<compile_context>
chip_gen: v5e
topology: v5e:2x2
jax: 0.10.0
libtpu: 0.0.40
codegen_flags: <defaults>
</compile_context>

<pallas_src>
import jax
import jax.numpy as jnp
from jax.experimental import pallas as pl
from jax.experimental.pallas import tpu as pltpu


# ----------------------------------------------------------------------------
# Kernel
# ----------------------------------------------------------------------------
def _make_seq2seq_kernel(num_layers, t_in, target_length, hidden_size, vpad):
    L, H = num_layers, hidden_size
    H3, H4 = 3 * hidden_size, 4 * hidden_size

    def lstm_cell(gates, c_prev):
        # Gate layout (reordered at param-build time): [ i | f | o | g ].
        sg = jax.nn.sigmoid(gates[:, 0:H3])        # sigmoid only on 3H lanes
        g_g = jnp.tanh(gates[:, H3:H4])            # tanh only on the g block
        i_g = sg[:, 0:H]
        f_g = sg[:, H:2 * H]
        o_g = sg[:, 2 * H:H3]
        c_new = f_g * c_prev + i_g * g_g
        h_new = o_g * jnp.tanh(c_new)
        return h_new, c_new

    def kernel(*refs):
        tokens_ref = refs[0]                               # SMEM [t_in] int32
        enc_x0_ref = refs[1]                               # VMEM [Vpad, 4H]
        enc_l0 = refs[2:4]                                 # (whh_t, b)
        pos = 4
        enc_rest = refs[pos:pos + 3 * (L - 1)]; pos += 3 * (L - 1)   # (wih_t, whh_t, b)/layer
        dec_eproj_ref = refs[pos]; pos += 1                # VMEM [Vpad, 4H]
        dec_sos_ref = refs[pos]; pos += 1                  # VMEM [1, 4H]
        dec_l0 = refs[pos:pos + 2]; pos += 2               # (whh_t, b)
        dec_rest = refs[pos:pos + 3 * (L - 1)]; pos += 3 * (L - 1)
        wv_ref = refs[pos]                                 # [H, Vpad]
        bv_ref = refs[pos + 1]                             # [1, Vpad] (pad cols = -1e30)
        out_ref = refs[pos + 2]                            # [target_length, Vpad]

        # ---------------- Encoder ----------------
        # Embedding gather as one-hot matmul against the precomputed
        # (enc_emb @ Wih_enc0^T) table: no dynamically-addressed VMEM row loads.
        row = jax.lax.broadcasted_iota(jnp.int32, (t_in, vpad), 0)
        col = jax.lax.broadcasted_iota(jnp.int32, (t_in, vpad), 1)
        onehot_in = jnp.zeros((t_in, vpad), jnp.float32)
        for t in range(t_in):
            onehot_in = jnp.where((row == t) & (col == tokens_ref[t]),
                                  1.0, onehot_in)

        enc_h, enc_c = [], []
        x = None
        for l in range(L):
            if l == 0:
                whh_t = enc_l0[0][...]                     # only the layer in flight
                b = enc_l0[1][...]
                gx = jnp.dot(onehot_in, enc_x0_ref[...],
                             preferred_element_type=jnp.float32) + b
            else:
                base = 3 * (l - 1)
                whh_t = enc_rest[base + 1][...]
                b = enc_rest[base + 2][...]
                gx = jnp.dot(x, enc_rest[base][...],
                             preferred_element_type=jnp.float32) + b
            h = jnp.zeros((1, H), jnp.float32)
            c = jnp.zeros((1, H), jnp.float32)
            ys = []
            for t in range(t_in):                          # unrolled recurrence
                gates = gx[t:t + 1, :] + jnp.dot(
                    h, whh_t, preferred_element_type=jnp.float32)
                h, c = lstm_cell(gates, c)
                ys.append(h)
            x = jnp.concatenate(ys, axis=0)                # [t_in, H] -> next layer
            enc_h.append(h)
            enc_c.append(c)

        # ---------------- Decoder (greedy rollout, decoder_hidden = enc_hidden) ---
        # TODO(synk): explicit MXU weight residency (matmul_push_rhs across the
        # serial steps) is a further v5e/v6e win; kept on jnp.dot for portability.
        vocab_iota = jax.lax.broadcasted_iota(jnp.int32, (1, vpad), 1)
        h_st = list(enc_h)
        c_st = list(enc_c)
        gx0 = dec_sos_ref[...]                             # precomputed SOS projection
        for i in range(target_length):                     # unrolled greedy decode
            # Layer 0: gates = emb_proj(token) + h @ Whh0^T + b0 (no concat).
            gates = (gx0
                     + jnp.dot(h_st[0], dec_l0[0][...],
                               preferred_element_type=jnp.float32)
                     + dec_l0[1][...])
            h_new, c_new = lstm_cell(gates, c_st[0])
            h_st[0] = h_new
            c_st[0] = c_new
            x_t = h_new
            for l in range(1, L):                          # layers > 0: two small dots
                base = 3 * (l - 1)
                gates = (jnp.dot(x_t, dec_rest[base][...],
                                 preferred_element_type=jnp.float32)
                         + jnp.dot(h_st[l], dec_rest[base + 1][...],
                                   preferred_element_type=jnp.float32)
                         + dec_rest[base + 2][...])
                h_new, c_new = lstm_cell(gates, c_st[l])
                h_st[l] = h_new
                c_st[l] = c_new
                x_t = h_new

            logits = jnp.dot(x_t, wv_ref[...],
                             preferred_element_type=jnp.float32) + bv_ref[...]
            out_ref[pl.ds(i, 1), :] = logits               # lane-dense per-step store

            if i + 1 < target_length:
                # Vector-domain greedy feedback: argmax (first index on ties) ->
                # one-hot -> next-step layer-0 gate projection.  No scalar
                # round-trip, no dynamic embedding load.
                m = jnp.max(logits, axis=1, keepdims=True)             # [1,1]
                cand = jnp.where(logits == m, vocab_iota, vpad)        # [1,Vpad]
                amin = jnp.min(cand, axis=1, keepdims=True)            # [1,1]
                onehot = (vocab_iota == amin).astype(jnp.float32)      # [1,Vpad]
                gx0 = jnp.dot(onehot, dec_eproj_ref[...],
                              preferred_element_type=jnp.float32)      # [1,4H]

    return kernel


# ----------------------------------------------------------------------------
# Parameter construction (nn.Embedding / nn.LSTM / nn.Linear shapes; biases
# pre-summed; gates reordered [i,f,g,o] -> [i,f,o,g]; embedding tables folded
# through the layer-0 input projections; vocab dim lane-padded to 128).
# ----------------------------------------------------------------------------
def _reorder_gates(w, H):
    # PyTorch LSTM gate blocks [i, f, g, o] -> kernel layout [i, f, o, g].
    return jnp.concatenate([w[0:H], w[H:2 * H], w[3 * H:4 * H], w[2 * H:3 * H]],
                           axis=0)


def make_params(key, vocab_size, emb_dim, hidden_size, num_layers,
                sos_token_idx, eos_token_idx):
    H = hidden_size
    vpad = max(128, ((vocab_size + 127) // 128) * 128)

    def uni(k, shape, scale):
        return jax.random.uniform(k, shape, jnp.float32, -scale, scale)

    keys = iter(jax.random.split(key, 64))
    kscale = 1.0 / (hidden_size ** 0.5)

    def raw_lstm_stack():
        layers = []
        for l in range(num_layers):
            in_dim = emb_dim if l == 0 else H
            w_ih = uni(next(keys), (4 * H, in_dim), kscale)
            w_hh = uni(next(keys), (4 * H, H), kscale)
            b_ih = uni(next(keys), (4 * H,), kscale)
            b_hh = uni(next(keys), (4 * H,), kscale)
            layers.append((_reorder_gates(w_ih, H), _reorder_gates(w_hh, H),
                           _reorder_gates(b_ih + b_hh, H)))
        return layers

    enc_raw = raw_lstm_stack()
    dec_raw = raw_lstm_stack()
    enc_emb = jax.random.normal(next(keys), (vocab_size, emb_dim), jnp.float32)
    dec_emb = jax.random.normal(next(keys), (vocab_size, emb_dim), jnp.float32)
    lin_w = uni(next(keys), (vocab_size, H), kscale)          # [V, H]
    lin_b = uni(next(keys), (vocab_size,), kscale)

    def pad_rows(a, n):
        return jnp.pad(a, ((0, n - a.shape[0]), (0, 0)))

    # Encoder layer 0: embedding folded through the input projection.
    enc_x0_proj = pad_rows(enc_emb @ enc_raw[0][0].T, vpad)   # [Vpad, 4H]
    enc_layers = [(enc_raw[0][1].T, enc_raw[0][2][None, :])]  # (whh_t, b)
    for l in range(1, num_layers):
        w_ih, w_hh, b = enc_raw[l]
        enc_layers.append((w_ih.T, w_hh.T, b[None, :]))

    # Decoder layer 0: Eproj for the one-hot greedy-feedback path.
    dec_eproj = pad_rows(dec_emb @ dec_raw[0][0].T, vpad)     # [Vpad, 4H]
    dec_sos_gx = dec_emb[sos_token_idx:sos_token_idx + 1] @ dec_raw[0][0].T  # [1, 4H]
    dec_layers = [(dec_raw[0][1].T, dec_raw[0][2][None, :])]
    for l in range(1, num_layers):
        w_ih, w_hh, b = dec_raw[l]
        dec_layers.append((w_ih.T, w_hh.T, b[None, :]))

    # Vocab projection, lane-padded; padded logits forced to -1e30 so the
    # greedy argmax can never select a padding column.
    wv_pad = jnp.pad(lin_w.T, ((0, 0), (0, vpad - vocab_size)))          # [H, Vpad]
    bv_pad = jnp.concatenate(
        [lin_b, jnp.full((vpad - vocab_size,), -1e30, jnp.float32)])[None, :]

    return dict(
        num_layers=num_layers, hidden_size=hidden_size, vocab_size=vocab_size,
        vpad=vpad, sos=sos_token_idx, eos=eos_token_idx,
        enc_x0_proj=enc_x0_proj, enc_layers=enc_layers,
        dec_eproj=dec_eproj, dec_sos_gx=dec_sos_gx, dec_layers=dec_layers,
        wv_pad=wv_pad, bv_pad=bv_pad,
    )


# ----------------------------------------------------------------------------
# Seq2Seq forward (prediction mode: outputs=None, teacher_forcing_prob=0.0).
# One fused pallas_call for the entire forward pass.
# ----------------------------------------------------------------------------
def seq2seq_forward(params, inputs):
    # inputs: [1, T_in] int32 token ids (single example, like the PyTorch module)
    tokens = inputs[0].astype(jnp.int32)
    t_in = int(tokens.shape[0])
    target_length = 2 * t_in
    L = params['num_layers']
    V = params['vocab_size']
    vpad = params['vpad']

    flat = [params['enc_x0_proj']]
    flat += [params['enc_layers'][0][0], params['enc_layers'][0][1]]
    for (wih_t, whh_t, b) in params['enc_layers'][1:]:
        flat += [wih_t, whh_t, b]
    flat += [params['dec_eproj'], params['dec_sos_gx']]
    flat += [params['dec_layers'][0][0], params['dec_layers'][0][1]]
    for (wih_t, whh_t, b) in params['dec_layers'][1:]:
        flat += [wih_t, whh_t, b]
    flat += [params['wv_pad'], params['bv_pad']]

    # TODO(synk): random.random()-based teacher forcing and the EOS early-break
    # (dynamic output truncation) have no static-shape Pallas equivalent; this
    # runs the deterministic greedy path for the full target_length.
    # TODO(synk): at realistic vocab/hidden sizes the embedding / vocab
    # projection tables should stay in HBM (memory_space=pl.ANY) and be tiled
    # over a grid with pl.Buffered multi-buffering (esp. v7x's 64 MiB VMEM).
    kernel = _make_seq2seq_kernel(L, t_in, target_length,
                                  params['hidden_size'], vpad)
    smem = pl.BlockSpec(memory_space=pltpu.MemorySpace.SMEM)
    vmem = pl.BlockSpec(memory_space=pltpu.MemorySpace.VMEM)
    out = pl.pallas_call(
        kernel,
        out_shape=jax.ShapeDtypeStruct((target_length, vpad), jnp.float32),
        in_specs=[smem] + [vmem] * len(flat),
        out_specs=vmem,
    )(tokens, *flat)
    return out[:, :V]                                      # drop lane padding


if __name__ == "__main__":
    VOCAB, EMB, HIDDEN, LAYERS, SEQ = 32, 16, 32, 2, 8
    SOS, EOS = 1, 2

    key = jax.random.PRNGKey(0)
    k_params, k_inputs = jax.random.split(key)
    params = make_params(k_params, VOCAB, EMB, HIDDEN, LAYERS, SOS, EOS)
    inputs = jax.random.randint(k_inputs, (1, SEQ), 0, VOCAB, dtype=jnp.int32)

    out = seq2seq_forward(params, inputs)
    out = jax.block_until_ready(out)
    assert out.shape == (2 * SEQ, VOCAB) and out.dtype == jnp.float32
    assert bool(jnp.all(jnp.isfinite(out)))
    print("KERNEL_OK")
</pallas_src>

<mosaic_0001>
module attributes {stable_mosaic.version = 11 : i64} {
  func.func @kernel(%arg0: memref<8xi32, #tpu.memory_space<smem>>, %arg1: memref<128x128xf32, #tpu.memory_space<vmem>>, %arg2: memref<32x128xf32, #tpu.memory_space<vmem>>, %arg3: memref<1x128xf32, #tpu.memory_space<vmem>>, %arg4: memref<32x128xf32, #tpu.memory_space<vmem>>, %arg5: memref<32x128xf32, #tpu.memory_space<vmem>>, %arg6: memref<1x128xf32, #tpu.memory_space<vmem>>, %arg7: memref<128x128xf32, #tpu.memory_space<vmem>>, %arg8: memref<1x128xf32, #tpu.memory_space<vmem>>, %arg9: memref<32x128xf32, #tpu.memory_space<vmem>>, %arg10: memref<1x128xf32, #tpu.memory_space<vmem>>, %arg11: memref<32x128xf32, #tpu.memory_space<vmem>>, %arg12: memref<32x128xf32, #tpu.memory_space<vmem>>, %arg13: memref<1x128xf32, #tpu.memory_space<vmem>>, %arg14: memref<32x128xf32, #tpu.memory_space<vmem>>, %arg15: memref<1x128xf32, #tpu.memory_space<vmem>>, %arg16: memref<16x128xf32, #tpu.memory_space<vmem>>) attributes {dimension_semantics = [], scalar_prefetch = 0 : i64, scratch_operands = 0 : i64, tpu.core_type = #tpu.core_type<tc>} {
    %0 = tpu.iota {dimensions = array<i32: 0>} : vector<8x128xi32>
    %1 = tpu.iota {dimensions = array<i32: 1>} : vector<8x128xi32>
    %cst = arith.constant 0.000000e+00 : f32
    %2 = vector.broadcast %cst : f32 to vector<8x128xf32>
    %c0_i32 = arith.constant 0 : i32
    %3 = vector.broadcast %c0_i32 : i32 to vector<8x128xi32>
    %4 = arith.cmpi eq, %0, %3 : vector<8x128xi32>
    %c0 = arith.constant 0 : index
    %5 = memref.load %arg0[%c0] : memref<8xi32, #tpu.memory_space<smem>>
    %6 = vector.broadcast %5 : i32 to vector<8x128xi32>
    %7 = arith.cmpi eq, %1, %6 : vector<8x128xi32>
    %8 = arith.andi %4, %7 : vector<8x128xi1>
    %cst_0 = arith.constant 1.000000e+00 : f32
    %9 = vector.broadcast %cst_0 : f32 to vector<8x128xf32>
    %10 = arith.select %8, %9, %2 : vector<8x128xi1>, vector<8x128xf32>
    %c1_i32 = arith.constant 1 : i32
    %11 = vector.broadcast %c1_i32 : i32 to vector<8x128xi32>
    %12 = arith.cmpi eq, %0, %11 : vector<8x128xi32>
    %c1 = arith.constant 1 : index
    %13 = memref.load %arg0[%c1] : memref<8xi32, #tpu.memory_space<smem>>
    %14 = vector.broadcast %13 : i32 to vector<8x128xi32>
    %15 = arith.cmpi eq, %1, %14 : vector<8x128xi32>
    %16 = arith.andi %12, %15 : vector<8x128xi1>
    %cst_1 = arith.constant 1.000000e+00 : f32
    %17 = vector.broadcast %cst_1 : f32 to vector<8x128xf32>
    %18 = arith.select %16, %17, %10 : vector<8x128xi1>, vector<8x128xf32>
    %c2_i32 = arith.constant 2 : i32
    %19 = vector.broadcast %c2_i32 : i32 to vector<8x128xi32>
    %20 = arith.cmpi eq, %0, %19 : vector<8x128xi32>
    %c2 = arith.constant 2 : index
    %21 = memref.load %arg0[%c2] : memref<8xi32, #tpu.memory_space<smem>>
    %22 = vector.broadcast %21 : i32 to vector<8x128xi32>
    %23 = arith.cmpi eq, %1, %22 : vector<8x128xi32>
    %24 = arith.andi %20, %23 : vector<8x128xi1>
    %cst_2 = arith.constant 1.000000e+00 : f32
    %25 = vector.broadcast %cst_2 : f32 to vector<8x128xf32>
    %26 = arith.select %24, %25, %18 : vector<8x128xi1>, vector<8x128xf32>
    %c3_i32 = arith.constant 3 : i32
    %27 = vector.broadcast %c3_i32 : i32 to vector<8x128xi32>
    %28 = arith.cmpi eq, %0, %27 : vector<8x128xi32>
    %c3 = arith.constant 3 : index
    %29 = memref.load %arg0[%c3] : memref<8xi32, #tpu.memory_space<smem>>
    %30 = vector.broadcast %29 : i32 to vector<8x128xi32>
    %31 = arith.cmpi eq, %1, %30 : vector<8x128xi32>
    %32 = arith.andi %28, %31 : vector<8x128xi1>
    %cst_3 = arith.constant 1.000000e+00 : f32
    %33 = vector.broadcast %cst_3 : f32 to vector<8x128xf32>
    %34 = arith.select %32, %33, %26 : vector<8x128xi1>, vector<8x128xf32>
    %c4_i32 = arith.constant 4 : i32
    %35 = vector.broadcast %c4_i32 : i32 to vector<8x128xi32>
    %36 = arith.cmpi eq, %0, %35 : vector<8x128xi32>
    %c4 = arith.constant 4 : index
    %37 = memref.load %arg0[%c4] : memref<8xi32, #tpu.memory_space<smem>>
    %38 = vector.broadcast %37 : i32 to vector<8x128xi32>
    %39 = arith.cmpi eq, %1, %38 : vector<8x128xi32>
    %40 = arith.andi %36, %39 : vector<8x128xi1>
    %cst_4 = arith.constant 1.000000e+00 : f32
    %41 = vector.broadcast %cst_4 : f32 to vector<8x128xf32>
    %42 = arith.select %40, %41, %34 : vector<8x128xi1>, vector<8x128xf32>
    %c5_i32 = arith.constant 5 : i32
    %43 = vector.broadcast %c5_i32 : i32 to vector<8x128xi32>
    %44 = arith.cmpi eq, %0, %43 : vector<8x128xi32>
    %c5 = arith.constant 5 : index
    %45 = memref.load %arg0[%c5] : memref<8xi32, #tpu.memory_space<smem>>
    %46 = vector.broadcast %45 : i32 to vector<8x128xi32>
    %47 = arith.cmpi eq, %1, %46 : vector<8x128xi32>
    %48 = arith.andi %44, %47 : vector<8x128xi1>
    %cst_5 = arith.constant 1.000000e+00 : f32
    %49 = vector.broadcast %cst_5 : f32 to vector<8x128xf32>
    %50 = arith.select %48, %49, %42 : vector<8x128xi1>, vector<8x128xf32>
    %c6_i32 = arith.constant 6 : i32
    %51 = vector.broadcast %c6_i32 : i32 to vector<8x128xi32>
    %52 = arith.cmpi eq, %0, %51 : vector<8x128xi32>
    %c6 = arith.constant 6 : index
    %53 = memref.load %arg0[%c6] : memref<8xi32, #tpu.memory_space<smem>>
    %54 = vector.broadcast %53 : i32 to vector<8x128xi32>
    %55 = arith.cmpi eq, %1, %54 : vector<8x128xi32>
    %56 = arith.andi %52, %55 : vector<8x128xi1>
    %cst_6 = arith.constant 1.000000e+00 : f32
    %57 = vector.broadcast %cst_6 : f32 to vector<8x128xf32>
    %58 = arith.select %56, %57, %50 : vector<8x128xi1>, vector<8x128xf32>
    %c7_i32 = arith.constant 7 : i32
    %59 = vector.broadcast %c7_i32 : i32 to vector<8x128xi32>
    %60 = arith.cmpi eq, %0, %59 : vector<8x128xi32>
    %c7 = arith.constant 7 : index
    %61 = memref.load %arg0[%c7] : memref<8xi32, #tpu.memory_space<smem>>
    %62 = vector.broadcast %61 : i32 to vector<8x128xi32>
    %63 = arith.cmpi eq, %1, %62 : vector<8x128xi32>
    %64 = arith.andi %60, %63 : vector<8x128xi1>
    %cst_7 = arith.constant 1.000000e+00 : f32
    %65 = vector.broadcast %cst_7 : f32 to vector<8x128xf32>
    %66 = arith.select %64, %65, %58 : vector<8x128xi1>, vector<8x128xf32>
    %c0_8 = arith.constant 0 : index
    %c0_9 = arith.constant 0 : index
    %67 = vector.load %arg2[%c0_8, %c0_9] : memref<32x128xf32, #tpu.memory_space<vmem>>, vector<32x128xf32>
    %c0_10 = arith.constant 0 : index
    %c0_11 = arith.constant 0 : index
    %68 = vector.load %arg3[%c0_10, %c0_11] : memref<1x128xf32, #tpu.memory_space<vmem>>, vector<1x128xf32>
    %c0_12 = arith.constant 0 : index
    %c0_13 = arith.constant 0 : index
    %69 = vector.load %arg1[%c0_12, %c0_13] : memref<128x128xf32, #tpu.memory_space<vmem>>, vector<128x128xf32>
    %cst_14 = arith.constant dense<0.000000e+00> : vector<8x128xf32>
    %70 = tpu.matmul %66, %69, %cst_14 {dimension_numbers = #tpu.dot_dimension_numbers<[1], [0], [0], [1], [0, 0, 1, 1], [], []>} : vector<8x128xf32>, vector<128x128xf32>, vector<8x128xf32> -> vector<8x128xf32>
    %71 = vector.broadcast %68 : vector<1x128xf32> to vector<8x128xf32>
    %72 = arith.addf %70, %71 : vector<8x128xf32>
    %cst_15 = arith.constant 0.000000e+00 : f32
    %73 = vector.broadcast %cst_15 : f32 to vector<1x32xf32>
    %cst_16 = arith.constant 0.000000e+00 : f32
    %74 = vector.broadcast %cst_16 : f32 to vector<1x32xf32>
    %75 = vector.extract_strided_slice %72 {offsets = [0, 0], sizes = [1, 128], strides = [1, 1]} : vector<8x128xf32> to vector<1x128xf32>
    %cst_17 = arith.constant dense<0.000000e+00> : vector<1x128xf32>
    %76 = tpu.matmul %73, %67, %cst_17 {dimension_numbers = #tpu.dot_dimension_numbers<[1], [0], [0], [1], [0, 0, 1, 1], [], []>} : vector<1x32xf32>, vector<32x128xf32>, vector<1x128xf32> -> vector<1x128xf32>
    %77 = arith.addf %75, %76 : vector<1x128xf32>
    %78 = vector.extract_strided_slice %77 {offsets = [0, 0], sizes = [1, 96], strides = [1, 1]} : vector<1x128xf32> to vector<1x96xf32>
    %79 = arith.negf %78 : vector<1x96xf32>
    %80 = math.exp %79 : vector<1x96xf32>
    %cst_18 = arith.constant 1.000000e+00 : f32
    %81 = vector.broadcast %cst_18 : f32 to vector<1x96xf32>
    %82 = arith.addf %81, %80 : vector<1x96xf32>
    %83 = arith.divf %81, %82 : vector<1x96xf32>
    %84 = vector.extract_strided_slice %77 {offsets = [0, 96], sizes = [1, 32], strides = [1, 1]} : vector<1x128xf32> to vector<1x32xf32>
    %85 = math.tanh %84 : vector<1x32xf32>
    %86 = vector.extract_strided_slice %83 {offsets = [0, 0], sizes = [1, 32], strides = [1, 1]} : vector<1x96xf32> to vector<1x32xf32>
    %87 = vector.extract_strided_slice %83 {offsets = [0, 32], sizes = [1, 32], strides = [1, 1]} : vector<1x96xf32> to vector<1x32xf32>
    %88 = vector.extract_strided_slice %83 {offsets = [0, 64], sizes = [1, 32], strides = [1, 1]} : vector<1x96xf32> to vector<1x32xf32>
    %89 = arith.mulf %87, %74 : vector<1x32xf32>
    %90 = arith.mulf %86, %85 : vector<1x32xf32>
    %91 = arith.addf %89, %90 : vector<1x32xf32>
    %92 = math.tanh %91 : vector<1x32xf32>
    %93 = arith.mulf %88, %92 : vector<1x32xf32>
    %94 = vector.extract_strided_slice %72 {offsets = [1, 0], sizes = [1, 128], strides = [1, 1]} : vector<8x128xf32> to vector<1x128xf32>
    %cst_19 = arith.constant dense<0.000000e+00> : vector<1x128xf32>
    %95 = tpu.matmul %93, %67, %cst_19 {dimension_numbers = #tpu.dot_dimension_numbers<[1], [0], [0], [1], [0, 0, 1, 1], [], []>} : vector<1x32xf32>, vector<32x128xf32>, vector<1x128xf32> -> vector<1x128xf32>
    %96 = arith.addf %94, %95 : vector<1x128xf32>
    %97 = vector.extract_strided_slice %96 {offsets = [0, 0], sizes = [1, 96], strides = [1, 1]} : vector<1x128xf32> to vector<1x96xf32>
    %98 = arith.negf %97 : vector<1x96xf32>
    %99 = math.exp %98 : vector<1x96xf32>
    %cst_20 = arith.constant 1.000000e+00 : f32
    %100 = vector.broadcast %cst_20 : f32 to vector<1x96xf32>
    %101 = arith.addf %100, %99 : vector<1x96xf32>
    %102 = arith.divf %100, %101 : vector<1x96xf32>
    %103 = vector.extract_strided_slice %96 {offsets = [0, 96], sizes = [1, 32], strides = [1, 1]} : vector<1x128xf32> to vector<1x32xf32>
    %104 = math.tanh %103 : vector<1x32xf32>
    %105 = vector.extract_strided_slice %102 {offsets = [0, 0], sizes = [1, 32], strides = [1, 1]} : vector<1x96xf32> to vector<1x32xf32>
    %106 = vector.extract_strided_slice %102 {offsets = [0, 32], sizes = [1, 32], strides = [1, 1]} : vector<1x96xf32> to vector<1x32xf32>
    %107 = vector.extract_strided_slice %102 {offsets = [0, 64], sizes = [1, 32], strides = [1, 1]} : vector<1x96xf32> to vector<1x32xf32>
    %108 = arith.mulf %106, %91 : vector<1x32xf32>
    %109 = arith.mulf %105, %104 : vector<1x32xf32>
    %110 = arith.addf %108, %109 : vector<1x32xf32>
    %111 = math.tanh %110 : vector<1x32xf32>
    %112 = arith.mulf %107, %111 : vector<1x32xf32>
    %113 = vector.extract_strided_slice %72 {offsets = [2, 0], sizes = [1, 128], strides = [1, 1]} : vector<8x128xf32> to vector<1x128xf32>
    %cst_21 = arith.constant dense<0.000000e+00> : vector<1x128xf32>
    %114 = tpu.matmul %112, %67, %cst_21 {dimension_numbers = #tpu.dot_dimension_numbers<[1], [0], [0], [1], [0, 0, 1, 1], [], []>} : vector<1x32xf32>, vector<32x128xf32>, vector<1x128xf32> -> vector<1x128xf32>
    %115 = arith.addf %113, %114 : vector<1x128xf32>
    %116 = vector.extract_strided_slice %115 {offsets = [0, 0], sizes = [1, 96], strides = [1, 1]} : vector<1x128xf32> to vector<1x96xf32>
    %117 = arith.negf %116 : vector<1x96xf32>
    %118 = math.exp %117 : vector<1x96xf32>
    %cst_22 = arith.constant 1.000000e+00 : f32
    %119 = vector.broadcast %cst_22 : f32 to vector<1x96xf32>
    %120 = arith.addf %119, %118 : vector<1x96xf32>
    %121 = arith.divf %119, %120 : vector<1x96xf32>
    %122 = vector.extract_strided_slice %115 {offsets = [0, 96], sizes = [1, 32], strides = [1, 1]} : vector<1x128xf32> to vector<1x32xf32>
    %123 = math.tanh %122 : vector<1x32xf32>
    %124 = vector.extract_strided_slice %121 {offsets = [0, 0], sizes = [1, 32], strides = [1, 1]} : vector<1x96xf32> to vector<1x32xf32>
    %125 = vector.extract_strided_slice %121 {offsets = [0, 32], sizes = [1, 32], strides = [1, 1]} : vector<1x96xf32> to vector<1x32xf32>
    %126 = vector.extract_strided_slice %121 {offsets = [0, 64], sizes = [1, 32], strides = [1, 1]} : vector<1x96xf32> to vector<1x32xf32>
    %127 = arith.mulf %125, %110 : vector<1x32xf32>
    %128 = arith.mulf %124, %123 : vector<1x32xf32>
    %129 = arith.addf %127, %128 : vector<1x32xf32>
    %130 = math.tanh %129 : vector<1x32xf32>
    %131 = arith.mulf %126, %130 : vector<1x32xf32>
    %132 = vector.extract_strided_slice %72 {offsets = [3, 0], sizes = [1, 128], strides = [1, 1]} : vector<8x128xf32> to vector<1x128xf32>
    %cst_23 = arith.constant dense<0.000000e+00> : vector<1x128xf32>
    %133 = tpu.matmul %131, %67, %cst_23 {dimension_numbers = #tpu.dot_dimension_numbers<[1], [0], [0], [1], [0, 0, 1, 1], [], []>} : vector<1x32xf32>, vector<32x128xf32>, vector<1x128xf32> -> vector<1x128xf32>
    %134 = arith.addf %132, %133 : vector<1x128xf32>
    %135 = vector.extract_strided_slice %134 {offsets = [0, 0], sizes = [1, 96], strides = [1, 1]} : vector<1x128xf32> to vector<1x96xf32>
    %136 = arith.negf %135 : vector<1x96xf32>
    %137 = math.exp %136 : vector<1x96xf32>
    %cst_24 = arith.constant 1.000000e+00 : f32
    %138 = vector.broadcast %cst_24 : f32 to vector<1x96xf32>
    %139 = arith.addf %138, %137 : vector<1x96xf32>
    %140 = arith.divf %138, %139 : vector<1x96xf32>
    %141 = vector.extract_strided_slice %134 {offsets = [0, 96], sizes = [1, 32], strides = [1, 1]} : vector<1x128xf32> to vector<1x32xf32>
    %142 = math.tanh %141 : vector<1x32xf32>
    %143 = vector.extract_strided_slice %140 {offsets = [0, 0], sizes = [1, 32], strides = [1, 1]} : vector<1x96xf32> to vector<1x32xf32>
    %144 = vector.extract_strided_slice %140 {offsets = [0, 32], sizes = [1, 32], strides = [1, 1]} : vector<1x96xf32> to vector<1x32xf32>
    %145 = vector.extract_strided_slice %140 {offsets = [0, 64], sizes = [1, 32], strides = [1, 1]} : vector<1x96xf32> to vector<1x32xf32>
    %146 = arith.mulf %144, %129 : vector<1x32xf32>
    %147 = arith.mulf %143, %142 : vector<1x32xf32>
    %148 = arith.addf %146, %147 : vector<1x32xf32>
    %149 = math.tanh %148 : vector<1x32xf32>
    %150 = arith.mulf %145, %149 : vector<1x32xf32>
    %151 = vector.extract_strided_slice %72 {offsets = [4, 0], sizes = [1, 128], strides = [1, 1]} : vector<8x128xf32> to vector<1x128xf32>
    %cst_25 = arith.constant dense<0.000000e+00> : vector<1x128xf32>
    %152 = tpu.matmul %150, %67, %cst_25 {dimension_numbers = #tpu.dot_dimension_numbers<[1], [0], [0], [1], [0, 0, 1, 1], [], []>} : vector<1x32xf32>, vector<32x128xf32>, vector<1x128xf32> -> vector<1x128xf32>
    %153 = arith.addf %151, %152 : vector<1x128xf32>
    %154 = vector.extract_strided_slice %153 {offsets = [0, 0], sizes = [1, 96], strides = [1, 1]} : vector<1x128xf32> to vector<1x96xf32>
    %155 = arith.negf %154 : vector<1x96xf32>
    %156 = math.exp %155 : vector<1x96xf32>
    %cst_26 = arith.constant 1.000000e+00 : f32
    %157 = vector.broadcast %cst_26 : f32 to vector<1x96xf32>
    %158 = arith.addf %157, %156 : vector<1x96xf32>
    %159 = arith.divf %157, %158 : vector<1x96xf32>
    %160 = vector.extract_strided_slice %153 {offsets = [0, 96], sizes = [1, 32], strides = [1, 1]} : vector<1x128xf32> to vector<1x32xf32>
    %161 = math.tanh %160 : vector<1x32xf32>
    %162 = vector.extract_strided_slice %159 {offsets = [0, 0], sizes = [1, 32], strides = [1, 1]} : vector<1x96xf32> to vector<1x32xf32>
    %163 = vector.extract_strided_slice %159 {offsets = [0, 32], sizes = [1, 32], strides = [1, 1]} : vector<1x96xf32> to vector<1x32xf32>
    %164 = vector.extract_strided_slice %159 {offsets = [0, 64], sizes = [1, 32], strides = [1, 1]} : vector<1x96xf32> to vector<1x32xf32>
    %165 = arith.mulf %163, %148 : vector<1x32xf32>
    %166 = arith.mulf %162, %161 : vector<1x32xf32>
    %167 = arith.addf %165, %166 : vector<1x32xf32>
    %168 = math.tanh %167 : vector<1x32xf32>
    %169 = arith.mulf %164, %168 : vector<1x32xf32>
    %170 = vector.extract_strided_slice %72 {offsets = [5, 0], sizes = [1, 128], strides = [1, 1]} : vector<8x128xf32> to vector<1x128xf32>
    %cst_27 = arith.constant dense<0.000000e+00> : vector<1x128xf32>
    %171 = tpu.matmul %169, %67, %cst_27 {dimension_numbers = #tpu.dot_dimension_numbers<[1], [0], [0], [1], [0, 0, 1, 1], [], []>} : vector<1x32xf32>, vector<32x128xf32>, vector<1x128xf32> -> vector<1x128xf32>
    %172 = arith.addf %170, %171 : vector<1x128xf32>
    %173 = vector.extract_strided_slice %172 {offsets = [0, 0], sizes = [1, 96], strides = [1, 1]} : vector<1x128xf32> to vector<1x96xf32>
    %174 = arith.negf %173 : vector<1x96xf32>
    %175 = math.exp %174 : vector<1x96xf32>
    %cst_28 = arith.constant 1.000000e+00 : f32
    %176 = vector.broadcast %cst_28 : f32 to vector<1x96xf32>
    %177 = arith.addf %176, %175 : vector<1x96xf32>
    %178 = arith.divf %176, %177 : vector<1x96xf32>
    %179 = vector.extract_strided_slice %172 {offsets = [0, 96], sizes = [1, 32], strides = [1, 1]} : vector<1x128xf32> to vector<1x32xf32>
    %180 = math.tanh %179 : vector<1x32xf32>
    %181 = vector.extract_strided_slice %178 {offsets = [0, 0], sizes = [1, 32], strides = [1, 1]} : vector<1x96xf32> to vector<1x32xf32>
    %182 = vector.extract_strided_slice %178 {offsets = [0, 32], sizes = [1, 32], strides = [1, 1]} : vector<1x96xf32> to vector<1x32xf32>
    %183 = vector.extract_strided_slice %178 {offsets = [0, 64], sizes = [1, 32], strides = [1, 1]} : vector<1x96xf32> to vector<1x32xf32>
    %184 = arith.mulf %182, %167 : vector<1x32xf32>
    %185 = arith.mulf %181, %180 : vector<1x32xf32>
    %186 = arith.addf %184, %185 : vector<1x32xf32>
    %187 = math.tanh %186 : vector<1x32xf32>
    %188 = arith.mulf %183, %187 : vector<1x32xf32>
    %189 = vector.extract_strided_slice %72 {offsets = [6, 0], sizes = [1, 128], strides = [1, 1]} : vector<8x128xf32> to vector<1x128xf32>
    %cst_29 = arith.constant dense<0.000000e+00> : vector<1x128xf32>
    %190 = tpu.matmul %188, %67, %cst_29 {dimension_numbers = #tpu.dot_dimension_numbers<[1], [0], [0], [1], [0, 0, 1, 1], [], []>} : vector<1x32xf32>, vector<32x128xf32>, vector<1x128xf32> -> vector<1x128xf32>
    %191 = arith.addf %189, %190 : vector<1x128xf32>
    %192 = vector.extract_strided_slice %191 {offsets = [0, 0], sizes = [1, 96], strides = [1, 1]} : vector<1x128xf32> to vector<1x96xf32>
    %193 = arith.negf %192 : vector<1x96xf32>
    %194 = math.exp %193 : vector<1x96xf32>
    %cst_30 = arith.constant 1.000000e+00 : f32
    %195 = vector.broadcast %cst_30 : f32 to vector<1x96xf32>
    %196 = arith.addf %195, %194 : vector<1x96xf32>
    %197 = arith.divf %195, %196 : vector<1x96xf32>
    %198 = vector.extract_strided_slice %191 {offsets = [0, 96], sizes = [1, 32], strides = [1, 1]} : vector<1x128xf32> to vector<1x32xf32>
    %199 = math.tanh %198 : vector<1x32xf32>
    %200 = vector.extract_strided_slice %197 {offsets = [0, 0], sizes = [1, 32], strides = [1, 1]} : vector<1x96xf32> to vector<1x32xf32>
    %201 = vector.extract_strided_slice %197 {offsets = [0, 32], sizes = [1, 32], strides = [1, 1]} : vector<1x96xf32> to vector<1x32xf32>
    %202 = vector.extract_strided_slice %197 {offsets = [0, 64], sizes = [1, 32], strides = [1, 1]} : vector<1x96xf32> to vector<1x32xf32>
    %203 = arith.mulf %201, %186 : vector<1x32xf32>
    %204 = arith.mulf %200, %199 : vector<1x32xf32>
    %205 = arith.addf %203, %204 : vector<1x32xf32>
    %206 = math.tanh %205 : vector<1x32xf32>
    %207 = arith.mulf %202, %206 : vector<1x32xf32>
    %208 = vector.extract_strided_slice %72 {offsets = [7, 0], sizes = [1, 128], strides = [1, 1]} : vector<8x128xf32> to vector<1x128xf32>
    %cst_31 = arith.constant dense<0.000000e+00> : vector<1x128xf32>
    %209 = tpu.matmul %207, %67, %cst_31 {dimension_numbers = #tpu.dot_dimension_numbers<[1], [0], [0], [1], [0, 0, 1, 1], [], []>} : vector<1x32xf32>, vector<32x128xf32>, vector<1x128xf32> -> vector<1x128xf32>
    %210 = arith.addf %208, %209 : vector<1x128xf32>
    %211 = vector.extract_strided_slice %210 {offsets = [0, 0], sizes = [1, 96], strides = [1, 1]} : vector<1x128xf32> to vector<1x96xf32>
    %212 = arith.negf %211 : vector<1x96xf32>
    %213 = math.exp %212 : vector<1x96xf32>
    %cst_32 = arith.constant 1.000000e+00 : f32
    %214 = vector.broadcast %cst_32 : f32 to vector<1x96xf32>
    %215 = arith.addf %214, %213 : vector<1x96xf32>
    %216 = arith.divf %214, %215 : vector<1x96xf32>
    %217 = vector.extract_strided_slice %210 {offsets = [0, 96], sizes = [1, 32], strides = [1, 1]} : vector<1x128xf32> to vector<1x32xf32>
    %218 = math.tanh %217 : vector<1x32xf32>
    %219 = vector.extract_strided_slice %216 {offsets = [0, 0], sizes = [1, 32], strides = [1, 1]} : vector<1x96xf32> to vector<1x32xf32>
    %220 = vector.extract_strided_slice %216 {offsets = [0, 32], sizes = [1, 32], strides = [1, 1]} : vector<1x96xf32> to vector<1x32xf32>
    %221 = vector.extract_strided_slice %216 {offsets = [0, 64], sizes = [1, 32], strides = [1, 1]} : vector<1x96xf32> to vector<1x32xf32>
    %222 = arith.mulf %220, %205 : vector<1x32xf32>
    %223 = arith.mulf %219, %218 : vector<1x32xf32>
    %224 = arith.addf %222, %223 : vector<1x32xf32>
    %225 = math.tanh %224 : vector<1x32xf32>
    %226 = arith.mulf %221, %225 : vector<1x32xf32>
    %227 = tpu.concatenate %93, %112, %131, %150, %169, %188, %207, %226 in 0 : vector<1x32xf32>, vector<1x32xf32>, vector<1x32xf32>, vector<1x32xf32>, vector<1x32xf32>, vector<1x32xf32>, vector<1x32xf32>, vector<1x32xf32> -> vector<8x32xf32>
    %c0_33 = arith.constant 0 : index
    %c0_34 = arith.constant 0 : index
    %228 = vector.load %arg5[%c0_33, %c0_34] : memref<32x128xf32, #tpu.memory_space<vmem>>, vector<32x128xf32>
    %c0_35 = arith.constant 0 : index
    %c0_36 = arith.constant 0 : index
    %229 = vector.load %arg6[%c0_35, %c0_36] : memref<1x128xf32, #tpu.memory_space<vmem>>, vector<1x128xf32>
    %c0_37 = arith.constant 0 : index
    %c0_38 = arith.constant 0 : index
    %230 = vector.load %arg4[%c0_37, %c0_38] : memref<32x128xf32, #tpu.memory_space<vmem>>, vector<32x128xf32>
    %cst_39 = arith.constant dense<0.000000e+00> : vector<8x128xf32>
    %231 = tpu.matmul %227, %230, %cst_39 {dimension_numbers = #tpu.dot_dimension_numbers<[1], [0], [0], [1], [0, 0, 1, 1], [], []>} : vector<8x32xf32>, vector<32x128xf32>, vector<8x128xf32> -> vector<8x128xf32>
    %232 = vector.broadcast %229 : vector<1x128xf32> to vector<8x128xf32>
    %233 = arith.addf %231, %232 : vector<8x128xf32>
    %cst_40 = arith.constant 0.000000e+00 : f32
    %234 = vector.broadcast %cst_40 : f32 to vector<1x32xf32>
    %cst_41 = arith.constant 0.000000e+00 : f32
    %235 = vector.broadcast %cst_41 : f32 to vector<1x32xf32>
    %236 = vector.extract_strided_slice %233 {offsets = [0, 0], sizes = [1, 128], strides = [1, 1]} : vector<8x128xf32> to vector<1x128xf32>
    %cst_42 = arith.constant dense<0.000000e+00> : vector<1x128xf32>
    %237 = tpu.matmul %234, %228, %cst_42 {dimension_numbers = #tpu.dot_dimension_numbers<[1], [0], [0], [1], [0, 0, 1, 1], [], []>} : vector<1x32xf32>, vector<32x128xf32>, vector<1x128xf32> -> vector<1x128xf32>
    %238 = arith.addf %236, %237 : vector<1x128xf32>
    %239 = vector.extract_strided_slice %238 {offsets = [0, 0], sizes = [1, 96], strides = [1, 1]} : vector<1x128xf32> to vector<1x96xf32>
    %240 = arith.negf %239 : vector<1x96xf32>
    %241 = math.exp %240 : vector<1x96xf32>
    %cst_43 = arith.constant 1.000000e+00 : f32
    %242 = vector.broadcast %cst_43 : f32 to vector<1x96xf32>
    %243 = arith.addf %242, %241 : vector<1x96xf32>
    %244 = arith.divf %242, %243 : vector<1x96xf32>
    %245 = vector.extract_strided_slice %238 {offsets = [0, 96], sizes = [1, 32], strides = [1, 1]} : vector<1x128xf32> to vector<1x32xf32>
    %246 = math.tanh %245 : vector<1x32xf32>
    %247 = vector.extract_strided_slice %244 {offsets = [0, 0], sizes = [1, 32], strides = [1, 1]} : vector<1x96xf32> to vector<1x32xf32>
    %248 = vector.extract_strided_slice %244 {offsets = [0, 32], sizes = [1, 32], strides = [1, 1]} : vector<1x96xf32> to vector<1x32xf32>
    %249 = vector.extract_strided_slice %244 {offsets = [0, 64], sizes = [1, 32], strides = [1, 1]} : vector<1x96xf32> to vector<1x32xf32>
    %250 = arith.mulf %248, %235 : vector<1x32xf32>
    %251 = arith.mulf %247, %246 : vector<1x32xf32>
    %252 = arith.addf %250, %251 : vector<1x32xf32>
    %253 = math.tanh %252 : vector<1x32xf32>
    %254 = arith.mulf %249, %253 : vector<1x32xf32>
    %255 = vector.extract_strided_slice %233 {offsets = [1, 0], sizes = [1, 128], strides = [1, 1]} : vector<8x128xf32> to vector<1x128xf32>
    %cst_44 = arith.constant dense<0.000000e+00> : vector<1x128xf32>
    %256 = tpu.matmul %254, %228, %cst_44 {dimension_numbers = #tpu.dot_dimension_numbers<[1], [0], [0], [1], [0, 0, 1, 1], [], []>} : vector<1x32xf32>, vector<32x128xf32>, vector<1x128xf32> -> vector<1x128xf32>
    %257 = arith.addf %255, %256 : vector<1x128xf32>
    %258 = vector.extract_strided_slice %257 {offsets = [0, 0], sizes = [1, 96], strides = [1, 1]} : vector<1x128xf32> to vector<1x96xf32>
    %259 = arith.negf %258 : vector<1x96xf32>
    %260 = math.exp %259 : vector<1x96xf32>
    %cst_45 = arith.constant 1.000000e+00 : f32
    %261 = vector.broadcast %cst_45 : f32 to vector<1x96xf32>
    %262 = arith.addf %261, %260 : vector<1x96xf32>
    %263 = arith.divf %261, %262 : vector<1x96xf32>
    %264 = vector.extract_strided_slice %257 {offsets = [0, 96], sizes = [1, 32], strides = [1, 1]} : vector<1x128xf32> to vector<1x32xf32>
    %265 = math.tanh %264 : vector<1x32xf32>
    %266 = vector.extract_strided_slice %263 {offsets = [0, 0], sizes = [1, 32], strides = [1, 1]} : vector<1x96xf32> to vector<1x32xf32>
    %267 = vector.extract_strided_slice %263 {offsets = [0, 32], sizes = [1, 32], strides = [1, 1]} : vector<1x96xf32> to vector<1x32xf32>
    %268 = vector.extract_strided_slice %263 {offsets = [0, 64], sizes = [1, 32], strides = [1, 1]} : vector<1x96xf32> to vector<1x32xf32>
    %269 = arith.mulf %267, %252 : vector<1x32xf32>
    %270 = arith.mulf %266, %265 : vector<1x32xf32>
    %271 = arith.addf %269, %270 : vector<1x32xf32>
    %272 = math.tanh %271 : vector<1x32xf32>
    %273 = arith.mulf %268, %272 : vector<1x32xf32>
    %274 = vector.extract_strided_slice %233 {offsets = [2, 0], sizes = [1, 128], strides = [1, 1]} : vector<8x128xf32> to vector<1x128xf32>
    %cst_46 = arith.constant dense<0.000000e+00> : vector<1x128xf32>
    %275 = tpu.matmul %273, %228, %cst_46 {dimension_numbers = #tpu.dot_dimension_numbers<[1], [0], [0], [1], [0, 0, 1, 1], [], []>} : vector<1x32xf32>, vector<32x128xf32>, vector<1x128xf32> -> vector<1x128xf32>
    %276 = arith.addf %274, %275 : vector<1x128xf32>
    %277 = vector.extract_strided_slice %276 {offsets = [0, 0], sizes = [1, 96], strides = [1, 1]} : vector<1x128xf32> to vector<1x96xf32>
    %278 = arith.negf %277 : vector<1x96xf32>
    %279 = math.exp %278 : vector<1x96xf32>
    %cst_47 = arith.constant 1.000000e+00 : f32
    %280 = vector.broadcast %cst_47 : f32 to vector<1x96xf32>
    %281 = arith.addf %280, %279 : vector<1x96xf32>
    %282 = arith.divf %280, %281 : vector<1x96xf32>
    %283 = vector.extract_strided_slice %276 {offsets = [0, 96], sizes = [1, 32], strides = [1, 1]} : vector<1x128xf32> to vector<1x32xf32>
    %284 = math.tanh %283 : vector<1x32xf32>
    %285 = vector.extract_strided_slice %282 {offsets = [0, 0], sizes = [1, 32], strides = [1, 1]} : vector<1x96xf32> to vector<1x32xf32>
    %286 = vector.extract_strided_slice %282 {offsets = [0, 32], sizes = [1, 32], strides = [1, 1]} : vector<1x96xf32> to vector<1x32xf32>
    %287 = vector.extract_strided_slice %282 {offsets = [0, 64], sizes = [1, 32], strides = [1, 1]} : vector<1x96xf32> to vector<1x32xf32>
    %288 = arith.mulf %286, %271 : vector<1x32xf32>
    %289 = arith.mulf %285, %284 : vector<1x32xf32>
    %290 = arith.addf %288, %289 : vector<1x32xf32>
    %291 = math.tanh %290 : vector<1x32xf32>
    %292 = arith.mulf %287, %291 : vector<1x32xf32>
    %293 = vector.extract_strided_slice %233 {offsets = [3, 0], sizes = [1, 128], strides = [1, 1]} : vector<8x128xf32> to vector<1x128xf32>
    %cst_48 = arith.constant dense<0.000000e+00> : vector<1x128xf32>
    %294 = tpu.matmul %292, %228, %cst_48 {dimension_numbers = #tpu.dot_dimension_numbers<[1], [0], [0], [1], [0, 0, 1, 1], [], []>} : vector<1x32xf32>, vector<32x128xf32>, vector<1x128xf32> -> vector<1x128xf32>
    %295 = arith.addf %293, %294 : vector<1x128xf32>
    %296 = vector.extract_strided_slice %295 {offsets = [0, 0], sizes = [1, 96], strides = [1, 1]} : vector<1x128xf32> to vector<1x96xf32>
    %297 = arith.negf %296 : vector<1x96xf32>
    %298 = math.exp %297 : vector<1x96xf32>
    %cst_49 = arith.constant 1.000000e+00 : f32
    %299 = vector.broadcast %cst_49 : f32 to vector<1x96xf32>
    %300 = arith.addf %299, %298 : vector<1x96xf32>
    %301 = arith.divf %299, %300 : vector<1x96xf32>
    %302 = vector.extract_strided_slice %295 {offsets = [0, 96], sizes = [1, 32], strides = [1, 1]} : vector<1x128xf32> to vector<1x32xf32>
    %303 = math.tanh %302 : vector<1x32xf32>
    %304 = vector.extract_strided_slice %301 {offsets = [0, 0], sizes = [1, 32], strides = [1, 1]} : vector<1x96xf32> to vector<1x32xf32>
    %305 = vector.extract_strided_slice %301 {offsets = [0, 32], sizes = [1, 32], strides = [1, 1]} : vector<1x96xf32> to vector<1x32xf32>
    %306 = vector.extract_strided_slice %301 {offsets = [0, 64], sizes = [1, 32], strides = [1, 1]} : vector<1x96xf32> to vector<1x32xf32>
    %307 = arith.mulf %305, %290 : vector<1x32xf32>
    %308 = arith.mulf %304, %303 : vector<1x32xf32>
    %309 = arith.addf %307, %308 : vector<1x32xf32>
    %310 = math.tanh %309 : vector<1x32xf32>
    %311 = arith.mulf %306, %310 : vector<1x32xf32>
    %312 = vector.extract_strided_slice %233 {offsets = [4, 0], sizes = [1, 128], strides = [1, 1]} : vector<8x128xf32> to vector<1x128xf32>
    %cst_50 = arith.constant dense<0.000000e+00> : vector<1x128xf32>
    %313 = tpu.matmul %311, %228, %cst_50 {dimension_numbers = #tpu.dot_dimension_numbers<[1], [0], [0], [1], [0, 0, 1, 1], [], []>} : vector<1x32xf32>, vector<32x128xf32>, vector<1x128xf32> -> vector<1x128xf32>
    %314 = arith.addf %312, %313 : vector<1x128xf32>
    %315 = vector.extract_strided_slice %314 {offsets = [0, 0], sizes = [1, 96], strides = [1, 1]} : vector<1x128xf32> to vector<1x96xf32>
    %316 = arith.negf %315 : vector<1x96xf32>
    %317 = math.exp %316 : vector<1x96xf32>
    %cst_51 = arith.constant 1.000000e+00 : f32
    %318 = vector.broadcast %cst_51 : f32 to vector<1x96xf32>
    %319 = arith.addf %318, %317 : vector<1x96xf32>
    %320 = arith.divf %318, %319 : vector<1x96xf32>
    %321 = vector.extract_strided_slice %314 {offsets = [0, 96], sizes = [1, 32], strides = [1, 1]} : vector<1x128xf32> to vector<1x32xf32>
    %322 = math.tanh %321 : vector<1x32xf32>
    %323 = vector.extract_strided_slice %320 {offsets = [0, 0], sizes = [1, 32], strides = [1, 1]} : vector<1x96xf32> to vector<1x32xf32>
    %324 = vector.extract_strided_slice %320 {offsets = [0, 32], sizes = [1, 32], strides = [1, 1]} : vector<1x96xf32> to vector<1x32xf32>
    %325 = vector.extract_strided_slice %320 {offsets = [0, 64], sizes = [1, 32], strides = [1, 1]} : vector<1x96xf32> to vector<1x32xf32>
    %326 = arith.mulf %324, %309 : vector<1x32xf32>
    %327 = arith.mulf %323, %322 : vector<1x32xf32>
    %328 = arith.addf %326, %327 : vector<1x32xf32>
    %329 = math.tanh %328 : vector<1x32xf32>
    %330 = arith.mulf %325, %329 : vector<1x32xf32>
    %331 = vector.extract_strided_slice %233 {offsets = [5, 0], sizes = [1, 128], strides = [1, 1]} : vector<8x128xf32> to vector<1x128xf32>
    %cst_52 = arith.constant dense<0.000000e+00> : vector<1x128xf32>
    %332 = tpu.matmul %330, %228, %cst_52 {dimension_numbers = #tpu.dot_dimension_numbers<[1], [0], [0], [1], [0, 0, 1, 1], [], []>} : vector<1x32xf32>, vector<32x128xf32>, vector<1x128xf32> -> vector<1x128xf32>
    %333 = arith.addf %331, %332 : vector<1x128xf32>
    %334 = vector.extract_strided_slice %333 {offsets = [0, 0], sizes = [1, 96], strides = [1, 1]} : vector<1x128xf32> to vector<1x96xf32>
    %335 = arith.negf %334 : vector<1x96xf32>
    %336 = math.exp %335 : vector<1x96xf32>
    %cst_53 = arith.constant 1.000000e+00 : f32
    %337 = vector.broadcast %cst_53 : f32 to vector<1x96xf32>
    %338 = arith.addf %337, %336 : vector<1x96xf32>
    %339 = arith.divf %337, %338 : vector<1x96xf32>
    %340 = vector.extract_strided_slice %333 {offsets = [0, 96], sizes = [1, 32], strides = [1, 1]} : vector<1x128xf32> to vector<1x32xf32>
    %341 = math.tanh %340 : vector<1x32xf32>
    %342 = vector.extract_strided_slice %339 {offsets = [0, 0], sizes = [1, 32], strides = [1, 1]} : vector<1x96xf32> to vector<1x32xf32>
    %343 = vector.extract_strided_slice %339 {offsets = [0, 32], sizes = [1, 32], strides = [1, 1]} : vector<1x96xf32> to vector<1x32xf32>
    %344 = vector.extract_strided_slice %339 {offsets = [0, 64], sizes = [1, 32], strides = [1, 1]} : vector<1x96xf32> to vector<1x32xf32>
    %345 = arith.mulf %343, %328 : vector<1x32xf32>
    %346 = arith.mulf %342, %341 : vector<1x32xf32>
    %347 = arith.addf %345, %346 : vector<1x32xf32>
    %348 = math.tanh %347 : vector<1x32xf32>
    %349 = arith.mulf %344, %348 : vector<1x32xf32>
    %350 = vector.extract_strided_slice %233 {offsets = [6, 0], sizes = [1, 128], strides = [1, 1]} : vector<8x128xf32> to vector<1x128xf32>
    %cst_54 = arith.constant dense<0.000000e+00> : vector<1x128xf32>
    %351 = tpu.matmul %349, %228, %cst_54 {dimension_numbers = #tpu.dot_dimension_numbers<[1], [0], [0], [1], [0, 0, 1, 1], [], []>} : vector<1x32xf32>, vector<32x128xf32>, vector<1x128xf32> -> vector<1x128xf32>
    %352 = arith.addf %350, %351 : vector<1x128xf32>
    %353 = vector.extract_strided_slice %352 {offsets = [0, 0], sizes = [1, 96], strides = [1, 1]} : vector<1x128xf32> to vector<1x96xf32>
    %354 = arith.negf %353 : vector<1x96xf32>
    %355 = math.exp %354 : vector<1x96xf32>
    %cst_55 = arith.constant 1.000000e+00 : f32
    %356 = vector.broadcast %cst_55 : f32 to vector<1x96xf32>
    %357 = arith.addf %356, %355 : vector<1x96xf32>
    %358 = arith.divf %356, %357 : vector<1x96xf32>
    %359 = vector.extract_strided_slice %352 {offsets = [0, 96], sizes = [1, 32], strides = [1, 1]} : vector<1x128xf32> to vector<1x32xf32>
    %360 = math.tanh %359 : vector<1x32xf32>
    %361 = vector.extract_strided_slice %358 {offsets = [0, 0], sizes = [1, 32], strides = [1, 1]} : vector<1x96xf32> to vector<1x32xf32>
    %362 = vector.extract_strided_slice %358 {offsets = [0, 32], sizes = [1, 32], strides = [1, 1]} : vector<1x96xf32> to vector<1x32xf32>
    %363 = vector.extract_strided_slice %358 {offsets = [0, 64], sizes = [1, 32], strides = [1, 1]} : vector<1x96xf32> to vector<1x32xf32>
    %364 = arith.mulf %362, %347 : vector<1x32xf32>
    %365 = arith.mulf %361, %360 : vector<1x32xf32>
    %366 = arith.addf %364, %365 : vector<1x32xf32>
    %367 = math.tanh %366 : vector<1x32xf32>
    %368 = arith.mulf %363, %367 : vector<1x32xf32>
    %369 = vector.extract_strided_slice %233 {offsets = [7, 0], sizes = [1, 128], strides = [1, 1]} : vector<8x128xf32> to vector<1x128xf32>
    %cst_56 = arith.constant dense<0.000000e+00> : vector<1x128xf32>
    %370 = tpu.matmul %368, %228, %cst_56 {dimension_numbers = #tpu.dot_dimension_numbers<[1], [0], [0], [1], [0, 0, 1, 1], [], []>} : vector<1x32xf32>, vector<32x128xf32>, vector<1x128xf32> -> vector<1x128xf32>
    %371 = arith.addf %369, %370 : vector<1x128xf32>
    %372 = vector.extract_strided_slice %371 {offsets = [0, 0], sizes = [1, 96], strides = [1, 1]} : vector<1x128xf32> to vector<1x96xf32>
    %373 = arith.negf %372 : vector<1x96xf32>
    %374 = math.exp %373 : vector<1x96xf32>
    %cst_57 = arith.constant 1.000000e+00 : f32
    %375 = vector.broadcast %cst_57 : f32 to vector<1x96xf32>
    %376 = arith.addf %375, %374 : vector<1x96xf32>
    %377 = arith.divf %375, %376 : vector<1x96xf32>
    %378 = vector.extract_strided_slice %371 {offsets = [0, 96], sizes = [1, 32], strides = [1, 1]} : vector<1x128xf32> to vector<1x32xf32>
    %379 = math.tanh %378 : vector<1x32xf32>
    %380 = vector.extract_strided_slice %377 {offsets = [0, 0], sizes = [1, 32], strides = [1, 1]} : vector<1x96xf32> to vector<1x32xf32>
    %381 = vector.extract_strided_slice %377 {offsets = [0, 32], sizes = [1, 32], strides = [1, 1]} : vector<1x96xf32> to vector<1x32xf32>
    %382 = vector.extract_strided_slice %377 {offsets = [0, 64], sizes = [1, 32], strides = [1, 1]} : vector<1x96xf32> to vector<1x32xf32>
    %383 = arith.mulf %381, %366 : vector<1x32xf32>
    %384 = arith.mulf %380, %379 : vector<1x32xf32>
    %385 = arith.addf %383, %384 : vector<1x32xf32>
    %386 = math.tanh %385 : vector<1x32xf32>
    %387 = arith.mulf %382, %386 : vector<1x32xf32>
    %388 = tpu.iota {dimensions = array<i32: 1>} : vector<1x128xi32>
    %c0_58 = arith.constant 0 : index
    %c0_59 = arith.constant 0 : index
    %389 = vector.load %arg8[%c0_58, %c0_59] : memref<1x128xf32, #tpu.memory_space<vmem>>, vector<1x128xf32>
    %c0_60 = arith.constant 0 : index
    %c0_61 = arith.constant 0 : index
    %390 = vector.load %arg9[%c0_60, %c0_61] : memref<32x128xf32, #tpu.memory_space<vmem>>, vector<32x128xf32>
    %cst_62 = arith.constant dense<0.000000e+00> : vector<1x128xf32>
    %391 = tpu.matmul %226, %390, %cst_62 {dimension_numbers = #tpu.dot_dimension_numbers<[1], [0], [0], [1], [0, 0, 1, 1], [], []>} : vector<1x32xf32>, vector<32x128xf32>, vector<1x128xf32> -> vector<1x128xf32>
    %392 = arith.addf %389, %391 : vector<1x128xf32>
    %c0_63 = arith.constant 0 : index
    %c0_64 = arith.constant 0 : index
    %393 = vector.load %arg10[%c0_63, %c0_64] : memref<1x128xf32, #tpu.memory_space<vmem>>, vector<1x128xf32>
    %394 = arith.addf %392, %393 : vector<1x128xf32>
    %395 = vector.extract_strided_slice %394 {offsets = [0, 0], sizes = [1, 96], strides = [1, 1]} : vector<1x128xf32> to vector<1x96xf32>
    %396 = arith.negf %395 : vector<1x96xf32>
    %397 = math.exp %396 : vector<1x96xf32>
    %cst_65 = arith.constant 1.000000e+00 : f32
    %398 = vector.broadcast %cst_65 : f32 to vector<1x96xf32>
    %399 = arith.addf %398, %397 : vector<1x96xf32>
    %400 = arith.divf %398, %399 : vector<1x96xf32>
    %401 = vector.extract_strided_slice %394 {offsets = [0, 96], sizes = [1, 32], strides = [1, 1]} : vector<1x128xf32> to vector<1x32xf32>
    %402 = math.tanh %401 : vector<1x32xf32>
    %403 = vector.extract_strided_slice %400 {offsets = [0, 0], sizes = [1, 32], strides = [1, 1]} : vector<1x96xf32> to vector<1x32xf32>
    %404 = vector.extract_strided_slice %400 {offsets = [0, 32], sizes = [1, 32], strides = [1, 1]} : vector<1x96xf32> to vector<1x32xf32>
    %405 = vector.extract_strided_slice %400 {offsets = [0, 64], sizes = [1, 32], strides = [1, 1]} : vector<1x96xf32> to vector<1x32xf32>
    %406 = arith.mulf %404, %224 : vector<1x32xf32>
    %407 = arith.mulf %403, %402 : vector<1x32xf32>
    %408 = arith.addf %406, %407 : vector<1x32xf32>
    %409 = math.tanh %408 : vector<1x32xf32>
    %410 = arith.mulf %405, %409 : vector<1x32xf32>
    %c0_66 = arith.constant 0 : index
    %c0_67 = arith.constant 0 : index
    %411 = vector.load %arg11[%c0_66, %c0_67] : memref<32x128xf32, #tpu.memory_space<vmem>>, vector<32x128xf32>
    %cst_68 = arith.constant dense<0.000000e+00> : vector<1x128xf32>
    %412 = tpu.matmul %410, %411, %cst_68 {dimension_numbers = #tpu.dot_dimension_numbers<[1], [0], [0], [1], [0, 0, 1, 1], [], []>} : vector<1x32xf32>, vector<32x128xf32>, vector<1x128xf32> -> vector<1x128xf32>
    %c0_69 = arith.constant 0 : index
    %c0_70 = arith.constant 0 : index
    %413 = vector.load %arg12[%c0_69, %c0_70] : memref<32x128xf32, #tpu.memory_space<vmem>>, vector<32x128xf32>
    %cst_71 = arith.constant dense<0.000000e+00> : vector<1x128xf32>
    %414 = tpu.matmul %387, %413, %cst_71 {dimension_numbers = #tpu.dot_dimension_numbers<[1], [0], [0], [1], [0, 0, 1, 1], [], []>} : vector<1x32xf32>, vector<32x128xf32>, vector<1x128xf32> -> vector<1x128xf32>
    %415 = arith.addf %412, %414 : vector<1x128xf32>
    %c0_72 = arith.constant 0 : index
    %c0_73 = arith.constant 0 : index
    %416 = vector.load %arg13[%c0_72, %c0_73] : memref<1x128xf32, #tpu.memory_space<vmem>>, vector<1x128xf32>
    %417 = arith.addf %415, %416 : vector<1x128xf32>
    %418 = vector.extract_strided_slice %417 {offsets = [0, 0], sizes = [1, 96], strides = [1, 1]} : vector<1x128xf32> to vector<1x96xf32>
    %419 = arith.negf %418 : vector<1x96xf32>
    %420 = math.exp %419 : vector<1x96xf32>
    %cst_74 = arith.constant 1.000000e+00 : f32
    %421 = vector.broadcast %cst_74 : f32 to vector<1x96xf32>
    %422 = arith.addf %421, %420 : vector<1x96xf32>
    %423 = arith.divf %421, %422 : vector<1x96xf32>
    %424 = vector.extract_strided_slice %417 {offsets = [0, 96], sizes = [1, 32], strides = [1, 1]} : vector<1x128xf32> to vector<1x32xf32>
    %425 = math.tanh %424 : vector<1x32xf32>
    %426 = vector.extract_strided_slice %423 {offsets = [0, 0], sizes = [1, 32], strides = [1, 1]} : vector<1x96xf32> to vector<1x32xf32>
    %427 = vector.extract_strided_slice %423 {offsets = [0, 32], sizes = [1, 32], strides = [1, 1]} : vector<1x96xf32> to vector<1x32xf32>
    %428 = vector.extract_strided_slice %423 {offsets = [0, 64], sizes = [1, 32], strides = [1, 1]} : vector<1x96xf32> to vector<1x32xf32>
    %429 = arith.mulf %427, %385 : vector<1x32xf32>
    %430 = arith.mulf %426, %425 : vector<1x32xf32>
    %431 = arith.addf %429, %430 : vector<1x32xf32>
    %432 = math.tanh %431 : vector<1x32xf32>
    %433 = arith.mulf %428, %432 : vector<1x32xf32>
    %c0_75 = arith.constant 0 : index
    %c0_76 = arith.constant 0 : index
    %434 = vector.load %arg14[%c0_75, %c0_76] : memref<32x128xf32, #tpu.memory_space<vmem>>, vector<32x128xf32>
    %cst_77 = arith.constant dense<0.000000e+00> : vector<1x128xf32>
    %435 = tpu.matmul %433, %434, %cst_77 {dimension_numbers = #tpu.dot_dimension_numbers<[1], [0], [0], [1], [0, 0, 1, 1], [], []>} : vector<1x32xf32>, vector<32x128xf32>, vector<1x128xf32> -> vector<1x128xf32>
    %c0_78 = arith.constant 0 : index
    %c0_79 = arith.constant 0 : index
    %436 = vector.load %arg15[%c0_78, %c0_79] : memref<1x128xf32, #tpu.memory_space<vmem>>, vector<1x128xf32>
    %437 = arith.addf %435, %436 : vector<1x128xf32>
    %c0_80 = arith.constant 0 : index
    %c0_81 = arith.constant 0 : index
    %438 = vector.load %arg16[%c0_80, %c0_81] : memref<16x128xf32, #tpu.memory_space<vmem>>, vector<1x128xf32>
    tpu.vector_store %arg16[%c0_80, %c0_81], %437 {strides = array<i32>} : memref<16x128xf32, #tpu.memory_space<vmem>>, vector<1x128xf32>,
    %cst_82 = arith.constant dense<0xFF800000> : vector<1xf32>
    %439 = vector.multi_reduction <maximumf>, %437, %cst_82 [1] : vector<1x128xf32> to vector<1xf32>
    %440 = vector.shape_cast %439 : vector<1xf32> to vector<1x1xf32>
    %441 = vector.broadcast %440 : vector<1x1xf32> to vector<1x128xf32>
    %442 = arith.cmpf oeq, %437, %441 : vector<1x128xf32>
    %c128_i32 = arith.constant 128 : i32
    %443 = vector.broadcast %c128_i32 : i32 to vector<1x128xi32>
    %444 = arith.select %442, %388, %443 : vector<1x128xi1>, vector<1x128xi32>
    %cst_83 = arith.constant dense<2147483647> : vector<1xi32>
    %445 = vector.multi_reduction <minsi>, %444, %cst_83 [1] : vector<1x128xi32> to vector<1xi32>
    %446 = vector.shape_cast %445 : vector<1xi32> to vector<1x1xi32>
    %447 = vector.broadcast %446 : vector<1x1xi32> to vector<1x128xi32>
    %448 = arith.cmpi eq, %388, %447 : vector<1x128xi32>
    %449 = arith.extui %448 : vector<1x128xi1> to vector<1x128xi32>
    %450 = arith.sitofp %449 : vector<1x128xi32> to vector<1x128xf32>
    %c0_84 = arith.constant 0 : index
    %c0_85 = arith.constant 0 : index
    %451 = vector.load %arg7[%c0_84, %c0_85] : memref<128x128xf32, #tpu.memory_space<vmem>>, vector<128x128xf32>
    %cst_86 = arith.constant dense<0.000000e+00> : vector<1x128xf32>
    %452 = tpu.matmul %450, %451, %cst_86 {dimension_numbers = #tpu.dot_dimension_numbers<[1], [0], [0], [1], [0, 0, 1, 1], [], []>} : vector<1x128xf32>, vector<128x128xf32>, vector<1x128xf32> -> vector<1x128xf32>
    %c0_87 = arith.constant 0 : index
    %c0_88 = arith.constant 0 : index
    %453 = vector.load %arg9[%c0_87, %c0_88] : memref<32x128xf32, #tpu.memory_space<vmem>>, vector<32x128xf32>
    %cst_89 = arith.constant dense<0.000000e+00> : vector<1x128xf32>
    %454 = tpu.matmul %410, %453, %cst_89 {dimension_numbers = #tpu.dot_dimension_numbers<[1], [0], [0], [1], [0, 0, 1, 1], [], []>} : vector<1x32xf32>, vector<32x128xf32>, vector<1x128xf32> -> vector<1x128xf32>
    %455 = arith.addf %452, %454 : vector<1x128xf32>
    %c0_90 = arith.constant 0 : index
    %c0_91 = arith.constant 0 : index
    %456 = vector.load %arg10[%c0_90, %c0_91] : memref<1x128xf32, #tpu.memory_space<vmem>>, vector<1x128xf32>
    %457 = arith.addf %455, %456 : vector<1x128xf32>
    %458 = vector.extract_strided_slice %457 {offsets = [0, 0], sizes = [1, 96], strides = [1, 1]} : vector<1x128xf32> to vector<1x96xf32>
    %459 = arith.negf %458 : vector<1x96xf32>
    %460 = math.exp %459 : vector<1x96xf32>
    %cst_92 = arith.constant 1.000000e+00 : f32
    %461 = vector.broadcast %cst_92 : f32 to vector<1x96xf32>
    %462 = arith.addf %461, %460 : vector<1x96xf32>
    %463 = arith.divf %461, %462 : vector<1x96xf32>
    %464 = vector.extract_strided_slice %457 {offsets = [0, 96], sizes = [1, 32], strides = [1, 1]} : vector<1x128xf32> to vector<1x32xf32>
    %465 = math.tanh %464 : vector<1x32xf32>
    %466 = vector.extract_strided_slice %463 {offsets = [0, 0], sizes = [1, 32], strides = [1, 1]} : vector<1x96xf32> to vector<1x32xf32>
    %467 = vector.extract_strided_slice %463 {offsets = [0, 32], sizes = [1, 32], strides = [1, 1]} : vector<1x96xf32> to vector<1x32xf32>
    %468 = vector.extract_strided_slice %463 {offsets = [0, 64], sizes = [1, 32], strides = [1, 1]} : vector<1x96xf32> to vector<1x32xf32>
    %469 = arith.mulf %467, %408 : vector<1x32xf32>
    %470 = arith.mulf %466, %465 : vector<1x32xf32>
    %471 = arith.addf %469, %470 : vector<1x32xf32>
    %472 = math.tanh %471 : vector<1x32xf32>
    %473 = arith.mulf %468, %472 : vector<1x32xf32>
    %c0_93 = arith.constant 0 : index
    %c0_94 = arith.constant 0 : index
    %474 = vector.load %arg11[%c0_93, %c0_94] : memref<32x128xf32, #tpu.memory_space<vmem>>, vector<32x128xf32>
    %cst_95 = arith.constant dense<0.000000e+00> : vector<1x128xf32>
    %475 = tpu.matmul %473, %474, %cst_95 {dimension_numbers = #tpu.dot_dimension_numbers<[1], [0], [0], [1], [0, 0, 1, 1], [], []>} : vector<1x32xf32>, vector<32x128xf32>, vector<1x128xf32> -> vector<1x128xf32>
    %c0_96 = arith.constant 0 : index
    %c0_97 = arith.constant 0 : index
    %476 = vector.load %arg12[%c0_96, %c0_97] : memref<32x128xf32, #tpu.memory_space<vmem>>, vector<32x128xf32>
    %cst_98 = arith.constant dense<0.000000e+00> : vector<1x128xf32>
    %477 = tpu.matmul %433, %476, %cst_98 {dimension_numbers = #tpu.dot_dimension_numbers<[1], [0], [0], [1], [0, 0, 1, 1], [], []>} : vector<1x32xf32>, vector<32x128xf32>, vector<1x128xf32> -> vector<1x128xf32>
    %478 = arith.addf %475, %477 : vector<1x128xf32>
    %c0_99 = arith.constant 0 : index
    %c0_100 = arith.constant 0 : index
    %479 = vector.load %arg13[%c0_99, %c0_100] : memref<1x128xf32, #tpu.memory_space<vmem>>, vector<1x128xf32>
    %480 = arith.addf %478, %479 : vector<1x128xf32>
    %481 = vector.extract_strided_slice %480 {offsets = [0, 0], sizes = [1, 96], strides = [1, 1]} : vector<1x128xf32> to vector<1x96xf32>
    %482 = arith.negf %481 : vector<1x96xf32>
    %483 = math.exp %482 : vector<1x96xf32>
    %cst_101 = arith.constant 1.000000e+00 : f32
    %484 = vector.broadcast %cst_101 : f32 to vector<1x96xf32>
    %485 = arith.addf %484, %483 : vector<1x96xf32>
    %486 = arith.divf %484, %485 : vector<1x96xf32>
    %487 = vector.extract_strided_slice %480 {offsets = [0, 96], sizes = [1, 32], strides = [1, 1]} : vector<1x128xf32> to vector<1x32xf32>
    %488 = math.tanh %487 : vector<1x32xf32>
    %489 = vector.extract_strided_slice %486 {offsets = [0, 0], sizes = [1, 32], strides = [1, 1]} : vector<1x96xf32> to vector<1x32xf32>
    %490 = vector.extract_strided_slice %486 {offsets = [0, 32], sizes = [1, 32], strides = [1, 1]} : vector<1x96xf32> to vector<1x32xf32>
    %491 = vector.extract_strided_slice %486 {offsets = [0, 64], sizes = [1, 32], strides = [1, 1]} : vector<1x96xf32> to vector<1x32xf32>
    %492 = arith.mulf %490, %431 : vector<1x32xf32>
    %493 = arith.mulf %489, %488 : vector<1x32xf32>
    %494 = arith.addf %492, %493 : vector<1x32xf32>
    %495 = math.tanh %494 : vector<1x32xf32>
    %496 = arith.mulf %491, %495 : vector<1x32xf32>
    %c0_102 = arith.constant 0 : index
    %c0_103 = arith.constant 0 : index
    %497 = vector.load %arg14[%c0_102, %c0_103] : memref<32x128xf32, #tpu.memory_space<vmem>>, vector<32x128xf32>
    %cst_104 = arith.constant dense<0.000000e+00> : vector<1x128xf32>
    %498 = tpu.matmul %496, %497, %cst_104 {dimension_numbers = #tpu.dot_dimension_numbers<[1], [0], [0], [1], [0, 0, 1, 1], [], []>} : vector<1x32xf32>, vector<32x128xf32>, vector<1x128xf32> -> vector<1x128xf32>
    %c0_105 = arith.constant 0 : index
    %c0_106 = arith.constant 0 : index
    %499 = vector.load %arg15[%c0_105, %c0_106] : memref<1x128xf32, #tpu.memory_space<vmem>>, vector<1x128xf32>
    %500 = arith.addf %498, %499 : vector<1x128xf32>
    %c1_107 = arith.constant 1 : index
    %c0_108 = arith.constant 0 : index
    %501 = vector.load %arg16[%c1_107, %c0_108] : memref<16x128xf32, #tpu.memory_space<vmem>>, vector<1x128xf32>
    tpu.vector_store %arg16[%c1_107, %c0_108], %500 {strides = array<i32>} : memref<16x128xf32, #tpu.memory_space<vmem>>, vector<1x128xf32>,
    %cst_109 = arith.constant dense<0xFF800000> : vector<1xf32>
    %502 = vector.multi_reduction <maximumf>, %500, %cst_109 [1] : vector<1x128xf32> to vector<1xf32>
    %503 = vector.shape_cast %502 : vector<1xf32> to vector<1x1xf32>
    %504 = vector.broadcast %503 : vector<1x1xf32> to vector<1x128xf32>
    %505 = arith.cmpf oeq, %500, %504 : vector<1x128xf32>
    %c128_i32_110 = arith.constant 128 : i32
    %506 = vector.broadcast %c128_i32_110 : i32 to vector<1x128xi32>
    %507 = arith.select %505, %388, %506 : vector<1x128xi1>, vector<1x128xi32>
    %cst_111 = arith.constant dense<2147483647> : vector<1xi32>
    %508 = vector.multi_reduction <minsi>, %507, %cst_111 [1] : vector<1x128xi32> to vector<1xi32>
    %509 = vector.shape_cast %508 : vector<1xi32> to vector<1x1xi32>
    %510 = vector.broadcast %509 : vector<1x1xi32> to vector<1x128xi32>
    %511 = arith.cmpi eq, %388, %510 : vector<1x128xi32>
    %512 = arith.extui %511 : vector<1x128xi1> to vector<1x128xi32>
    %513 = arith.sitofp %512 : vector<1x128xi32> to vector<1x128xf32>
    %c0_112 = arith.constant 0 : index
    %c0_113 = arith.constant 0 : index
    %514 = vector.load %arg7[%c0_112, %c0_113] : memref<128x128xf32, #tpu.memory_space<vmem>>, vector<128x128xf32>
    %cst_114 = arith.constant dense<0.000000e+00> : vector<1x128xf32>
    %515 = tpu.matmul %513, %514, %cst_114 {dimension_numbers = #tpu.dot_dimension_numbers<[1], [0], [0], [1], [0, 0, 1, 1], [], []>} : vector<1x128xf32>, vector<128x128xf32>, vector<1x128xf32> -> vector<1x128xf32>
    %c0_115 = arith.constant 0 : index
    %c0_116 = arith.constant 0 : index
    %516 = vector.load %arg9[%c0_115, %c0_116] : memref<32x128xf32, #tpu.memory_space<vmem>>, vector<32x128xf32>
    %cst_117 = arith.constant dense<0.000000e+00> : vector<1x128xf32>
    %517 = tpu.matmul %473, %516, %cst_117 {dimension_numbers = #tpu.dot_dimension_numbers<[1], [0], [0], [1], [0, 0, 1, 1], [], []>} : vector<1x32xf32>, vector<32x128xf32>, vector<1x128xf32> -> vector<1x128xf32>
    %518 = arith.addf %515, %517 : vector<1x128xf32>
    %c0_118 = arith.constant 0 : index
    %c0_119 = arith.constant 0 : index
    %519 = vector.load %arg10[%c0_118, %c0_119] : memref<1x128xf32, #tpu.memory_space<vmem>>, vector<1x128xf32>
    %520 = arith.addf %518, %519 : vector<1x128xf32>
    %521 = vector.extract_strided_slice %520 {offsets = [0, 0], sizes = [1, 96], strides = [1, 1]} : vector<1x128xf32> to vector<1x96xf32>
    %522 = arith.negf %521 : vector<1x96xf32>
    %523 = math.exp %522 : vector<1x96xf32>
    %cst_120 = arith.constant 1.000000e+00 : f32
    %524 = vector.broadcast %cst_120 : f32 to vector<1x96xf32>
    %525 = arith.addf %524, %523 : vector<1x96xf32>
    %526 = arith.divf %524, %525 : vector<1x96xf32>
    %527 = vector.extract_strided_slice %520 {offsets = [0, 96], sizes = [1, 32], strides = [1, 1]} : vector<1x128xf32> to vector<1x32xf32>
    %528 = math.tanh %527 : vector<1x32xf32>
    %529 = vector.extract_strided_slice %526 {offsets = [0, 0], sizes = [1, 32], strides = [1, 1]} : vector<1x96xf32> to vector<1x32xf32>
    %530 = vector.extract_strided_slice %526 {offsets = [0, 32], sizes = [1, 32], strides = [1, 1]} : vector<1x96xf32> to vector<1x32xf32>
    %531 = vector.extract_strided_slice %526 {offsets = [0, 64], sizes = [1, 32], strides = [1, 1]} : vector<1x96xf32> to vector<1x32xf32>
    %532 = arith.mulf %530, %471 : vector<1x32xf32>
    %533 = arith.mulf %529, %528 : vector<1x32xf32>
    %534 = arith.addf %532, %533 : vector<1x32xf32>
    %535 = math.tanh %534 : vector<1x32xf32>
    %536 = arith.mulf %531, %535 : vector<1x32xf32>
    %c0_121 = arith.constant 0 : index
    %c0_122 = arith.constant 0 : index
    %537 = vector.load %arg11[%c0_121, %c0_122] : memref<32x128xf32, #tpu.memory_space<vmem>>, vector<32x128xf32>
    %cst_123 = arith.constant dense<0.000000e+00> : vector<1x128xf32>
    %538 = tpu.matmul %536, %537, %cst_123 {dimension_numbers = #tpu.dot_dimension_numbers<[1], [0], [0], [1], [0, 0, 1, 1], [], []>} : vector<1x32xf32>, vector<32x128xf32>, vector<1x128xf32> -> vector<1x128xf32>
    %c0_124 = arith.constant 0 : index
    %c0_125 = arith.constant 0 : index
    %539 = vector.load %arg12[%c0_124, %c0_125] : memref<32x128xf32, #tpu.memory_space<vmem>>, vector<32x128xf32>
    %cst_126 = arith.constant dense<0.000000e+00> : vector<1x128xf32>
    %540 = tpu.matmul %496, %539, %cst_126 {dimension_numbers = #tpu.dot_dimension_numbers<[1], [0], [0], [1], [0, 0, 1, 1], [], []>} : vector<1x32xf32>, vector<32x128xf32>, vector<1x128xf32> -> vector<1x128xf32>
    %541 = arith.addf %538, %540 : vector<1x128xf32>
    %c0_127 = arith.constant 0 : index
    %c0_128 = arith.constant 0 : index
    %542 = vector.load %arg13[%c0_127, %c0_128] : memref<1x128xf32, #tpu.memory_space<vmem>>, vector<1x128xf32>
    %543 = arith.addf %541, %542 : vector<1x128xf32>
    %544 = vector.extract_strided_slice %543 {offsets = [0, 0], sizes = [1, 96], strides = [1, 1]} : vector<1x128xf32> to vector<1x96xf32>
    %545 = arith.negf %544 : vector<1x96xf32>
    %546 = math.exp %545 : vector<1x96xf32>
    %cst_129 = arith.constant 1.000000e+00 : f32
    %547 = vector.broadcast %cst_129 : f32 to vector<1x96xf32>
    %548 = arith.addf %547, %546 : vector<1x96xf32>
    %549 = arith.divf %547, %548 : vector<1x96xf32>
    %550 = vector.extract_strided_slice %543 {offsets = [0, 96], sizes = [1, 32], strides = [1, 1]} : vector<1x128xf32> to vector<1x32xf32>
    %551 = math.tanh %550 : vector<1x32xf32>
    %552 = vector.extract_strided_slice %549 {offsets = [0, 0], sizes = [1, 32], strides = [1, 1]} : vector<1x96xf32> to vector<1x32xf32>
    %553 = vector.extract_strided_slice %549 {offsets = [0, 32], sizes = [1, 32], strides = [1, 1]} : vector<1x96xf32> to vector<1x32xf32>
    %554 = vector.extract_strided_slice %549 {offsets = [0, 64], sizes = [1, 32], strides = [1, 1]} : vector<1x96xf32> to vector<1x32xf32>
    %555 = arith.mulf %553, %494 : vector<1x32xf32>
    %556 = arith.mulf %552, %551 : vector<1x32xf32>
    %557 = arith.addf %555, %556 : vector<1x32xf32>
    %558 = math.tanh %557 : vector<1x32xf32>
    %559 = arith.mulf %554, %558 : vector<1x32xf32>
    %c0_130 = arith.constant 0 : index
    %c0_131 = arith.constant 0 : index
    %560 = vector.load %arg14[%c0_130, %c0_131] : memref<32x128xf32, #tpu.memory_space<vmem>>, vector<32x128xf32>
    %cst_132 = arith.constant dense<0.000000e+00> : vector<1x128xf32>
    %561 = tpu.matmul %559, %560, %cst_132 {dimension_numbers = #tpu.dot_dimension_numbers<[1], [0], [0], [1], [0, 0, 1, 1], [], []>} : vector<1x32xf32>, vector<32x128xf32>, vector<1x128xf32> -> vector<1x128xf32>
    %c0_133 = arith.constant 0 : index
    %c0_134 = arith.constant 0 : index
    %562 = vector.load %arg15[%c0_133, %c0_134] : memref<1x128xf32, #tpu.memory_space<vmem>>, vector<1x128xf32>
    %563 = arith.addf %561, %562 : vector<1x128xf32>
    %c2_135 = arith.constant 2 : index
    %c0_136 = arith.constant 0 : index
    %564 = vector.load %arg16[%c2_135, %c0_136] : memref<16x128xf32, #tpu.memory_space<vmem>>, vector<1x128xf32>
    tpu.vector_store %arg16[%c2_135, %c0_136], %563 {strides = array<i32>} : memref<16x128xf32, #tpu.memory_space<vmem>>, vector<1x128xf32>,
    %cst_137 = arith.constant dense<0xFF800000> : vector<1xf32>
    %565 = vector.multi_reduction <maximumf>, %563, %cst_137 [1] : vector<1x128xf32> to vector<1xf32>
    %566 = vector.shape_cast %565 : vector<1xf32> to vector<1x1xf32>
    %567 = vector.broadcast %566 : vector<1x1xf32> to vector<1x128xf32>
    %568 = arith.cmpf oeq, %563, %567 : vector<1x128xf32>
    %c128_i32_138 = arith.constant 128 : i32
    %569 = vector.broadcast %c128_i32_138 : i32 to vector<1x128xi32>
    %570 = arith.select %568, %388, %569 : vector<1x128xi1>, vector<1x128xi32>
    %cst_139 = arith.constant dense<2147483647> : vector<1xi32>
    %571 = vector.multi_reduction <minsi>, %570, %cst_139 [1] : vector<1x128xi32> to vector<1xi32>
    %572 = vector.shape_cast %571 : vector<1xi32> to vector<1x1xi32>
    %573 = vector.broadcast %572 : vector<1x1xi32> to vector<1x128xi32>
    %574 = arith.cmpi eq, %388, %573 : vector<1x128xi32>
    %575 = arith.extui %574 : vector<1x128xi1> to vector<1x128xi32>
    %576 = arith.sitofp %575 : vector<1x128xi32> to vector<1x128xf32>
    %c0_140 = arith.constant 0 : index
    %c0_141 = arith.constant 0 : index
    %577 = vector.load %arg7[%c0_140, %c0_141] : memref<128x128xf32, #tpu.memory_space<vmem>>, vector<128x128xf32>
    %cst_142 = arith.constant dense<0.000000e+00> : vector<1x128xf32>
    %578 = tpu.matmul %576, %577, %cst_142 {dimension_numbers = #tpu.dot_dimension_numbers<[1], [0], [0], [1], [0, 0, 1, 1], [], []>} : vector<1x128xf32>, vector<128x128xf32>, vector<1x128xf32> -> vector<1x128xf32>
    %c0_143 = arith.constant 0 : index
    %c0_144 = arith.constant 0 : index
    %579 = vector.load %arg9[%c0_143, %c0_144] : memref<32x128xf32, #tpu.memory_space<vmem>>, vector<32x128xf32>
    %cst_145 = arith.constant dense<0.000000e+00> : vector<1x128xf32>
    %580 = tpu.matmul %536, %579, %cst_145 {dimension_numbers = #tpu.dot_dimension_numbers<[1], [0], [0], [1], [0, 0, 1, 1], [], []>} : vector<1x32xf32>, vector<32x128xf32>, vector<1x128xf32> -> vector<1x128xf32>
    %581 = arith.addf %578, %580 : vector<1x128xf32>
    %c0_146 = arith.constant 0 : index
    %c0_147 = arith.constant 0 : index
    %582 = vector.load %arg10[%c0_146, %c0_147] : memref<1x128xf32, #tpu.memory_space<vmem>>, vector<1x128xf32>
    %583 = arith.addf %581, %582 : vector<1x128xf32>
    %584 = vector.extract_strided_slice %583 {offsets = [0, 0], sizes = [1, 96], strides = [1, 1]} : vector<1x128xf32> to vector<1x96xf32>
    %585 = arith.negf %584 : vector<1x96xf32>
    %586 = math.exp %585 : vector<1x96xf32>
    %cst_148 = arith.constant 1.000000e+00 : f32
    %587 = vector.broadcast %cst_148 : f32 to vector<1x96xf32>
    %588 = arith.addf %587, %586 : vector<1x96xf32>
    %589 = arith.divf %587, %588 : vector<1x96xf32>
    %590 = vector.extract_strided_slice %583 {offsets = [0, 96], sizes = [1, 32], strides = [1, 1]} : vector<1x128xf32> to vector<1x32xf32>
    %591 = math.tanh %590 : vector<1x32xf32>
    %592 = vector.extract_strided_slice %589 {offsets = [0, 0], sizes = [1, 32], strides = [1, 1]} : vector<1x96xf32> to vector<1x32xf32>
    %593 = vector.extract_strided_slice %589 {offsets = [0, 32], sizes = [1, 32], strides = [1, 1]} : vector<1x96xf32> to vector<1x32xf32>
    %594 = vector.extract_strided_slice %589 {offsets = [0, 64], sizes = [1, 32], strides = [1, 1]} : vector<1x96xf32> to vector<1x32xf32>
    %595 = arith.mulf %593, %534 : vector<1x32xf32>
    %596 = arith.mulf %592, %591 : vector<1x32xf32>
    %597 = arith.addf %595, %596 : vector<1x32xf32>
    %598 = math.tanh %597 : vector<1x32xf32>
    %599 = arith.mulf %594, %598 : vector<1x32xf32>
    %c0_149 = arith.constant 0 : index
    %c0_150 = arith.constant 0 : index
    %600 = vector.load %arg11[%c0_149, %c0_150] : memref<32x128xf32, #tpu.memory_space<vmem>>, vector<32x128xf32>
    %cst_151 = arith.constant dense<0.000000e+00> : vector<1x128xf32>
    %601 = tpu.matmul %599, %600, %cst_151 {dimension_numbers = #tpu.dot_dimension_numbers<[1], [0], [0], [1], [0, 0, 1, 1], [], []>} : vector<1x32xf32>, vector<32x128xf32>, vector<1x128xf32> -> vector<1x128xf32>
    %c0_152 = arith.constant 0 : index
    %c0_153 = arith.constant 0 : index
    %602 = vector.load %arg12[%c0_152, %c0_153] : memref<32x128xf32, #tpu.memory_space<vmem>>, vector<32x128xf32>
    %cst_154 = arith.constant dense<0.000000e+00> : vector<1x128xf32>
    %603 = tpu.matmul %559, %602, %cst_154 {dimension_numbers = #tpu.dot_dimension_numbers<[1], [0], [0], [1], [0, 0, 1, 1], [], []>} : vector<1x32xf32>, vector<32x128xf32>, vector<1x128xf32> -> vector<1x128xf32>
    %604 = arith.addf %601, %603 : vector<1x128xf32>
    %c0_155 = arith.constant 0 : index
    %c0_156 = arith.constant 0 : index
    %605 = vector.load %arg13[%c0_155, %c0_156] : memref<1x128xf32, #tpu.memory_space<vmem>>, vector<1x128xf32>
    %606 = arith.addf %604, %605 : vector<1x128xf32>
    %607 = vector.extract_strided_slice %606 {offsets = [0, 0], sizes = [1, 96], strides = [1, 1]} : vector<1x128xf32> to vector<1x96xf32>
    %608 = arith.negf %607 : vector<1x96xf32>
    %609 = math.exp %608 : vector<1x96xf32>
    %cst_157 = arith.constant 1.000000e+00 : f32
    %610 = vector.broadcast %cst_157 : f32 to vector<1x96xf32>
    %611 = arith.addf %610, %609 : vector<1x96xf32>
    %612 = arith.divf %610, %611 : vector<1x96xf32>
    %613 = vector.extract_strided_slice %606 {offsets = [0, 96], sizes = [1, 32], strides = [1, 1]} : vector<1x128xf32> to vector<1x32xf32>
    %614 = math.tanh %613 : vector<1x32xf32>
    %615 = vector.extract_strided_slice %612 {offsets = [0, 0], sizes = [1, 32], strides = [1, 1]} : vector<1x96xf32> to vector<1x32xf32>
    %616 = vector.extract_strided_slice %612 {offsets = [0, 32], sizes = [1, 32], strides = [1, 1]} : vector<1x96xf32> to vector<1x32xf32>
    %617 = vector.extract_strided_slice %612 {offsets = [0, 64], sizes = [1, 32], strides = [1, 1]} : vector<1x96xf32> to vector<1x32xf32>
    %618 = arith.mulf %616, %557 : vector<1x32xf32>
    %619 = arith.mulf %615, %614 : vector<1x32xf32>
    %620 = arith.addf %618, %619 : vector<1x32xf32>
    %621 = math.tanh %620 : vector<1x32xf32>
    %622 = arith.mulf %617, %621 : vector<1x32xf32>
    %c0_158 = arith.constant 0 : index
    %c0_159 = arith.constant 0 : index
    %623 = vector.load %arg14[%c0_158, %c0_159] : memref<32x128xf32, #tpu.memory_space<vmem>>, vector<32x128xf32>
    %cst_160 = arith.constant dense<0.000000e+00> : vector<1x128xf32>
    %624 = tpu.matmul %622, %623, %cst_160 {dimension_numbers = #tpu.dot_dimension_numbers<[1], [0], [0], [1], [0, 0, 1, 1], [], []>} : vector<1x32xf32>, vector<32x128xf32>, vector<1x128xf32> -> vector<1x128xf32>
    %c0_161 = arith.constant 0 : index
    %c0_162 = arith.constant 0 : index
    %625 = vector.load %arg15[%c0_161, %c0_162] : memref<1x128xf32, #tpu.memory_space<vmem>>, vector<1x128xf32>
    %626 = arith.addf %624, %625 : vector<1x128xf32>
    %c3_163 = arith.constant 3 : index
    %c0_164 = arith.constant 0 : index
    %627 = vector.load %arg16[%c3_163, %c0_164] : memref<16x128xf32, #tpu.memory_space<vmem>>, vector<1x128xf32>
    tpu.vector_store %arg16[%c3_163, %c0_164], %626 {strides = array<i32>} : memref<16x128xf32, #tpu.memory_space<vmem>>, vector<1x128xf32>,
    %cst_165 = arith.constant dense<0xFF800000> : vector<1xf32>
    %628 = vector.multi_reduction <maximumf>, %626, %cst_165 [1] : vector<1x128xf32> to vector<1xf32>
    %629 = vector.shape_cast %628 : vector<1xf32> to vector<1x1xf32>
    %630 = vector.broadcast %629 : vector<1x1xf32> to vector<1x128xf32>
    %631 = arith.cmpf oeq, %626, %630 : vector<1x128xf32>
    %c128_i32_166 = arith.constant 128 : i32
    %632 = vector.broadcast %c128_i32_166 : i32 to vector<1x128xi32>
    %633 = arith.select %631, %388, %632 : vector<1x128xi1>, vector<1x128xi32>
    %cst_167 = arith.constant dense<2147483647> : vector<1xi32>
    %634 = vector.multi_reduction <minsi>, %633, %cst_167 [1] : vector<1x128xi32> to vector<1xi32>
    %635 = vector.shape_cast %634 : vector<1xi32> to vector<1x1xi32>
    %636 = vector.broadcast %635 : vector<1x1xi32> to vector<1x128xi32>
    %637 = arith.cmpi eq, %388, %636 : vector<1x128xi32>
    %638 = arith.extui %637 : vector<1x128xi1> to vector<1x128xi32>
    %639 = arith.sitofp %638 : vector<1x128xi32> to vector<1x128xf32>
    %c0_168 = arith.constant 0 : index
    %c0_169 = arith.constant 0 : index
    %640 = vector.load %arg7[%c0_168, %c0_169] : memref<128x128xf32, #tpu.memory_space<vmem>>, vector<128x128xf32>
    %cst_170 = arith.constant dense<0.000000e+00> : vector<1x128xf32>
    %641 = tpu.matmul %639, %640, %cst_170 {dimension_numbers = #tpu.dot_dimension_numbers<[1], [0], [0], [1], [0, 0, 1, 1], [], []>} : vector<1x128xf32>, vector<128x128xf32>, vector<1x128xf32> -> vector<1x128xf32>
    %c0_171 = arith.constant 0 : index
    %c0_172 = arith.constant 0 : index
    %642 = vector.load %arg9[%c0_171, %c0_172] : memref<32x128xf32, #tpu.memory_space<vmem>>, vector<32x128xf32>
    %cst_173 = arith.constant dense<0.000000e+00> : vector<1x128xf32>
    %643 = tpu.matmul %599, %642, %cst_173 {dimension_numbers = #tpu.dot_dimension_numbers<[1], [0], [0], [1], [0, 0, 1, 1], [], []>} : vector<1x32xf32>, vector<32x128xf32>, vector<1x128xf32> -> vector<1x128xf32>
    %644 = arith.addf %641, %643 : vector<1x128xf32>
    %c0_174 = arith.constant 0 : index
    %c0_175 = arith.constant 0 : index
    %645 = vector.load %arg10[%c0_174, %c0_175] : memref<1x128xf32, #tpu.memory_space<vmem>>, vector<1x128xf32>
    %646 = arith.addf %644, %645 : vector<1x128xf32>
    %647 = vector.extract_strided_slice %646 {offsets = [0, 0], sizes = [1, 96], strides = [1, 1]} : vector<1x128xf32> to vector<1x96xf32>
    %648 = arith.negf %647 : vector<1x96xf32>
    %649 = math.exp %648 : vector<1x96xf32>
    %cst_176 = arith.constant 1.000000e+00 : f32
    %650 = vector.broadcast %cst_176 : f32 to vector<1x96xf32>
    %651 = arith.addf %650, %649 : vector<1x96xf32>
    %652 = arith.divf %650, %651 : vector<1x96xf32>
    %653 = vector.extract_strided_slice %646 {offsets = [0, 96], sizes = [1, 32], strides = [1, 1]} : vector<1x128xf32> to vector<1x32xf32>
    %654 = math.tanh %653 : vector<1x32xf32>
    %655 = vector.extract_strided_slice %652 {offsets = [0, 0], sizes = [1, 32], strides = [1, 1]} : vector<1x96xf32> to vector<1x32xf32>
    %656 = vector.extract_strided_slice %652 {offsets = [0, 32], sizes = [1, 32], strides = [1, 1]} : vector<1x96xf32> to vector<1x32xf32>
    %657 = vector.extract_strided_slice %652 {offsets = [0, 64], sizes = [1, 32], strides = [1, 1]} : vector<1x96xf32> to vector<1x32xf32>
    %658 = arith.mulf %656, %597 : vector<1x32xf32>
    %659 = arith.mulf %655, %654 : vector<1x32xf32>
    %660 = arith.addf %658, %659 : vector<1x32xf32>
    %661 = math.tanh %660 : vector<1x32xf32>
    %662 = arith.mulf %657, %661 : vector<1x32xf32>
    %c0_177 = arith.constant 0 : index
    %c0_178 = arith.constant 0 : index
    %663 = vector.load %arg11[%c0_177, %c0_178] : memref<32x128xf32, #tpu.memory_space<vmem>>, vector<32x128xf32>
    %cst_179 = arith.constant dense<0.000000e+00> : vector<1x128xf32>
    %664 = tpu.matmul %662, %663, %cst_179 {dimension_numbers = #tpu.dot_dimension_numbers<[1], [0], [0], [1], [0, 0, 1, 1], [], []>} : vector<1x32xf32>, vector<32x128xf32>, vector<1x128xf32> -> vector<1x128xf32>
    %c0_180 = arith.constant 0 : index
    %c0_181 = arith.constant 0 : index
    %665 = vector.load %arg12[%c0_180, %c0_181] : memref<32x128xf32, #tpu.memory_space<vmem>>, vector<32x128xf32>
    %cst_182 = arith.constant dense<0.000000e+00> : vector<1x128xf32>
    %666 = tpu.matmul %622, %665, %cst_182 {dimension_numbers = #tpu.dot_dimension_numbers<[1], [0], [0], [1], [0, 0, 1, 1], [], []>} : vector<1x32xf32>, vector<32x128xf32>, vector<1x128xf32> -> vector<1x128xf32>
    %667 = arith.addf %664, %666 : vector<1x128xf32>
    %c0_183 = arith.constant 0 : index
    %c0_184 = arith.constant 0 : index
    %668 = vector.load %arg13[%c0_183, %c0_184] : memref<1x128xf32, #tpu.memory_space<vmem>>, vector<1x128xf32>
    %669 = arith.addf %667, %668 : vector<1x128xf32>
    %670 = vector.extract_strided_slice %669 {offsets = [0, 0], sizes = [1, 96], strides = [1, 1]} : vector<1x128xf32> to vector<1x96xf32>
    %671 = arith.negf %670 : vector<1x96xf32>
    %672 = math.exp %671 : vector<1x96xf32>
    %cst_185 = arith.constant 1.000000e+00 : f32
    %673 = vector.broadcast %cst_185 : f32 to vector<1x96xf32>
    %674 = arith.addf %673, %672 : vector<1x96xf32>
    %675 = arith.divf %673, %674 : vector<1x96xf32>
    %676 = vector.extract_strided_slice %669 {offsets = [0, 96], sizes = [1, 32], strides = [1, 1]} : vector<1x128xf32> to vector<1x32xf32>
    %677 = math.tanh %676 : vector<1x32xf32>
    %678 = vector.extract_strided_slice %675 {offsets = [0, 0], sizes = [1, 32], strides = [1, 1]} : vector<1x96xf32> to vector<1x32xf32>
    %679 = vector.extract_strided_slice %675 {offsets = [0, 32], sizes = [1, 32], strides = [1, 1]} : vector<1x96xf32> to vector<1x32xf32>
    %680 = vector.extract_strided_slice %675 {offsets = [0, 64], sizes = [1, 32], strides = [1, 1]} : vector<1x96xf32> to vector<1x32xf32>
    %681 = arith.mulf %679, %620 : vector<1x32xf32>
    %682 = arith.mulf %678, %677 : vector<1x32xf32>
    %683 = arith.addf %681, %682 : vector<1x32xf32>
    %684 = math.tanh %683 : vector<1x32xf32>
    %685 = arith.mulf %680, %684 : vector<1x32xf32>
    %c0_186 = arith.constant 0 : index
    %c0_187 = arith.constant 0 : index
    %686 = vector.load %arg14[%c0_186, %c0_187] : memref<32x128xf32, #tpu.memory_space<vmem>>, vector<32x128xf32>
    %cst_188 = arith.constant dense<0.000000e+00> : vector<1x128xf32>
    %687 = tpu.matmul %685, %686, %cst_188 {dimension_numbers = #tpu.dot_dimension_numbers<[1], [0], [0], [1], [0, 0, 1, 1], [], []>} : vector<1x32xf32>, vector<32x128xf32>, vector<1x128xf32> -> vector<1x128xf32>
    %c0_189 = arith.constant 0 : index
    %c0_190 = arith.constant 0 : index
    %688 = vector.load %arg15[%c0_189, %c0_190] : memref<1x128xf32, #tpu.memory_space<vmem>>, vector<1x128xf32>
    %689 = arith.addf %687, %688 : vector<1x128xf32>
    %c4_191 = arith.constant 4 : index
    %c0_192 = arith.constant 0 : index
    %690 = vector.load %arg16[%c4_191, %c0_192] : memref<16x128xf32, #tpu.memory_space<vmem>>, vector<1x128xf32>
    tpu.vector_store %arg16[%c4_191, %c0_192], %689 {strides = array<i32>} : memref<16x128xf32, #tpu.memory_space<vmem>>, vector<1x128xf32>,
    %cst_193 = arith.constant dense<0xFF800000> : vector<1xf32>
    %691 = vector.multi_reduction <maximumf>, %689, %cst_193 [1] : vector<1x128xf32> to vector<1xf32>
    %692 = vector.shape_cast %691 : vector<1xf32> to vector<1x1xf32>
    %693 = vector.broadcast %692 : vector<1x1xf32> to vector<1x128xf32>
    %694 = arith.cmpf oeq, %689, %693 : vector<1x128xf32>
    %c128_i32_194 = arith.constant 128 : i32
    %695 = vector.broadcast %c128_i32_194 : i32 to vector<1x128xi32>
    %696 = arith.select %694, %388, %695 : vector<1x128xi1>, vector<1x128xi32>
    %cst_195 = arith.constant dense<2147483647> : vector<1xi32>
    %697 = vector.multi_reduction <minsi>, %696, %cst_195 [1] : vector<1x128xi32> to vector<1xi32>
    %698 = vector.shape_cast %697 : vector<1xi32> to vector<1x1xi32>
    %699 = vector.broadcast %698 : vector<1x1xi32> to vector<1x128xi32>
    %700 = arith.cmpi eq, %388, %699 : vector<1x128xi32>
    %701 = arith.extui %700 : vector<1x128xi1> to vector<1x128xi32>
    %702 = arith.sitofp %701 : vector<1x128xi32> to vector<1x128xf32>
    %c0_196 = arith.constant 0 : index
    %c0_197 = arith.constant 0 : index
    %703 = vector.load %arg7[%c0_196, %c0_197] : memref<128x128xf32, #tpu.memory_space<vmem>>, vector<128x128xf32>
    %cst_198 = arith.constant dense<0.000000e+00> : vector<1x128xf32>
    %704 = tpu.matmul %702, %703, %cst_198 {dimension_numbers = #tpu.dot_dimension_numbers<[1], [0], [0], [1], [0, 0, 1, 1], [], []>} : vector<1x128xf32>, vector<128x128xf32>, vector<1x128xf32> -> vector<1x128xf32>
    %c0_199 = arith.constant 0 : index
    %c0_200 = arith.constant 0 : index
    %705 = vector.load %arg9[%c0_199, %c0_200] : memref<32x128xf32, #tpu.memory_space<vmem>>, vector<32x128xf32>
    %cst_201 = arith.constant dense<0.000000e+00> : vector<1x128xf32>
    %706 = tpu.matmul %662, %705, %cst_201 {dimension_numbers = #tpu.dot_dimension_numbers<[1], [0], [0], [1], [0, 0, 1, 1], [], []>} : vector<1x32xf32>, vector<32x128xf32>, vector<1x128xf32> -> vector<1x128xf32>
    %707 = arith.addf %704, %706 : vector<1x128xf32>
    %c0_202 = arith.constant 0 : index
    %c0_203 = arith.constant 0 : index
    %708 = vector.load %arg10[%c0_202, %c0_203] : memref<1x128xf32, #tpu.memory_space<vmem>>, vector<1x128xf32>
    %709 = arith.addf %707, %708 : vector<1x128xf32>
    %710 = vector.extract_strided_slice %709 {offsets = [0, 0], sizes = [1, 96], strides = [1, 1]} : vector<1x128xf32> to vector<1x96xf32>
    %711 = arith.negf %710 : vector<1x96xf32>
    %712 = math.exp %711 : vector<1x96xf32>
    %cst_204 = arith.constant 1.000000e+00 : f32
    %713 = vector.broadcast %cst_204 : f32 to vector<1x96xf32>
    %714 = arith.addf %713, %712 : vector<1x96xf32>
    %715 = arith.divf %713, %714 : vector<1x96xf32>
    %716 = vector.extract_strided_slice %709 {offsets = [0, 96], sizes = [1, 32], strides = [1, 1]} : vector<1x128xf32> to vector<1x32xf32>
    %717 = math.tanh %716 : vector<1x32xf32>
    %718 = vector.extract_strided_slice %715 {offsets = [0, 0], sizes = [1, 32], strides = [1, 1]} : vector<1x96xf32> to vector<1x32xf32>
    %719 = vector.extract_strided_slice %715 {offsets = [0, 32], sizes = [1, 32], strides = [1, 1]} : vector<1x96xf32> to vector<1x32xf32>
    %720 = vector.extract_strided_slice %715 {offsets = [0, 64], sizes = [1, 32], strides = [1, 1]} : vector<1x96xf32> to vector<1x32xf32>
    %721 = arith.mulf %719, %660 : vector<1x32xf32>
    %722 = arith.mulf %718, %717 : vector<1x32xf32>
    %723 = arith.addf %721, %722 : vector<1x32xf32>
    %724 = math.tanh %723 : vector<1x32xf32>
    %725 = arith.mulf %720, %724 : vector<1x32xf32>
    %c0_205 = arith.constant 0 : index
    %c0_206 = arith.constant 0 : index
    %726 = vector.load %arg11[%c0_205, %c0_206] : memref<32x128xf32, #tpu.memory_space<vmem>>, vector<32x128xf32>
    %cst_207 = arith.constant dense<0.000000e+00> : vector<1x128xf32>
    %727 = tpu.matmul %725, %726, %cst_207 {dimension_numbers = #tpu.dot_dimension_numbers<[1], [0], [0], [1], [0, 0, 1, 1], [], []>} : vector<1x32xf32>, vector<32x128xf32>, vector<1x128xf32> -> vector<1x128xf32>
    %c0_208 = arith.constant 0 : index
    %c0_209 = arith.constant 0 : index
    %728 = vector.load %arg12[%c0_208, %c0_209] : memref<32x128xf32, #tpu.memory_space<vmem>>, vector<32x128xf32>
    %cst_210 = arith.constant dense<0.000000e+00> : vector<1x128xf32>
    %729 = tpu.matmul %685, %728, %cst_210 {dimension_numbers = #tpu.dot_dimension_numbers<[1], [0], [0], [1], [0, 0, 1, 1], [], []>} : vector<1x32xf32>, vector<32x128xf32>, vector<1x128xf32> -> vector<1x128xf32>
    %730 = arith.addf %727, %729 : vector<1x128xf32>
    %c0_211 = arith.constant 0 : index
    %c0_212 = arith.constant 0 : index
    %731 = vector.load %arg13[%c0_211, %c0_212] : memref<1x128xf32, #tpu.memory_space<vmem>>, vector<1x128xf32>
    %732 = arith.addf %730, %731 : vector<1x128xf32>
    %733 = vector.extract_strided_slice %732 {offsets = [0, 0], sizes = [1, 96], strides = [1, 1]} : vector<1x128xf32> to vector<1x96xf32>
    %734 = arith.negf %733 : vector<1x96xf32>
    %735 = math.exp %734 : vector<1x96xf32>
    %cst_213 = arith.constant 1.000000e+00 : f32
    %736 = vector.broadcast %cst_213 : f32 to vector<1x96xf32>
    %737 = arith.addf %736, %735 : vector<1x96xf32>
    %738 = arith.divf %736, %737 : vector<1x96xf32>
    %739 = vector.extract_strided_slice %732 {offsets = [0, 96], sizes = [1, 32], strides = [1, 1]} : vector<1x128xf32> to vector<1x32xf32>
    %740 = math.tanh %739 : vector<1x32xf32>
    %741 = vector.extract_strided_slice %738 {offsets = [0, 0], sizes = [1, 32], strides = [1, 1]} : vector<1x96xf32> to vector<1x32xf32>
    %742 = vector.extract_strided_slice %738 {offsets = [0, 32], sizes = [1, 32], strides = [1, 1]} : vector<1x96xf32> to vector<1x32xf32>
    %743 = vector.extract_strided_slice %738 {offsets = [0, 64], sizes = [1, 32], strides = [1, 1]} : vector<1x96xf32> to vector<1x32xf32>
    %744 = arith.mulf %742, %683 : vector<1x32xf32>
    %745 = arith.mulf %741, %740 : vector<1x32xf32>
    %746 = arith.addf %744, %745 : vector<1x32xf32>
    %747 = math.tanh %746 : vector<1x32xf32>
    %748 = arith.mulf %743, %747 : vector<1x32xf32>
    %c0_214 = arith.constant 0 : index
    %c0_215 = arith.constant 0 : index
    %749 = vector.load %arg14[%c0_214, %c0_215] : memref<32x128xf32, #tpu.memory_space<vmem>>, vector<32x128xf32>
    %cst_216 = arith.constant dense<0.000000e+00> : vector<1x128xf32>
    %750 = tpu.matmul %748, %749, %cst_216 {dimension_numbers = #tpu.dot_dimension_numbers<[1], [0], [0], [1], [0, 0, 1, 1], [], []>} : vector<1x32xf32>, vector<32x128xf32>, vector<1x128xf32> -> vector<1x128xf32>
    %c0_217 = arith.constant 0 : index
    %c0_218 = arith.constant 0 : index
    %751 = vector.load %arg15[%c0_217, %c0_218] : memref<1x128xf32, #tpu.memory_space<vmem>>, vector<1x128xf32>
    %752 = arith.addf %750, %751 : vector<1x128xf32>
    %c5_219 = arith.constant 5 : index
    %c0_220 = arith.constant 0 : index
    %753 = vector.load %arg16[%c5_219, %c0_220] : memref<16x128xf32, #tpu.memory_space<vmem>>, vector<1x128xf32>
    tpu.vector_store %arg16[%c5_219, %c0_220], %752 {strides = array<i32>} : memref<16x128xf32, #tpu.memory_space<vmem>>, vector<1x128xf32>,
    %cst_221 = arith.constant dense<0xFF800000> : vector<1xf32>
    %754 = vector.multi_reduction <maximumf>, %752, %cst_221 [1] : vector<1x128xf32> to vector<1xf32>
    %755 = vector.shape_cast %754 : vector<1xf32> to vector<1x1xf32>
    %756 = vector.broadcast %755 : vector<1x1xf32> to vector<1x128xf32>
    %757 = arith.cmpf oeq, %752, %756 : vector<1x128xf32>
    %c128_i32_222 = arith.constant 128 : i32
    %758 = vector.broadcast %c128_i32_222 : i32 to vector<1x128xi32>
    %759 = arith.select %757, %388, %758 : vector<1x128xi1>, vector<1x128xi32>
    %cst_223 = arith.constant dense<2147483647> : vector<1xi32>
    %760 = vector.multi_reduction <minsi>, %759, %cst_223 [1] : vector<1x128xi32> to vector<1xi32>
    %761 = vector.shape_cast %760 : vector<1xi32> to vector<1x1xi32>
    %762 = vector.broadcast %761 : vector<1x1xi32> to vector<1x128xi32>
    %763 = arith.cmpi eq, %388, %762 : vector<1x128xi32>
    %764 = arith.extui %763 : vector<1x128xi1> to vector<1x128xi32>
    %765 = arith.sitofp %764 : vector<1x128xi32> to vector<1x128xf32>
    %c0_224 = arith.constant 0 : index
    %c0_225 = arith.constant 0 : index
    %766 = vector.load %arg7[%c0_224, %c0_225] : memref<128x128xf32, #tpu.memory_space<vmem>>, vector<128x128xf32>
    %cst_226 = arith.constant dense<0.000000e+00> : vector<1x128xf32>
    %767 = tpu.matmul %765, %766, %cst_226 {dimension_numbers = #tpu.dot_dimension_numbers<[1], [0], [0], [1], [0, 0, 1, 1], [], []>} : vector<1x128xf32>, vector<128x128xf32>, vector<1x128xf32> -> vector<1x128xf32>
    %c0_227 = arith.constant 0 : index
    %c0_228 = arith.constant 0 : index
    %768 = vector.load %arg9[%c0_227, %c0_228] : memref<32x128xf32, #tpu.memory_space<vmem>>, vector<32x128xf32>
    %cst_229 = arith.constant dense<0.000000e+00> : vector<1x128xf32>
    %769 = tpu.matmul %725, %768, %cst_229 {dimension_numbers = #tpu.dot_dimension_numbers<[1], [0], [0], [1], [0, 0, 1, 1], [], []>} : vector<1x32xf32>, vector<32x128xf32>, vector<1x128xf32> -> vector<1x128xf32>
    %770 = arith.addf %767, %769 : vector<1x128xf32>
    %c0_230 = arith.constant 0 : index
    %c0_231 = arith.constant 0 : index
    %771 = vector.load %arg10[%c0_230, %c0_231] : memref<1x128xf32, #tpu.memory_space<vmem>>, vector<1x128xf32>
    %772 = arith.addf %770, %771 : vector<1x128xf32>
    %773 = vector.extract_strided_slice %772 {offsets = [0, 0], sizes = [1, 96], strides = [1, 1]} : vector<1x128xf32> to vector<1x96xf32>
    %774 = arith.negf %773 : vector<1x96xf32>
    %775 = math.exp %774 : vector<1x96xf32>
    %cst_232 = arith.constant 1.000000e+00 : f32
    %776 = vector.broadcast %cst_232 : f32 to vector<1x96xf32>
    %777 = arith.addf %776, %775 : vector<1x96xf32>
    %778 = arith.divf %776, %777 : vector<1x96xf32>
    %779 = vector.extract_strided_slice %772 {offsets = [0, 96], sizes = [1, 32], strides = [1, 1]} : vector<1x128xf32> to vector<1x32xf32>
    %780 = math.tanh %779 : vector<1x32xf32>
    %781 = vector.extract_strided_slice %778 {offsets = [0, 0], sizes = [1, 32], strides = [1, 1]} : vector<1x96xf32> to vector<1x32xf32>
    %782 = vector.extract_strided_slice %778 {offsets = [0, 32], sizes = [1, 32], strides = [1, 1]} : vector<1x96xf32> to vector<1x32xf32>
    %783 = vector.extract_strided_slice %778 {offsets = [0, 64], sizes = [1, 32], strides = [1, 1]} : vector<1x96xf32> to vector<1x32xf32>
    %784 = arith.mulf %782, %723 : vector<1x32xf32>
    %785 = arith.mulf %781, %780 : vector<1x32xf32>
    %786 = arith.addf %784, %785 : vector<1x32xf32>
    %787 = math.tanh %786 : vector<1x32xf32>
    %788 = arith.mulf %783, %787 : vector<1x32xf32>
    %c0_233 = arith.constant 0 : index
    %c0_234 = arith.constant 0 : index
    %789 = vector.load %arg11[%c0_233, %c0_234] : memref<32x128xf32, #tpu.memory_space<vmem>>, vector<32x128xf32>
    %cst_235 = arith.constant dense<0.000000e+00> : vector<1x128xf32>
    %790 = tpu.matmul %788, %789, %cst_235 {dimension_numbers = #tpu.dot_dimension_numbers<[1], [0], [0], [1], [0, 0, 1, 1], [], []>} : vector<1x32xf32>, vector<32x128xf32>, vector<1x128xf32> -> vector<1x128xf32>
    %c0_236 = arith.constant 0 : index
    %c0_237 = arith.constant 0 : index
    %791 = vector.load %arg12[%c0_236, %c0_237] : memref<32x128xf32, #tpu.memory_space<vmem>>, vector<32x128xf32>
    %cst_238 = arith.constant dense<0.000000e+00> : vector<1x128xf32>
    %792 = tpu.matmul %748, %791, %cst_238 {dimension_numbers = #tpu.dot_dimension_numbers<[1], [0], [0], [1], [0, 0, 1, 1], [], []>} : vector<1x32xf32>, vector<32x128xf32>, vector<1x128xf32> -> vector<1x128xf32>
    %793 = arith.addf %790, %792 : vector<1x128xf32>
    %c0_239 = arith.constant 0 : index
    %c0_240 = arith.constant 0 : index
    %794 = vector.load %arg13[%c0_239, %c0_240] : memref<1x128xf32, #tpu.memory_space<vmem>>, vector<1x128xf32>
    %795 = arith.addf %793, %794 : vector<1x128xf32>
    %796 = vector.extract_strided_slice %795 {offsets = [0, 0], sizes = [1, 96], strides = [1, 1]} : vector<1x128xf32> to vector<1x96xf32>
    %797 = arith.negf %796 : vector<1x96xf32>
    %798 = math.exp %797 : vector<1x96xf32>
    %cst_241 = arith.constant 1.000000e+00 : f32
    %799 = vector.broadcast %cst_241 : f32 to vector<1x96xf32>
    %800 = arith.addf %799, %798 : vector<1x96xf32>
    %801 = arith.divf %799, %800 : vector<1x96xf32>
    %802 = vector.extract_strided_slice %795 {offsets = [0, 96], sizes = [1, 32], strides = [1, 1]} : vector<1x128xf32> to vector<1x32xf32>
    %803 = math.tanh %802 : vector<1x32xf32>
    %804 = vector.extract_strided_slice %801 {offsets = [0, 0], sizes = [1, 32], strides = [1, 1]} : vector<1x96xf32> to vector<1x32xf32>
    %805 = vector.extract_strided_slice %801 {offsets = [0, 32], sizes = [1, 32], strides = [1, 1]} : vector<1x96xf32> to vector<1x32xf32>
    %806 = vector.extract_strided_slice %801 {offsets = [0, 64], sizes = [1, 32], strides = [1, 1]} : vector<1x96xf32> to vector<1x32xf32>
    %807 = arith.mulf %805, %746 : vector<1x32xf32>
    %808 = arith.mulf %804, %803 : vector<1x32xf32>
    %809 = arith.addf %807, %808 : vector<1x32xf32>
    %810 = math.tanh %809 : vector<1x32xf32>
    %811 = arith.mulf %806, %810 : vector<1x32xf32>
    %c0_242 = arith.constant 0 : index
    %c0_243 = arith.constant 0 : index
    %812 = vector.load %arg14[%c0_242, %c0_243] : memref<32x128xf32, #tpu.memory_space<vmem>>, vector<32x128xf32>
    %cst_244 = arith.constant dense<0.000000e+00> : vector<1x128xf32>
    %813 = tpu.matmul %811, %812, %cst_244 {dimension_numbers = #tpu.dot_dimension_numbers<[1], [0], [0], [1], [0, 0, 1, 1], [], []>} : vector<1x32xf32>, vector<32x128xf32>, vector<1x128xf32> -> vector<1x128xf32>
    %c0_245 = arith.constant 0 : index
    %c0_246 = arith.constant 0 : index
    %814 = vector.load %arg15[%c0_245, %c0_246] : memref<1x128xf32, #tpu.memory_space<vmem>>, vector<1x128xf32>
    %815 = arith.addf %813, %814 : vector<1x128xf32>
    %c6_247 = arith.constant 6 : index
    %c0_248 = arith.constant 0 : index
    %816 = vector.load %arg16[%c6_247, %c0_248] : memref<16x128xf32, #tpu.memory_space<vmem>>, vector<1x128xf32>
    tpu.vector_store %arg16[%c6_247, %c0_248], %815 {strides = array<i32>} : memref<16x128xf32, #tpu.memory_space<vmem>>, vector<1x128xf32>,
    %cst_249 = arith.constant dense<0xFF800000> : vector<1xf32>
    %817 = vector.multi_reduction <maximumf>, %815, %cst_249 [1] : vector<1x128xf32> to vector<1xf32>
    %818 = vector.shape_cast %817 : vector<1xf32> to vector<1x1xf32>
    %819 = vector.broadcast %818 : vector<1x1xf32> to vector<1x128xf32>
    %820 = arith.cmpf oeq, %815, %819 : vector<1x128xf32>
    %c128_i32_250 = arith.constant 128 : i32
    %821 = vector.broadcast %c128_i32_250 : i32 to vector<1x128xi32>
    %822 = arith.select %820, %388, %821 : vector<1x128xi1>, vector<1x128xi32>
    %cst_251 = arith.constant dense<2147483647> : vector<1xi32>
    %823 = vector.multi_reduction <minsi>, %822, %cst_251 [1] : vector<1x128xi32> to vector<1xi32>
    %824 = vector.shape_cast %823 : vector<1xi32> to vector<1x1xi32>
    %825 = vector.broadcast %824 : vector<1x1xi32> to vector<1x128xi32>
    %826 = arith.cmpi eq, %388, %825 : vector<1x128xi32>
    %827 = arith.extui %826 : vector<1x128xi1> to vector<1x128xi32>
    %828 = arith.sitofp %827 : vector<1x128xi32> to vector<1x128xf32>
    %c0_252 = arith.constant 0 : index
    %c0_253 = arith.constant 0 : index
    %829 = vector.load %arg7[%c0_252, %c0_253] : memref<128x128xf32, #tpu.memory_space<vmem>>, vector<128x128xf32>
    %cst_254 = arith.constant dense<0.000000e+00> : vector<1x128xf32>
    %830 = tpu.matmul %828, %829, %cst_254 {dimension_numbers = #tpu.dot_dimension_numbers<[1], [0], [0], [1], [0, 0, 1, 1], [], []>} : vector<1x128xf32>, vector<128x128xf32>, vector<1x128xf32> -> vector<1x128xf32>
    %c0_255 = arith.constant 0 : index
    %c0_256 = arith.constant 0 : index
    %831 = vector.load %arg9[%c0_255, %c0_256] : memref<32x128xf32, #tpu.memory_space<vmem>>, vector<32x128xf32>
    %cst_257 = arith.constant dense<0.000000e+00> : vector<1x128xf32>
    %832 = tpu.matmul %788, %831, %cst_257 {dimension_numbers = #tpu.dot_dimension_numbers<[1], [0], [0], [1], [0, 0, 1, 1], [], []>} : vector<1x32xf32>, vector<32x128xf32>, vector<1x128xf32> -> vector<1x128xf32>
    %833 = arith.addf %830, %832 : vector<1x128xf32>
    %c0_258 = arith.constant 0 : index
    %c0_259 = arith.constant 0 : index
    %834 = vector.load %arg10[%c0_258, %c0_259] : memref<1x128xf32, #tpu.memory_space<vmem>>, vector<1x128xf32>
    %835 = arith.addf %833, %834 : vector<1x128xf32>
    %836 = vector.extract_strided_slice %835 {offsets = [0, 0], sizes = [1, 96], strides = [1, 1]} : vector<1x128xf32> to vector<1x96xf32>
    %837 = arith.negf %836 : vector<1x96xf32>
    %838 = math.exp %837 : vector<1x96xf32>
    %cst_260 = arith.constant 1.000000e+00 : f32
    %839 = vector.broadcast %cst_260 : f32 to vector<1x96xf32>
    %840 = arith.addf %839, %838 : vector<1x96xf32>
    %841 = arith.divf %839, %840 : vector<1x96xf32>
    %842 = vector.extract_strided_slice %835 {offsets = [0, 96], sizes = [1, 32], strides = [1, 1]} : vector<1x128xf32> to vector<1x32xf32>
    %843 = math.tanh %842 : vector<1x32xf32>
    %844 = vector.extract_strided_slice %841 {offsets = [0, 0], sizes = [1, 32], strides = [1, 1]} : vector<1x96xf32> to vector<1x32xf32>
    %845 = vector.extract_strided_slice %841 {offsets = [0, 32], sizes = [1, 32], strides = [1, 1]} : vector<1x96xf32> to vector<1x32xf32>
    %846 = vector.extract_strided_slice %841 {offsets = [0, 64], sizes = [1, 32], strides = [1, 1]} : vector<1x96xf32> to vector<1x32xf32>
    %847 = arith.mulf %845, %786 : vector<1x32xf32>
    %848 = arith.mulf %844, %843 : vector<1x32xf32>
    %849 = arith.addf %847, %848 : vector<1x32xf32>
    %850 = math.tanh %849 : vector<1x32xf32>
    %851 = arith.mulf %846, %850 : vector<1x32xf32>
    %c0_261 = arith.constant 0 : index
    %c0_262 = arith.constant 0 : index
    %852 = vector.load %arg11[%c0_261, %c0_262] : memref<32x128xf32, #tpu.memory_space<vmem>>, vector<32x128xf32>
    %cst_263 = arith.constant dense<0.000000e+00> : vector<1x128xf32>
    %853 = tpu.matmul %851, %852, %cst_263 {dimension_numbers = #tpu.dot_dimension_numbers<[1], [0], [0], [1], [0, 0, 1, 1], [], []>} : vector<1x32xf32>, vector<32x128xf32>, vector<1x128xf32> -> vector<1x128xf32>
    %c0_264 = arith.constant 0 : index
    %c0_265 = arith.constant 0 : index
    %854 = vector.load %arg12[%c0_264, %c0_265] : memref<32x128xf32, #tpu.memory_space<vmem>>, vector<32x128xf32>
    %cst_266 = arith.constant dense<0.000000e+00> : vector<1x128xf32>
    %855 = tpu.matmul %811, %854, %cst_266 {dimension_numbers = #tpu.dot_dimension_numbers<[1], [0], [0], [1], [0, 0, 1, 1], [], []>} : vector<1x32xf32>, vector<32x128xf32>, vector<1x128xf32> -> vector<1x128xf32>
    %856 = arith.addf %853, %855 : vector<1x128xf32>
    %c0_267 = arith.constant 0 : index
    %c0_268 = arith.constant 0 : index
    %857 = vector.load %arg13[%c0_267, %c0_268] : memref<1x128xf32, #tpu.memory_space<vmem>>, vector<1x128xf32>
    %858 = arith.addf %856, %857 : vector<1x128xf32>
    %859 = vector.extract_strided_slice %858 {offsets = [0, 0], sizes = [1, 96], strides = [1, 1]} : vector<1x128xf32> to vector<1x96xf32>
    %860 = arith.negf %859 : vector<1x96xf32>
    %861 = math.exp %860 : vector<1x96xf32>
    %cst_269 = arith.constant 1.000000e+00 : f32
    %862 = vector.broadcast %cst_269 : f32 to vector<1x96xf32>
    %863 = arith.addf %862, %861 : vector<1x96xf32>
    %864 = arith.divf %862, %863 : vector<1x96xf32>
    %865 = vector.extract_strided_slice %858 {offsets = [0, 96], sizes = [1, 32], strides = [1, 1]} : vector<1x128xf32> to vector<1x32xf32>
    %866 = math.tanh %865 : vector<1x32xf32>
    %867 = vector.extract_strided_slice %864 {offsets = [0, 0], sizes = [1, 32], strides = [1, 1]} : vector<1x96xf32> to vector<1x32xf32>
    %868 = vector.extract_strided_slice %864 {offsets = [0, 32], sizes = [1, 32], strides = [1, 1]} : vector<1x96xf32> to vector<1x32xf32>
    %869 = vector.extract_strided_slice %864 {offsets = [0, 64], sizes = [1, 32], strides = [1, 1]} : vector<1x96xf32> to vector<1x32xf32>
    %870 = arith.mulf %868, %809 : vector<1x32xf32>
    %871 = arith.mulf %867, %866 : vector<1x32xf32>
    %872 = arith.addf %870, %871 : vector<1x32xf32>
    %873 = math.tanh %872 : vector<1x32xf32>
    %874 = arith.mulf %869, %873 : vector<1x32xf32>
    %c0_270 = arith.constant 0 : index
    %c0_271 = arith.constant 0 : index
    %875 = vector.load %arg14[%c0_270, %c0_271] : memref<32x128xf32, #tpu.memory_space<vmem>>, vector<32x128xf32>
    %cst_272 = arith.constant dense<0.000000e+00> : vector<1x128xf32>
    %876 = tpu.matmul %874, %875, %cst_272 {dimension_numbers = #tpu.dot_dimension_numbers<[1], [0], [0], [1], [0, 0, 1, 1], [], []>} : vector<1x32xf32>, vector<32x128xf32>, vector<1x128xf32> -> vector<1x128xf32>
    %c0_273 = arith.constant 0 : index
    %c0_274 = arith.constant 0 : index
    %877 = vector.load %arg15[%c0_273, %c0_274] : memref<1x128xf32, #tpu.memory_space<vmem>>, vector<1x128xf32>
    %878 = arith.addf %876, %877 : vector<1x128xf32>
    %c7_275 = arith.constant 7 : index
    %c0_276 = arith.constant 0 : index
    %879 = vector.load %arg16[%c7_275, %c0_276] : memref<16x128xf32, #tpu.memory_space<vmem>>, vector<1x128xf32>
    tpu.vector_store %arg16[%c7_275, %c0_276], %878 {strides = array<i32>} : memref<16x128xf32, #tpu.memory_space<vmem>>, vector<1x128xf32>,
    %cst_277 = arith.constant dense<0xFF800000> : vector<1xf32>
    %880 = vector.multi_reduction <maximumf>, %878, %cst_277 [1] : vector<1x128xf32> to vector<1xf32>
    %881 = vector.shape_cast %880 : vector<1xf32> to vector<1x1xf32>
    %882 = vector.broadcast %881 : vector<1x1xf32> to vector<1x128xf32>
    %883 = arith.cmpf oeq, %878, %882 : vector<1x128xf32>
    %c128_i32_278 = arith.constant 128 : i32
    %884 = vector.broadcast %c128_i32_278 : i32 to vector<1x128xi32>
    %885 = arith.select %883, %388, %884 : vector<1x128xi1>, vector<1x128xi32>
    %cst_279 = arith.constant dense<2147483647> : vector<1xi32>
    %886 = vector.multi_reduction <minsi>, %885, %cst_279 [1] : vector<1x128xi32> to vector<1xi32>
    %887 = vector.shape_cast %886 : vector<1xi32> to vector<1x1xi32>
    %888 = vector.broadcast %887 : vector<1x1xi32> to vector<1x128xi32>
    %889 = arith.cmpi eq, %388, %888 : vector<1x128xi32>
    %890 = arith.extui %889 : vector<1x128xi1> to vector<1x128xi32>
    %891 = arith.sitofp %890 : vector<1x128xi32> to vector<1x128xf32>
    %c0_280 = arith.constant 0 : index
    %c0_281 = arith.constant 0 : index
    %892 = vector.load %arg7[%c0_280, %c0_281] : memref<128x128xf32, #tpu.memory_space<vmem>>, vector<128x128xf32>
    %cst_282 = arith.constant dense<0.000000e+00> : vector<1x128xf32>
    %893 = tpu.matmul %891, %892, %cst_282 {dimension_numbers = #tpu.dot_dimension_numbers<[1], [0], [0], [1], [0, 0, 1, 1], [], []>} : vector<1x128xf32>, vector<128x128xf32>, vector<1x128xf32> -> vector<1x128xf32>
    %c0_283 = arith.constant 0 : index
    %c0_284 = arith.constant 0 : index
    %894 = vector.load %arg9[%c0_283, %c0_284] : memref<32x128xf32, #tpu.memory_space<vmem>>, vector<32x128xf32>
    %cst_285 = arith.constant dense<0.000000e+00> : vector<1x128xf32>
    %895 = tpu.matmul %851, %894, %cst_285 {dimension_numbers = #tpu.dot_dimension_numbers<[1], [0], [0], [1], [0, 0, 1, 1], [], []>} : vector<1x32xf32>, vector<32x128xf32>, vector<1x128xf32> -> vector<1x128xf32>
    %896 = arith.addf %893, %895 : vector<1x128xf32>
    %c0_286 = arith.constant 0 : index
    %c0_287 = arith.constant 0 : index
    %897 = vector.load %arg10[%c0_286, %c0_287] : memref<1x128xf32, #tpu.memory_space<vmem>>, vector<1x128xf32>
    %898 = arith.addf %896, %897 : vector<1x128xf32>
    %899 = vector.extract_strided_slice %898 {offsets = [0, 0], sizes = [1, 96], strides = [1, 1]} : vector<1x128xf32> to vector<1x96xf32>
    %900 = arith.negf %899 : vector<1x96xf32>
    %901 = math.exp %900 : vector<1x96xf32>
    %cst_288 = arith.constant 1.000000e+00 : f32
    %902 = vector.broadcast %cst_288 : f32 to vector<1x96xf32>
    %903 = arith.addf %902, %901 : vector<1x96xf32>
    %904 = arith.divf %902, %903 : vector<1x96xf32>
    %905 = vector.extract_strided_slice %898 {offsets = [0, 96], sizes = [1, 32], strides = [1, 1]} : vector<1x128xf32> to vector<1x32xf32>
    %906 = math.tanh %905 : vector<1x32xf32>
    %907 = vector.extract_strided_slice %904 {offsets = [0, 0], sizes = [1, 32], strides = [1, 1]} : vector<1x96xf32> to vector<1x32xf32>
    %908 = vector.extract_strided_slice %904 {offsets = [0, 32], sizes = [1, 32], strides = [1, 1]} : vector<1x96xf32> to vector<1x32xf32>
    %909 = vector.extract_strided_slice %904 {offsets = [0, 64], sizes = [1, 32], strides = [1, 1]} : vector<1x96xf32> to vector<1x32xf32>
    %910 = arith.mulf %908, %849 : vector<1x32xf32>
    %911 = arith.mulf %907, %906 : vector<1x32xf32>
    %912 = arith.addf %910, %911 : vector<1x32xf32>
    %913 = math.tanh %912 : vector<1x32xf32>
    %914 = arith.mulf %909, %913 : vector<1x32xf32>
    %c0_289 = arith.constant 0 : index
    %c0_290 = arith.constant 0 : index
    %915 = vector.load %arg11[%c0_289, %c0_290] : memref<32x128xf32, #tpu.memory_space<vmem>>, vector<32x128xf32>
    %cst_291 = arith.constant dense<0.000000e+00> : vector<1x128xf32>
    %916 = tpu.matmul %914, %915, %cst_291 {dimension_numbers = #tpu.dot_dimension_numbers<[1], [0], [0], [1], [0, 0, 1, 1], [], []>} : vector<1x32xf32>, vector<32x128xf32>, vector<1x128xf32> -> vector<1x128xf32>
    %c0_292 = arith.constant 0 : index
    %c0_293 = arith.constant 0 : index
    %917 = vector.load %arg12[%c0_292, %c0_293] : memref<32x128xf32, #tpu.memory_space<vmem>>, vector<32x128xf32>
    %cst_294 = arith.constant dense<0.000000e+00> : vector<1x128xf32>
    %918 = tpu.matmul %874, %917, %cst_294 {dimension_numbers = #tpu.dot_dimension_numbers<[1], [0], [0], [1], [0, 0, 1, 1], [], []>} : vector<1x32xf32>, vector<32x128xf32>, vector<1x128xf32> -> vector<1x128xf32>
    %919 = arith.addf %916, %918 : vector<1x128xf32>
    %c0_295 = arith.constant 0 : index
    %c0_296 = arith.constant 0 : index
    %920 = vector.load %arg13[%c0_295, %c0_296] : memref<1x128xf32, #tpu.memory_space<vmem>>, vector<1x128xf32>
    %921 = arith.addf %919, %920 : vector<1x128xf32>
    %922 = vector.extract_strided_slice %921 {offsets = [0, 0], sizes = [1, 96], strides = [1, 1]} : vector<1x128xf32> to vector<1x96xf32>
    %923 = arith.negf %922 : vector<1x96xf32>
    %924 = math.exp %923 : vector<1x96xf32>
    %cst_297 = arith.constant 1.000000e+00 : f32
    %925 = vector.broadcast %cst_297 : f32 to vector<1x96xf32>
    %926 = arith.addf %925, %924 : vector<1x96xf32>
    %927 = arith.divf %925, %926 : vector<1x96xf32>
    %928 = vector.extract_strided_slice %921 {offsets = [0, 96], sizes = [1, 32], strides = [1, 1]} : vector<1x128xf32> to vector<1x32xf32>
    %929 = math.tanh %928 : vector<1x32xf32>
    %930 = vector.extract_strided_slice %927 {offsets = [0, 0], sizes = [1, 32], strides = [1, 1]} : vector<1x96xf32> to vector<1x32xf32>
    %931 = vector.extract_strided_slice %927 {offsets = [0, 32], sizes = [1, 32], strides = [1, 1]} : vector<1x96xf32> to vector<1x32xf32>
    %932 = vector.extract_strided_slice %927 {offsets = [0, 64], sizes = [1, 32], strides = [1, 1]} : vector<1x96xf32> to vector<1x32xf32>
    %933 = arith.mulf %931, %872 : vector<1x32xf32>
    %934 = arith.mulf %930, %929 : vector<1x32xf32>
    %935 = arith.addf %933, %934 : vector<1x32xf32>
    %936 = math.tanh %935 : vector<1x32xf32>
    %937 = arith.mulf %932, %936 : vector<1x32xf32>
    %c0_298 = arith.constant 0 : index
    %c0_299 = arith.constant 0 : index
    %938 = vector.load %arg14[%c0_298, %c0_299] : memref<32x128xf32, #tpu.memory_space<vmem>>, vector<32x128xf32>
    %cst_300 = arith.constant dense<0.000000e+00> : vector<1x128xf32>
    %939 = tpu.matmul %937, %938, %cst_300 {dimension_numbers = #tpu.dot_dimension_numbers<[1], [0], [0], [1], [0, 0, 1, 1], [], []>} : vector<1x32xf32>, vector<32x128xf32>, vector<1x128xf32> -> vector<1x128xf32>
    %c0_301 = arith.constant 0 : index
    %c0_302 = arith.constant 0 : index
    %940 = vector.load %arg15[%c0_301, %c0_302] : memref<1x128xf32, #tpu.memory_space<vmem>>, vector<1x128xf32>
    %941 = arith.addf %939, %940 : vector<1x128xf32>
    %c8 = arith.constant 8 : index
    %c0_303 = arith.constant 0 : index
    %942 = vector.load %arg16[%c8, %c0_303] : memref<16x128xf32, #tpu.memory_space<vmem>>, vector<1x128xf32>
    tpu.vector_store %arg16[%c8, %c0_303], %941 {strides = array<i32>} : memref<16x128xf32, #tpu.memory_space<vmem>>, vector<1x128xf32>,
    %cst_304 = arith.constant dense<0xFF800000> : vector<1xf32>
    %943 = vector.multi_reduction <maximumf>, %941, %cst_304 [1] : vector<1x128xf32> to vector<1xf32>
    %944 = vector.shape_cast %943 : vector<1xf32> to vector<1x1xf32>
    %945 = vector.broadcast %944 : vector<1x1xf32> to vector<1x128xf32>
    %946 = arith.cmpf oeq, %941, %945 : vector<1x128xf32>
    %c128_i32_305 = arith.constant 128 : i32
    %947 = vector.broadcast %c128_i32_305 : i32 to vector<1x128xi32>
    %948 = arith.select %946, %388, %947 : vector<1x128xi1>, vector<1x128xi32>
    %cst_306 = arith.constant dense<2147483647> : vector<1xi32>
    %949 = vector.multi_reduction <minsi>, %948, %cst_306 [1] : vector<1x128xi32> to vector<1xi32>
    %950 = vector.shape_cast %949 : vector<1xi32> to vector<1x1xi32>
    %951 = vector.broadcast %950 : vector<1x1xi32> to vector<1x128xi32>
    %952 = arith.cmpi eq, %388, %951 : vector<1x128xi32>
    %953 = arith.extui %952 : vector<1x128xi1> to vector<1x128xi32>
    %954 = arith.sitofp %953 : vector<1x128xi32> to vector<1x128xf32>
    %c0_307 = arith.constant 0 : index
    %c0_308 = arith.constant 0 : index
    %955 = vector.load %arg7[%c0_307, %c0_308] : memref<128x128xf32, #tpu.memory_space<vmem>>, vector<128x128xf32>
    %cst_309 = arith.constant dense<0.000000e+00> : vector<1x128xf32>
    %956 = tpu.matmul %954, %955, %cst_309 {dimension_numbers = #tpu.dot_dimension_numbers<[1], [0], [0], [1], [0, 0, 1, 1], [], []>} : vector<1x128xf32>, vector<128x128xf32>, vector<1x128xf32> -> vector<1x128xf32>
    %c0_310 = arith.constant 0 : index
    %c0_311 = arith.constant 0 : index
    %957 = vector.load %arg9[%c0_310, %c0_311] : memref<32x128xf32, #tpu.memory_space<vmem>>, vector<32x128xf32>
    %cst_312 = arith.constant dense<0.000000e+00> : vector<1x128xf32>
    %958 = tpu.matmul %914, %957, %cst_312 {dimension_numbers = #tpu.dot_dimension_numbers<[1], [0], [0], [1], [0, 0, 1, 1], [], []>} : vector<1x32xf32>, vector<32x128xf32>, vector<1x128xf32> -> vector<1x128xf32>
    %959 = arith.addf %956, %958 : vector<1x128xf32>
    %c0_313 = arith.constant 0 : index
    %c0_314 = arith.constant 0 : index
    %960 = vector.load %arg10[%c0_313, %c0_314] : memref<1x128xf32, #tpu.memory_space<vmem>>, vector<1x128xf32>
    %961 = arith.addf %959, %960 : vector<1x128xf32>
    %962 = vector.extract_strided_slice %961 {offsets = [0, 0], sizes = [1, 96], strides = [1, 1]} : vector<1x128xf32> to vector<1x96xf32>
    %963 = arith.negf %962 : vector<1x96xf32>
    %964 = math.exp %963 : vector<1x96xf32>
    %cst_315 = arith.constant 1.000000e+00 : f32
    %965 = vector.broadcast %cst_315 : f32 to vector<1x96xf32>
    %966 = arith.addf %965, %964 : vector<1x96xf32>
    %967 = arith.divf %965, %966 : vector<1x96xf32>
    %968 = vector.extract_strided_slice %961 {offsets = [0, 96], sizes = [1, 32], strides = [1, 1]} : vector<1x128xf32> to vector<1x32xf32>
    %969 = math.tanh %968 : vector<1x32xf32>
    %970 = vector.extract_strided_slice %967 {offsets = [0, 0], sizes = [1, 32], strides = [1, 1]} : vector<1x96xf32> to vector<1x32xf32>
    %971 = vector.extract_strided_slice %967 {offsets = [0, 32], sizes = [1, 32], strides = [1, 1]} : vector<1x96xf32> to vector<1x32xf32>
    %972 = vector.extract_strided_slice %967 {offsets = [0, 64], sizes = [1, 32], strides = [1, 1]} : vector<1x96xf32> to vector<1x32xf32>
    %973 = arith.mulf %971, %912 : vector<1x32xf32>
    %974 = arith.mulf %970, %969 : vector<1x32xf32>
    %975 = arith.addf %973, %974 : vector<1x32xf32>
    %976 = math.tanh %975 : vector<1x32xf32>
    %977 = arith.mulf %972, %976 : vector<1x32xf32>
    %c0_316 = arith.constant 0 : index
    %c0_317 = arith.constant 0 : index
    %978 = vector.load %arg11[%c0_316, %c0_317] : memref<32x128xf32, #tpu.memory_space<vmem>>, vector<32x128xf32>
    %cst_318 = arith.constant dense<0.000000e+00> : vector<1x128xf32>
    %979 = tpu.matmul %977, %978, %cst_318 {dimension_numbers = #tpu.dot_dimension_numbers<[1], [0], [0], [1], [0, 0, 1, 1], [], []>} : vector<1x32xf32>, vector<32x128xf32>, vector<1x128xf32> -> vector<1x128xf32>
    %c0_319 = arith.constant 0 : index
    %c0_320 = arith.constant 0 : index
    %980 = vector.load %arg12[%c0_319, %c0_320] : memref<32x128xf32, #tpu.memory_space<vmem>>, vector<32x128xf32>
    %cst_321 = arith.constant dense<0.000000e+00> : vector<1x128xf32>
    %981 = tpu.matmul %937, %980, %cst_321 {dimension_numbers = #tpu.dot_dimension_numbers<[1], [0], [0], [1], [0, 0, 1, 1], [], []>} : vector<1x32xf32>, vector<32x128xf32>, vector<1x128xf32> -> vector<1x128xf32>
    %982 = arith.addf %979, %981 : vector<1x128xf32>
    %c0_322 = arith.constant 0 : index
    %c0_323 = arith.constant 0 : index
    %983 = vector.load %arg13[%c0_322, %c0_323] : memref<1x128xf32, #tpu.memory_space<vmem>>, vector<1x128xf32>
    %984 = arith.addf %982, %983 : vector<1x128xf32>
    %985 = vector.extract_strided_slice %984 {offsets = [0, 0], sizes = [1, 96], strides = [1, 1]} : vector<1x128xf32> to vector<1x96xf32>
    %986 = arith.negf %985 : vector<1x96xf32>
    %987 = math.exp %986 : vector<1x96xf32>
    %cst_324 = arith.constant 1.000000e+00 : f32
    %988 = vector.broadcast %cst_324 : f32 to vector<1x96xf32>
    %989 = arith.addf %988, %987 : vector<1x96xf32>
    %990 = arith.divf %988, %989 : vector<1x96xf32>
    %991 = vector.extract_strided_slice %984 {offsets = [0, 96], sizes = [1, 32], strides = [1, 1]} : vector<1x128xf32> to vector<1x32xf32>
    %992 = math.tanh %991 : vector<1x32xf32>
    %993 = vector.extract_strided_slice %990 {offsets = [0, 0], sizes = [1, 32], strides = [1, 1]} : vector<1x96xf32> to vector<1x32xf32>
    %994 = vector.extract_strided_slice %990 {offsets = [0, 32], sizes = [1, 32], strides = [1, 1]} : vector<1x96xf32> to vector<1x32xf32>
    %995 = vector.extract_strided_slice %990 {offsets = [0, 64], sizes = [1, 32], strides = [1, 1]} : vector<1x96xf32> to vector<1x32xf32>
    %996 = arith.mulf %994, %935 : vector<1x32xf32>
    %997 = arith.mulf %993, %992 : vector<1x32xf32>
    %998 = arith.addf %996, %997 : vector<1x32xf32>
    %999 = math.tanh %998 : vector<1x32xf32>
    %1000 = arith.mulf %995, %999 : vector<1x32xf32>
    %c0_325 = arith.constant 0 : index
    %c0_326 = arith.constant 0 : index
    %1001 = vector.load %arg14[%c0_325, %c0_326] : memref<32x128xf32, #tpu.memory_space<vmem>>, vector<32x128xf32>
    %cst_327 = arith.constant dense<0.000000e+00> : vector<1x128xf32>
    %1002 = tpu.matmul %1000, %1001, %cst_327 {dimension_numbers = #tpu.dot_dimension_numbers<[1], [0], [0], [1], [0, 0, 1, 1], [], []>} : vector<1x32xf32>, vector<32x128xf32>, vector<1x128xf32> -> vector<1x128xf32>
    %c0_328 = arith.constant 0 : index
    %c0_329 = arith.constant 0 : index
    %1003 = vector.load %arg15[%c0_328, %c0_329] : memref<1x128xf32, #tpu.memory_space<vmem>>, vector<1x128xf32>
    %1004 = arith.addf %1002, %1003 : vector<1x128xf32>
    %c9 = arith.constant 9 : index
    %c0_330 = arith.constant 0 : index
    %1005 = vector.load %arg16[%c9, %c0_330] : memref<16x128xf32, #tpu.memory_space<vmem>>, vector<1x128xf32>
    tpu.vector_store %arg16[%c9, %c0_330], %1004 {strides = array<i32>} : memref<16x128xf32, #tpu.memory_space<vmem>>, vector<1x128xf32>,
    %cst_331 = arith.constant dense<0xFF800000> : vector<1xf32>
    %1006 = vector.multi_reduction <maximumf>, %1004, %cst_331 [1] : vector<1x128xf32> to vector<1xf32>
    %1007 = vector.shape_cast %1006 : vector<1xf32> to vector<1x1xf32>
    %1008 = vector.broadcast %1007 : vector<1x1xf32> to vector<1x128xf32>
    %1009 = arith.cmpf oeq, %1004, %1008 : vector<1x128xf32>
    %c128_i32_332 = arith.constant 128 : i32
    %1010 = vector.broadcast %c128_i32_332 : i32 to vector<1x128xi32>
    %1011 = arith.select %1009, %388, %1010 : vector<1x128xi1>, vector<1x128xi32>
    %cst_333 = arith.constant dense<2147483647> : vector<1xi32>
    %1012 = vector.multi_reduction <minsi>, %1011, %cst_333 [1] : vector<1x128xi32> to vector<1xi32>
    %1013 = vector.shape_cast %1012 : vector<1xi32> to vector<1x1xi32>
    %1014 = vector.broadcast %1013 : vector<1x1xi32> to vector<1x128xi32>
    %1015 = arith.cmpi eq, %388, %1014 : vector<1x128xi32>
    %1016 = arith.extui %1015 : vector<1x128xi1> to vector<1x128xi32>
    %1017 = arith.sitofp %1016 : vector<1x128xi32> to vector<1x128xf32>
    %c0_334 = arith.constant 0 : index
    %c0_335 = arith.constant 0 : index
    %1018 = vector.load %arg7[%c0_334, %c0_335] : memref<128x128xf32, #tpu.memory_space<vmem>>, vector<128x128xf32>
    %cst_336 = arith.constant dense<0.000000e+00> : vector<1x128xf32>
    %1019 = tpu.matmul %1017, %1018, %cst_336 {dimension_numbers = #tpu.dot_dimension_numbers<[1], [0], [0], [1], [0, 0, 1, 1], [], []>} : vector<1x128xf32>, vector<128x128xf32>, vector<1x128xf32> -> vector<1x128xf32>
    %c0_337 = arith.constant 0 : index
    %c0_338 = arith.constant 0 : index
    %1020 = vector.load %arg9[%c0_337, %c0_338] : memref<32x128xf32, #tpu.memory_space<vmem>>, vector<32x128xf32>
    %cst_339 = arith.constant dense<0.000000e+00> : vector<1x128xf32>
    %1021 = tpu.matmul %977, %1020, %cst_339 {dimension_numbers = #tpu.dot_dimension_numbers<[1], [0], [0], [1], [0, 0, 1, 1], [], []>} : vector<1x32xf32>, vector<32x128xf32>, vector<1x128xf32> -> vector<1x128xf32>
    %1022 = arith.addf %1019, %1021 : vector<1x128xf32>
    %c0_340 = arith.constant 0 : index
    %c0_341 = arith.constant 0 : index
    %1023 = vector.load %arg10[%c0_340, %c0_341] : memref<1x128xf32, #tpu.memory_space<vmem>>, vector<1x128xf32>
    %1024 = arith.addf %1022, %1023 : vector<1x128xf32>
    %1025 = vector.extract_strided_slice %1024 {offsets = [0, 0], sizes = [1, 96], strides = [1, 1]} : vector<1x128xf32> to vector<1x96xf32>
    %1026 = arith.negf %1025 : vector<1x96xf32>
    %1027 = math.exp %1026 : vector<1x96xf32>
    %cst_342 = arith.constant 1.000000e+00 : f32
    %1028 = vector.broadcast %cst_342 : f32 to vector<1x96xf32>
    %1029 = arith.addf %1028, %1027 : vector<1x96xf32>
    %1030 = arith.divf %1028, %1029 : vector<1x96xf32>
    %1031 = vector.extract_strided_slice %1024 {offsets = [0, 96], sizes = [1, 32], strides = [1, 1]} : vector<1x128xf32> to vector<1x32xf32>
    %1032 = math.tanh %1031 : vector<1x32xf32>
    %1033 = vector.extract_strided_slice %1030 {offsets = [0, 0], sizes = [1, 32], strides = [1, 1]} : vector<1x96xf32> to vector<1x32xf32>
    %1034 = vector.extract_strided_slice %1030 {offsets = [0, 32], sizes = [1, 32], strides = [1, 1]} : vector<1x96xf32> to vector<1x32xf32>
    %1035 = vector.extract_strided_slice %1030 {offsets = [0, 64], sizes = [1, 32], strides = [1, 1]} : vector<1x96xf32> to vector<1x32xf32>
    %1036 = arith.mulf %1034, %975 : vector<1x32xf32>
    %1037 = arith.mulf %1033, %1032 : vector<1x32xf32>
    %1038 = arith.addf %1036, %1037 : vector<1x32xf32>
    %1039 = math.tanh %1038 : vector<1x32xf32>
    %1040 = arith.mulf %1035, %1039 : vector<1x32xf32>
    %c0_343 = arith.constant 0 : index
    %c0_344 = arith.constant 0 : index
    %1041 = vector.load %arg11[%c0_343, %c0_344] : memref<32x128xf32, #tpu.memory_space<vmem>>, vector<32x128xf32>
    %cst_345 = arith.constant dense<0.000000e+00> : vector<1x128xf32>
    %1042 = tpu.matmul %1040, %1041, %cst_345 {dimension_numbers = #tpu.dot_dimension_numbers<[1], [0], [0], [1], [0, 0, 1, 1], [], []>} : vector<1x32xf32>, vector<32x128xf32>, vector<1x128xf32> -> vector<1x128xf32>
    %c0_346 = arith.constant 0 : index
    %c0_347 = arith.constant 0 : index
    %1043 = vector.load %arg12[%c0_346, %c0_347] : memref<32x128xf32, #tpu.memory_space<vmem>>, vector<32x128xf32>
    %cst_348 = arith.constant dense<0.000000e+00> : vector<1x128xf32>
    %1044 = tpu.matmul %1000, %1043, %cst_348 {dimension_numbers = #tpu.dot_dimension_numbers<[1], [0], [0], [1], [0, 0, 1, 1], [], []>} : vector<1x32xf32>, vector<32x128xf32>, vector<1x128xf32> -> vector<1x128xf32>
    %1045 = arith.addf %1042, %1044 : vector<1x128xf32>
    %c0_349 = arith.constant 0 : index
    %c0_350 = arith.constant 0 : index
    %1046 = vector.load %arg13[%c0_349, %c0_350] : memref<1x128xf32, #tpu.memory_space<vmem>>, vector<1x128xf32>
    %1047 = arith.addf %1045, %1046 : vector<1x128xf32>
    %1048 = vector.extract_strided_slice %1047 {offsets = [0, 0], sizes = [1, 96], strides = [1, 1]} : vector<1x128xf32> to vector<1x96xf32>
    %1049 = arith.negf %1048 : vector<1x96xf32>
    %1050 = math.exp %1049 : vector<1x96xf32>
    %cst_351 = arith.constant 1.000000e+00 : f32
    %1051 = vector.broadcast %cst_351 : f32 to vector<1x96xf32>
    %1052 = arith.addf %1051, %1050 : vector<1x96xf32>
    %1053 = arith.divf %1051, %1052 : vector<1x96xf32>
    %1054 = vector.extract_strided_slice %1047 {offsets = [0, 96], sizes = [1, 32], strides = [1, 1]} : vector<1x128xf32> to vector<1x32xf32>
    %1055 = math.tanh %1054 : vector<1x32xf32>
    %1056 = vector.extract_strided_slice %1053 {offsets = [0, 0], sizes = [1, 32], strides = [1, 1]} : vector<1x96xf32> to vector<1x32xf32>
    %1057 = vector.extract_strided_slice %1053 {offsets = [0, 32], sizes = [1, 32], strides = [1, 1]} : vector<1x96xf32> to vector<1x32xf32>
    %1058 = vector.extract_strided_slice %1053 {offsets = [0, 64], sizes = [1, 32], strides = [1, 1]} : vector<1x96xf32> to vector<1x32xf32>
    %1059 = arith.mulf %1057, %998 : vector<1x32xf32>
    %1060 = arith.mulf %1056, %1055 : vector<1x32xf32>
    %1061 = arith.addf %1059, %1060 : vector<1x32xf32>
    %1062 = math.tanh %1061 : vector<1x32xf32>
    %1063 = arith.mulf %1058, %1062 : vector<1x32xf32>
    %c0_352 = arith.constant 0 : index
    %c0_353 = arith.constant 0 : index
    %1064 = vector.load %arg14[%c0_352, %c0_353] : memref<32x128xf32, #tpu.memory_space<vmem>>, vector<32x128xf32>
    %cst_354 = arith.constant dense<0.000000e+00> : vector<1x128xf32>
    %1065 = tpu.matmul %1063, %1064, %cst_354 {dimension_numbers = #tpu.dot_dimension_numbers<[1], [0], [0], [1], [0, 0, 1, 1], [], []>} : vector<1x32xf32>, vector<32x128xf32>, vector<1x128xf32> -> vector<1x128xf32>
    %c0_355 = arith.constant 0 : index
    %c0_356 = arith.constant 0 : index
    %1066 = vector.load %arg15[%c0_355, %c0_356] : memref<1x128xf32, #tpu.memory_space<vmem>>, vector<1x128xf32>
    %1067 = arith.addf %1065, %1066 : vector<1x128xf32>
    %c10 = arith.constant 10 : index
    %c0_357 = arith.constant 0 : index
    %1068 = vector.load %arg16[%c10, %c0_357] : memref<16x128xf32, #tpu.memory_space<vmem>>, vector<1x128xf32>
    tpu.vector_store %arg16[%c10, %c0_357], %1067 {strides = array<i32>} : memref<16x128xf32, #tpu.memory_space<vmem>>, vector<1x128xf32>,
    %cst_358 = arith.constant dense<0xFF800000> : vector<1xf32>
    %1069 = vector.multi_reduction <maximumf>, %1067, %cst_358 [1] : vector<1x128xf32> to vector<1xf32>
    %1070 = vector.shape_cast %1069 : vector<1xf32> to vector<1x1xf32>
    %1071 = vector.broadcast %1070 : vector<1x1xf32> to vector<1x128xf32>
    %1072 = arith.cmpf oeq, %1067, %1071 : vector<1x128xf32>
    %c128_i32_359 = arith.constant 128 : i32
    %1073 = vector.broadcast %c128_i32_359 : i32 to vector<1x128xi32>
    %1074 = arith.select %1072, %388, %1073 : vector<1x128xi1>, vector<1x128xi32>
    %cst_360 = arith.constant dense<2147483647> : vector<1xi32>
    %1075 = vector.multi_reduction <minsi>, %1074, %cst_360 [1] : vector<1x128xi32> to vector<1xi32>
    %1076 = vector.shape_cast %1075 : vector<1xi32> to vector<1x1xi32>
    %1077 = vector.broadcast %1076 : vector<1x1xi32> to vector<1x128xi32>
    %1078 = arith.cmpi eq, %388, %1077 : vector<1x128xi32>
    %1079 = arith.extui %1078 : vector<1x128xi1> to vector<1x128xi32>
    %1080 = arith.sitofp %1079 : vector<1x128xi32> to vector<1x128xf32>
    %c0_361 = arith.constant 0 : index
    %c0_362 = arith.constant 0 : index
    %1081 = vector.load %arg7[%c0_361, %c0_362] : memref<128x128xf32, #tpu.memory_space<vmem>>, vector<128x128xf32>
    %cst_363 = arith.constant dense<0.000000e+00> : vector<1x128xf32>
    %1082 = tpu.matmul %1080, %1081, %cst_363 {dimension_numbers = #tpu.dot_dimension_numbers<[1], [0], [0], [1], [0, 0, 1, 1], [], []>} : vector<1x128xf32>, vector<128x128xf32>, vector<1x128xf32> -> vector<1x128xf32>
    %c0_364 = arith.constant 0 : index
    %c0_365 = arith.constant 0 : index
    %1083 = vector.load %arg9[%c0_364, %c0_365] : memref<32x128xf32, #tpu.memory_space<vmem>>, vector<32x128xf32>
    %cst_366 = arith.constant dense<0.000000e+00> : vector<1x128xf32>
    %1084 = tpu.matmul %1040, %1083, %cst_366 {dimension_numbers = #tpu.dot_dimension_numbers<[1], [0], [0], [1], [0, 0, 1, 1], [], []>} : vector<1x32xf32>, vector<32x128xf32>, vector<1x128xf32> -> vector<1x128xf32>
    %1085 = arith.addf %1082, %1084 : vector<1x128xf32>
    %c0_367 = arith.constant 0 : index
    %c0_368 = arith.constant 0 : index
    %1086 = vector.load %arg10[%c0_367, %c0_368] : memref<1x128xf32, #tpu.memory_space<vmem>>, vector<1x128xf32>
    %1087 = arith.addf %1085, %1086 : vector<1x128xf32>
    %1088 = vector.extract_strided_slice %1087 {offsets = [0, 0], sizes = [1, 96], strides = [1, 1]} : vector<1x128xf32> to vector<1x96xf32>
    %1089 = arith.negf %1088 : vector<1x96xf32>
    %1090 = math.exp %1089 : vector<1x96xf32>
    %cst_369 = arith.constant 1.000000e+00 : f32
    %1091 = vector.broadcast %cst_369 : f32 to vector<1x96xf32>
    %1092 = arith.addf %1091, %1090 : vector<1x96xf32>
    %1093 = arith.divf %1091, %1092 : vector<1x96xf32>
    %1094 = vector.extract_strided_slice %1087 {offsets = [0, 96], sizes = [1, 32], strides = [1, 1]} : vector<1x128xf32> to vector<1x32xf32>
    %1095 = math.tanh %1094 : vector<1x32xf32>
    %1096 = vector.extract_strided_slice %1093 {offsets = [0, 0], sizes = [1, 32], strides = [1, 1]} : vector<1x96xf32> to vector<1x32xf32>
    %1097 = vector.extract_strided_slice %1093 {offsets = [0, 32], sizes = [1, 32], strides = [1, 1]} : vector<1x96xf32> to vector<1x32xf32>
    %1098 = vector.extract_strided_slice %1093 {offsets = [0, 64], sizes = [1, 32], strides = [1, 1]} : vector<1x96xf32> to vector<1x32xf32>
    %1099 = arith.mulf %1097, %1038 : vector<1x32xf32>
    %1100 = arith.mulf %1096, %1095 : vector<1x32xf32>
    %1101 = arith.addf %1099, %1100 : vector<1x32xf32>
    %1102 = math.tanh %1101 : vector<1x32xf32>
    %1103 = arith.mulf %1098, %1102 : vector<1x32xf32>
    %c0_370 = arith.constant 0 : index
    %c0_371 = arith.constant 0 : index
    %1104 = vector.load %arg11[%c0_370, %c0_371] : memref<32x128xf32, #tpu.memory_space<vmem>>, vector<32x128xf32>
    %cst_372 = arith.constant dense<0.000000e+00> : vector<1x128xf32>
    %1105 = tpu.matmul %1103, %1104, %cst_372 {dimension_numbers = #tpu.dot_dimension_numbers<[1], [0], [0], [1], [0, 0, 1, 1], [], []>} : vector<1x32xf32>, vector<32x128xf32>, vector<1x128xf32> -> vector<1x128xf32>
    %c0_373 = arith.constant 0 : index
    %c0_374 = arith.constant 0 : index
    %1106 = vector.load %arg12[%c0_373, %c0_374] : memref<32x128xf32, #tpu.memory_space<vmem>>, vector<32x128xf32>
    %cst_375 = arith.constant dense<0.000000e+00> : vector<1x128xf32>
    %1107 = tpu.matmul %1063, %1106, %cst_375 {dimension_numbers = #tpu.dot_dimension_numbers<[1], [0], [0], [1], [0, 0, 1, 1], [], []>} : vector<1x32xf32>, vector<32x128xf32>, vector<1x128xf32> -> vector<1x128xf32>
    %1108 = arith.addf %1105, %1107 : vector<1x128xf32>
    %c0_376 = arith.constant 0 : index
    %c0_377 = arith.constant 0 : index
    %1109 = vector.load %arg13[%c0_376, %c0_377] : memref<1x128xf32, #tpu.memory_space<vmem>>, vector<1x128xf32>
    %1110 = arith.addf %1108, %1109 : vector<1x128xf32>
    %1111 = vector.extract_strided_slice %1110 {offsets = [0, 0], sizes = [1, 96], strides = [1, 1]} : vector<1x128xf32> to vector<1x96xf32>
    %1112 = arith.negf %1111 : vector<1x96xf32>
    %1113 = math.exp %1112 : vector<1x96xf32>
    %cst_378 = arith.constant 1.000000e+00 : f32
    %1114 = vector.broadcast %cst_378 : f32 to vector<1x96xf32>
    %1115 = arith.addf %1114, %1113 : vector<1x96xf32>
    %1116 = arith.divf %1114, %1115 : vector<1x96xf32>
    %1117 = vector.extract_strided_slice %1110 {offsets = [0, 96], sizes = [1, 32], strides = [1, 1]} : vector<1x128xf32> to vector<1x32xf32>
    %1118 = math.tanh %1117 : vector<1x32xf32>
    %1119 = vector.extract_strided_slice %1116 {offsets = [0, 0], sizes = [1, 32], strides = [1, 1]} : vector<1x96xf32> to vector<1x32xf32>
    %1120 = vector.extract_strided_slice %1116 {offsets = [0, 32], sizes = [1, 32], strides = [1, 1]} : vector<1x96xf32> to vector<1x32xf32>
    %1121 = vector.extract_strided_slice %1116 {offsets = [0, 64], sizes = [1, 32], strides = [1, 1]} : vector<1x96xf32> to vector<1x32xf32>
    %1122 = arith.mulf %1120, %1061 : vector<1x32xf32>
    %1123 = arith.mulf %1119, %1118 : vector<1x32xf32>
    %1124 = arith.addf %1122, %1123 : vector<1x32xf32>
    %1125 = math.tanh %1124 : vector<1x32xf32>
    %1126 = arith.mulf %1121, %1125 : vector<1x32xf32>
    %c0_379 = arith.constant 0 : index
    %c0_380 = arith.constant 0 : index
    %1127 = vector.load %arg14[%c0_379, %c0_380] : memref<32x128xf32, #tpu.memory_space<vmem>>, vector<32x128xf32>
    %cst_381 = arith.constant dense<0.000000e+00> : vector<1x128xf32>
    %1128 = tpu.matmul %1126, %1127, %cst_381 {dimension_numbers = #tpu.dot_dimension_numbers<[1], [0], [0], [1], [0, 0, 1, 1], [], []>} : vector<1x32xf32>, vector<32x128xf32>, vector<1x128xf32> -> vector<1x128xf32>
    %c0_382 = arith.constant 0 : index
    %c0_383 = arith.constant 0 : index
    %1129 = vector.load %arg15[%c0_382, %c0_383] : memref<1x128xf32, #tpu.memory_space<vmem>>, vector<1x128xf32>
    %1130 = arith.addf %1128, %1129 : vector<1x128xf32>
    %c11 = arith.constant 11 : index
    %c0_384 = arith.constant 0 : index
    %1131 = vector.load %arg16[%c11, %c0_384] : memref<16x128xf32, #tpu.memory_space<vmem>>, vector<1x128xf32>
    tpu.vector_store %arg16[%c11, %c0_384], %1130 {strides = array<i32>} : memref<16x128xf32, #tpu.memory_space<vmem>>, vector<1x128xf32>,
    %cst_385 = arith.constant dense<0xFF800000> : vector<1xf32>
    %1132 = vector.multi_reduction <maximumf>, %1130, %cst_385 [1] : vector<1x128xf32> to vector<1xf32>
    %1133 = vector.shape_cast %1132 : vector<1xf32> to vector<1x1xf32>
    %1134 = vector.broadcast %1133 : vector<1x1xf32> to vector<1x128xf32>
    %1135 = arith.cmpf oeq, %1130, %1134 : vector<1x128xf32>
    %c128_i32_386 = arith.constant 128 : i32
    %1136 = vector.broadcast %c128_i32_386 : i32 to vector<1x128xi32>
    %1137 = arith.select %1135, %388, %1136 : vector<1x128xi1>, vector<1x128xi32>
    %cst_387 = arith.constant dense<2147483647> : vector<1xi32>
    %1138 = vector.multi_reduction <minsi>, %1137, %cst_387 [1] : vector<1x128xi32> to vector<1xi32>
    %1139 = vector.shape_cast %1138 : vector<1xi32> to vector<1x1xi32>
    %1140 = vector.broadcast %1139 : vector<1x1xi32> to vector<1x128xi32>
    %1141 = arith.cmpi eq, %388, %1140 : vector<1x128xi32>
    %1142 = arith.extui %1141 : vector<1x128xi1> to vector<1x128xi32>
    %1143 = arith.sitofp %1142 : vector<1x128xi32> to vector<1x128xf32>
    %c0_388 = arith.constant 0 : index
    %c0_389 = arith.constant 0 : index
    %1144 = vector.load %arg7[%c0_388, %c0_389] : memref<128x128xf32, #tpu.memory_space<vmem>>, vector<128x128xf32>
    %cst_390 = arith.constant dense<0.000000e+00> : vector<1x128xf32>
    %1145 = tpu.matmul %1143, %1144, %cst_390 {dimension_numbers = #tpu.dot_dimension_numbers<[1], [0], [0], [1], [0, 0, 1, 1], [], []>} : vector<1x128xf32>, vector<128x128xf32>, vector<1x128xf32> -> vector<1x128xf32>
    %c0_391 = arith.constant 0 : index
    %c0_392 = arith.constant 0 : index
    %1146 = vector.load %arg9[%c0_391, %c0_392] : memref<32x128xf32, #tpu.memory_space<vmem>>, vector<32x128xf32>
    %cst_393 = arith.constant dense<0.000000e+00> : vector<1x128xf32>
    %1147 = tpu.matmul %1103, %1146, %cst_393 {dimension_numbers = #tpu.dot_dimension_numbers<[1], [0], [0], [1], [0, 0, 1, 1], [], []>} : vector<1x32xf32>, vector<32x128xf32>, vector<1x128xf32> -> vector<1x128xf32>
    %1148 = arith.addf %1145, %1147 : vector<1x128xf32>
    %c0_394 = arith.constant 0 : index
    %c0_395 = arith.constant 0 : index
    %1149 = vector.load %arg10[%c0_394, %c0_395] : memref<1x128xf32, #tpu.memory_space<vmem>>, vector<1x128xf32>
    %1150 = arith.addf %1148, %1149 : vector<1x128xf32>
    %1151 = vector.extract_strided_slice %1150 {offsets = [0, 0], sizes = [1, 96], strides = [1, 1]} : vector<1x128xf32> to vector<1x96xf32>
    %1152 = arith.negf %1151 : vector<1x96xf32>
    %1153 = math.exp %1152 : vector<1x96xf32>
    %cst_396 = arith.constant 1.000000e+00 : f32
    %1154 = vector.broadcast %cst_396 : f32 to vector<1x96xf32>
    %1155 = arith.addf %1154, %1153 : vector<1x96xf32>
    %1156 = arith.divf %1154, %1155 : vector<1x96xf32>
    %1157 = vector.extract_strided_slice %1150 {offsets = [0, 96], sizes = [1, 32], strides = [1, 1]} : vector<1x128xf32> to vector<1x32xf32>
    %1158 = math.tanh %1157 : vector<1x32xf32>
    %1159 = vector.extract_strided_slice %1156 {offsets = [0, 0], sizes = [1, 32], strides = [1, 1]} : vector<1x96xf32> to vector<1x32xf32>
    %1160 = vector.extract_strided_slice %1156 {offsets = [0, 32], sizes = [1, 32], strides = [1, 1]} : vector<1x96xf32> to vector<1x32xf32>
    %1161 = vector.extract_strided_slice %1156 {offsets = [0, 64], sizes = [1, 32], strides = [1, 1]} : vector<1x96xf32> to vector<1x32xf32>
    %1162 = arith.mulf %1160, %1101 : vector<1x32xf32>
    %1163 = arith.mulf %1159, %1158 : vector<1x32xf32>
    %1164 = arith.addf %1162, %1163 : vector<1x32xf32>
    %1165 = math.tanh %1164 : vector<1x32xf32>
    %1166 = arith.mulf %1161, %1165 : vector<1x32xf32>
    %c0_397 = arith.constant 0 : index
    %c0_398 = arith.constant 0 : index
    %1167 = vector.load %arg11[%c0_397, %c0_398] : memref<32x128xf32, #tpu.memory_space<vmem>>, vector<32x128xf32>
    %cst_399 = arith.constant dense<0.000000e+00> : vector<1x128xf32>
    %1168 = tpu.matmul %1166, %1167, %cst_399 {dimension_numbers = #tpu.dot_dimension_numbers<[1], [0], [0], [1], [0, 0, 1, 1], [], []>} : vector<1x32xf32>, vector<32x128xf32>, vector<1x128xf32> -> vector<1x128xf32>
    %c0_400 = arith.constant 0 : index
    %c0_401 = arith.constant 0 : index
    %1169 = vector.load %arg12[%c0_400, %c0_401] : memref<32x128xf32, #tpu.memory_space<vmem>>, vector<32x128xf32>
    %cst_402 = arith.constant dense<0.000000e+00> : vector<1x128xf32>
    %1170 = tpu.matmul %1126, %1169, %cst_402 {dimension_numbers = #tpu.dot_dimension_numbers<[1], [0], [0], [1], [0, 0, 1, 1], [], []>} : vector<1x32xf32>, vector<32x128xf32>, vector<1x128xf32> -> vector<1x128xf32>
    %1171 = arith.addf %1168, %1170 : vector<1x128xf32>
    %c0_403 = arith.constant 0 : index
    %c0_404 = arith.constant 0 : index
    %1172 = vector.load %arg13[%c0_403, %c0_404] : memref<1x128xf32, #tpu.memory_space<vmem>>, vector<1x128xf32>
    %1173 = arith.addf %1171, %1172 : vector<1x128xf32>
    %1174 = vector.extract_strided_slice %1173 {offsets = [0, 0], sizes = [1, 96], strides = [1, 1]} : vector<1x128xf32> to vector<1x96xf32>
    %1175 = arith.negf %1174 : vector<1x96xf32>
    %1176 = math.exp %1175 : vector<1x96xf32>
    %cst_405 = arith.constant 1.000000e+00 : f32
    %1177 = vector.broadcast %cst_405 : f32 to vector<1x96xf32>
    %1178 = arith.addf %1177, %1176 : vector<1x96xf32>
    %1179 = arith.divf %1177, %1178 : vector<1x96xf32>
    %1180 = vector.extract_strided_slice %1173 {offsets = [0, 96], sizes = [1, 32], strides = [1, 1]} : vector<1x128xf32> to vector<1x32xf32>
    %1181 = math.tanh %1180 : vector<1x32xf32>
    %1182 = vector.extract_strided_slice %1179 {offsets = [0, 0], sizes = [1, 32], strides = [1, 1]} : vector<1x96xf32> to vector<1x32xf32>
    %1183 = vector.extract_strided_slice %1179 {offsets = [0, 32], sizes = [1, 32], strides = [1, 1]} : vector<1x96xf32> to vector<1x32xf32>
    %1184 = vector.extract_strided_slice %1179 {offsets = [0, 64], sizes = [1, 32], strides = [1, 1]} : vector<1x96xf32> to vector<1x32xf32>
    %1185 = arith.mulf %1183, %1124 : vector<1x32xf32>
    %1186 = arith.mulf %1182, %1181 : vector<1x32xf32>
    %1187 = arith.addf %1185, %1186 : vector<1x32xf32>
    %1188 = math.tanh %1187 : vector<1x32xf32>
    %1189 = arith.mulf %1184, %1188 : vector<1x32xf32>
    %c0_406 = arith.constant 0 : index
    %c0_407 = arith.constant 0 : index
    %1190 = vector.load %arg14[%c0_406, %c0_407] : memref<32x128xf32, #tpu.memory_space<vmem>>, vector<32x128xf32>
    %cst_408 = arith.constant dense<0.000000e+00> : vector<1x128xf32>
    %1191 = tpu.matmul %1189, %1190, %cst_408 {dimension_numbers = #tpu.dot_dimension_numbers<[1], [0], [0], [1], [0, 0, 1, 1], [], []>} : vector<1x32xf32>, vector<32x128xf32>, vector<1x128xf32> -> vector<1x128xf32>
    %c0_409 = arith.constant 0 : index
    %c0_410 = arith.constant 0 : index
    %1192 = vector.load %arg15[%c0_409, %c0_410] : memref<1x128xf32, #tpu.memory_space<vmem>>, vector<1x128xf32>
    %1193 = arith.addf %1191, %1192 : vector<1x128xf32>
    %c12 = arith.constant 12 : index
    %c0_411 = arith.constant 0 : index
    %1194 = vector.load %arg16[%c12, %c0_411] : memref<16x128xf32, #tpu.memory_space<vmem>>, vector<1x128xf32>
    tpu.vector_store %arg16[%c12, %c0_411], %1193 {strides = array<i32>} : memref<16x128xf32, #tpu.memory_space<vmem>>, vector<1x128xf32>,
    %cst_412 = arith.constant dense<0xFF800000> : vector<1xf32>
    %1195 = vector.multi_reduction <maximumf>, %1193, %cst_412 [1] : vector<1x128xf32> to vector<1xf32>
    %1196 = vector.shape_cast %1195 : vector<1xf32> to vector<1x1xf32>
    %1197 = vector.broadcast %1196 : vector<1x1xf32> to vector<1x128xf32>
    %1198 = arith.cmpf oeq, %1193, %1197 : vector<1x128xf32>
    %c128_i32_413 = arith.constant 128 : i32
    %1199 = vector.broadcast %c128_i32_413 : i32 to vector<1x128xi32>
    %1200 = arith.select %1198, %388, %1199 : vector<1x128xi1>, vector<1x128xi32>
    %cst_414 = arith.constant dense<2147483647> : vector<1xi32>
    %1201 = vector.multi_reduction <minsi>, %1200, %cst_414 [1] : vector<1x128xi32> to vector<1xi32>
    %1202 = vector.shape_cast %1201 : vector<1xi32> to vector<1x1xi32>
    %1203 = vector.broadcast %1202 : vector<1x1xi32> to vector<1x128xi32>
    %1204 = arith.cmpi eq, %388, %1203 : vector<1x128xi32>
    %1205 = arith.extui %1204 : vector<1x128xi1> to vector<1x128xi32>
    %1206 = arith.sitofp %1205 : vector<1x128xi32> to vector<1x128xf32>
    %c0_415 = arith.constant 0 : index
    %c0_416 = arith.constant 0 : index
    %1207 = vector.load %arg7[%c0_415, %c0_416] : memref<128x128xf32, #tpu.memory_space<vmem>>, vector<128x128xf32>
    %cst_417 = arith.constant dense<0.000000e+00> : vector<1x128xf32>
    %1208 = tpu.matmul %1206, %1207, %cst_417 {dimension_numbers = #tpu.dot_dimension_numbers<[1], [0], [0], [1], [0, 0, 1, 1], [], []>} : vector<1x128xf32>, vector<128x128xf32>, vector<1x128xf32> -> vector<1x128xf32>
    %c0_418 = arith.constant 0 : index
    %c0_419 = arith.constant 0 : index
    %1209 = vector.load %arg9[%c0_418, %c0_419] : memref<32x128xf32, #tpu.memory_space<vmem>>, vector<32x128xf32>
    %cst_420 = arith.constant dense<0.000000e+00> : vector<1x128xf32>
    %1210 = tpu.matmul %1166, %1209, %cst_420 {dimension_numbers = #tpu.dot_dimension_numbers<[1], [0], [0], [1], [0, 0, 1, 1], [], []>} : vector<1x32xf32>, vector<32x128xf32>, vector<1x128xf32> -> vector<1x128xf32>
    %1211 = arith.addf %1208, %1210 : vector<1x128xf32>
    %c0_421 = arith.constant 0 : index
    %c0_422 = arith.constant 0 : index
    %1212 = vector.load %arg10[%c0_421, %c0_422] : memref<1x128xf32, #tpu.memory_space<vmem>>, vector<1x128xf32>
    %1213 = arith.addf %1211, %1212 : vector<1x128xf32>
    %1214 = vector.extract_strided_slice %1213 {offsets = [0, 0], sizes = [1, 96], strides = [1, 1]} : vector<1x128xf32> to vector<1x96xf32>
    %1215 = arith.negf %1214 : vector<1x96xf32>
    %1216 = math.exp %1215 : vector<1x96xf32>
    %cst_423 = arith.constant 1.000000e+00 : f32
    %1217 = vector.broadcast %cst_423 : f32 to vector<1x96xf32>
    %1218 = arith.addf %1217, %1216 : vector<1x96xf32>
    %1219 = arith.divf %1217, %1218 : vector<1x96xf32>
    %1220 = vector.extract_strided_slice %1213 {offsets = [0, 96], sizes = [1, 32], strides = [1, 1]} : vector<1x128xf32> to vector<1x32xf32>
    %1221 = math.tanh %1220 : vector<1x32xf32>
    %1222 = vector.extract_strided_slice %1219 {offsets = [0, 0], sizes = [1, 32], strides = [1, 1]} : vector<1x96xf32> to vector<1x32xf32>
    %1223 = vector.extract_strided_slice %1219 {offsets = [0, 32], sizes = [1, 32], strides = [1, 1]} : vector<1x96xf32> to vector<1x32xf32>
    %1224 = vector.extract_strided_slice %1219 {offsets = [0, 64], sizes = [1, 32], strides = [1, 1]} : vector<1x96xf32> to vector<1x32xf32>
    %1225 = arith.mulf %1223, %1164 : vector<1x32xf32>
    %1226 = arith.mulf %1222, %1221 : vector<1x32xf32>
    %1227 = arith.addf %1225, %1226 : vector<1x32xf32>
    %1228 = math.tanh %1227 : vector<1x32xf32>
    %1229 = arith.mulf %1224, %1228 : vector<1x32xf32>
    %c0_424 = arith.constant 0 : index
    %c0_425 = arith.constant 0 : index
    %1230 = vector.load %arg11[%c0_424, %c0_425] : memref<32x128xf32, #tpu.memory_space<vmem>>, vector<32x128xf32>
    %cst_426 = arith.constant dense<0.000000e+00> : vector<1x128xf32>
    %1231 = tpu.matmul %1229, %1230, %cst_426 {dimension_numbers = #tpu.dot_dimension_numbers<[1], [0], [0], [1], [0, 0, 1, 1], [], []>} : vector<1x32xf32>, vector<32x128xf32>, vector<1x128xf32> -> vector<1x128xf32>
    %c0_427 = arith.constant 0 : index
    %c0_428 = arith.constant 0 : index
    %1232 = vector.load %arg12[%c0_427, %c0_428] : memref<32x128xf32, #tpu.memory_space<vmem>>, vector<32x128xf32>
    %cst_429 = arith.constant dense<0.000000e+00> : vector<1x128xf32>
    %1233 = tpu.matmul %1189, %1232, %cst_429 {dimension_numbers = #tpu.dot_dimension_numbers<[1], [0], [0], [1], [0, 0, 1, 1], [], []>} : vector<1x32xf32>, vector<32x128xf32>, vector<1x128xf32> -> vector<1x128xf32>
    %1234 = arith.addf %1231, %1233 : vector<1x128xf32>
    %c0_430 = arith.constant 0 : index
    %c0_431 = arith.constant 0 : index
    %1235 = vector.load %arg13[%c0_430, %c0_431] : memref<1x128xf32, #tpu.memory_space<vmem>>, vector<1x128xf32>
    %1236 = arith.addf %1234, %1235 : vector<1x128xf32>
    %1237 = vector.extract_strided_slice %1236 {offsets = [0, 0], sizes = [1, 96], strides = [1, 1]} : vector<1x128xf32> to vector<1x96xf32>
    %1238 = arith.negf %1237 : vector<1x96xf32>
    %1239 = math.exp %1238 : vector<1x96xf32>
    %cst_432 = arith.constant 1.000000e+00 : f32
    %1240 = vector.broadcast %cst_432 : f32 to vector<1x96xf32>
    %1241 = arith.addf %1240, %1239 : vector<1x96xf32>
    %1242 = arith.divf %1240, %1241 : vector<1x96xf32>
    %1243 = vector.extract_strided_slice %1236 {offsets = [0, 96], sizes = [1, 32], strides = [1, 1]} : vector<1x128xf32> to vector<1x32xf32>
    %1244 = math.tanh %1243 : vector<1x32xf32>
    %1245 = vector.extract_strided_slice %1242 {offsets = [0, 0], sizes = [1, 32], strides = [1, 1]} : vector<1x96xf32> to vector<1x32xf32>
    %1246 = vector.extract_strided_slice %1242 {offsets = [0, 32], sizes = [1, 32], strides = [1, 1]} : vector<1x96xf32> to vector<1x32xf32>
    %1247 = vector.extract_strided_slice %1242 {offsets = [0, 64], sizes = [1, 32], strides = [1, 1]} : vector<1x96xf32> to vector<1x32xf32>
    %1248 = arith.mulf %1246, %1187 : vector<1x32xf32>
    %1249 = arith.mulf %1245, %1244 : vector<1x32xf32>
    %1250 = arith.addf %1248, %1249 : vector<1x32xf32>
    %1251 = math.tanh %1250 : vector<1x32xf32>
    %1252 = arith.mulf %1247, %1251 : vector<1x32xf32>
    %c0_433 = arith.constant 0 : index
    %c0_434 = arith.constant 0 : index
    %1253 = vector.load %arg14[%c0_433, %c0_434] : memref<32x128xf32, #tpu.memory_space<vmem>>, vector<32x128xf32>
    %cst_435 = arith.constant dense<0.000000e+00> : vector<1x128xf32>
    %1254 = tpu.matmul %1252, %1253, %cst_435 {dimension_numbers = #tpu.dot_dimension_numbers<[1], [0], [0], [1], [0, 0, 1, 1], [], []>} : vector<1x32xf32>, vector<32x128xf32>, vector<1x128xf32> -> vector<1x128xf32>
    %c0_436 = arith.constant 0 : index
    %c0_437 = arith.constant 0 : index
    %1255 = vector.load %arg15[%c0_436, %c0_437] : memref<1x128xf32, #tpu.memory_space<vmem>>, vector<1x128xf32>
    %1256 = arith.addf %1254, %1255 : vector<1x128xf32>
    %c13 = arith.constant 13 : index
    %c0_438 = arith.constant 0 : index
    %1257 = vector.load %arg16[%c13, %c0_438] : memref<16x128xf32, #tpu.memory_space<vmem>>, vector<1x128xf32>
    tpu.vector_store %arg16[%c13, %c0_438], %1256 {strides = array<i32>} : memref<16x128xf32, #tpu.memory_space<vmem>>, vector<1x128xf32>,
    %cst_439 = arith.constant dense<0xFF800000> : vector<1xf32>
    %1258 = vector.multi_reduction <maximumf>, %1256, %cst_439 [1] : vector<1x128xf32> to vector<1xf32>
    %1259 = vector.shape_cast %1258 : vector<1xf32> to vector<1x1xf32>
    %1260 = vector.broadcast %1259 : vector<1x1xf32> to vector<1x128xf32>
    %1261 = arith.cmpf oeq, %1256, %1260 : vector<1x128xf32>
    %c128_i32_440 = arith.constant 128 : i32
    %1262 = vector.broadcast %c128_i32_440 : i32 to vector<1x128xi32>
    %1263 = arith.select %1261, %388, %1262 : vector<1x128xi1>, vector<1x128xi32>
    %cst_441 = arith.constant dense<2147483647> : vector<1xi32>
    %1264 = vector.multi_reduction <minsi>, %1263, %cst_441 [1] : vector<1x128xi32> to vector<1xi32>
    %1265 = vector.shape_cast %1264 : vector<1xi32> to vector<1x1xi32>
    %1266 = vector.broadcast %1265 : vector<1x1xi32> to vector<1x128xi32>
    %1267 = arith.cmpi eq, %388, %1266 : vector<1x128xi32>
    %1268 = arith.extui %1267 : vector<1x128xi1> to vector<1x128xi32>
    %1269 = arith.sitofp %1268 : vector<1x128xi32> to vector<1x128xf32>
    %c0_442 = arith.constant 0 : index
    %c0_443 = arith.constant 0 : index
    %1270 = vector.load %arg7[%c0_442, %c0_443] : memref<128x128xf32, #tpu.memory_space<vmem>>, vector<128x128xf32>
    %cst_444 = arith.constant dense<0.000000e+00> : vector<1x128xf32>
    %1271 = tpu.matmul %1269, %1270, %cst_444 {dimension_numbers = #tpu.dot_dimension_numbers<[1], [0], [0], [1], [0, 0, 1, 1], [], []>} : vector<1x128xf32>, vector<128x128xf32>, vector<1x128xf32> -> vector<1x128xf32>
    %c0_445 = arith.constant 0 : index
    %c0_446 = arith.constant 0 : index
    %1272 = vector.load %arg9[%c0_445, %c0_446] : memref<32x128xf32, #tpu.memory_space<vmem>>, vector<32x128xf32>
    %cst_447 = arith.constant dense<0.000000e+00> : vector<1x128xf32>
    %1273 = tpu.matmul %1229, %1272, %cst_447 {dimension_numbers = #tpu.dot_dimension_numbers<[1], [0], [0], [1], [0, 0, 1, 1], [], []>} : vector<1x32xf32>, vector<32x128xf32>, vector<1x128xf32> -> vector<1x128xf32>
    %1274 = arith.addf %1271, %1273 : vector<1x128xf32>
    %c0_448 = arith.constant 0 : index
    %c0_449 = arith.constant 0 : index
    %1275 = vector.load %arg10[%c0_448, %c0_449] : memref<1x128xf32, #tpu.memory_space<vmem>>, vector<1x128xf32>
    %1276 = arith.addf %1274, %1275 : vector<1x128xf32>
    %1277 = vector.extract_strided_slice %1276 {offsets = [0, 0], sizes = [1, 96], strides = [1, 1]} : vector<1x128xf32> to vector<1x96xf32>
    %1278 = arith.negf %1277 : vector<1x96xf32>
    %1279 = math.exp %1278 : vector<1x96xf32>
    %cst_450 = arith.constant 1.000000e+00 : f32
    %1280 = vector.broadcast %cst_450 : f32 to vector<1x96xf32>
    %1281 = arith.addf %1280, %1279 : vector<1x96xf32>
    %1282 = arith.divf %1280, %1281 : vector<1x96xf32>
    %1283 = vector.extract_strided_slice %1276 {offsets = [0, 96], sizes = [1, 32], strides = [1, 1]} : vector<1x128xf32> to vector<1x32xf32>
    %1284 = math.tanh %1283 : vector<1x32xf32>
    %1285 = vector.extract_strided_slice %1282 {offsets = [0, 0], sizes = [1, 32], strides = [1, 1]} : vector<1x96xf32> to vector<1x32xf32>
    %1286 = vector.extract_strided_slice %1282 {offsets = [0, 32], sizes = [1, 32], strides = [1, 1]} : vector<1x96xf32> to vector<1x32xf32>
    %1287 = vector.extract_strided_slice %1282 {offsets = [0, 64], sizes = [1, 32], strides = [1, 1]} : vector<1x96xf32> to vector<1x32xf32>
    %1288 = arith.mulf %1286, %1227 : vector<1x32xf32>
    %1289 = arith.mulf %1285, %1284 : vector<1x32xf32>
    %1290 = arith.addf %1288, %1289 : vector<1x32xf32>
    %1291 = math.tanh %1290 : vector<1x32xf32>
    %1292 = arith.mulf %1287, %1291 : vector<1x32xf32>
    %c0_451 = arith.constant 0 : index
    %c0_452 = arith.constant 0 : index
    %1293 = vector.load %arg11[%c0_451, %c0_452] : memref<32x128xf32, #tpu.memory_space<vmem>>, vector<32x128xf32>
    %cst_453 = arith.constant dense<0.000000e+00> : vector<1x128xf32>
    %1294 = tpu.matmul %1292, %1293, %cst_453 {dimension_numbers = #tpu.dot_dimension_numbers<[1], [0], [0], [1], [0, 0, 1, 1], [], []>} : vector<1x32xf32>, vector<32x128xf32>, vector<1x128xf32> -> vector<1x128xf32>
    %c0_454 = arith.constant 0 : index
    %c0_455 = arith.constant 0 : index
    %1295 = vector.load %arg12[%c0_454, %c0_455] : memref<32x128xf32, #tpu.memory_space<vmem>>, vector<32x128xf32>
    %cst_456 = arith.constant dense<0.000000e+00> : vector<1x128xf32>
    %1296 = tpu.matmul %1252, %1295, %cst_456 {dimension_numbers = #tpu.dot_dimension_numbers<[1], [0], [0], [1], [0, 0, 1, 1], [], []>} : vector<1x32xf32>, vector<32x128xf32>, vector<1x128xf32> -> vector<1x128xf32>
    %1297 = arith.addf %1294, %1296 : vector<1x128xf32>
    %c0_457 = arith.constant 0 : index
    %c0_458 = arith.constant 0 : index
    %1298 = vector.load %arg13[%c0_457, %c0_458] : memref<1x128xf32, #tpu.memory_space<vmem>>, vector<1x128xf32>
    %1299 = arith.addf %1297, %1298 : vector<1x128xf32>
    %1300 = vector.extract_strided_slice %1299 {offsets = [0, 0], sizes = [1, 96], strides = [1, 1]} : vector<1x128xf32> to vector<1x96xf32>
    %1301 = arith.negf %1300 : vector<1x96xf32>
    %1302 = math.exp %1301 : vector<1x96xf32>
    %cst_459 = arith.constant 1.000000e+00 : f32
    %1303 = vector.broadcast %cst_459 : f32 to vector<1x96xf32>
    %1304 = arith.addf %1303, %1302 : vector<1x96xf32>
    %1305 = arith.divf %1303, %1304 : vector<1x96xf32>
    %1306 = vector.extract_strided_slice %1299 {offsets = [0, 96], sizes = [1, 32], strides = [1, 1]} : vector<1x128xf32> to vector<1x32xf32>
    %1307 = math.tanh %1306 : vector<1x32xf32>
    %1308 = vector.extract_strided_slice %1305 {offsets = [0, 0], sizes = [1, 32], strides = [1, 1]} : vector<1x96xf32> to vector<1x32xf32>
    %1309 = vector.extract_strided_slice %1305 {offsets = [0, 32], sizes = [1, 32], strides = [1, 1]} : vector<1x96xf32> to vector<1x32xf32>
    %1310 = vector.extract_strided_slice %1305 {offsets = [0, 64], sizes = [1, 32], strides = [1, 1]} : vector<1x96xf32> to vector<1x32xf32>
    %1311 = arith.mulf %1309, %1250 : vector<1x32xf32>
    %1312 = arith.mulf %1308, %1307 : vector<1x32xf32>
    %1313 = arith.addf %1311, %1312 : vector<1x32xf32>
    %1314 = math.tanh %1313 : vector<1x32xf32>
    %1315 = arith.mulf %1310, %1314 : vector<1x32xf32>
    %c0_460 = arith.constant 0 : index
    %c0_461 = arith.constant 0 : index
    %1316 = vector.load %arg14[%c0_460, %c0_461] : memref<32x128xf32, #tpu.memory_space<vmem>>, vector<32x128xf32>
    %cst_462 = arith.constant dense<0.000000e+00> : vector<1x128xf32>
    %1317 = tpu.matmul %1315, %1316, %cst_462 {dimension_numbers = #tpu.dot_dimension_numbers<[1], [0], [0], [1], [0, 0, 1, 1], [], []>} : vector<1x32xf32>, vector<32x128xf32>, vector<1x128xf32> -> vector<1x128xf32>
    %c0_463 = arith.constant 0 : index
    %c0_464 = arith.constant 0 : index
    %1318 = vector.load %arg15[%c0_463, %c0_464] : memref<1x128xf32, #tpu.memory_space<vmem>>, vector<1x128xf32>
    %1319 = arith.addf %1317, %1318 : vector<1x128xf32>
    %c14 = arith.constant 14 : index
    %c0_465 = arith.constant 0 : index
    %1320 = vector.load %arg16[%c14, %c0_465] : memref<16x128xf32, #tpu.memory_space<vmem>>, vector<1x128xf32>
    tpu.vector_store %arg16[%c14, %c0_465], %1319 {strides = array<i32>} : memref<16x128xf32, #tpu.memory_space<vmem>>, vector<1x128xf32>,
    %cst_466 = arith.constant dense<0xFF800000> : vector<1xf32>
    %1321 = vector.multi_reduction <maximumf>, %1319, %cst_466 [1] : vector<1x128xf32> to vector<1xf32>
    %1322 = vector.shape_cast %1321 : vector<1xf32> to vector<1x1xf32>
    %1323 = vector.broadcast %1322 : vector<1x1xf32> to vector<1x128xf32>
    %1324 = arith.cmpf oeq, %1319, %1323 : vector<1x128xf32>
    %c128_i32_467 = arith.constant 128 : i32
    %1325 = vector.broadcast %c128_i32_467 : i32 to vector<1x128xi32>
    %1326 = arith.select %1324, %388, %1325 : vector<1x128xi1>, vector<1x128xi32>
    %cst_468 = arith.constant dense<2147483647> : vector<1xi32>
    %1327 = vector.multi_reduction <minsi>, %1326, %cst_468 [1] : vector<1x128xi32> to vector<1xi32>
    %1328 = vector.shape_cast %1327 : vector<1xi32> to vector<1x1xi32>
    %1329 = vector.broadcast %1328 : vector<1x1xi32> to vector<1x128xi32>
    %1330 = arith.cmpi eq, %388, %1329 : vector<1x128xi32>
    %1331 = arith.extui %1330 : vector<1x128xi1> to vector<1x128xi32>
    %1332 = arith.sitofp %1331 : vector<1x128xi32> to vector<1x128xf32>
    %c0_469 = arith.constant 0 : index
    %c0_470 = arith.constant 0 : index
    %1333 = vector.load %arg7[%c0_469, %c0_470] : memref<128x128xf32, #tpu.memory_space<vmem>>, vector<128x128xf32>
    %cst_471 = arith.constant dense<0.000000e+00> : vector<1x128xf32>
    %1334 = tpu.matmul %1332, %1333, %cst_471 {dimension_numbers = #tpu.dot_dimension_numbers<[1], [0], [0], [1], [0, 0, 1, 1], [], []>} : vector<1x128xf32>, vector<128x128xf32>, vector<1x128xf32> -> vector<1x128xf32>
    %c0_472 = arith.constant 0 : index
    %c0_473 = arith.constant 0 : index
    %1335 = vector.load %arg9[%c0_472, %c0_473] : memref<32x128xf32, #tpu.memory_space<vmem>>, vector<32x128xf32>
    %cst_474 = arith.constant dense<0.000000e+00> : vector<1x128xf32>
    %1336 = tpu.matmul %1292, %1335, %cst_474 {dimension_numbers = #tpu.dot_dimension_numbers<[1], [0], [0], [1], [0, 0, 1, 1], [], []>} : vector<1x32xf32>, vector<32x128xf32>, vector<1x128xf32> -> vector<1x128xf32>
    %1337 = arith.addf %1334, %1336 : vector<1x128xf32>
    %c0_475 = arith.constant 0 : index
    %c0_476 = arith.constant 0 : index
    %1338 = vector.load %arg10[%c0_475, %c0_476] : memref<1x128xf32, #tpu.memory_space<vmem>>, vector<1x128xf32>
    %1339 = arith.addf %1337, %1338 : vector<1x128xf32>
    %1340 = vector.extract_strided_slice %1339 {offsets = [0, 0], sizes = [1, 96], strides = [1, 1]} : vector<1x128xf32> to vector<1x96xf32>
    %1341 = arith.negf %1340 : vector<1x96xf32>
    %1342 = math.exp %1341 : vector<1x96xf32>
    %cst_477 = arith.constant 1.000000e+00 : f32
    %1343 = vector.broadcast %cst_477 : f32 to vector<1x96xf32>
    %1344 = arith.addf %1343, %1342 : vector<1x96xf32>
    %1345 = arith.divf %1343, %1344 : vector<1x96xf32>
    %1346 = vector.extract_strided_slice %1339 {offsets = [0, 96], sizes = [1, 32], strides = [1, 1]} : vector<1x128xf32> to vector<1x32xf32>
    %1347 = math.tanh %1346 : vector<1x32xf32>
    %1348 = vector.extract_strided_slice %1345 {offsets = [0, 0], sizes = [1, 32], strides = [1, 1]} : vector<1x96xf32> to vector<1x32xf32>
    %1349 = vector.extract_strided_slice %1345 {offsets = [0, 32], sizes = [1, 32], strides = [1, 1]} : vector<1x96xf32> to vector<1x32xf32>
    %1350 = vector.extract_strided_slice %1345 {offsets = [0, 64], sizes = [1, 32], strides = [1, 1]} : vector<1x96xf32> to vector<1x32xf32>
    %1351 = arith.mulf %1349, %1290 : vector<1x32xf32>
    %1352 = arith.mulf %1348, %1347 : vector<1x32xf32>
    %1353 = arith.addf %1351, %1352 : vector<1x32xf32>
    %1354 = math.tanh %1353 : vector<1x32xf32>
    %1355 = arith.mulf %1350, %1354 : vector<1x32xf32>
    %c0_478 = arith.constant 0 : index
    %c0_479 = arith.constant 0 : index
    %1356 = vector.load %arg11[%c0_478, %c0_479] : memref<32x128xf32, #tpu.memory_space<vmem>>, vector<32x128xf32>
    %cst_480 = arith.constant dense<0.000000e+00> : vector<1x128xf32>
    %1357 = tpu.matmul %1355, %1356, %cst_480 {dimension_numbers = #tpu.dot_dimension_numbers<[1], [0], [0], [1], [0, 0, 1, 1], [], []>} : vector<1x32xf32>, vector<32x128xf32>, vector<1x128xf32> -> vector<1x128xf32>
    %c0_481 = arith.constant 0 : index
    %c0_482 = arith.constant 0 : index
    %1358 = vector.load %arg12[%c0_481, %c0_482] : memref<32x128xf32, #tpu.memory_space<vmem>>, vector<32x128xf32>
    %cst_483 = arith.constant dense<0.000000e+00> : vector<1x128xf32>
    %1359 = tpu.matmul %1315, %1358, %cst_483 {dimension_numbers = #tpu.dot_dimension_numbers<[1], [0], [0], [1], [0, 0, 1, 1], [], []>} : vector<1x32xf32>, vector<32x128xf32>, vector<1x128xf32> -> vector<1x128xf32>
    %1360 = arith.addf %1357, %1359 : vector<1x128xf32>
    %c0_484 = arith.constant 0 : index
    %c0_485 = arith.constant 0 : index
    %1361 = vector.load %arg13[%c0_484, %c0_485] : memref<1x128xf32, #tpu.memory_space<vmem>>, vector<1x128xf32>
    %1362 = arith.addf %1360, %1361 : vector<1x128xf32>
    %1363 = vector.extract_strided_slice %1362 {offsets = [0, 0], sizes = [1, 96], strides = [1, 1]} : vector<1x128xf32> to vector<1x96xf32>
    %1364 = arith.negf %1363 : vector<1x96xf32>
    %1365 = math.exp %1364 : vector<1x96xf32>
    %cst_486 = arith.constant 1.000000e+00 : f32
    %1366 = vector.broadcast %cst_486 : f32 to vector<1x96xf32>
    %1367 = arith.addf %1366, %1365 : vector<1x96xf32>
    %1368 = arith.divf %1366, %1367 : vector<1x96xf32>
    %1369 = vector.extract_strided_slice %1362 {offsets = [0, 96], sizes = [1, 32], strides = [1, 1]} : vector<1x128xf32> to vector<1x32xf32>
    %1370 = math.tanh %1369 : vector<1x32xf32>
    %1371 = vector.extract_strided_slice %1368 {offsets = [0, 0], sizes = [1, 32], strides = [1, 1]} : vector<1x96xf32> to vector<1x32xf32>
    %1372 = vector.extract_strided_slice %1368 {offsets = [0, 32], sizes = [1, 32], strides = [1, 1]} : vector<1x96xf32> to vector<1x32xf32>
    %1373 = vector.extract_strided_slice %1368 {offsets = [0, 64], sizes = [1, 32], strides = [1, 1]} : vector<1x96xf32> to vector<1x32xf32>
    %1374 = arith.mulf %1372, %1313 : vector<1x32xf32>
    %1375 = arith.mulf %1371, %1370 : vector<1x32xf32>
    %1376 = arith.addf %1374, %1375 : vector<1x32xf32>
    %1377 = math.tanh %1376 : vector<1x32xf32>
    %1378 = arith.mulf %1373, %1377 : vector<1x32xf32>
    %c0_487 = arith.constant 0 : index
    %c0_488 = arith.constant 0 : index
    %1379 = vector.load %arg14[%c0_487, %c0_488] : memref<32x128xf32, #tpu.memory_space<vmem>>, vector<32x128xf32>
    %cst_489 = arith.constant dense<0.000000e+00> : vector<1x128xf32>
    %1380 = tpu.matmul %1378, %1379, %cst_489 {dimension_numbers = #tpu.dot_dimension_numbers<[1], [0], [0], [1], [0, 0, 1, 1], [], []>} : vector<1x32xf32>, vector<32x128xf32>, vector<1x128xf32> -> vector<1x128xf32>
    %c0_490 = arith.constant 0 : index
    %c0_491 = arith.constant 0 : index
    %1381 = vector.load %arg15[%c0_490, %c0_491] : memref<1x128xf32, #tpu.memory_space<vmem>>, vector<1x128xf32>
    %1382 = arith.addf %1380, %1381 : vector<1x128xf32>
    %c15 = arith.constant 15 : index
    %c0_492 = arith.constant 0 : index
    %1383 = vector.load %arg16[%c15, %c0_492] : memref<16x128xf32, #tpu.memory_space<vmem>>, vector<1x128xf32>
    tpu.vector_store %arg16[%c15, %c0_492], %1382 {strides = array<i32>} : memref<16x128xf32, #tpu.memory_space<vmem>>, vector<1x128xf32>,
    return
  }
}

</mosaic_0001>

<bundles_post_ra>
// kernel: tpu_custom_call.1
= control target key start
LH: loop header
LB: loop body
LE: loop exit
PB: predicated region body
PF: predicated region fallthrough
CT: control target
= control target key end

     0   :  { %s7603_s0 = inlined_call_operand.hbm [shape: s32[8], index: 0, kind: input, shape index: {}]   ;;  %s7604_s1 = inlined_call_operand.hbm [shape: f32[128,128], index: 1, kind: input, shape index: {}]   ;;  %s7605_s2 = inlined_call_operand.hbm [shape: f32[32,128], index: 2, kind: input, shape index: {}]   ;;  %s7606_s3 = inlined_call_operand.vmem [shape: f32[1,128], index: 3, kind: input, shape index: {}]   ;;  %s7607_s4 = inlined_call_operand.hbm [shape: f32[32,128], index: 4, kind: input, shape index: {}]   ;;  %s7608_s5 = inlined_call_operand.hbm [shape: f32[32,128], index: 5, kind: input, shape index: {}]   ;;  %s7609_s6 = inlined_call_operand.vmem [shape: f32[1,128], index: 6, kind: input, shape index: {}]   ;;  %s7610_s7 = inlined_call_operand.hbm [shape: f32[128,128], index: 7, kind: input, shape index: {}]   ;;  %s7611_s8 = inlined_call_operand.vmem [shape: f32[1,128], index: 8, kind: input, shape index: {}]   ;;  %s7612_s9 = inlined_call_operand.hbm [shape: f32[32,128], index: 9, kind: input, shape index: {}]   ;;  %s7613_s10 = inlined_call_operand.vmem [shape: f32[1,128], index: 10, kind: input, shape index: {}]   ;;  %s7614_s11 = inlined_call_operand.hbm [shape: f32[32,128], index: 11, kind: input, shape index: {}]   ;;  %s7615_s12 = inlined_call_operand.hbm [shape: f32[32,128], index: 12, kind: input, shape index: {}]   ;;  %s7616_s13 = inlined_call_operand.vmem [shape: f32[1,128], index: 13, kind: input, shape index: {}]   ;;  %s7617_s14 = inlined_call_operand.hbm [shape: f32[32,128], index: 14, kind: input, shape index: {}]   ;;  %s7618_s15 = inlined_call_operand.vmem [shape: f32[1,128], index: 15, kind: input, shape index: {}]   ;;  %s7619_s16 = inlined_call_operand.hbm [shape: f32[16,128], index: 16, kind: output, shape index: {}]  }
   0x1   :  { %7620 = sst [smem:[#allocation27_spill]] %s7603_s0 }
   0x2   :  { %21 = vsyncpa [#allocation5], 0 }
   0x3   :  { %22 = vsyncpa [#allocation3], 0 }
   0x4   :  { %23 = vsyncpa [#allocation8], 0 }
   0x5   :  { %24 = vsyncpa [#allocation11], 0 }
   0x6   :  { %25 = vsyncpa [#allocation14], 0 }
   0x7   :  { %26 = vsyncpa [#allocation17], 0 }
   0x8   :  { %27 = vsyncpa [#allocation4], 0  ;;  %s54_s23 = sshll.u32 %s7605_s2, 4  ;;  %s6193_s24 = smov [#allocation7]   ;;  %s55_s23 = int_to_ptr.hbm [resolvable:$true] %s54_s23 }
   0x9   :  { %s56_s25 = sshll.u32 %s6193_s24, 4  ;;  %s82_s28 = sshll.u32 %s7608_s5, 4  ;;  %s57_s25 = int_to_ptr.vmem [resolvable:$true] %s56_s25  ;;  %s83_s28 = int_to_ptr.hbm [resolvable:$true] %s82_s28 }
   0xa   :  { %s6194_s29 = smov 128   ;;  %s6195_s30 = smov 8  }
   0xb   :  { %62 = dma.hbm_to_vmem [thread:$0]  %s55_s23, 512, %s57_s25, [#allocation8], %s6194_s29, %s6194_s29, %s6195_s30  }
   0xc   :  { %s6196_s0 = smov [#allocation10]   ;;  %s112_s2 = sshll.u32 %s7612_s9, 4  ;;  %s113_s2 = int_to_ptr.hbm [resolvable:$true] %s112_s2 }
   0xd   :  { %s84_s17 = sshll.u32 %s6196_s0, 4  ;;  %s140_s21 = sshll.u32 %s7615_s12, 4  ;;  %s85_s17 = int_to_ptr.vmem [resolvable:$true] %s84_s17  ;;  %s141_s21 = int_to_ptr.hbm [resolvable:$true] %s140_s21 }
   0xe   :  { %90 = dma.hbm_to_vmem [thread:$0]  %s83_s28, 512, %s85_s17, [#allocation11], %s6194_s29, %s6194_s29, %s6195_s30  }
   0xf   :  { %s6197_s22 = smov [#allocation13]   ;;  %s6198_s23 = smov [#allocation16]  }
  0x10   :  { %s114_s24 = sshll.u32 %s6197_s22, 4  ;;  %s142_s9 = sshll.u32 %s6198_s23, 4  ;;  %s115_s24 = int_to_ptr.vmem [resolvable:$true] %s114_s24  ;;  %s143_s9 = int_to_ptr.vmem [resolvable:$true] %s142_s9 }
  0x11   :  { %120 = dma.hbm_to_vmem [thread:$0]  %s113_s2, 512, %s115_s24, [#allocation14], %s6194_s29, %s6194_s29, %s6195_s30  }
  0x12   :  { %s7621_s27 = sld [smem:[#allocation27_spill]]  ;;  %s41_s17 = sshll.u32 %s7604_s1, 4  ;;  %s42_s17 = int_to_ptr.hbm [resolvable:$true] %s41_s17 }
  0x13   :  { %148 = dma.hbm_to_vmem [thread:$0]  %s141_s21, 512, %s143_s9, [#allocation17], %s6194_s29, %s6194_s29, %s6195_s30  }
  0x14   :  { %s6199_s18 = smov [#allocation2]   ;;  %s6200_s19 = smov [#allocation6]  }
  0x15   :  { %s43_s2 = sshll.u32 %s6200_s19, 4  ;;  %s69_s22 = sshll.u32 %s7607_s4, 4  ;;  %s44_s2 = int_to_ptr.vmem [resolvable:$true] %s43_s2  ;;  %s70_s22 = int_to_ptr.hbm [resolvable:$true] %s69_s22 }
  0x16   :  { %49 = dma.hbm_to_vmem [thread:$0]  %s42_s17, 2048, %s44_s2, [#allocation3], %s6194_s29, %s6194_s29, %s6195_s30  }
  0x17   :  { %s97_s23 = sshll.u32 %s7610_s7, 4  ;;  %s6201_s1 = smov [#allocation9]   ;;  %s98_s23 = int_to_ptr.hbm [resolvable:$true] %s97_s23 }
  0x18   :  { %s33_s0 = sshll.u32 %s7621_s27, 4  ;;  %s71_s9 = sshll.u32 %s6201_s1, 4  ;;  %s34_s0 = int_to_ptr.hbm [resolvable:$true] %s33_s0  ;;  %s72_s9 = int_to_ptr.vmem [resolvable:$true] %s71_s9 }
  0x19   :  { %36 = dma.hbm_to_smem %s34_s0, 16, %s6199_s18, [#allocation5]  }
  0x1a   :  { %77 = dma.hbm_to_vmem [thread:$0]  %s70_s22, 512, %s72_s9, [#allocation8], %s6194_s29, %s6194_s29, %s6195_s30  }
  0x1b   :  { %s6202_s25 = smov [#allocation12]   ;;  %s127_s0 = sshll.u32 %s7614_s11, 4  ;;  %s128_s0 = int_to_ptr.hbm [resolvable:$true] %s127_s0 }
  0x1c   :  { %s99_s4 = sshll.u32 %s6202_s25, 4  ;;  %s155_s28 = sshll.u32 %s7617_s14, 4  ;;  %s100_s4 = int_to_ptr.vmem [resolvable:$true] %s99_s4  ;;  %s156_s28 = int_to_ptr.hbm [resolvable:$true] %s155_s28 }
  0x1d   :  { %105 = dma.hbm_to_vmem [thread:$0]  %s98_s23, 2048, %s100_s4, [#allocation11], %s6194_s29, %s6194_s29, %s6195_s30  }
  0x1e   :  { %s6203_s17 = smov [#allocation15]   ;;  %s6204_s19 = smov [#allocation18]  }
  0x1f   :  { %s129_s18 = sshll.u32 %s6203_s17, 4  ;;  %s157_s11 = sshll.u32 %s6204_s19, 4  ;;  %s130_s18 = int_to_ptr.vmem [resolvable:$true] %s129_s18  ;;  %s158_s11 = int_to_ptr.vmem [resolvable:$true] %s157_s11 }
  0x20   :  { %135 = dma.hbm_to_vmem [thread:$0]  %s128_s0, 512, %s130_s18, [#allocation14], %s6194_s29, %s6194_s29, %s6195_s30  }
  0x21   :  { %163 = dma.hbm_to_vmem [thread:$0]  %s156_s28, 512, %s158_s11, [#allocation17], %s6194_s29, %s6194_s29, %s6195_s30  }
  0x22   :  { %6179 = dma.done.wait [#allocation5], 16  }
  0x23   :  { %6180 = vsyncadd [#allocation5], 4294967280 }
  0x24   :  { %6181 = dma.done.wait [#allocation3], 2048  }
  0x25   :  { %6182 = vsyncadd [#allocation3], 4294965248 }
  0x26   :  { %6183 = dma.done.wait [#allocation8], 1024  }
  0x27   :  { %6184 = vsyncadd [#allocation8], 4294966272 }
  0x28   :  { %6185 = dma.done.wait [#allocation11], 2560  }
  0x29   :  { %6186 = vsyncadd [#allocation11], 4294964736 }
  0x2a   :  { %6187 = dma.done.wait [#allocation14], 1024  }
  0x2b   :  { %6188 = vsyncadd [#allocation14], 4294966272 }
  0x2c   :  { %6189 = dma.done.wait [#allocation17], 1024  }
  0x2d   :  { %6190 = vsyncadd [#allocation17], 4294966272 }
  0x2e   :  { %206 = sfence }
  0x2f   :  { %v279_v0 = vld [vmem:[#allocation6 + $0x78] sm:$0xff]  ;;  %v278_v1 = vld [vmem:[#allocation6 + $0x70] sm:$0xff]  ;;  %v207_v2 = vlaneseq  ;;  %s212_s14 = sld [smem:[#allocation2]]  ;;  %v277_v3 = vld [vmem:[#allocation6 + $0x68] sm:$0xff]  ;;  %v6205_v15 = vmov 0.0   ;;  %s6206_s25 = smov 32  }
  0x30   :  { %283 = vmatpush.msra.mxu0 %v279_v0  ;;  %s6352_s2 = sld [smem:[#allocation2 + $0x1]]  ;;  %v6356_v5 = vld [vmem:[#allocation7 + $0x18] sm:$0xff]  ;;  %v276_v7 = vld [vmem:[#allocation6 + $0x60] sm:$0xff]  ;;  %v6363_v8 = vld [vmem:[#allocation7 + $0x10] sm:$0xff]  ;;  %s5342_s18 = sshll.u32 %s7619_s16, 4  ;;  %s5343_s18 = int_to_ptr.hbm [resolvable:$true] %s5342_s18 }
  0x31   :  { %v6354_v4 = vshrl.u32 %v207_v2, 7  ;;  %v6358_v6 = vand.u32 127, %v207_v2  ;;  %s6360_s5 = sld [smem:[#allocation2 + $0x2]]  ;;  %319 = vmatpush.msra.mxu3 %v6356_v5  ;;  %382 = vmatpush.msra.mxu2 %v6356_v5  ;;  %v6366_v9 = vld [vmem:[#allocation7 + $0x8] sm:$0xff]  ;;  %v275_v10 = vld [vmem:[#allocation6 + $0x58] sm:$0xff]  ;;  %v6377_v12 = vld [vmem:[#allocation7] sm:$0xff] }
  0x32   :  { %284 = vmatpush.msra.mxu0 %v278_v1  ;;  %s6369_s20 = sld [smem:[#allocation2 + $0x3]]  ;;  %522 = vmatpush.msra.mxu1 %v6356_v5  ;;  %v274_v14 = vld [vmem:[#allocation6 + $0x50] sm:$0xff]  ;;  %v273_v19 = vld [vmem:[#allocation6 + $0x48] sm:$0xff]  ;;  %v272_v22 = vld [vmem:[#allocation6 + $0x40] sm:$0xff] }
  0x33   :  { %vm211_vm0 = vcmp.eq.s32.totalorder %v6354_v4, 0  ;;  %320 = vmatpush.msra.mxu3 %v6363_v8  ;;  %vm217_vm1 = vcmp.eq.s32.totalorder %v6354_v4, 1  ;;  %s6374_s22 = sld [smem:[#allocation2 + $0x4]]  ;;  %383 = vmatpush.msra.mxu2 %v6363_v8  ;;  %vm223_vm5 = vcmp.eq.s32.totalorder %v6354_v4, 2  ;;  %vm229_vm9 = vcmp.eq.s32.totalorder %v6354_v4, 3  ;;  %v271_v24 = vld [vmem:[#allocation6 + $0x38] sm:$0xff] }
  0x34   :  { %285 = vmatpush.msra.mxu0 %v277_v3  ;;  %s6381_s21 = sld [smem:[#allocation2 + $0x5]]  ;;  %523 = vmatpush.msra.mxu1 %v6363_v8  ;;  %vm235_vm12 = vcmp.eq.s32.totalorder %v6354_v4, 4  ;;  %v270_v28 = vld [vmem:[#allocation6 + $0x30] sm:$0xff]  ;;  %vm241_vm15 = vcmp.eq.s32.totalorder %v6354_v4, 5  ;;  %v269_v31 = vld [vmem:[#allocation6 + $0x28] sm:$0xff]  ;;  %v268_v32 = vld [vmem:[#allocation6 + $0x20] sm:$0xff] }
  0x35   :  { %v213_v11 = vstv %s212_s14  ;;  %321 = vmatpush.msra.mxu3 %v6366_v9  ;;  %384 = vmatpush.msra.mxu2 %v6366_v9  ;;  %s6398_s24 = sld [smem:[#allocation2 + $0x6]]  ;;  %v267_v36 = vld [vmem:[#allocation6 + $0x18] sm:$0xff]  ;;  %v266_v38 = vld [vmem:[#allocation6 + $0x10] sm:$0xff]  ;;  %v265_v39 = vld [vmem:[#allocation6 + $0x8] sm:$0xff] }
  0x36   :  { %286 = vmatpush.msra.mxu0 %v276_v7  ;;  %vm214_vm2 = vcmp.eq.s32.totalorder %v6358_v6, %v213_v11  ;;  %v219_v13 = vstv %s6352_s2  ;;  %524 = vmatpush.msra.mxu1 %v6366_v9  ;;  %s6413_s23 = sld [smem:[#allocation2 + $0x7]]  ;;  %v264_v41 = vld [vmem:[#allocation6] sm:$0xff]  ;;  %v5541_v43 = vld [vmem:[%s7606_s3] ss:$0 sm:$0xff]  ;;  %s6207_s3 = smov 64  }
  0x37   :  { %vm215_vm3 = vmand %vm211_vm0, %vm214_vm2  ;;  %vm220_vm4 = vcmp.eq.s32.totalorder %v6358_v6, %v219_v13  ;;  %v225_v18 = vstv %s6360_s5  ;;  %322 = vmatpush.msra.mxu3 %v6377_v12  ;;  %385 = vmatpush.msra.mxu2 %v6377_v12  ;;  %vm247_vm2 = vcmp.eq.s32.totalorder %v6354_v4, 6 }
  0x38   :  { %287 = vmatpush.msra.mxu0 %v275_v10  ;;  %v216_v16 = vsel %vm215_vm3, 1.0, %v6205_v15  ;;  %vm6393_vm6 = vmand %vm217_vm1, %vm220_vm4  ;;  %vm226_vm7 = vcmp.eq.s32.totalorder %v6358_v6, %v225_v18  ;;  %323 = vmatmul.f32.vlgmr.msra.gmra.mxu3 %v6205_v15  ;;  %v231_v21 = vstv %s6369_s20 }
  0x39   :  { %v222_v20 = vsel %vm6393_vm6, 1.0, %v216_v16  ;;  %vm227_vm8 = vmand %vm223_vm5, %vm226_vm7  ;;  %vm232_vm10 = vcmp.eq.s32.totalorder %v6358_v6, %v231_v21  ;;  %v237_v23 = vstv %s6374_s22  ;;  %452 = vmatpush.msrb.mxu3 %v6356_v5  ;;  %525 = vmatpush.msra.mxu1 %v6377_v12  ;;  %vm253_vm5 = vcmp.eq.s32.totalorder %v6354_v4, 7 }
  0x3a   :  { %288 = vmatpush.msra.mxu0 %v274_v14  ;;  %592 = vmatpush.msrb.mxu2 %v6356_v5  ;;  %v228_v25 = vsel %vm227_vm8, 1.0, %v222_v20  ;;  %vm6418_vm11 = vmand %vm229_vm9, %vm232_vm10  ;;  %vm238_vm13 = vcmp.eq.s32.totalorder %v6358_v6, %v237_v23  ;;  %v243_v27 = vstv %s6381_s21 }
  0x3b   :  { %453 = vmatpush.msrb.mxu3 %v6363_v8  ;;  %732 = vmatpush.msrb.mxu1 %v6356_v5  ;;  %v234_v29 = vsel %vm6418_vm11, 1.0, %v228_v25  ;;  %vm239_vm14 = vmand %vm235_vm12, %vm238_vm13  ;;  %vm244_vm0 = vcmp.eq.s32.totalorder %v6358_v6, %v243_v27  ;;  %v249_v30 = vstv %s6398_s24  ;;  %vm303_vm12 = vcmask 261120  }
  0x3c   :  { %289 = vmatpush.msra.mxu0 %v273_v19  ;;  %593 = vmatpush.msrb.mxu2 %v6363_v8  ;;  %v240_v33 = vsel %vm239_vm14, 1.0, %v234_v29  ;;  %vm6439_vm1 = vmand %vm241_vm15, %vm244_vm0  ;;  %vm250_vm3 = vcmp.eq.s32.totalorder %v6358_v6, %v249_v30  ;;  %v255_v35 = vstv %s6413_s23 }
  0x3d   :  { %454 = vmatpush.msrb.mxu3 %v6366_v9  ;;  %733 = vmatpush.msrb.mxu1 %v6363_v8  ;;  %v246_v37 = vsel %vm6439_vm1, 1.0, %v240_v33  ;;  %vm251_vm4 = vmand %vm247_vm2, %vm250_vm3  ;;  %vm256_vm6 = vcmp.eq.s32.totalorder %v6358_v6, %v255_v35 }
  0x3e   :  { %290 = vmatpush.msra.mxu0 %v272_v22  ;;  %594 = vmatpush.msrb.mxu2 %v6366_v9  ;;  %v252_v40 = vsel %vm251_vm4, 1.0, %v246_v37  ;;  %vm257_vm7 = vmand %vm253_vm5, %vm256_vm6  ;;  %vm854_vm5 = vcmask 1040384   ;;  %vm856_vm6 = vcmask 1041408  }
  0x3f   :  { %455 = vmatpush.msrb.mxu3 %v6377_v12  ;;  %734 = vmatpush.msrb.mxu1 %v6366_v9  ;;  %v258_v42 = vsel %vm257_vm7, 1.0, %v252_v40 }
  0x40   :  { %291 = vmatpush.msra.mxu0 %v271_v24  ;;  %595 = vmatpush.msrb.mxu2 %v6377_v12 }
  0x41   :  { %662 = vmatpush.msra.mxu3 %v6356_v5  ;;  %735 = vmatpush.msrb.mxu1 %v6377_v12 }
  0x42   :  { %292 = vmatpush.msra.mxu0 %v270_v28 }
  0x43   :  { %663 = vmatpush.msra.mxu3 %v6363_v8 }
  0x44   :  { %293 = vmatpush.msra.mxu0 %v269_v31 }
  0x45   :  { %664 = vmatpush.msra.mxu3 %v6366_v9 }
  0x46   :  { %294 = vmatpush.msra.mxu0 %v268_v32 }
  0x47   :  { %665 = vmatpush.msra.mxu3 %v6377_v12 }
  0x48   :  { %295 = vmatpush.msra.mxu0 %v267_v36 }
  0x4a   :  { %296 = vmatpush.msra.mxu0 %v266_v38 }
  0x4c   :  { %297 = vmatpush.msra.mxu0 %v265_v39 }
  0x4e   :  { %298 = vmatpush.msra.mxu0 %v264_v41 }
  0x4f   :  { %299 = vmatmul.f32.vlgmr.msra.gmra.mxu0 %v258_v42 }
  0xbb   :  { %v324_v45 = vpop.f32.mrf.mxu3 }
  0xcc   :  { %v300_v44 = vpop.f32.mrf.mxu0 }
  0xcd   :  { %v6458_v46 = vadd.f32 %v5541_v43, %v300_v44 }
  0xcf   :  { %v327_v47 = vadd.f32 %v324_v45, %v6458_v46 }
  0xd1   :  { %5543 = vtanh.f32 %v327_v47  ;;  %v5367_v49 = vmul.f32 -1.442695, %v327_v47 }
  0xd3   :  { %5545 = vpow2.f32 %v5367_v49 }
  0xd7   :  { %v5544_v48 = vpop.eup %5543 }
  0xd8   :  { %350 = vrot.lane.b32.xlu0 %v5544_v48, %s6206_s25 }
  0xd9   :  { %v5546_v50 = vpop.eup %5545 }
  0xda   :  { %v331_v51 = vadd.f32 1.0, %v5546_v50 }
  0xdc   :  { %5547 = vrcp.f32 %v331_v51  ;;  %v343_v57 = vand.u32 2147483648, %v331_v51  ;;  %vm337_vm9 = vweird.f32 %v331_v51  ;;  %v341_v58 = vand.u32 2147483647, %v331_v51 }
  0xde   :  { %v344_v60 = vor.u32 1.1754944e-38, %v343_v57  ;;  %vm342_vm11 = vcmp.eq.f32.partialorder %v341_v58, 8.507059e+37 }
  0xe2   :  { %v5548_v52 = vpop.eup %5547 }
  0xe3   :  { %v333_v53 = vmul.f32 %v5548_v52, %v331_v51  ;;  %vm338_vm8 = vweird.f32 %v5548_v52 }
  0xe4   :  { %vm339_vm10 = vmor %vm337_vm9, %vm338_vm8 }
  0xe5   :  { %v334_v54 = vsub.f32 1.0, %v333_v53 }
  0xe7   :  { %v335_v55 = vmul.f32 %v5548_v52, %v334_v54 }
  0xe9   :  { %v336_v56 = vadd.f32 %v5548_v52, %v335_v55 }
  0xeb   :  { %v340_v59 = vsel %vm339_vm10, %v5548_v52, %v336_v56 }
  0xec   :  { %v345_v62 = vsel %vm342_vm11, %v344_v60, %v340_v59  ;;  %vm858_vm11 = vcmask 1042432  }
  0xed   :  { %v348_v0 = vmul.f32 0.0, %v345_v62 }
 0x14a   :  { %v351_v61 = vpop.permute.xlu0 %350 }
 0x14b   :  { %v353_v63 = vmul.f32 %v351_v61, %v345_v62 }
 0x14d   :  { %355 = vrot.lane.b32.xlu0 %v353_v63, %s6206_s25 }
 0x1bf   :  { %v356_v1 = vpop.permute.xlu0 %355 }
 0x1c0   :  { %v358_v2 = vadd.f32 %v356_v1, %v348_v0 }
 0x1c2   :  { %5549 = vtanh.f32 %v358_v2  ;;  %v415_v28 = vrot.slane %v358_v2, 7 }
 0x1c8   :  { %v5550_v3 = vpop.eup %5549 }
 0x1c9   :  { %361 = vrot.lane.b32.xlu1 %v5550_v3, %s6206_s25 }
 0x23b   :  { %v362_v4 = vpop.permute.xlu1 %361 }
 0x23c   :  { %v6464_v7 = vmul.f32 %v362_v4, %v345_v62 }
 0x23e   :  { %366 = vrot.lane.b32.xlu1 %v6464_v7, %s6207_s3 }
 0x2b0   :  { %v367_v10 = vpop.permute.xlu1 %366 }
 0x2b1   :  { %5368 = vmatmul.msk.f32.vlgmr.msra.gmra.mxu2 %vm303_vm12, %v367_v10 }
 0x2b2   :  { %802 = vmatpush.msra.mxu2 %v6356_v5 }
 0x2b4   :  { %803 = vmatpush.msra.mxu2 %v6363_v8 }
 0x2b6   :  { %804 = vmatpush.msra.mxu2 %v6366_v9 }
 0x2b8   :  { %805 = vmatpush.msra.mxu2 %v6377_v12 }
 0x334   :  { %v387_v11 = vpop.f32.mrf.mxu2 }
 0x335   :  { %v391_v13 = vrot.slane %v387_v11, 7 }
 0x337   :  { %v393_v14 = vadd.f32 %v391_v13, %v6458_v46 }
 0x339   :  { %5551 = vtanh.f32 %v393_v14  ;;  %v5369_v17 = vmul.f32 -1.442695, %v393_v14 }
 0x33b   :  { %5553 = vpow2.f32 %v5369_v17 }
 0x33f   :  { %v5552_v16 = vpop.eup %5551 }
 0x340   :  { %419 = vrot.lane.b32.xlu2 %v5552_v16, %s6206_s25 }
 0x341   :  { %v5554_v18 = vpop.eup %5553 }
 0x342   :  { %v397_v19 = vadd.f32 1.0, %v5554_v18 }
 0x344   :  { %5555 = vrcp.f32 %v397_v19  ;;  %v409_v12 = vand.u32 2147483648, %v397_v19  ;;  %vm403_vm14 = vweird.f32 %v397_v19  ;;  %v407_v22 = vand.u32 2147483647, %v397_v19 }
 0x346   :  { %v410_v24 = vor.u32 1.1754944e-38, %v409_v12  ;;  %vm408_vm0 = vcmp.eq.f32.partialorder %v407_v22, 8.507059e+37 }
 0x34a   :  { %v5556_v5 = vpop.eup %5555 }
 0x34b   :  { %v399_v20 = vmul.f32 %v5556_v5, %v397_v19  ;;  %vm404_vm13 = vweird.f32 %v5556_v5 }
 0x34c   :  { %vm405_vm15 = vmor %vm403_vm14, %vm404_vm13 }
 0x34d   :  { %v400_v8 = vsub.f32 1.0, %v399_v20 }
 0x34f   :  { %v401_v21 = vmul.f32 %v5556_v5, %v400_v8 }
 0x351   :  { %v402_v9 = vadd.f32 %v5556_v5, %v401_v21 }
 0x353   :  { %v406_v23 = vsel %vm405_vm15, %v5556_v5, %v402_v9 }
 0x354   :  { %v411_v26 = vsel %vm408_vm0, %v410_v24, %v406_v23 }
 0x355   :  { %v417_v29 = vmul.f32 %v415_v28, %v411_v26 }
 0x39a   :  { %v420_v25 = vpop.permute.xlu2 %419 }
 0x39b   :  { %v422_v27 = vmul.f32 %v420_v25, %v411_v26 }
 0x39d   :  { %424 = vrot.lane.b32.xlu2 %v422_v27, %s6206_s25 }
 0x3f7   :  { %v425_v30 = vpop.permute.xlu2 %424 }
 0x3f8   :  { %v427_v31 = vadd.f32 %v425_v30, %v417_v29 }
 0x3fa   :  { %5557 = vtanh.f32 %v427_v31  ;;  %v485_v57 = vrot.slane %v427_v31, 7 }
 0x400   :  { %v5558_v32 = vpop.eup %5557 }
 0x401   :  { %430 = vrot.lane.b32.xlu0 %v5558_v32, %s6206_s25 }
 0x473   :  { %v431_v33 = vpop.permute.xlu0 %430 }
 0x474   :  { %v433_v34 = vmul.f32 %v431_v33, %v411_v26 }
 0x476   :  { %v435_v35 = vrot.slane %v433_v34, 1  ;;  %v855_v0 = vsel %vm854_vm5, %v6464_v7, %v433_v34 }
 0x478   :  { %436 = vrot.lane.b32.xlu1 %v435_v35, %s6207_s3 }
 0x4ea   :  { %v437_v36 = vpop.permute.xlu1 %436 }
 0x4eb   :  { %5370 = vmatmul.msk.f32.vlgmr.msrb.gmra.mxu3 %vm303_vm12, %v437_v36 }
 0x56e   :  { %v457_v37 = vpop.f32.mrf.mxu3 }
 0x56f   :  { %v461_v38 = vrot.slane %v457_v37, 6 }
 0x571   :  { %v463_v39 = vadd.f32 %v461_v38, %v6458_v46 }
 0x573   :  { %5559 = vtanh.f32 %v463_v39  ;;  %v5371_v41 = vmul.f32 -1.442695, %v463_v39 }
 0x575   :  { %5561 = vpow2.f32 %v5371_v41 }
 0x579   :  { %v5560_v40 = vpop.eup %5559 }
 0x57a   :  { %489 = vrot.lane.b32.xlu2 %v5560_v40, %s6206_s25 }
 0x57b   :  { %v5562_v42 = vpop.eup %5561 }
 0x57c   :  { %v467_v43 = vadd.f32 1.0, %v5562_v42 }
 0x57e   :  { %5563 = vrcp.f32 %v467_v43  ;;  %v479_v50 = vand.u32 2147483648, %v467_v43  ;;  %vm473_vm2 = vweird.f32 %v467_v43  ;;  %v477_v51 = vand.u32 2147483647, %v467_v43 }
 0x580   :  { %v480_v53 = vor.u32 1.1754944e-38, %v479_v50  ;;  %vm478_vm4 = vcmp.eq.f32.partialorder %v477_v51, 8.507059e+37 }
 0x584   :  { %v5564_v44 = vpop.eup %5563 }
 0x585   :  { %v469_v45 = vmul.f32 %v5564_v44, %v467_v43  ;;  %vm474_vm1 = vweird.f32 %v5564_v44 }
 0x586   :  { %vm475_vm3 = vmor %vm473_vm2, %vm474_vm1  ;;  %vm860_vm1 = vcmask 1043456  }
 0x587   :  { %v470_v47 = vsub.f32 1.0, %v469_v45 }
 0x589   :  { %v471_v48 = vmul.f32 %v5564_v44, %v470_v47 }
 0x58b   :  { %v472_v49 = vadd.f32 %v5564_v44, %v471_v48 }
 0x58d   :  { %v476_v52 = vsel %vm475_vm3, %v5564_v44, %v472_v49 }
 0x58e   :  { %v481_v55 = vsel %vm478_vm4, %v480_v53, %v476_v52 }
 0x58f   :  { %v487_v58 = vmul.f32 %v485_v57, %v481_v55 }
 0x5d4   :  { %v490_v54 = vpop.permute.xlu2 %489 }
 0x5d5   :  { %v492_v56 = vmul.f32 %v490_v54, %v481_v55 }
 0x5d7   :  { %494 = vrot.lane.b32.xlu0 %v492_v56, %s6206_s25 }
 0x649   :  { %v495_v59 = vpop.permute.xlu0 %494 }
 0x64a   :  { %v497_v60 = vadd.f32 %v495_v59, %v487_v58 }
 0x64c   :  { %5565 = vtanh.f32 %v497_v60  ;;  %v555_v25 = vrot.slane %v497_v60, 7 }
 0x652   :  { %v5566_v61 = vpop.eup %5565 }
 0x653   :  { %500 = vrot.lane.b32.xlu1 %v5566_v61, %s6206_s25 }
 0x6c5   :  { %v501_v62 = vpop.permute.xlu1 %500 }
 0x6c6   :  { %v503_v63 = vmul.f32 %v501_v62, %v481_v55 }
 0x6c8   :  { %v505_v1 = vrot.slane %v503_v63, 2  ;;  %v857_v2 = vsel %vm856_vm6, %v855_v0, %v503_v63 }
 0x6ca   :  { %506 = vrot.lane.b32.xlu2 %v505_v1, %s6207_s3 }
 0x724   :  { %v507_v3 = vpop.permute.xlu2 %506 }
 0x725   :  { %5372 = vmatmul.msk.f32.vlgmr.msra.gmra.mxu1 %vm303_vm12, %v507_v3 }
 0x7a2   :  { %v527_v4 = vpop.f32.mrf.mxu1 }
 0x7a3   :  { %v531_v10 = vrot.slane %v527_v4, 5 }
 0x7a5   :  { %v533_v11 = vadd.f32 %v531_v10, %v6458_v46 }
 0x7a7   :  { %5567 = vtanh.f32 %v533_v11  ;;  %v5373_v14 = vmul.f32 -1.442695, %v533_v11 }
 0x7a9   :  { %5569 = vpow2.f32 %v5373_v14 }
 0x7ad   :  { %v5568_v13 = vpop.eup %5567 }
 0x7ae   :  { %559 = vrot.lane.b32.xlu0 %v5568_v13, %s6206_s25 }
 0x7af   :  { %v5570_v16 = vpop.eup %5569 }
 0x7b0   :  { %v537_v17 = vadd.f32 1.0, %v5570_v16 }
 0x7b2   :  { %5571 = vrcp.f32 %v537_v17  ;;  %v549_v8 = vand.u32 2147483648, %v537_v17  ;;  %vm543_vm8 = vweird.f32 %v537_v17  ;;  %v547_v21 = vand.u32 2147483647, %v537_v17 }
 0x7b4   :  { %v550_v12 = vor.u32 1.1754944e-38, %v549_v8  ;;  %vm548_vm10 = vcmp.eq.f32.partialorder %v547_v21, 8.507059e+37 }
 0x7b8   :  { %v5572_v7 = vpop.eup %5571 }
 0x7b9   :  { %v539_v18 = vmul.f32 %v5572_v7, %v537_v17  ;;  %vm544_vm7 = vweird.f32 %v5572_v7 }
 0x7ba   :  { %vm545_vm9 = vmor %vm543_vm8, %vm544_vm7  ;;  %vm862_vm7 = vcmask 1044480  }
 0x7bb   :  { %v540_v19 = vsub.f32 1.0, %v539_v18 }
 0x7bd   :  { %v541_v5 = vmul.f32 %v5572_v7, %v540_v19 }
 0x7bf   :  { %v542_v20 = vadd.f32 %v5572_v7, %v541_v5 }
 0x7c1   :  { %v546_v9 = vsel %vm545_vm9, %v5572_v7, %v542_v20 }
 0x7c2   :  { %v551_v23 = vsel %vm548_vm10, %v550_v12, %v546_v9 }
 0x7c3   :  { %v557_v26 = vmul.f32 %v555_v25, %v551_v23 }
 0x820   :  { %v560_v22 = vpop.permute.xlu0 %559 }
 0x821   :  { %v562_v24 = vmul.f32 %v560_v22, %v551_v23 }
 0x823   :  { %564 = vrot.lane.b32.xlu1 %v562_v24, %s6206_s25 }
 0x895   :  { %v565_v27 = vpop.permute.xlu1 %564 }
 0x896   :  { %v567_v28 = vadd.f32 %v565_v27, %v557_v26 }
 0x898   :  { %5573 = vtanh.f32 %v567_v28  ;;  %v625_v55 = vrot.slane %v567_v28, 7 }
 0x89e   :  { %v5574_v29 = vpop.eup %5573 }
 0x89f   :  { %570 = vrot.lane.b32.xlu2 %v5574_v29, %s6206_s25 }
 0x8f9   :  { %v571_v30 = vpop.permute.xlu2 %570 }
 0x8fa   :  { %v573_v31 = vmul.f32 %v571_v30, %v551_v23 }
 0x8fc   :  { %v575_v32 = vrot.slane %v573_v31, 3  ;;  %v859_v33 = vsel %vm858_vm11, %v857_v2, %v573_v31 }
 0x8fe   :  { %576 = vrot.lane.b32.xlu0 %v575_v32, %s6207_s3 }
 0x970   :  { %v577_v34 = vpop.permute.xlu0 %576 }
 0x971   :  { %5374 = vmatmul.msk.f32.vlgmr.msrb.gmra.mxu2 %vm303_vm12, %v577_v34 }
 0x9f4   :  { %v597_v35 = vpop.f32.mrf.mxu2 }
 0x9f5   :  { %v601_v36 = vrot.slane %v597_v35, 4 }
 0x9f7   :  { %v603_v37 = vadd.f32 %v601_v36, %v6458_v46 }
 0x9f9   :  { %5575 = vtanh.f32 %v603_v37  ;;  %v5375_v39 = vmul.f32 -1.442695, %v603_v37 }
 0x9fb   :  { %5577 = vpow2.f32 %v5375_v39 }
 0x9ff   :  { %v5576_v38 = vpop.eup %5575 }
 0xa00   :  { %629 = vrot.lane.b32.xlu1 %v5576_v38, %s6206_s25 }
 0xa01   :  { %v5578_v40 = vpop.eup %5577 }
 0xa02   :  { %v607_v41 = vadd.f32 1.0, %v5578_v40 }
 0xa04   :  { %5579 = vrcp.f32 %v607_v41  ;;  %v619_v48 = vand.u32 2147483648, %v607_v41  ;;  %vm613_vm14 = vweird.f32 %v607_v41  ;;  %v617_v49 = vand.u32 2147483647, %v607_v41 }
 0xa06   :  { %v620_v51 = vor.u32 1.1754944e-38, %v619_v48  ;;  %vm618_vm0 = vcmp.eq.f32.partialorder %v617_v49, 8.507059e+37 }
 0xa0a   :  { %v5580_v42 = vpop.eup %5579 }
 0xa0b   :  { %v609_v43 = vmul.f32 %v5580_v42, %v607_v41  ;;  %vm614_vm13 = vweird.f32 %v5580_v42 }
 0xa0c   :  { %vm615_vm15 = vmor %vm613_vm14, %vm614_vm13  ;;  %vm864_vm13 = vcmask 1045504  }
 0xa0d   :  { %v610_v44 = vsub.f32 1.0, %v609_v43 }
 0xa0f   :  { %v611_v45 = vmul.f32 %v5580_v42, %v610_v44 }
 0xa11   :  { %v612_v47 = vadd.f32 %v5580_v42, %v611_v45 }
 0xa13   :  { %v616_v50 = vsel %vm615_vm15, %v5580_v42, %v612_v47 }
 0xa14   :  { %v621_v53 = vsel %vm618_vm0, %v620_v51, %v616_v50 }
 0xa15   :  { %v627_v56 = vmul.f32 %v625_v55, %v621_v53 }
 0xa72   :  { %v630_v52 = vpop.permute.xlu1 %629 }
 0xa73   :  { %v632_v54 = vmul.f32 %v630_v52, %v621_v53 }
 0xa75   :  { %634 = vrot.lane.b32.xlu2 %v632_v54, %s6206_s25 }
 0xacf   :  { %v635_v57 = vpop.permute.xlu2 %634 }
 0xad0   :  { %v637_v58 = vadd.f32 %v635_v57, %v627_v56 }
 0xad2   :  { %5581 = vtanh.f32 %v637_v58  ;;  %v695_v22 = vrot.slane %v637_v58, 7 }
 0xad8   :  { %v5582_v59 = vpop.eup %5581 }
 0xad9   :  { %640 = vrot.lane.b32.xlu0 %v5582_v59, %s6206_s25 }
 0xb4b   :  { %v641_v60 = vpop.permute.xlu0 %640 }
 0xb4c   :  { %v643_v61 = vmul.f32 %v641_v60, %v621_v53 }
 0xb4e   :  { %v645_v62 = vrot.slane %v643_v61, 4  ;;  %v861_v63 = vsel %vm860_vm1, %v859_v33, %v643_v61 }
 0xb50   :  { %646 = vrot.lane.b32.xlu1 %v645_v62, %s6207_s3 }
 0xbc2   :  { %v647_v0 = vpop.permute.xlu1 %646 }
 0xbc3   :  { %5376 = vmatmul.msk.f32.vlgmr.msra.gmra.mxu3 %vm303_vm12, %v647_v0 }
 0xc46   :  { %v667_v1 = vpop.f32.mrf.mxu3 }
 0xc47   :  { %v671_v2 = vrot.slane %v667_v1, 3 }
 0xc49   :  { %v673_v3 = vadd.f32 %v671_v2, %v6458_v46 }
 0xc4b   :  { %5583 = vtanh.f32 %v673_v3  ;;  %v5377_v10 = vmul.f32 -1.442695, %v673_v3 }
 0xc4d   :  { %5585 = vpow2.f32 %v5377_v10 }
 0xc51   :  { %v5584_v4 = vpop.eup %5583 }
 0xc52   :  { %699 = vrot.lane.b32.xlu2 %v5584_v4, %s6206_s25 }
 0xc53   :  { %v5586_v11 = vpop.eup %5585 }
 0xc54   :  { %v677_v13 = vadd.f32 1.0, %v5586_v11 }
 0xc56   :  { %5587 = vrcp.f32 %v677_v13  ;;  %v689_v19 = vand.u32 2147483648, %v677_v13  ;;  %vm683_vm3 = vweird.f32 %v677_v13  ;;  %v687_v5 = vand.u32 2147483647, %v677_v13 }
 0xc58   :  { %v690_v8 = vor.u32 1.1754944e-38, %v689_v19  ;;  %vm688_vm6 = vcmp.eq.f32.partialorder %v687_v5, 8.507059e+37 }
 0xc5c   :  { %v5588_v14 = vpop.eup %5587 }
 0xc5d   :  { %v679_v16 = vmul.f32 %v5588_v14, %v677_v13  ;;  %vm684_vm2 = vweird.f32 %v5588_v14 }
 0xc5e   :  { %vm685_vm4 = vmor %vm683_vm3, %vm684_vm2  ;;  %vm866_vm2 = vcmask 1046528  }
 0xc5f   :  { %v680_v17 = vsub.f32 1.0, %v679_v16 }
 0xc61   :  { %v681_v7 = vmul.f32 %v5588_v14, %v680_v17 }
 0xc63   :  { %v682_v18 = vadd.f32 %v5588_v14, %v681_v7 }
 0xc65   :  { %v686_v20 = vsel %vm685_vm4, %v5588_v14, %v682_v18 }
 0xc66   :  { %v691_v9 = vsel %vm688_vm6, %v690_v8, %v686_v20 }
 0xc67   :  { %v697_v23 = vmul.f32 %v695_v22, %v691_v9 }
 0xcac   :  { %v700_v21 = vpop.permute.xlu2 %699 }
 0xcad   :  { %v702_v12 = vmul.f32 %v700_v21, %v691_v9 }
 0xcaf   :  { %704 = vrot.lane.b32.xlu0 %v702_v12, %s6206_s25 }
 0xd21   :  { %v705_v24 = vpop.permute.xlu0 %704 }
 0xd22   :  { %v707_v25 = vadd.f32 %v705_v24, %v697_v23  ;;  %v876_v23 = vld [vmem:[#allocation9 + $0x18] sm:$0xff]  ;;  %v875_v24 = vld [vmem:[#allocation9 + $0x10] sm:$0xff] }
 0xd23   :  { %897 = vmatpush.msrb.mxu3 %v876_v23 }
 0xd24   :  { %5589 = vtanh.f32 %v707_v25  ;;  %v765_v52 = vrot.slane %v707_v25, 7  ;;  %v874_v25 = vld [vmem:[#allocation9 + $0x8] sm:$0xff] }
 0xd25   :  { %898 = vmatpush.msrb.mxu3 %v875_v24 }
 0xd27   :  { %899 = vmatpush.msrb.mxu3 %v874_v25 }
 0xd2a   :  { %v5590_v26 = vpop.eup %5589 }
 0xd2b   :  { %710 = vrot.lane.b32.xlu1 %v5590_v26, %s6206_s25  ;;  %v873_v26 = vld [vmem:[#allocation9] sm:$0xff] }
 0xd2c   :  { %900 = vmatpush.msrb.mxu3 %v873_v26 }
 0xd9d   :  { %v711_v27 = vpop.permute.xlu1 %710 }
 0xd9e   :  { %v713_v28 = vmul.f32 %v711_v27, %v691_v9 }
 0xda0   :  { %v715_v29 = vrot.slane %v713_v28, 5  ;;  %v863_v30 = vsel %vm862_vm7, %v861_v63, %v713_v28 }
 0xda2   :  { %716 = vrot.lane.b32.xlu2 %v715_v29, %s6207_s3 }
 0xdfc   :  { %v717_v31 = vpop.permute.xlu2 %716 }
 0xdfd   :  { %5378 = vmatmul.msk.f32.vlgmr.msrb.gmra.mxu1 %vm303_vm12, %v717_v31  ;;  %v870_v31 = vld [vmem:[#allocation10 + $0x10] sm:$0xff] }
 0xe7a   :  { %v737_v32 = vpop.f32.mrf.mxu1 }
 0xe7b   :  { %v741_v33 = vrot.slane %v737_v32, 2  ;;  %v869_v32 = vld [vmem:[#allocation10 + $0x8] sm:$0xff] }
 0xe7d   :  { %v743_v34 = vadd.f32 %v741_v33, %v6458_v46  ;;  %v868_v33 = vld [vmem:[#allocation10] sm:$0xff] }
 0xe7f   :  { %5591 = vtanh.f32 %v743_v34  ;;  %v5379_v36 = vmul.f32 -1.442695, %v743_v34 }
 0xe81   :  { %5593 = vpow2.f32 %v5379_v36 }
 0xe85   :  { %v5592_v35 = vpop.eup %5591 }
 0xe86   :  { %769 = vrot.lane.b32.xlu0 %v5592_v35, %s6206_s25 }
 0xe87   :  { %v5594_v37 = vpop.eup %5593 }
 0xe88   :  { %v747_v38 = vadd.f32 1.0, %v5594_v37 }
 0xe8a   :  { %5595 = vrcp.f32 %v747_v38  ;;  %v759_v44 = vand.u32 2147483648, %v747_v38  ;;  %vm753_vm9 = vweird.f32 %v747_v38  ;;  %v757_v45 = vand.u32 2147483647, %v747_v38 }
 0xe8c   :  { %v760_v48 = vor.u32 1.1754944e-38, %v759_v44  ;;  %vm758_vm11 = vcmp.eq.f32.partialorder %v757_v45, 8.507059e+37 }
 0xe90   :  { %v5596_v39 = vpop.eup %5595 }
 0xe91   :  { %v749_v40 = vmul.f32 %v5596_v39, %v747_v38  ;;  %vm754_vm8 = vweird.f32 %v5596_v39 }
 0xe92   :  { %vm755_vm10 = vmor %vm753_vm9, %vm754_vm8 }
 0xe93   :  { %v750_v41 = vsub.f32 1.0, %v749_v40 }
 0xe95   :  { %v751_v42 = vmul.f32 %v5596_v39, %v750_v41 }
 0xe97   :  { %v752_v43 = vadd.f32 %v5596_v39, %v751_v42 }
 0xe99   :  { %v756_v47 = vsel %vm755_vm10, %v5596_v39, %v752_v43 }
 0xe9a   :  { %v761_v50 = vsel %vm758_vm11, %v760_v48, %v756_v47 }
 0xe9b   :  { %v767_v53 = vmul.f32 %v765_v52, %v761_v50 }
 0xef8   :  { %v770_v49 = vpop.permute.xlu0 %769 }
 0xef9   :  { %v772_v51 = vmul.f32 %v770_v49, %v761_v50 }
 0xefb   :  { %774 = vrot.lane.b32.xlu1 %v772_v51, %s6206_s25 }
 0xf6d   :  { %v775_v54 = vpop.permute.xlu1 %774 }
 0xf6e   :  { %v777_v55 = vadd.f32 %v775_v54, %v767_v53 }
 0xf70   :  { %5597 = vtanh.f32 %v777_v55  ;;  %v835_v8 = vrot.slane %v777_v55, 7 }
 0xf76   :  { %v5598_v56 = vpop.eup %5597 }
 0xf77   :  { %780 = vrot.lane.b32.xlu2 %v5598_v56, %s6206_s25 }
 0xfd1   :  { %v781_v57 = vpop.permute.xlu2 %780 }
 0xfd2   :  { %v783_v58 = vmul.f32 %v781_v57, %v761_v50 }
 0xfd4   :  { %v785_v59 = vrot.slane %v783_v58, 6  ;;  %v865_v60 = vsel %vm864_vm13, %v863_v30, %v783_v58  ;;  %v871_v30 = vld [vmem:[#allocation10 + $0x18] sm:$0xff] }
 0xfd5   :  { %917 = vmatpush.msra.mxu1 %v871_v30  ;;  %980 = vmatpush.msrb.mxu2 %v871_v30 }
 0xfd6   :  { %786 = vrot.lane.b32.xlu0 %v785_v59, %s6207_s3  ;;  %1050 = vmatpush.msra.mxu3 %v871_v30 }
 0xfd7   :  { %1120 = vmatpush.msrb.mxu0 %v871_v30  ;;  %918 = vmatpush.msra.mxu1 %v870_v31 }
 0xfd8   :  { %981 = vmatpush.msrb.mxu2 %v870_v31  ;;  %1051 = vmatpush.msra.mxu3 %v870_v31 }
 0xfd9   :  { %1121 = vmatpush.msrb.mxu0 %v870_v31  ;;  %919 = vmatpush.msra.mxu1 %v869_v32 }
 0xfda   :  { %982 = vmatpush.msrb.mxu2 %v869_v32  ;;  %1052 = vmatpush.msra.mxu3 %v869_v32 }
 0xfdb   :  { %1122 = vmatpush.msrb.mxu0 %v869_v32  ;;  %920 = vmatpush.msra.mxu1 %v868_v33 }
 0xfdc   :  { %983 = vmatpush.msrb.mxu2 %v868_v33  ;;  %921 = vmatmul.f32.vlgmr.msra.gmra.mxu1 %v6205_v15  ;;  %v5542_v15 = vld [vmem:[%s7609_s6] ss:$0 sm:$0xff] }
 0xfdd   :  { %1053 = vmatpush.msra.mxu3 %v868_v33  ;;  %1123 = vmatpush.msrb.mxu0 %v868_v33 }
 0xfde   :  { %1190 = vmatpush.msrb.mxu1 %v871_v30 }
 0xfdf   :  { %1400 = vmatpush.msra.mxu0 %v871_v30 }
 0xfe0   :  { %1191 = vmatpush.msrb.mxu1 %v870_v31 }
 0xfe1   :  { %1401 = vmatpush.msra.mxu0 %v870_v31 }
 0xfe2   :  { %1192 = vmatpush.msrb.mxu1 %v869_v32 }
 0xfe3   :  { %1402 = vmatpush.msra.mxu0 %v869_v32 }
 0xfe4   :  { %1193 = vmatpush.msrb.mxu1 %v868_v33 }
 0xfe5   :  { %1403 = vmatpush.msra.mxu0 %v868_v33 }
0x1048   :  { %v787_v61 = vpop.permute.xlu0 %786 }
0x1049   :  { %5380 = vmatmul.msk.f32.vlgmr.msra.gmra.mxu2 %vm303_vm12, %v787_v61 }
0x104a   :  { %1260 = vmatpush.msra.mxu2 %v871_v30 }
0x104c   :  { %1261 = vmatpush.msra.mxu2 %v870_v31 }
0x104e   :  { %1262 = vmatpush.msra.mxu2 %v869_v32 }
0x1050   :  { %1263 = vmatpush.msra.mxu2 %v868_v33 }
0x1059   :  { %v922_v36 = vpop.f32.mrf.mxu1 }
0x10cc   :  { %v807_v62 = vpop.f32.mrf.mxu2 }
0x10cd   :  { %v811_v63 = vrot.slane %v807_v62, 1 }
0x10cf   :  { %v813_v0 = vadd.f32 %v811_v63, %v6458_v46 }
0x10d1   :  { %5599 = vtanh.f32 %v813_v0  ;;  %v5381_v2 = vmul.f32 -1.442695, %v813_v0 }
0x10d3   :  { %5601 = vpow2.f32 %v5381_v2 }
0x10d7   :  { %v5600_v1 = vpop.eup %5599 }
0x10d8   :  { %839 = vrot.lane.b32.xlu1 %v5600_v1, %s6206_s25 }
0x10d9   :  { %v5602_v3 = vpop.eup %5601 }
0x10da   :  { %v817_v4 = vadd.f32 1.0, %v5602_v3 }
0x10dc   :  { %5603 = vrcp.f32 %v817_v4  ;;  %v829_v17 = vand.u32 2147483648, %v817_v4  ;;  %vm823_vm15 = vweird.f32 %v817_v4  ;;  %v827_v7 = vand.u32 2147483647, %v817_v4 }
0x10de   :  { %v830_v18 = vor.u32 1.1754944e-38, %v829_v17  ;;  %vm828_vm1 = vcmp.eq.f32.partialorder %v827_v7, 8.507059e+37 }
0x10e2   :  { %v5604_v10 = vpop.eup %5603 }
0x10e3   :  { %v819_v11 = vmul.f32 %v5604_v10, %v817_v4  ;;  %vm824_vm14 = vweird.f32 %v5604_v10 }
0x10e4   :  { %vm825_vm0 = vmor %vm823_vm15, %vm824_vm14 }
0x10e5   :  { %v820_v13 = vsub.f32 1.0, %v819_v11 }
0x10e7   :  { %v821_v14 = vmul.f32 %v5604_v10, %v820_v13 }
0x10e9   :  { %v822_v16 = vadd.f32 %v5604_v10, %v821_v14 }
0x10eb   :  { %v826_v46 = vsel %vm825_vm0, %v5604_v10, %v822_v16 }
0x10ec   :  { %v831_v5 = vsel %vm828_vm1, %v830_v18, %v826_v46 }
0x10ed   :  { %v837_v21 = vmul.f32 %v835_v8, %v831_v5 }
0x114a   :  { %v840_v19 = vpop.permute.xlu1 %839 }
0x114b   :  { %v842_v20 = vmul.f32 %v840_v19, %v831_v5 }
0x114d   :  { %844 = vrot.lane.b32.xlu2 %v842_v20, %s6206_s25 }
0x11a7   :  { %v845_v9 = vpop.permute.xlu2 %844 }
0x11a8   :  { %v847_v12 = vadd.f32 %v845_v9, %v837_v21 }
0x11aa   :  { %5605 = vtanh.f32 %v847_v12  ;;  %1507 = vst [vmem:[#allocation1] sm:$0xff] %v847_v12 }
0x11b0   :  { %v5606_v22 = vpop.eup %5605 }
0x11b1   :  { %850 = vrot.lane.b32.xlu0 %v5606_v22, %s6206_s25 }
0x1223   :  { %v851_v27 = vpop.permute.xlu0 %850 }
0x1224   :  { %v6515_v28 = vmul.f32 %v851_v27, %v831_v5 }
0x1226   :  { %v867_v29 = vsel %vm866_vm2, %v865_v60, %v6515_v28 }
0x1227   :  { %881 = vrot.lane.b32.xlu1 %v867_v29, %s6207_s3 }
0x1299   :  { %v882_v34 = vpop.permute.xlu1 %881 }
0x129a   :  { %5382 = vmatmul.msk.f32.vlgmr.msrb.gmra.mxu3 %vm303_vm12, %v882_v34 }
0x129b   :  { %1330 = vmatpush.msrb.mxu3 %v871_v30 }
0x129d   :  { %1331 = vmatpush.msrb.mxu3 %v870_v31 }
0x129f   :  { %1332 = vmatpush.msrb.mxu3 %v869_v32 }
0x12a1   :  { %1333 = vmatpush.msrb.mxu3 %v868_v33 }
0x131d   :  { %v902_v35 = vpop.f32.mrf.mxu3 }
0x131e   :  { %v6524_v37 = vadd.f32 %v5542_v15, %v902_v35 }
0x1320   :  { %v925_v38 = vadd.f32 %v922_v36, %v6524_v37 }
0x1322   :  { %5607 = vtanh.f32 %v925_v38  ;;  %v5383_v40 = vmul.f32 -1.442695, %v925_v38 }
0x1324   :  { %5609 = vpow2.f32 %v5383_v40 }
0x1328   :  { %v5608_v39 = vpop.eup %5607 }
0x1329   :  { %948 = vrot.lane.b32.xlu2 %v5608_v39, %s6206_s25 }
0x132a   :  { %v5610_v41 = vpop.eup %5609 }
0x132b   :  { %v929_v42 = vadd.f32 1.0, %v5610_v41 }
0x132d   :  { %5611 = vrcp.f32 %v929_v42  ;;  %v941_v49 = vand.u32 2147483648, %v929_v42  ;;  %vm935_vm4 = vweird.f32 %v929_v42  ;;  %v939_v50 = vand.u32 2147483647, %v929_v42 }
0x132f   :  { %v942_v52 = vor.u32 1.1754944e-38, %v941_v49  ;;  %vm940_vm7 = vcmp.eq.f32.partialorder %v939_v50, 8.507059e+37 }
0x1333   :  { %v5612_v43 = vpop.eup %5611 }
0x1334   :  { %v931_v44 = vmul.f32 %v5612_v43, %v929_v42  ;;  %vm936_vm3 = vweird.f32 %v5612_v43 }
0x1335   :  { %vm937_vm6 = vmor %vm935_vm4, %vm936_vm3 }
0x1336   :  { %v932_v45 = vsub.f32 1.0, %v931_v44 }
0x1338   :  { %v933_v47 = vmul.f32 %v5612_v43, %v932_v45 }
0x133a   :  { %v934_v48 = vadd.f32 %v5612_v43, %v933_v47 }
0x133c   :  { %v938_v51 = vsel %vm937_vm6, %v5612_v43, %v934_v48 }
0x133d   :  { %v943_v54 = vsel %vm940_vm7, %v942_v52, %v938_v51 }
0x133e   :  { %v946_v56 = vmul.f32 0.0, %v943_v54 }
0x1383   :  { %v949_v53 = vpop.permute.xlu2 %948 }
0x1384   :  { %v951_v55 = vmul.f32 %v949_v53, %v943_v54 }
0x1386   :  { %953 = vrot.lane.b32.xlu0 %v951_v55, %s6206_s25 }
0x13f8   :  { %v954_v57 = vpop.permute.xlu0 %953 }
0x13f9   :  { %v956_v58 = vadd.f32 %v954_v57, %v946_v56 }
0x13fb   :  { %5613 = vtanh.f32 %v956_v58  ;;  %v1013_v21 = vrot.slane %v956_v58, 7 }
0x1401   :  { %v5614_v59 = vpop.eup %5613 }
0x1402   :  { %959 = vrot.lane.b32.xlu1 %v5614_v59, %s6206_s25 }
0x1474   :  { %v960_v60 = vpop.permute.xlu1 %959 }
0x1475   :  { %v962_v61 = vmul.f32 %v960_v60, %v943_v54 }
0x1477   :  { %964 = vrot.lane.b32.xlu2 %v962_v61, %s6207_s3 }
0x14d1   :  { %v965_v62 = vpop.permute.xlu2 %964 }
0x14d2   :  { %5384 = vmatmul.msk.f32.vlgmr.msrb.gmra.mxu2 %vm303_vm12, %v965_v62 }
0x1555   :  { %v985_v63 = vpop.f32.mrf.mxu2 }
0x1556   :  { %v989_v0 = vrot.slane %v985_v63, 7 }
0x1558   :  { %v991_v1 = vadd.f32 %v989_v0, %v6524_v37 }
0x155a   :  { %5615 = vtanh.f32 %v991_v1  ;;  %v5385_v3 = vmul.f32 -1.442695, %v991_v1 }
0x155c   :  { %5617 = vpow2.f32 %v5385_v3 }
0x1560   :  { %v5616_v2 = vpop.eup %5615 }
0x1561   :  { %1017 = vrot.lane.b32.xlu0 %v5616_v2, %s6206_s25 }
0x1562   :  { %v5618_v4 = vpop.eup %5617 }
0x1563   :  { %v995_v10 = vadd.f32 1.0, %v5618_v4 }
0x1565   :  { %5619 = vrcp.f32 %v995_v10  ;;  %v1007_v7 = vand.u32 2147483648, %v995_v10  ;;  %vm1001_vm9 = vweird.f32 %v995_v10  ;;  %v1005_v46 = vand.u32 2147483647, %v995_v10 }
0x1567   :  { %v1008_v19 = vor.u32 1.1754944e-38, %v1007_v7  ;;  %vm1006_vm11 = vcmp.eq.f32.partialorder %v1005_v46, 8.507059e+37 }
0x156b   :  { %v5620_v11 = vpop.eup %5619 }
0x156c   :  { %v997_v13 = vmul.f32 %v5620_v11, %v995_v10  ;;  %vm1002_vm8 = vweird.f32 %v5620_v11 }
0x156d   :  { %vm1003_vm10 = vmor %vm1001_vm9, %vm1002_vm8 }
0x156e   :  { %v998_v14 = vsub.f32 1.0, %v997_v13 }
0x1570   :  { %v999_v16 = vmul.f32 %v5620_v11, %v998_v14 }
0x1572   :  { %v1000_v17 = vadd.f32 %v5620_v11, %v999_v16 }
0x1574   :  { %v1004_v18 = vsel %vm1003_vm10, %v5620_v11, %v1000_v17 }
0x1575   :  { %v1009_v20 = vsel %vm1006_vm11, %v1008_v19, %v1004_v18 }
0x1576   :  { %v1015_v9 = vmul.f32 %v1013_v21, %v1009_v20 }
0x15d3   :  { %v1018_v5 = vpop.permute.xlu0 %1017 }
0x15d4   :  { %v1020_v8 = vmul.f32 %v1018_v5, %v1009_v20 }
0x15d6   :  { %1022 = vrot.lane.b32.xlu1 %v1020_v8, %s6206_s25 }
0x1648   :  { %v1023_v12 = vpop.permute.xlu1 %1022 }
0x1649   :  { %v1025_v22 = vadd.f32 %v1023_v12, %v1015_v9 }
0x164b   :  { %5621 = vtanh.f32 %v1025_v22  ;;  %v1083_v49 = vrot.slane %v1025_v22, 7 }
0x1651   :  { %v5622_v23 = vpop.eup %5621 }
0x1652   :  { %1028 = vrot.lane.b32.xlu2 %v5622_v23, %s6206_s25 }
0x16ac   :  { %v1029_v24 = vpop.permute.xlu2 %1028 }
0x16ad   :  { %v1031_v25 = vmul.f32 %v1029_v24, %v1009_v20 }
0x16af   :  { %v1033_v26 = vrot.slane %v1031_v25, 1 }
0x16b1   :  { %1034 = vrot.lane.b32.xlu0 %v1033_v26, %s6207_s3 }
0x1723   :  { %v1035_v27 = vpop.permute.xlu0 %1034 }
0x1724   :  { %5386 = vmatmul.msk.f32.vlgmr.msra.gmra.mxu3 %vm303_vm12, %v1035_v27 }
0x17a7   :  { %v1055_v29 = vpop.f32.mrf.mxu3 }
0x17a8   :  { %v1059_v30 = vrot.slane %v1055_v29, 6 }
0x17aa   :  { %v1061_v31 = vadd.f32 %v1059_v30, %v6524_v37 }
0x17ac   :  { %5623 = vtanh.f32 %v1061_v31  ;;  %v5387_v33 = vmul.f32 -1.442695, %v1061_v31 }
0x17ae   :  { %5625 = vpow2.f32 %v5387_v33 }
0x17b2   :  { %v5624_v32 = vpop.eup %5623 }
0x17b3   :  { %1087 = vrot.lane.b32.xlu1 %v5624_v32, %s6206_s25 }
0x17b4   :  { %v5626_v34 = vpop.eup %5625 }
0x17b5   :  { %v1065_v15 = vadd.f32 1.0, %v5626_v34 }
0x17b7   :  { %5627 = vrcp.f32 %v1065_v15  ;;  %v1077_v41 = vand.u32 2147483648, %v1065_v15  ;;  %vm1071_vm14 = vweird.f32 %v1065_v15  ;;  %v1075_v42 = vand.u32 2147483647, %v1065_v15 }
0x17b9   :  { %v1078_v44 = vor.u32 1.1754944e-38, %v1077_v41  ;;  %vm1076_vm0 = vcmp.eq.f32.partialorder %v1075_v42, 8.507059e+37 }
0x17bd   :  { %v5628_v35 = vpop.eup %5627 }
0x17be   :  { %v1067_v36 = vmul.f32 %v5628_v35, %v1065_v15  ;;  %vm1072_vm13 = vweird.f32 %v5628_v35 }
0x17bf   :  { %vm1073_vm15 = vmor %vm1071_vm14, %vm1072_vm13 }
0x17c0   :  { %v1068_v38 = vsub.f32 1.0, %v1067_v36 }
0x17c2   :  { %v1069_v39 = vmul.f32 %v5628_v35, %v1068_v38 }
0x17c4   :  { %v1070_v40 = vadd.f32 %v5628_v35, %v1069_v39 }
0x17c6   :  { %v1074_v43 = vsel %vm1073_vm15, %v5628_v35, %v1070_v40 }
0x17c7   :  { %v1079_v47 = vsel %vm1076_vm0, %v1078_v44, %v1074_v43 }
0x17c8   :  { %v1085_v50 = vmul.f32 %v1083_v49, %v1079_v47 }
0x1825   :  { %v1088_v45 = vpop.permute.xlu1 %1087 }
0x1826   :  { %v1090_v48 = vmul.f32 %v1088_v45, %v1079_v47 }
0x1828   :  { %1092 = vrot.lane.b32.xlu2 %v1090_v48, %s6206_s25 }
0x1882   :  { %v1093_v51 = vpop.permute.xlu2 %1092 }
0x1883   :  { %v1095_v52 = vadd.f32 %v1093_v51, %v1085_v50 }
0x1885   :  { %5629 = vtanh.f32 %v1095_v52  ;;  %v1153_v18 = vrot.slane %v1095_v52, 7 }
0x188b   :  { %v5630_v53 = vpop.eup %5629 }
0x188c   :  { %1098 = vrot.lane.b32.xlu0 %v5630_v53, %s6206_s25 }
0x18fe   :  { %v1099_v54 = vpop.permute.xlu0 %1098 }
0x18ff   :  { %v1101_v55 = vmul.f32 %v1099_v54, %v1079_v47 }
0x1901   :  { %v1103_v56 = vrot.slane %v1101_v55, 2 }
0x1903   :  { %1104 = vrot.lane.b32.xlu1 %v1103_v56, %s6207_s3 }
0x1975   :  { %v1105_v57 = vpop.permute.xlu1 %1104 }
0x1976   :  { %5388 = vmatmul.msk.f32.vlgmr.msrb.gmra.mxu0 %vm303_vm12, %v1105_v57 }
0x19f3   :  { %v1125_v58 = vpop.f32.mrf.mxu0 }
0x19f4   :  { %v1129_v59 = vrot.slane %v1125_v58, 5 }
0x19f6   :  { %v1131_v60 = vadd.f32 %v1129_v59, %v6524_v37 }
0x19f8   :  { %5631 = vtanh.f32 %v1131_v60  ;;  %v5389_v62 = vmul.f32 -1.442695, %v1131_v60 }
0x19fa   :  { %5633 = vpow2.f32 %v5389_v62 }
0x19fe   :  { %v5632_v61 = vpop.eup %5631 }
0x19ff   :  { %1157 = vrot.lane.b32.xlu2 %v5632_v61, %s6206_s25 }
0x1a00   :  { %v5634_v63 = vpop.eup %5633 }
0x1a01   :  { %v1135_v0 = vadd.f32 1.0, %v5634_v63 }
0x1a03   :  { %5635 = vrcp.f32 %v1135_v0  ;;  %v1147_v11 = vand.u32 2147483648, %v1135_v0  ;;  %vm1141_vm2 = vweird.f32 %v1135_v0  ;;  %v1145_v13 = vand.u32 2147483647, %v1135_v0 }
0x1a05   :  { %v1148_v16 = vor.u32 1.1754944e-38, %v1147_v11  ;;  %vm1146_vm4 = vcmp.eq.f32.partialorder %v1145_v13, 8.507059e+37 }
0x1a09   :  { %v5636_v1 = vpop.eup %5635 }
0x1a0a   :  { %v1137_v2 = vmul.f32 %v5636_v1, %v1135_v0  ;;  %vm1142_vm1 = vweird.f32 %v5636_v1 }
0x1a0b   :  { %vm1143_vm3 = vmor %vm1141_vm2, %vm1142_vm1 }
0x1a0c   :  { %v1138_v3 = vsub.f32 1.0, %v1137_v2 }
0x1a0e   :  { %v1139_v4 = vmul.f32 %v5636_v1, %v1138_v3 }
0x1a10   :  { %v1140_v10 = vadd.f32 %v5636_v1, %v1139_v4 }
0x1a12   :  { %v1144_v14 = vsel %vm1143_vm3, %v5636_v1, %v1140_v10 }
0x1a13   :  { %v1149_v7 = vsel %vm1146_vm4, %v1148_v16, %v1144_v14 }
0x1a14   :  { %v1155_v19 = vmul.f32 %v1153_v18, %v1149_v7 }
0x1a59   :  { %v1158_v17 = vpop.permute.xlu2 %1157 }
0x1a5a   :  { %v1160_v46 = vmul.f32 %v1158_v17, %v1149_v7 }
0x1a5c   :  { %1162 = vrot.lane.b32.xlu0 %v1160_v46, %s6206_s25 }
0x1ace   :  { %v1163_v5 = vpop.permute.xlu0 %1162 }
0x1acf   :  { %v1165_v20 = vadd.f32 %v1163_v5, %v1155_v19 }
0x1ad1   :  { %5637 = vtanh.f32 %v1165_v20  ;;  %v1223_v43 = vrot.slane %v1165_v20, 7 }
0x1ad7   :  { %v5638_v8 = vpop.eup %5637 }
0x1ad8   :  { %1168 = vrot.lane.b32.xlu1 %v5638_v8, %s6206_s25 }
0x1b4a   :  { %v1169_v21 = vpop.permute.xlu1 %1168 }
0x1b4b   :  { %v1171_v9 = vmul.f32 %v1169_v21, %v1149_v7 }
0x1b4d   :  { %v1173_v12 = vrot.slane %v1171_v9, 3 }
0x1b4f   :  { %1174 = vrot.lane.b32.xlu2 %v1173_v12, %s6207_s3 }
0x1ba9   :  { %v1175_v22 = vpop.permute.xlu2 %1174 }
0x1baa   :  { %5390 = vmatmul.msk.f32.vlgmr.msrb.gmra.mxu1 %vm303_vm12, %v1175_v22 }
0x1c27   :  { %v1195_v23 = vpop.f32.mrf.mxu1 }
0x1c28   :  { %v1199_v24 = vrot.slane %v1195_v23, 4 }
0x1c2a   :  { %v1201_v25 = vadd.f32 %v1199_v24, %v6524_v37 }
0x1c2c   :  { %5639 = vtanh.f32 %v1201_v25  ;;  %v5391_v27 = vmul.f32 -1.442695, %v1201_v25 }
0x1c2e   :  { %5641 = vpow2.f32 %v5391_v27 }
0x1c32   :  { %v5640_v26 = vpop.eup %5639 }
0x1c33   :  { %1227 = vrot.lane.b32.xlu0 %v5640_v26, %s6206_s25 }
0x1c34   :  { %v5642_v29 = vpop.eup %5641 }
0x1c35   :  { %v1205_v30 = vadd.f32 1.0, %v5642_v29 }
0x1c37   :  { %5643 = vrcp.f32 %v1205_v30  ;;  %v1217_v35 = vand.u32 2147483648, %v1205_v30  ;;  %vm1211_vm7 = vweird.f32 %v1205_v30  ;;  %v1215_v36 = vand.u32 2147483647, %v1205_v30 }
0x1c39   :  { %v1218_v39 = vor.u32 1.1754944e-38, %v1217_v35  ;;  %vm1216_vm9 = vcmp.eq.f32.partialorder %v1215_v36, 8.507059e+37 }
0x1c3d   :  { %v5644_v31 = vpop.eup %5643 }
0x1c3e   :  { %v1207_v32 = vmul.f32 %v5644_v31, %v1205_v30  ;;  %vm1212_vm6 = vweird.f32 %v5644_v31 }
0x1c3f   :  { %vm1213_vm8 = vmor %vm1211_vm7, %vm1212_vm6 }
0x1c40   :  { %v1208_v33 = vsub.f32 1.0, %v1207_v32 }
0x1c42   :  { %v1209_v34 = vmul.f32 %v5644_v31, %v1208_v33 }
0x1c44   :  { %v1210_v15 = vadd.f32 %v5644_v31, %v1209_v34 }
0x1c46   :  { %v1214_v38 = vsel %vm1213_vm8, %v5644_v31, %v1210_v15 }
0x1c47   :  { %v1219_v41 = vsel %vm1216_vm9, %v1218_v39, %v1214_v38  ;;  %v1458_v38 = vrot.slane %v6515_v28, 7  ;;  %v6567_v39 = vld [vmem:[#allocation13 + $0x18] sm:$0xff] }
0x1c48   :  { %v1225_v44 = vmul.f32 %v1223_v43, %v1219_v41  ;;  %1475 = vmatpush.msra.mxu1 %v6567_v39 }
0x1ca5   :  { %v1228_v40 = vpop.permute.xlu0 %1227 }
0x1ca6   :  { %v1230_v42 = vmul.f32 %v1228_v40, %v1219_v41  ;;  %v6570_v40 = vld [vmem:[#allocation13 + $0x10] sm:$0xff] }
0x1ca7   :  { %1476 = vmatpush.msra.mxu1 %v6570_v40 }
0x1ca8   :  { %1232 = vrot.lane.b32.xlu1 %v1230_v42, %s6206_s25  ;;  %v6575_v42 = vld [vmem:[#allocation13] sm:$0xff] }
0x1d1a   :  { %v1233_v45 = vpop.permute.xlu1 %1232 }
0x1d1b   :  { %v1235_v47 = vadd.f32 %v1233_v45, %v1225_v44 }
0x1d1d   :  { %5645 = vtanh.f32 %v1235_v47  ;;  %v1293_v14 = vrot.slane %v1235_v47, 7 }
0x1d23   :  { %v5646_v48 = vpop.eup %5645 }
0x1d24   :  { %1238 = vrot.lane.b32.xlu2 %v5646_v48, %s6206_s25 }
0x1d7e   :  { %v1239_v49 = vpop.permute.xlu2 %1238 }
0x1d7f   :  { %v1241_v50 = vmul.f32 %v1239_v49, %v1219_v41  ;;  %v6572_v41 = vld [vmem:[#allocation13 + $0x8] sm:$0xff] }
0x1d80   :  { %1477 = vmatpush.msra.mxu1 %v6572_v41 }
0x1d81   :  { %v1243_v51 = vrot.slane %v1241_v50, 4 }
0x1d82   :  { %1478 = vmatpush.msra.mxu1 %v6575_v42 }
0x1d83   :  { %1244 = vrot.lane.b32.xlu0 %v1243_v51, %s6207_s3 }
0x1d84   :  { %1716 = vmatpush.msrb.mxu1 %v6567_v39 }
0x1d86   :  { %1717 = vmatpush.msrb.mxu1 %v6570_v40 }
0x1d88   :  { %1718 = vmatpush.msrb.mxu1 %v6572_v41 }
0x1d8a   :  { %1719 = vmatpush.msrb.mxu1 %v6575_v42 }
0x1df5   :  { %v1245_v52 = vpop.permute.xlu0 %1244 }
0x1df6   :  { %5392 = vmatmul.msk.f32.vlgmr.msra.gmra.mxu2 %vm303_vm12, %v1245_v52  ;;  %v1452_v52 = vld [vmem:[%s7611_s8] sm:$0x1]  ;;  %s6209_s8 = smov [#allocation19]  }
0x1df7   :  { %s5340_s12 = sshll.u32 %s6209_s8, 4  ;;  %s5341_s12 = int_to_ptr.vmem [resolvable:$true] %s5340_s12 }
0x1e79   :  { %v1265_v53 = vpop.f32.mrf.mxu2 }
0x1e7a   :  { %v1269_v54 = vrot.slane %v1265_v53, 3 }
0x1e7c   :  { %v1271_v55 = vadd.f32 %v1269_v54, %v6524_v37  ;;  %v1484_v54 = vld [vmem:[%s7613_s10] sm:$0x1] }
0x1e7e   :  { %5647 = vtanh.f32 %v1271_v55  ;;  %v5393_v57 = vmul.f32 -1.442695, %v1271_v55 }
0x1e80   :  { %5649 = vpow2.f32 %v5393_v57 }
0x1e84   :  { %v5648_v56 = vpop.eup %5647 }
0x1e85   :  { %1297 = vrot.lane.b32.xlu1 %v5648_v56, %s6206_s25 }
0x1e86   :  { %v5650_v58 = vpop.eup %5649 }
0x1e87   :  { %v1275_v59 = vadd.f32 1.0, %v5650_v58 }
0x1e89   :  { %5651 = vrcp.f32 %v1275_v59  ;;  %v1287_v1 = vand.u32 2147483648, %v1275_v59  ;;  %vm1281_vm11 = vweird.f32 %v1275_v59  ;;  %v1285_v2 = vand.u32 2147483647, %v1275_v59 }
0x1e8b   :  { %v1288_v4 = vor.u32 1.1754944e-38, %v1287_v1  ;;  %vm1286_vm14 = vcmp.eq.f32.partialorder %v1285_v2, 8.507059e+37 }
0x1e8f   :  { %v5652_v60 = vpop.eup %5651 }
0x1e90   :  { %v1277_v61 = vmul.f32 %v5652_v60, %v1275_v59  ;;  %vm1282_vm10 = vweird.f32 %v5652_v60 }
0x1e91   :  { %vm1283_vm13 = vmor %vm1281_vm11, %vm1282_vm10 }
0x1e92   :  { %v1278_v62 = vsub.f32 1.0, %v1277_v61 }
0x1e94   :  { %v1279_v63 = vmul.f32 %v5652_v60, %v1278_v62 }
0x1e96   :  { %v1280_v0 = vadd.f32 %v5652_v60, %v1279_v63 }
0x1e98   :  { %v1284_v3 = vsel %vm1283_vm13, %v5652_v60, %v1280_v0 }
0x1e99   :  { %v1289_v11 = vsel %vm1286_vm14, %v1288_v4, %v1284_v3 }
0x1e9a   :  { %v1295_v16 = vmul.f32 %v1293_v14, %v1289_v11 }
0x1ef7   :  { %v1298_v10 = vpop.permute.xlu1 %1297 }
0x1ef8   :  { %v1300_v13 = vmul.f32 %v1298_v10, %v1289_v11 }
0x1efa   :  { %1302 = vrot.lane.b32.xlu2 %v1300_v13, %s6206_s25 }
0x1f54   :  { %v1303_v17 = vpop.permute.xlu2 %1302 }
0x1f55   :  { %v1305_v7 = vadd.f32 %v1303_v17, %v1295_v16 }
0x1f57   :  { %5653 = vtanh.f32 %v1305_v7  ;;  %v1363_v28 = vrot.slane %v1305_v7, 7 }
0x1f5d   :  { %v5654_v46 = vpop.eup %5653 }
0x1f5e   :  { %1308 = vrot.lane.b32.xlu0 %v5654_v46, %s6206_s25 }
0x1fd0   :  { %v1309_v18 = vpop.permute.xlu0 %1308 }
0x1fd1   :  { %v1311_v19 = vmul.f32 %v1309_v18, %v1289_v11 }
0x1fd3   :  { %v1313_v5 = vrot.slane %v1311_v19, 5 }
0x1fd5   :  { %1314 = vrot.lane.b32.xlu1 %v1313_v5, %s6207_s3 }
0x2047   :  { %v1315_v20 = vpop.permute.xlu1 %1314 }
0x2048   :  { %5394 = vmatmul.msk.f32.vlgmr.msrb.gmra.mxu3 %vm303_vm12, %v1315_v20 }
0x20cb   :  { %v1335_v8 = vpop.f32.mrf.mxu3 }
0x20cc   :  { %v1339_v21 = vrot.slane %v1335_v8, 2 }
0x20ce   :  { %v1341_v9 = vadd.f32 %v1339_v21, %v6524_v37 }
0x20d0   :  { %5655 = vtanh.f32 %v1341_v9  ;;  %v5395_v22 = vmul.f32 -1.442695, %v1341_v9 }
0x20d2   :  { %5657 = vpow2.f32 %v5395_v22 }
0x20d6   :  { %v5656_v12 = vpop.eup %5655 }
0x20d7   :  { %1367 = vrot.lane.b32.xlu2 %v5656_v12, %s6206_s25 }
0x20d8   :  { %v5658_v23 = vpop.eup %5657 }
0x20d9   :  { %v1345_v24 = vadd.f32 1.0, %v5658_v23 }
0x20db   :  { %5659 = vrcp.f32 %v1345_v24  ;;  %v1357_v31 = vand.u32 2147483648, %v1345_v24  ;;  %vm1351_vm0 = vweird.f32 %v1345_v24  ;;  %v1355_v32 = vand.u32 2147483647, %v1345_v24 }
0x20dd   :  { %v1358_v34 = vor.u32 1.1754944e-38, %v1357_v31  ;;  %vm1356_vm2 = vcmp.eq.f32.partialorder %v1355_v32, 8.507059e+37 }
0x20e1   :  { %v5660_v25 = vpop.eup %5659 }
0x20e2   :  { %v1347_v26 = vmul.f32 %v5660_v25, %v1345_v24  ;;  %vm1352_vm15 = vweird.f32 %v5660_v25 }
0x20e3   :  { %vm1353_vm1 = vmor %vm1351_vm0, %vm1352_vm15 }
0x20e4   :  { %v1348_v27 = vsub.f32 1.0, %v1347_v26 }
0x20e6   :  { %v1349_v29 = vmul.f32 %v5660_v25, %v1348_v27 }
0x20e8   :  { %v1350_v30 = vadd.f32 %v5660_v25, %v1349_v29 }
0x20ea   :  { %v1354_v33 = vsel %vm1353_vm1, %v5660_v25, %v1350_v30  ;;  %v1509_v30 = vld [vmem:[#allocation1 + $0x7] ss:$9 sm:$0xff] }
0x20eb   :  { %v1359_v35 = vsel %vm1356_vm2, %v1358_v34, %v1354_v33 }
0x20ec   :  { %v1365_v43 = vmul.f32 %v1363_v28, %v1359_v35 }
0x2131   :  { %v1368_v15 = vpop.permute.xlu2 %1367 }
0x2132   :  { %v1370_v36 = vmul.f32 %v1368_v15, %v1359_v35 }
0x2134   :  { %1372 = vrot.lane.b32.xlu0 %v1370_v36, %s6206_s25 }
0x213c   :  { %1459 = vrot.lane.b32.xlu0 %v1458_v38, %s6207_s3 }
0x21a6   :  { %v1373_v44 = vpop.permute.xlu0 %1372 }
0x21a7   :  { %v6583_v45 = vadd.f32 %v1373_v44, %v1365_v43 }
0x21a9   :  { %5661 = vtanh.f32 %v6583_v45  ;;  %v1433_v15 = vrot.slane %v6583_v45, 7  ;;  %v6616_v45 = vld [vmem:[#allocation15 + $0x8] sm:$0xff] }
0x21ae   :  { %v1460_v47 = vpop.permute.xlu0 %1459 }
0x21af   :  { %v5662_v48 = vpop.eup %5661  ;;  %5398 = vmatmul.msk.f32.vlgmr.msra.gmra.mxu1 %vm303_vm12, %v1460_v47 }
0x21b0   :  { %1378 = vrot.lane.b32.xlu1 %v5662_v48, %s6206_s25  ;;  %v6611_v48 = vld [vmem:[#allocation15 + $0x18] sm:$0xff] }
0x21b1   :  { %1580 = vmatpush.msra.mxu3 %v6611_v48 }
0x2222   :  { %v1379_v49 = vpop.permute.xlu1 %1378 }
0x2223   :  { %v1381_v50 = vmul.f32 %v1379_v49, %v1359_v35  ;;  %v6614_v49 = vld [vmem:[#allocation15 + $0x10] sm:$0xff] }
0x2224   :  { %1581 = vmatpush.msra.mxu3 %v6614_v49 }
0x2225   :  { %v1383_v51 = vrot.slane %v1381_v50, 6  ;;  %v6619_v50 = vld [vmem:[#allocation15] sm:$0xff] }
0x2226   :  { %1582 = vmatpush.msra.mxu3 %v6616_v45 }
0x2227   :  { %1384 = vrot.lane.b32.xlu2 %v1383_v51, %s6207_s3  ;;  %v6623_v51 = vld [vmem:[#allocation16 + $0x18] sm:$0xff] }
0x2228   :  { %1583 = vmatpush.msra.mxu3 %v6619_v50  ;;  %1554 = vmatpush.msrb.mxu2 %v6623_v51 }
0x222a   :  { %1803 = vmatpush.msrb.mxu3 %v6623_v51 }
0x222c   :  { %v1480_v53 = vpop.f32.mrf.mxu1 }
0x222d   :  { %v1483_v55 = vadd.f32 %v1480_v53, %v1452_v52  ;;  %v6625_v52 = vld [vmem:[#allocation16 + $0x10] sm:$0xff]  ;;  %v6629_v53 = vld [vmem:[#allocation16 + $0x8] sm:$0xff] }
0x222e   :  { %1555 = vmatpush.msrb.mxu2 %v6625_v52  ;;  %1804 = vmatpush.msrb.mxu3 %v6625_v52 }
0x222f   :  { %v1485_v56 = vadd.f32 %v1484_v54, %v1483_v55  ;;  %v6633_v54 = vld [vmem:[#allocation16] sm:$0xff] }
0x2230   :  { %1556 = vmatpush.msrb.mxu2 %v6629_v53  ;;  %1805 = vmatpush.msrb.mxu3 %v6629_v53 }
0x2231   :  { %5663 = vtanh.f32 %v1485_v56  ;;  %v5399_v59 = vmul.f32 -1.442695, %v1485_v56 }
0x2232   :  { %1557 = vmatpush.msrb.mxu2 %v6633_v54  ;;  %1806 = vmatpush.msrb.mxu3 %v6633_v54 }
0x2233   :  { %5665 = vpow2.f32 %v5399_v59 }
0x2237   :  { %v5664_v57 = vpop.eup %5663 }
0x2238   :  { %1513 = vrot.lane.b32.xlu2 %v5664_v57, %s6206_s25 }
0x2239   :  { %v5666_v60 = vpop.eup %5665 }
0x223a   :  { %v1489_v61 = vadd.f32 1.0, %v5666_v60 }
0x223c   :  { %5667 = vrcp.f32 %v1489_v61  ;;  %v1501_v13 = vand.u32 2147483648, %v1489_v61  ;;  %vm1495_vm4 = vweird.f32 %v1489_v61  ;;  %v1499_v14 = vand.u32 2147483647, %v1489_v61 }
0x223e   :  { %v1502_v17 = vor.u32 1.1754944e-38, %v1501_v13  ;;  %vm1500_vm7 = vcmp.eq.f32.partialorder %v1499_v14, 8.507059e+37 }
0x2242   :  { %v5668_v62 = vpop.eup %5667 }
0x2243   :  { %v1491_v63 = vmul.f32 %v5668_v62, %v1489_v61  ;;  %vm1496_vm3 = vweird.f32 %v5668_v62 }
0x2244   :  { %vm1497_vm6 = vmor %vm1495_vm4, %vm1496_vm3 }
0x2245   :  { %v1492_v2 = vsub.f32 1.0, %v1491_v63 }
0x2247   :  { %v1493_v4 = vmul.f32 %v5668_v62, %v1492_v2 }
0x2249   :  { %v1494_v10 = vadd.f32 %v5668_v62, %v1493_v4 }
0x224b   :  { %v1498_v16 = vsel %vm1497_vm6, %v5668_v62, %v1494_v10  ;;  %v1588_v62 = vld [vmem:[%s7616_s13] sm:$0x1] }
0x224c   :  { %v1503_v46 = vsel %vm1500_vm7, %v1502_v17, %v1498_v16 }
0x224d   :  { %v1511_v31 = vmul.f32 %v1509_v30, %v1503_v46  ;;  %v1634_v30 = vld [vmem:[%s7618_s15] sm:$0x1] }
0x2281   :  { %v1385_v58 = vpop.permute.xlu2 %1384 }
0x2282   :  { %5396 = vmatmul.msk.f32.vlgmr.msra.gmra.mxu0 %vm303_vm12, %v1385_v58 }
0x2292   :  { %v1514_v7 = vpop.permute.xlu2 %1513 }
0x2293   :  { %v1516_v18 = vmul.f32 %v1514_v7, %v1503_v46 }
0x22ff   :  { %v1405_v0 = vpop.f32.mrf.mxu0 }
0x2300   :  { %v1409_v1 = vrot.slane %v1405_v0, 1 }
0x2302   :  { %v1411_v3 = vadd.f32 %v1409_v1, %v6524_v37 }
0x2304   :  { %5669 = vtanh.f32 %v1411_v3  ;;  %v5397_v37 = vmul.f32 -1.442695, %v1411_v3 }
0x2306   :  { %5671 = vpow2.f32 %v5397_v37 }
0x230a   :  { %v5670_v11 = vpop.eup %5669 }
0x230b   :  { %1437 = vrot.lane.b32.xlu1 %v5670_v11, %s6206_s25 }
0x230c   :  { %v5672_v19 = vpop.eup %5671 }
0x230d   :  { %v1415_v5 = vadd.f32 1.0, %v5672_v19 }
0x230f   :  { %5673 = vrcp.f32 %v1415_v5  ;;  %v1427_v22 = vand.u32 2147483648, %v1415_v5  ;;  %vm1421_vm9 = vweird.f32 %v1415_v5  ;;  %v1425_v23 = vand.u32 2147483647, %v1415_v5 }
0x2311   :  { %v1428_v25 = vor.u32 1.1754944e-38, %v1427_v22  ;;  %vm1426_vm11 = vcmp.eq.f32.partialorder %v1425_v23, 8.507059e+37  ;;  %v6657_v22 = vld [vmem:[#allocation18 + $0x18] sm:$0xff]  ;;  %v6659_v23 = vld [vmem:[#allocation18 + $0x10] sm:$0xff] }
0x2312   :  { %1652 = vmatpush.msrb.mxu0 %v6657_v22  ;;  %1897 = vmatpush.msra.mxu1 %v6657_v22 }
0x2313   :  { %1518 = vrot.lane.b32.xlu1 %v1516_v18, %s6206_s25 }
0x2314   :  { %1653 = vmatpush.msrb.mxu0 %v6659_v23  ;;  %1898 = vmatpush.msra.mxu1 %v6659_v23 }
0x2315   :  { %v5674_v20 = vpop.eup %5673 }
0x2316   :  { %v1417_v8 = vmul.f32 %v5674_v20, %v1415_v5  ;;  %vm1422_vm8 = vweird.f32 %v5674_v20 }
0x2317   :  { %vm1423_vm10 = vmor %vm1421_vm9, %vm1422_vm8 }
0x2318   :  { %v1418_v21 = vsub.f32 1.0, %v1417_v8 }
0x231a   :  { %v1419_v9 = vmul.f32 %v5674_v20, %v1418_v21 }
0x231c   :  { %v1420_v12 = vadd.f32 %v5674_v20, %v1419_v9 }
0x231e   :  { %v1424_v24 = vsel %vm1423_vm10, %v5674_v20, %v1420_v12 }
0x231f   :  { %v1429_v27 = vsel %vm1426_vm11, %v1428_v25, %v1424_v24  ;;  %v6663_v24 = vld [vmem:[#allocation18 + $0x8] sm:$0xff]  ;;  %v6667_v25 = vld [vmem:[#allocation18] sm:$0xff] }
0x2320   :  { %v1435_v35 = vmul.f32 %v1433_v15, %v1429_v27  ;;  %1654 = vmatpush.msrb.mxu0 %v6663_v24  ;;  %1899 = vmatpush.msra.mxu1 %v6663_v24 }
0x2322   :  { %1655 = vmatpush.msrb.mxu0 %v6667_v25  ;;  %1900 = vmatpush.msra.mxu1 %v6667_v25 }
0x2324   :  { %1828 = vmatpush.msra.mxu0 %v6611_v48 }
0x2326   :  { %1829 = vmatpush.msra.mxu0 %v6614_v49 }
0x2328   :  { %1830 = vmatpush.msra.mxu0 %v6616_v45 }
0x232a   :  { %1831 = vmatpush.msra.mxu0 %v6619_v50 }
0x237d   :  { %v1438_v26 = vpop.permute.xlu1 %1437 }
0x237e   :  { %v1440_v29 = vmul.f32 %v1438_v26, %v1429_v27 }
0x2380   :  { %1442 = vrot.lane.b32.xlu0 %v1440_v29, %s6206_s25 }
0x2385   :  { %v1519_v32 = vpop.permute.xlu1 %1518 }
0x2386   :  { %v6601_v33 = vadd.f32 %v1519_v32, %v1511_v31 }
0x2388   :  { %5675 = vtanh.f32 %v6601_v33 }
0x238e   :  { %v5676_v34 = vpop.eup %5675 }
0x238f   :  { %1524 = vrot.lane.b32.xlu0 %v5676_v34, %s6206_s25 }
0x23f2   :  { %v1443_v36 = vpop.permute.xlu0 %1442 }
0x23f3   :  { %v6606_v38 = vadd.f32 %v1443_v36, %v1435_v35 }
0x23f5   :  { %5677 = vtanh.f32 %v6606_v38  ;;  %v1611_v20 = vrot.slane %v6606_v38, 7 }
0x23fb   :  { %v5678_v28 = vpop.eup %5677 }
0x23fc   :  { %1448 = vrot.lane.b32.xlu2 %v5678_v28, %s6206_s25 }
0x2401   :  { %v1525_v43 = vpop.permute.xlu0 %1524 }
0x2402   :  { %v1527_v44 = vmul.f32 %v1525_v43, %v1503_v46  ;;  %v6694_v43 = vld [vmem:[#allocation12 + $0x78] sm:$0xff] }
0x2403   :  { %1724 = vmatpush.msra.mxu2 %v6694_v43 }
0x2404   :  { %v1563_v47 = vperm.slane %v1527_v44, 0  ;;  %v6696_v44 = vld [vmem:[#allocation12 + $0x70] sm:$0xff] }
0x2405   :  { %1725 = vmatpush.msra.mxu2 %v6696_v44 }
0x2406   :  { %1564 = vrot.lane.b32.xlu2 %v1563_v47, %s6207_s3  ;;  %v6700_v47 = vld [vmem:[#allocation12 + $0x68] sm:$0xff] }
0x2407   :  { %1726 = vmatpush.msra.mxu2 %v6700_v47 }
0x2456   :  { %v1449_v55 = vpop.permute.xlu2 %1448 }
0x2457   :  { %v1451_v56 = vmul.f32 %v1449_v55, %v1429_v27  ;;  %v6704_v55 = vld [vmem:[#allocation12 + $0x60] sm:$0xff] }
0x2458   :  { %1727 = vmatpush.msra.mxu2 %v6704_v55 }
0x2459   :  { %v1537_v57 = vrot.slane %v1451_v56, 7  ;;  %v6708_v56 = vld [vmem:[#allocation12 + $0x58] sm:$0xff] }
0x245a   :  { %1728 = vmatpush.msra.mxu2 %v6708_v56 }
0x245b   :  { %1538 = vrot.lane.b32.xlu1 %v1537_v57, %s6207_s3  ;;  %v6712_v57 = vld [vmem:[#allocation12 + $0x50] sm:$0xff] }
0x245c   :  { %1729 = vmatpush.msra.mxu2 %v6712_v57 }
0x2460   :  { %v1565_v58 = vpop.permute.xlu2 %1564 }
0x2461   :  { %5401 = vmatmul.msk.f32.vlgmr.msra.gmra.mxu3 %vm303_vm12, %v1565_v58  ;;  %5405 = vmatmul.msk.f32.vlgmr.msrb.gmra.mxu1 %vm303_vm12, %v1565_v58  ;;  %v6716_v58 = vld [vmem:[#allocation12 + $0x48] sm:$0xff] }
0x2462   :  { %1961 = vmatpush.msra.mxu3 %v6567_v39  ;;  %2048 = vmatpush.msrb.mxu1 %v6623_v51 }
0x2463   :  { %1730 = vmatpush.msra.mxu2 %v6716_v58 }
0x2464   :  { %1962 = vmatpush.msra.mxu3 %v6570_v40  ;;  %2049 = vmatpush.msrb.mxu1 %v6625_v52 }
0x2466   :  { %1963 = vmatpush.msra.mxu3 %v6572_v41  ;;  %2050 = vmatpush.msrb.mxu1 %v6629_v53 }
0x2468   :  { %1964 = vmatpush.msra.mxu3 %v6575_v42  ;;  %2051 = vmatpush.msrb.mxu1 %v6633_v54 }
0x24cd   :  { %v1539_v59 = vpop.permute.xlu1 %1538 }
0x24ce   :  { %5400 = vmatmul.msk.f32.vlgmr.msrb.gmra.mxu2 %vm303_vm12, %v1539_v59  ;;  %v6720_v59 = vld [vmem:[#allocation12 + $0x40] sm:$0xff] }
0x24cf   :  { %1731 = vmatpush.msra.mxu2 %v6720_v59 }
0x24e4   :  { %v1585_v60 = vpop.f32.mrf.mxu3 }
0x2551   :  { %v1559_v61 = vpop.f32.mrf.mxu2 }
0x2552   :  { %v1586_v63 = vadd.f32 %v1585_v60, %v1559_v61  ;;  %v6724_v60 = vld [vmem:[#allocation12 + $0x38] sm:$0xff]  ;;  %v6728_v61 = vld [vmem:[#allocation12 + $0x30] sm:$0xff] }
0x2553   :  { %1732 = vmatpush.msra.mxu2 %v6724_v60 }
0x2554   :  { %v1589_v0 = vadd.f32 %v1588_v62, %v1586_v63  ;;  %v6732_v62 = vld [vmem:[#allocation12 + $0x28] sm:$0xff]  ;;  %v6736_v63 = vld [vmem:[#allocation12 + $0x20] sm:$0xff] }
0x2555   :  { %1733 = vmatpush.msra.mxu2 %v6728_v61 }
0x2556   :  { %5679 = vtanh.f32 %v1589_v0  ;;  %v5402_v2 = vmul.f32 -1.442695, %v1589_v0  ;;  %v6740_v0 = vld [vmem:[#allocation12 + $0x18] sm:$0xff] }
0x2557   :  { %1734 = vmatpush.msra.mxu2 %v6732_v62 }
0x2558   :  { %5681 = vpow2.f32 %v5402_v2 }
0x2559   :  { %1735 = vmatpush.msra.mxu2 %v6736_v63 }
0x255b   :  { %1736 = vmatpush.msra.mxu2 %v6740_v0 }
0x255c   :  { %v5680_v1 = vpop.eup %5679 }
0x255d   :  { %1615 = vrot.lane.b32.xlu0 %v5680_v1, %s6206_s25 }
0x255e   :  { %v5682_v3 = vpop.eup %5681 }
0x255f   :  { %v1593_v4 = vadd.f32 1.0, %v5682_v3 }
0x2561   :  { %5683 = vrcp.f32 %v1593_v4  ;;  %v1605_v17 = vand.u32 2147483648, %v1593_v4  ;;  %vm1599_vm14 = vweird.f32 %v1593_v4  ;;  %v1603_v7 = vand.u32 2147483647, %v1593_v4 }
0x2563   :  { %v1606_v18 = vor.u32 1.1754944e-38, %v1605_v17  ;;  %vm1604_vm0 = vcmp.eq.f32.partialorder %v1603_v7, 8.507059e+37 }
0x2567   :  { %v5684_v10 = vpop.eup %5683 }
0x2568   :  { %v1595_v11 = vmul.f32 %v5684_v10, %v1593_v4  ;;  %vm1600_vm13 = vweird.f32 %v5684_v10 }
0x2569   :  { %vm1601_vm15 = vmor %vm1599_vm14, %vm1600_vm13 }
0x256a   :  { %v1596_v13 = vsub.f32 1.0, %v1595_v11  ;;  %v6750_v11 = vld [vmem:[#allocation12 + $0x8] sm:$0xff] }
0x256c   :  { %v1597_v14 = vmul.f32 %v5684_v10, %v1596_v13  ;;  %v6753_v13 = vld [vmem:[#allocation12] sm:$0xff] }
0x256e   :  { %v1598_v16 = vadd.f32 %v5684_v10, %v1597_v14 }
0x2570   :  { %v1602_v46 = vsel %vm1601_vm15, %v5684_v10, %v1598_v16  ;;  %v6746_v10 = vld [vmem:[#allocation12 + $0x10] sm:$0xff] }
0x2571   :  { %v1607_v19 = vsel %vm1604_vm0, %v1606_v18, %v1602_v46  ;;  %1737 = vmatpush.msra.mxu2 %v6746_v10  ;;  %v6208_v18 = vmov 1.0  }
0x2572   :  { %v1613_v8 = vmul.f32 %v1611_v20, %v1607_v19 }
0x2573   :  { %1738 = vmatpush.msra.mxu2 %v6750_v11 }
0x2575   :  { %1739 = vmatpush.msra.mxu2 %v6753_v13 }
0x2577   :  { %2293 = vmatpush.msrb.mxu2 %v6623_v51  ;;  %v1721_v51 = vpop.f32.mrf.mxu1 }
0x2579   :  { %2294 = vmatpush.msrb.mxu2 %v6625_v52 }
0x257b   :  { %2295 = vmatpush.msrb.mxu2 %v6629_v53  ;;  %v1744_v53 = vld [vmem:[%s7613_s10] sm:$0x1] }
0x257d   :  { %2296 = vmatpush.msrb.mxu2 %v6633_v54 }
0x25cf   :  { %v1616_v37 = vpop.permute.xlu0 %1615 }
0x25d0   :  { %v1618_v5 = vmul.f32 %v1616_v37, %v1607_v19 }
0x25d2   :  { %1620 = vrot.lane.b32.xlu1 %v1618_v5, %s6206_s25 }
0x2644   :  { %v1621_v21 = vpop.permute.xlu1 %1620 }
0x2645   :  { %v6653_v9 = vadd.f32 %v1621_v21, %v1613_v8 }
0x2647   :  { %5685 = vtanh.f32 %v6653_v9 }
0x264d   :  { %v5686_v12 = vpop.eup %5685 }
0x264e   :  { %1626 = vrot.lane.b32.xlu2 %v5686_v12, %s6206_s25 }
0x26a8   :  { %v1627_v26 = vpop.permute.xlu2 %1626 }
0x26a9   :  { %v1629_v27 = vmul.f32 %v1627_v26, %v1607_v19 }
0x26ab   :  { %1636 = vrot.lane.b32.xlu0 %v1629_v27, %s6207_s3 }
0x271d   :  { %v1637_v29 = vpop.permute.xlu0 %1636 }
0x271e   :  { %5403 = vmatmul.msk.f32.vlgmr.msrb.gmra.mxu0 %vm303_vm12, %v1637_v29  ;;  %5408 = vmatmul.msk.f32.vlgmr.msrb.gmra.mxu3 %vm303_vm12, %v1637_v29 }
0x271f   :  { %2073 = vmatpush.msrb.mxu3 %v6611_v48  ;;  %1969 = vmatpush.msrb.mxu0 %v6694_v43 }
0x2721   :  { %2074 = vmatpush.msrb.mxu3 %v6614_v49  ;;  %1970 = vmatpush.msrb.mxu0 %v6696_v44 }
0x2723   :  { %2075 = vmatpush.msrb.mxu3 %v6616_v45  ;;  %1971 = vmatpush.msrb.mxu0 %v6700_v47 }
0x2725   :  { %2076 = vmatpush.msrb.mxu3 %v6619_v50  ;;  %1972 = vmatpush.msrb.mxu0 %v6704_v55 }
0x2727   :  { %1973 = vmatpush.msrb.mxu0 %v6708_v56 }
0x2729   :  { %1974 = vmatpush.msrb.mxu0 %v6712_v57 }
0x272b   :  { %1975 = vmatpush.msrb.mxu0 %v6716_v58 }
0x272d   :  { %1976 = vmatpush.msrb.mxu0 %v6720_v59 }
0x272f   :  { %1977 = vmatpush.msrb.mxu0 %v6724_v60 }
0x2731   :  { %1978 = vmatpush.msrb.mxu0 %v6728_v61 }
0x2733   :  { %1979 = vmatpush.msrb.mxu0 %v6732_v62 }
0x2735   :  { %1980 = vmatpush.msrb.mxu0 %v6736_v63 }
0x2737   :  { %1981 = vmatpush.msrb.mxu0 %v6740_v0 }
0x2739   :  { %1982 = vmatpush.msrb.mxu0 %v6746_v10 }
0x273b   :  { %1983 = vmatpush.msrb.mxu0 %v6750_v11 }
0x273d   :  { %1984 = vmatpush.msrb.mxu0 %v6753_v13 }
0x279b   :  { %v1657_v31 = vpop.f32.mrf.mxu0 }
0x279c   :  { %v1658_v32 = vadd.f32 %v1657_v31, %v1634_v30 }
0x279e   :  { %1660 = vst [vmem:[#allocation19] sm:$0x1] %v1658_v32  ;;  %v1661_v34 = vsel %vm854_vm5, %v1658_v32, -inf }
0x279f   :  { %1662 = vmax.xlane.f32.xlu1 %v1661_v34 }
0x2812   :  { %v1663_v15 = vpop.xlane.xlu1 %1662 }
0x2813   :  { %vm1664_vm1 = vcmp.eq.f32.partialorder %v1658_v32, %v1663_v15 }
0x2814   :  { %v1665_v35 = vsel %vm1664_vm1, %v6358_v6, 128 }
0x2815   :  { %v1666_v36 = vsel %vm854_vm5, %v1665_v35, 2147483647 }
0x2816   :  { %v1668_v38 = vshra.s32 %v1666_v36, 16  ;;  %v1667_v1 = vand.u32 65535, %v1666_v36 }
0x2818   :  { %v1670_v28 = vcvt.s32.f32 %v1668_v38  ;;  %v1669_v3 = vcvt.s32.f32 %v1667_v1 }
0x281a   :  { %1671 = vmin.xlane.f32.xlu2 %v1670_v28 }
0x288d   :  { %v1672_v2 = vpop.xlane.xlu2 %1671 }
0x288e   :  { %vm1673_vm2 = vcmp.eq.f32.partialorder %v1670_v28, %v1672_v2  ;;  %v1678_v14 = vcvt.f32.s32 %v1672_v2 }
0x288f   :  { %v1674_v4 = vsel %vm1673_vm2, %v1669_v3, inf }
0x2890   :  { %1675 = vmin.xlane.f32.xlu0 %v1674_v4  ;;  %v1679_v17 = vshll.u32 %v1678_v14, 16 }
0x2903   :  { %v1676_v16 = vpop.xlane.xlu0 %1675 }
0x2904   :  { %v1677_v7 = vcvt.f32.s32 %v1676_v16 }
0x2906   :  { %v1680_v46 = vadd.s32 %v1679_v17, %v1677_v7 }
0x2908   :  { %vm1681_vm3 = vcmp.eq.s32.totalorder %v6358_v6, %v1680_v46 }
0x2909   :  { %5406 = vmatmul.msk.f32.vlgmr.msra.gmra.mxu2 %vm1681_vm3, %v6208_v18 }
0x290a   :  { %2387 = vmatpush.msra.mxu2 %v6657_v22 }
0x290c   :  { %2388 = vmatpush.msra.mxu2 %v6659_v23 }
0x290e   :  { %2389 = vmatpush.msra.mxu2 %v6663_v24 }
0x2910   :  { %2390 = vmatpush.msra.mxu2 %v6667_v25 }
0x298c   :  { %v1741_v52 = vpop.f32.mrf.mxu2 }
0x298d   :  { %v1742_v54 = vadd.f32 %v1741_v52, %v1721_v51 }
0x298f   :  { %v1745_v37 = vadd.f32 %v1744_v53, %v1742_v54 }
0x2991   :  { %5687 = vtanh.f32 %v1745_v37  ;;  %v5407_v5 = vmul.f32 -1.442695, %v1745_v37 }
0x2993   :  { %5689 = vpow2.f32 %v5407_v5 }
0x2997   :  { %v5688_v19 = vpop.eup %5687 }
0x2998   :  { %1768 = vrot.lane.b32.xlu2 %v5688_v19, %s6206_s25 }
0x2999   :  { %v5690_v20 = vpop.eup %5689 }
0x299a   :  { %v1749_v8 = vadd.f32 1.0, %v5690_v20 }
0x299c   :  { %5691 = vrcp.f32 %v1749_v8  ;;  %v1761_v30 = vand.u32 2147483648, %v1749_v8  ;;  %vm1755_vm6 = vweird.f32 %v1749_v8  ;;  %v1759_v31 = vand.u32 2147483647, %v1749_v8 }
0x299e   :  { %v1762_v34 = vor.u32 1.1754944e-38, %v1761_v30  ;;  %vm1760_vm8 = vcmp.eq.f32.partialorder %v1759_v31, 8.507059e+37 }
0x29a2   :  { %v5692_v21 = vpop.eup %5691 }
0x29a3   :  { %v1751_v12 = vmul.f32 %v5692_v21, %v1749_v8  ;;  %vm1756_vm4 = vweird.f32 %v5692_v21 }
0x29a4   :  { %vm1757_vm7 = vmor %vm1755_vm6, %vm1756_vm4 }
0x29a5   :  { %v1752_v26 = vsub.f32 1.0, %v1751_v12 }
0x29a7   :  { %v1753_v27 = vmul.f32 %v5692_v21, %v1752_v26 }
0x29a9   :  { %v1754_v29 = vadd.f32 %v5692_v21, %v1753_v27 }
0x29ab   :  { %v1758_v32 = vsel %vm1757_vm7, %v5692_v21, %v1754_v29 }
0x29ac   :  { %v1763_v35 = vsel %vm1760_vm8, %v1762_v34, %v1758_v32 }
0x29ad   :  { %v1766_v38 = vmul.f32 %v1763_v35, %v6601_v33 }
0x29f2   :  { %v1769_v15 = vpop.permute.xlu2 %1768 }
0x29f3   :  { %v1771_v36 = vmul.f32 %v1769_v15, %v1763_v35 }
0x29f5   :  { %1773 = vrot.lane.b32.xlu1 %v1771_v36, %s6206_s25 }
0x2a67   :  { %v1774_v28 = vpop.permute.xlu1 %1773 }
0x2a68   :  { %v6774_v1 = vadd.f32 %v1774_v28, %v1766_v38 }
0x2a6a   :  { %5693 = vtanh.f32 %v6774_v1 }
0x2a70   :  { %v5694_v2 = vpop.eup %5693 }
0x2a71   :  { %1779 = vrot.lane.b32.xlu0 %v5694_v2, %s6206_s25 }
0x2ae3   :  { %v1780_v3 = vpop.permute.xlu0 %1779 }
0x2ae4   :  { %v1782_v4 = vmul.f32 %v1780_v3, %v1763_v35 }
0x2ae6   :  { %1812 = vrot.lane.b32.xlu2 %v1782_v4, %s6207_s3 }
0x2b40   :  { %v1813_v14 = vpop.permute.xlu2 %1812 }
0x2b41   :  { %5409 = vmatmul.msk.f32.vlgmr.msra.gmra.mxu0 %vm303_vm12, %v1813_v14  ;;  %5413 = vmatmul.msk.f32.vlgmr.msra.gmra.mxu3 %vm303_vm12, %v1813_v14 }
0x2b42   :  { %2206 = vmatpush.msra.mxu3 %v6567_v39  ;;  %2459 = vmatpush.msra.mxu0 %v6694_v43  ;;  %v1808_v39 = vpop.f32.mrf.mxu3 }
0x2b44   :  { %2207 = vmatpush.msra.mxu3 %v6570_v40  ;;  %2460 = vmatpush.msra.mxu0 %v6696_v44 }
0x2b46   :  { %2208 = vmatpush.msra.mxu3 %v6572_v41  ;;  %2461 = vmatpush.msra.mxu0 %v6700_v47  ;;  %v1836_v41 = vld [vmem:[%s7616_s13] sm:$0x1] }
0x2b48   :  { %2209 = vmatpush.msra.mxu3 %v6575_v42  ;;  %2462 = vmatpush.msra.mxu0 %v6704_v55 }
0x2b4a   :  { %2463 = vmatpush.msra.mxu0 %v6708_v56 }
0x2b4c   :  { %2464 = vmatpush.msra.mxu0 %v6712_v57 }
0x2b4e   :  { %2465 = vmatpush.msra.mxu0 %v6716_v58 }
0x2b50   :  { %2466 = vmatpush.msra.mxu0 %v6720_v59 }
0x2b52   :  { %2467 = vmatpush.msra.mxu0 %v6724_v60 }
0x2b54   :  { %2468 = vmatpush.msra.mxu0 %v6728_v61 }
0x2b56   :  { %2469 = vmatpush.msra.mxu0 %v6732_v62 }
0x2b58   :  { %2470 = vmatpush.msra.mxu0 %v6736_v63 }
0x2b5a   :  { %2471 = vmatpush.msra.mxu0 %v6740_v0 }
0x2b5c   :  { %2472 = vmatpush.msra.mxu0 %v6746_v10 }
0x2b5e   :  { %2473 = vmatpush.msra.mxu0 %v6750_v11 }
0x2b60   :  { %2474 = vmatpush.msra.mxu0 %v6753_v13 }
0x2bbe   :  { %v1833_v40 = vpop.f32.mrf.mxu0 }
0x2bbf   :  { %v1834_v42 = vadd.f32 %v1833_v40, %v1808_v39 }
0x2bc1   :  { %v1837_v33 = vadd.f32 %v1836_v41, %v1834_v42 }
0x2bc3   :  { %5695 = vtanh.f32 %v1837_v33  ;;  %v5410_v17 = vmul.f32 -1.442695, %v1837_v33 }
0x2bc5   :  { %5697 = vpow2.f32 %v5410_v17 }
0x2bc9   :  { %v5696_v16 = vpop.eup %5695 }
0x2bca   :  { %1860 = vrot.lane.b32.xlu1 %v5696_v16, %s6206_s25 }
0x2bcb   :  { %v5698_v7 = vpop.eup %5697 }
0x2bcc   :  { %v1841_v46 = vadd.f32 1.0, %v5698_v7 }
0x2bce   :  { %5699 = vrcp.f32 %v1841_v46  ;;  %v1853_v19 = vand.u32 2147483648, %v1841_v46  ;;  %vm1847_vm10 = vweird.f32 %v1841_v46  ;;  %v1851_v5 = vand.u32 2147483647, %v1841_v46 }
0x2bd0   :  { %v1854_v8 = vor.u32 1.1754944e-38, %v1853_v19  ;;  %vm1852_vm13 = vcmp.eq.f32.partialorder %v1851_v5, 8.507059e+37 }
0x2bd4   :  { %v5700_v51 = vpop.eup %5699 }
0x2bd5   :  { %v1843_v52 = vmul.f32 %v5700_v51, %v1841_v46  ;;  %vm1848_vm9 = vweird.f32 %v5700_v51 }
0x2bd6   :  { %vm1849_vm11 = vmor %vm1847_vm10, %vm1848_vm9 }
0x2bd7   :  { %v1844_v53 = vsub.f32 1.0, %v1843_v52 }
0x2bd9   :  { %v1845_v54 = vmul.f32 %v5700_v51, %v1844_v53 }
0x2bdb   :  { %v1846_v37 = vadd.f32 %v5700_v51, %v1845_v54 }
0x2bdd   :  { %v1850_v20 = vsel %vm1849_vm11, %v5700_v51, %v1846_v37 }
0x2bde   :  { %v1855_v12 = vsel %vm1852_vm13, %v1854_v8, %v1850_v20 }
0x2bdf   :  { %v1858_v27 = vmul.f32 %v1855_v12, %v6653_v9  ;;  %v1879_v9 = vld [vmem:[%s7618_s15] sm:$0x1] }
0x2c3c   :  { %v1861_v21 = vpop.permute.xlu1 %1860 }
0x2c3d   :  { %v1863_v26 = vmul.f32 %v1861_v21, %v1855_v12  ;;  %v2081_v21 = vld [vmem:[%s7616_s13] sm:$0x1] }
0x2c3f   :  { %1865 = vrot.lane.b32.xlu0 %v1863_v26, %s6206_s25 }
0x2cb1   :  { %v1866_v29 = vpop.permute.xlu0 %1865 }
0x2cb2   :  { %v6807_v30 = vadd.f32 %v1866_v29, %v1858_v27 }
0x2cb4   :  { %5701 = vtanh.f32 %v6807_v30 }
0x2cba   :  { %v5702_v31 = vpop.eup %5701 }
0x2cbb   :  { %1871 = vrot.lane.b32.xlu2 %v5702_v31, %s6206_s25 }
0x2d15   :  { %v1872_v32 = vpop.permute.xlu2 %1871 }
0x2d16   :  { %v1874_v34 = vmul.f32 %v1872_v32, %v1855_v12 }
0x2d18   :  { %1881 = vrot.lane.b32.xlu1 %v1874_v34, %s6207_s3 }
0x2d8a   :  { %v1882_v15 = vpop.permute.xlu1 %1881 }
0x2d8b   :  { %5411 = vmatmul.msk.f32.vlgmr.msra.gmra.mxu1 %vm303_vm12, %v1882_v15 }
0x2d8c   :  { %2142 = vmatpush.msra.mxu1 %v6657_v22 }
0x2d8e   :  { %2143 = vmatpush.msra.mxu1 %v6659_v23 }
0x2d90   :  { %2144 = vmatpush.msra.mxu1 %v6663_v24 }
0x2d92   :  { %2145 = vmatpush.msra.mxu1 %v6667_v25 }
0x2d93   :  { %5416 = vmatmul.msk.f32.vlgmr.msrb.gmra.mxu1 %vm303_vm12, %v1882_v15 }
0x2d94   :  { %2214 = vmatpush.msrb.mxu1 %v6694_v43 }
0x2d96   :  { %2215 = vmatpush.msrb.mxu1 %v6696_v44 }
0x2d98   :  { %2216 = vmatpush.msrb.mxu1 %v6700_v47 }
0x2d9a   :  { %2217 = vmatpush.msrb.mxu1 %v6704_v55 }
0x2d9c   :  { %2218 = vmatpush.msrb.mxu1 %v6708_v56 }
0x2d9e   :  { %2219 = vmatpush.msrb.mxu1 %v6712_v57 }
0x2da0   :  { %2220 = vmatpush.msrb.mxu1 %v6716_v58 }
0x2da2   :  { %2221 = vmatpush.msrb.mxu1 %v6720_v59 }
0x2da4   :  { %2222 = vmatpush.msrb.mxu1 %v6724_v60 }
0x2da6   :  { %2223 = vmatpush.msrb.mxu1 %v6728_v61 }
0x2da8   :  { %2224 = vmatpush.msrb.mxu1 %v6732_v62 }
0x2daa   :  { %2225 = vmatpush.msrb.mxu1 %v6736_v63 }
0x2dac   :  { %2226 = vmatpush.msrb.mxu1 %v6740_v0 }
0x2dae   :  { %2227 = vmatpush.msrb.mxu1 %v6746_v10  ;;  %v1966_v10 = vpop.f32.mrf.mxu3 }
0x2db0   :  { %2228 = vmatpush.msrb.mxu1 %v6750_v11 }
0x2db2   :  { %2229 = vmatpush.msrb.mxu1 %v6753_v13  ;;  %v1989_v13 = vld [vmem:[%s7613_s10] sm:$0x1] }
0x2e08   :  { %v1902_v22 = vpop.f32.mrf.mxu1 }
0x2e09   :  { %v1903_v23 = vadd.f32 %v1902_v22, %v1879_v9 }
0x2e0b   :  { %1905 = vst [vmem:[#allocation19 + $0x1] sm:$0x1] %v1903_v23  ;;  %v1906_v24 = vsel %vm854_vm5, %v1903_v23, -inf }
0x2e0c   :  { %1907 = vmax.xlane.f32.xlu0 %v1906_v24 }
0x2e7f   :  { %v1908_v25 = vpop.xlane.xlu0 %1907 }
0x2e80   :  { %vm1909_vm14 = vcmp.eq.f32.partialorder %v1903_v23, %v1908_v25 }
0x2e81   :  { %v1910_v43 = vsel %vm1909_vm14, %v6358_v6, 128 }
0x2e82   :  { %v1911_v44 = vsel %vm854_vm5, %v1910_v43, 2147483647 }
0x2e83   :  { %v1913_v47 = vshra.s32 %v1911_v44, 16  ;;  %v1912_v56 = vand.u32 65535, %v1911_v44 }
0x2e85   :  { %v1915_v55 = vcvt.s32.f32 %v1913_v47  ;;  %v1914_v58 = vcvt.s32.f32 %v1912_v56 }
0x2e87   :  { %1916 = vmin.xlane.f32.xlu2 %v1915_v55 }
0x2efa   :  { %v1917_v57 = vpop.xlane.xlu2 %1916 }
0x2efb   :  { %vm1918_vm15 = vcmp.eq.f32.partialorder %v1915_v55, %v1917_v57  ;;  %v1923_v60 = vcvt.f32.s32 %v1917_v57 }
0x2efc   :  { %v1919_v59 = vsel %vm1918_vm15, %v1914_v58, inf }
0x2efd   :  { %1920 = vmin.xlane.f32.xlu1 %v1919_v59  ;;  %v1924_v62 = vshll.u32 %v1923_v60, 16 }
0x2f70   :  { %v1921_v61 = vpop.xlane.xlu1 %1920 }
0x2f71   :  { %v1922_v63 = vcvt.f32.s32 %v1921_v61 }
0x2f73   :  { %v1925_v0 = vadd.s32 %v1924_v62, %v1922_v63 }
0x2f75   :  { %vm1926_vm0 = vcmp.eq.s32.totalorder %v6358_v6, %v1925_v0 }
0x2f76   :  { %5414 = vmatmul.msk.f32.vlgmr.msrb.gmra.mxu0 %vm1926_vm0, %v6208_v18 }
0x2ff3   :  { %v1986_v11 = vpop.f32.mrf.mxu0 }
0x2ff4   :  { %v1987_v35 = vadd.f32 %v1986_v11, %v1966_v10 }
0x2ff6   :  { %v1990_v36 = vadd.f32 %v1989_v13, %v1987_v35 }
0x2ff8   :  { %5703 = vtanh.f32 %v1990_v36  ;;  %v5415_v28 = vmul.f32 -1.442695, %v1990_v36 }
0x2ffa   :  { %5705 = vpow2.f32 %v5415_v28 }
0x2ffe   :  { %v5704_v38 = vpop.eup %5703 }
0x2fff   :  { %2013 = vrot.lane.b32.xlu0 %v5704_v38, %s6206_s25 }
0x3000   :  { %v5706_v2 = vpop.eup %5705 }
0x3001   :  { %v1994_v3 = vadd.f32 1.0, %v5706_v2 }
0x3003   :  { %5707 = vrcp.f32 %v1994_v3  ;;  %v2006_v42 = vand.u32 2147483648, %v1994_v3  ;;  %vm2000_vm2 = vweird.f32 %v1994_v3  ;;  %v2004_v33 = vand.u32 2147483647, %v1994_v3 }
0x3005   :  { %v2007_v17 = vor.u32 1.1754944e-38, %v2006_v42  ;;  %vm2005_vm4 = vcmp.eq.f32.partialorder %v2004_v33, 8.507059e+37  ;;  %v2234_v42 = vld [vmem:[%s7613_s10] sm:$0x1] }
0x3009   :  { %v5708_v4 = vpop.eup %5707 }
0x300a   :  { %v1996_v14 = vmul.f32 %v5708_v4, %v1994_v3  ;;  %vm2001_vm1 = vweird.f32 %v5708_v4 }
0x300b   :  { %vm2002_vm3 = vmor %vm2000_vm2, %vm2001_vm1 }
0x300c   :  { %v1997_v39 = vsub.f32 1.0, %v1996_v14 }
0x300e   :  { %v1998_v40 = vmul.f32 %v5708_v4, %v1997_v39 }
0x3010   :  { %v1999_v41 = vadd.f32 %v5708_v4, %v1998_v40 }
0x3012   :  { %v2003_v16 = vsel %vm2002_vm3, %v5708_v4, %v1999_v41 }
0x3013   :  { %v2008_v46 = vsel %vm2005_vm4, %v2007_v17, %v2003_v16 }
0x3014   :  { %v2011_v52 = vmul.f32 %v2008_v46, %v6774_v1  ;;  %v2053_v1 = vpop.f32.mrf.mxu1 }
0x3071   :  { %v2014_v7 = vpop.permute.xlu0 %2013 }
0x3072   :  { %v2016_v51 = vmul.f32 %v2014_v7, %v2008_v46 }
0x3074   :  { %2018 = vrot.lane.b32.xlu2 %v2016_v51, %s6206_s25 }
0x30ce   :  { %v2019_v53 = vpop.permute.xlu2 %2018 }
0x30cf   :  { %v6848_v54 = vadd.f32 %v2019_v53, %v2011_v52 }
0x30d1   :  { %5709 = vtanh.f32 %v6848_v54 }
0x30d7   :  { %v5710_v37 = vpop.eup %5709 }
0x30d8   :  { %2024 = vrot.lane.b32.xlu1 %v5710_v37, %s6206_s25 }
0x314a   :  { %v2025_v19 = vpop.permute.xlu1 %2024 }
0x314b   :  { %v2027_v5 = vmul.f32 %v2025_v19, %v2008_v46 }
0x314d   :  { %2057 = vrot.lane.b32.xlu0 %v2027_v5, %s6207_s3 }
0x31bf   :  { %v2058_v20 = vpop.permute.xlu0 %2057 }
0x31c0   :  { %5417 = vmatmul.msk.f32.vlgmr.msrb.gmra.mxu3 %vm303_vm12, %v2058_v20 }
0x31c1   :  { %2318 = vmatpush.msrb.mxu3 %v6611_v48 }
0x31c3   :  { %2319 = vmatpush.msrb.mxu3 %v6614_v49 }
0x31c5   :  { %2320 = vmatpush.msrb.mxu3 %v6616_v45 }
0x31c7   :  { %2321 = vmatpush.msrb.mxu3 %v6619_v50 }
0x31c8   :  { %5421 = vmatmul.msk.f32.vlgmr.msra.gmra.mxu3 %vm303_vm12, %v2058_v20 }
0x3243   :  { %v2078_v8 = vpop.f32.mrf.mxu3 }
0x3244   :  { %v2079_v12 = vadd.f32 %v2078_v8, %v2053_v1 }
0x3246   :  { %v2082_v26 = vadd.f32 %v2081_v21, %v2079_v12 }
0x3248   :  { %5711 = vtanh.f32 %v2082_v26  ;;  %v5418_v48 = vmul.f32 -1.442695, %v2082_v26 }
0x324a   :  { %5713 = vpow2.f32 %v5418_v48 }
0x324b   :  { %v2211_v40 = vpop.f32.mrf.mxu3 }
0x324e   :  { %v5712_v27 = vpop.eup %5711 }
0x324f   :  { %2105 = vrot.lane.b32.xlu2 %v5712_v27, %s6206_s25 }
0x3250   :  { %v5714_v49 = vpop.eup %5713 }
0x3251   :  { %v2086_v45 = vadd.f32 1.0, %v5714_v49 }
0x3253   :  { %5715 = vrcp.f32 %v2086_v45  ;;  %v2098_v15 = vand.u32 2147483648, %v2086_v45  ;;  %vm2092_vm7 = vweird.f32 %v2086_v45  ;;  %v2096_v9 = vand.u32 2147483647, %v2086_v45 }
0x3255   :  { %v2099_v23 = vor.u32 1.1754944e-38, %v2098_v15  ;;  %vm2097_vm9 = vcmp.eq.f32.partialorder %v2096_v9, 8.507059e+37  ;;  %v6896_v15 = vld [vmem:[#allocation13 + $0x8] sm:$0xff] }
0x3259   :  { %v5716_v50 = vpop.eup %5715 }
0x325a   :  { %v2088_v29 = vmul.f32 %v5716_v50, %v2086_v45  ;;  %vm2093_vm6 = vweird.f32 %v5716_v50 }
0x325b   :  { %vm2094_vm8 = vmor %vm2092_vm7, %vm2093_vm6 }
0x325c   :  { %v2089_v31 = vsub.f32 1.0, %v2088_v29 }
0x325e   :  { %v2090_v32 = vmul.f32 %v5716_v50, %v2089_v31 }
0x3260   :  { %v2091_v34 = vadd.f32 %v5716_v50, %v2090_v32  ;;  %v6891_v32 = vld [vmem:[#allocation13 + $0x18] sm:$0xff] }
0x3261   :  { %2451 = vmatpush.msra.mxu3 %v6891_v32 }
0x3262   :  { %v2095_v22 = vsel %vm2094_vm8, %v5716_v50, %v2091_v34  ;;  %v6893_v34 = vld [vmem:[#allocation13 + $0x10] sm:$0xff] }
0x3263   :  { %v2100_v25 = vsel %vm2097_vm9, %v2099_v23, %v2095_v22  ;;  %2452 = vmatpush.msra.mxu3 %v6893_v34 }
0x3264   :  { %v2103_v44 = vmul.f32 %v2100_v25, %v6807_v30  ;;  %v2124_v30 = vld [vmem:[%s7618_s15] sm:$0x1] }
0x3265   :  { %2453 = vmatpush.msra.mxu3 %v6896_v15 }
0x32a9   :  { %v2106_v24 = vpop.permute.xlu2 %2105 }
0x32aa   :  { %v2108_v43 = vmul.f32 %v2106_v24, %v2100_v25  ;;  %v2326_v24 = vld [vmem:[%s7616_s13] sm:$0x1] }
0x32ac   :  { %2110 = vrot.lane.b32.xlu0 %v2108_v43, %s6206_s25 }
0x331e   :  { %v2111_v47 = vpop.permute.xlu0 %2110 }
0x331f   :  { %v6865_v55 = vadd.f32 %v2111_v47, %v2103_v44 }
0x3321   :  { %5717 = vtanh.f32 %v6865_v55 }
0x3327   :  { %v5718_v56 = vpop.eup %5717 }
0x3328   :  { %2116 = vrot.lane.b32.xlu1 %v5718_v56, %s6206_s25 }
0x339a   :  { %v2117_v57 = vpop.permute.xlu1 %2116 }
0x339b   :  { %v2119_v58 = vmul.f32 %v2117_v57, %v2100_v25 }
0x339d   :  { %2126 = vrot.lane.b32.xlu2 %v2119_v58, %s6207_s3 }
0x33f7   :  { %v2127_v59 = vpop.permute.xlu2 %2126 }
0x33f8   :  { %5419 = vmatmul.msk.f32.vlgmr.msra.gmra.mxu1 %vm303_vm12, %v2127_v59  ;;  %5424 = vmatmul.msk.f32.vlgmr.msrb.gmra.mxu2 %vm303_vm12, %v2127_v59 }
0x3475   :  { %v2147_v60 = vpop.f32.mrf.mxu1 }
0x3476   :  { %v2148_v61 = vadd.f32 %v2147_v60, %v2124_v30 }
0x3478   :  { %2150 = vst [vmem:[#allocation19 + $0x2] sm:$0x1] %v2148_v61  ;;  %v2151_v62 = vsel %vm854_vm5, %v2148_v61, -inf }
0x3479   :  { %2152 = vmax.xlane.f32.xlu0 %v2151_v62 }
0x347b   :  { %v2298_v22 = vpop.f32.mrf.mxu2 }
0x34ec   :  { %v2153_v63 = vpop.xlane.xlu0 %2152 }
0x34ed   :  { %vm2154_vm10 = vcmp.eq.f32.partialorder %v2148_v61, %v2153_v63 }
0x34ee   :  { %v2155_v0 = vsel %vm2154_vm10, %v6358_v6, 128 }
0x34ef   :  { %v2156_v10 = vsel %vm854_vm5, %v2155_v0, 2147483647 }
0x34f0   :  { %v2158_v11 = vshra.s32 %v2156_v10, 16  ;;  %v2157_v35 = vand.u32 65535, %v2156_v10 }
0x34f2   :  { %v2160_v13 = vcvt.s32.f32 %v2158_v11  ;;  %v2159_v38 = vcvt.s32.f32 %v2157_v35 }
0x34f4   :  { %2161 = vmin.xlane.f32.xlu1 %v2160_v13 }
0x3567   :  { %v2162_v36 = vpop.xlane.xlu1 %2161 }
0x3568   :  { %vm2163_vm11 = vcmp.eq.f32.partialorder %v2160_v13, %v2162_v36  ;;  %v2168_v2 = vcvt.f32.s32 %v2162_v36 }
0x3569   :  { %v2164_v28 = vsel %vm2163_vm11, %v2159_v38, inf }
0x356a   :  { %2165 = vmin.xlane.f32.xlu2 %v2164_v28  ;;  %v2169_v4 = vshll.u32 %v2168_v2, 16 }
0x35dd   :  { %v2166_v3 = vpop.xlane.xlu2 %2165 }
0x35de   :  { %v2167_v14 = vcvt.f32.s32 %v2166_v3 }
0x35e0   :  { %v2170_v39 = vadd.s32 %v2169_v4, %v2167_v14  ;;  %v6916_v14 = vld [vmem:[#allocation16 + $0x18] sm:$0xff] }
0x35e1   :  { %2538 = vmatpush.msrb.mxu2 %v6916_v14 }
0x35e2   :  { %vm2171_vm13 = vcmp.eq.s32.totalorder %v6358_v6, %v2170_v39  ;;  %v6918_v39 = vld [vmem:[#allocation16 + $0x10] sm:$0xff] }
0x35e3   :  { %5422 = vmatmul.msk.f32.vlgmr.msrb.gmra.mxu1 %vm2171_vm13, %v6208_v18  ;;  %2539 = vmatpush.msrb.mxu2 %v6918_v39 }
0x3660   :  { %v2231_v41 = vpop.f32.mrf.mxu1 }
0x3661   :  { %v2232_v33 = vadd.f32 %v2231_v41, %v2211_v40  ;;  %v6921_v40 = vld [vmem:[#allocation16 + $0x8] sm:$0xff] }
0x3662   :  { %2540 = vmatpush.msrb.mxu2 %v6921_v40 }
0x3663   :  { %v2235_v16 = vadd.f32 %v2234_v42, %v2232_v33  ;;  %v2369_v42 = vld [vmem:[%s7618_s15] sm:$0x1] }
0x3665   :  { %5719 = vtanh.f32 %v2235_v16  ;;  %v5423_v7 = vmul.f32 -1.442695, %v2235_v16 }
0x3667   :  { %5721 = vpow2.f32 %v5423_v7 }
0x366b   :  { %v5720_v17 = vpop.eup %5719 }
0x366c   :  { %2258 = vrot.lane.b32.xlu0 %v5720_v17, %s6206_s25 }
0x366d   :  { %v5722_v46 = vpop.eup %5721 }
0x366e   :  { %v2239_v51 = vadd.f32 1.0, %v5722_v46 }
0x3670   :  { %5723 = vrcp.f32 %v2239_v51  ;;  %v2251_v20 = vand.u32 2147483648, %v2239_v51  ;;  %vm2245_vm15 = vweird.f32 %v2239_v51  ;;  %v2249_v1 = vand.u32 2147483647, %v2239_v51 }
0x3672   :  { %v2252_v21 = vor.u32 1.1754944e-38, %v2251_v20  ;;  %vm2250_vm1 = vcmp.eq.f32.partialorder %v2249_v1, 8.507059e+37 }
0x3676   :  { %v5724_v52 = vpop.eup %5723 }
0x3677   :  { %v2241_v53 = vmul.f32 %v5724_v52, %v2239_v51  ;;  %vm2246_vm14 = vweird.f32 %v5724_v52 }
0x3678   :  { %vm2247_vm0 = vmor %vm2245_vm15, %vm2246_vm14 }
0x3679   :  { %v2242_v37 = vsub.f32 1.0, %v2241_v53 }
0x367b   :  { %v2243_v19 = vmul.f32 %v5724_v52, %v2242_v37 }
0x367d   :  { %v2244_v5 = vadd.f32 %v5724_v52, %v2243_v19 }
0x367f   :  { %v2248_v8 = vsel %vm2247_vm0, %v5724_v52, %v2244_v5 }
0x3680   :  { %v2253_v26 = vsel %vm2250_vm1, %v2252_v21, %v2248_v8 }
0x3681   :  { %v2256_v48 = vmul.f32 %v2253_v26, %v6848_v54  ;;  %v6899_v54 = vld [vmem:[#allocation13] sm:$0xff] }
0x3682   :  { %2454 = vmatpush.msra.mxu3 %v6899_v54 }
0x36de   :  { %v2259_v12 = vpop.permute.xlu0 %2258 }
0x36df   :  { %v2261_v27 = vmul.f32 %v2259_v12, %v2253_v26 }
0x36e1   :  { %2263 = vrot.lane.b32.xlu1 %v2261_v27, %s6206_s25 }
0x3753   :  { %v2264_v49 = vpop.permute.xlu1 %2263 }
0x3754   :  { %v6886_v45 = vadd.f32 %v2264_v49, %v2256_v48  ;;  %v2479_v49 = vld [vmem:[%s7613_s10] sm:$0x1] }
0x3756   :  { %5725 = vtanh.f32 %v6886_v45 }
0x375c   :  { %v5726_v50 = vpop.eup %5725 }
0x375d   :  { %2269 = vrot.lane.b32.xlu2 %v5726_v50, %s6206_s25 }
0x37b7   :  { %v2270_v29 = vpop.permute.xlu2 %2269 }
0x37b8   :  { %v2272_v31 = vmul.f32 %v2270_v29, %v2253_v26 }
0x37ba   :  { %2302 = vrot.lane.b32.xlu0 %v2272_v31, %s6207_s3 }
0x382c   :  { %v2303_v9 = vpop.permute.xlu0 %2302 }
0x382d   :  { %5425 = vmatmul.msk.f32.vlgmr.msrb.gmra.mxu3 %vm303_vm12, %v2303_v9 }
0x3835   :  { %5429 = vmatmul.msk.f32.vlgmr.msra.gmra.mxu3 %vm303_vm12, %v2303_v9 }
0x38b0   :  { %v2323_v23 = vpop.f32.mrf.mxu3 }
0x38b1   :  { %v2324_v25 = vadd.f32 %v2323_v23, %v2298_v22 }
0x38b3   :  { %v2327_v43 = vadd.f32 %v2326_v24, %v2324_v25 }
0x38b5   :  { %5727 = vtanh.f32 %v2327_v43  ;;  %v5426_v47 = vmul.f32 -1.442695, %v2327_v43 }
0x38b7   :  { %5729 = vpow2.f32 %v5426_v47 }
0x38b8   :  { %v2456_v27 = vpop.f32.mrf.mxu3 }
0x38bb   :  { %v5728_v44 = vpop.eup %5727 }
0x38bc   :  { %2350 = vrot.lane.b32.xlu1 %v5728_v44, %s6206_s25 }
0x38bd   :  { %v5730_v56 = vpop.eup %5729 }
0x38be   :  { %v2331_v57 = vadd.f32 1.0, %v5730_v56 }
0x38c0   :  { %5731 = vrcp.f32 %v2331_v57  ;;  %v2343_v62 = vand.u32 2147483648, %v2331_v57  ;;  %vm2337_vm3 = vweird.f32 %v2331_v57  ;;  %v2341_v63 = vand.u32 2147483647, %v2331_v57 }
0x38c2   :  { %v2344_v10 = vor.u32 1.1754944e-38, %v2343_v62  ;;  %vm2342_vm6 = vcmp.eq.f32.partialorder %v2341_v63, 8.507059e+37 }
0x38c6   :  { %v5732_v58 = vpop.eup %5731 }
0x38c7   :  { %v2333_v59 = vmul.f32 %v5732_v58, %v2331_v57  ;;  %vm2338_vm2 = vweird.f32 %v5732_v58 }
0x38c8   :  { %vm2339_vm4 = vmor %vm2337_vm3, %vm2338_vm2 }
0x38c9   :  { %v2334_v30 = vsub.f32 1.0, %v2333_v59 }
0x38cb   :  { %v2335_v60 = vmul.f32 %v5732_v58, %v2334_v30 }
0x38cd   :  { %v2336_v61 = vadd.f32 %v5732_v58, %v2335_v60 }
0x38cf   :  { %v2340_v0 = vsel %vm2339_vm4, %v5732_v58, %v2336_v61 }
0x38d0   :  { %v2345_v13 = vsel %vm2342_vm6, %v2344_v10, %v2340_v0 }
0x38d1   :  { %v2348_v36 = vmul.f32 %v2345_v13, %v6865_v55  ;;  %v6924_v55 = vld [vmem:[#allocation16] sm:$0xff] }
0x38d2   :  { %2541 = vmatpush.msrb.mxu2 %v6924_v55 }
0x392e   :  { %v2351_v11 = vpop.permute.xlu1 %2350 }
0x392f   :  { %v2353_v35 = vmul.f32 %v2351_v11, %v2345_v13  ;;  %v6948_v11 = vld [vmem:[#allocation15 + $0x18] sm:$0xff] }
0x3930   :  { %2563 = vmatpush.msrb.mxu3 %v6948_v11 }
0x3931   :  { %2355 = vrot.lane.b32.xlu0 %v2353_v35, %s6206_s25  ;;  %v6953_v35 = vld [vmem:[#allocation15 + $0x8] sm:$0xff] }
0x39a3   :  { %v2356_v38 = vpop.permute.xlu0 %2355 }
0x39a4   :  { %v6911_v28 = vadd.f32 %v2356_v38, %v2348_v36  ;;  %v6956_v36 = vld [vmem:[#allocation15] sm:$0xff] }
0x39a6   :  { %5733 = vtanh.f32 %v6911_v28 }
0x39ac   :  { %v5734_v2 = vpop.eup %5733 }
0x39ad   :  { %2361 = vrot.lane.b32.xlu2 %v5734_v2, %s6206_s25 }
0x3a07   :  { %v2362_v3 = vpop.permute.xlu2 %2361 }
0x3a08   :  { %v2364_v4 = vmul.f32 %v2362_v3, %v2345_v13  ;;  %v6950_v13 = vld [vmem:[#allocation15 + $0x10] sm:$0xff] }
0x3a09   :  { %2564 = vmatpush.msrb.mxu3 %v6950_v13 }
0x3a0a   :  { %2371 = vrot.lane.b32.xlu1 %v2364_v4, %s6207_s3 }
0x3a0b   :  { %2565 = vmatpush.msrb.mxu3 %v6953_v35 }
0x3a0d   :  { %2566 = vmatpush.msrb.mxu3 %v6956_v36 }
0x3a0f   :  { %2696 = vmatpush.msra.mxu3 %v6891_v32 }
0x3a11   :  { %2697 = vmatpush.msra.mxu3 %v6893_v34 }
0x3a13   :  { %2698 = vmatpush.msra.mxu3 %v6896_v15 }
0x3a15   :  { %2699 = vmatpush.msra.mxu3 %v6899_v54 }
0x3a7c   :  { %v2372_v41 = vpop.permute.xlu1 %2371 }
0x3a7d   :  { %5427 = vmatmul.msk.f32.vlgmr.msra.gmra.mxu2 %vm303_vm12, %v2372_v41 }
0x3a85   :  { %5432 = vmatmul.msk.f32.vlgmr.msrb.gmra.mxu2 %vm303_vm12, %v2372_v41  ;;  %v2571_v41 = vld [vmem:[%s7616_s13] sm:$0x1] }
0x3b00   :  { %v2392_v33 = vpop.f32.mrf.mxu2 }
0x3b01   :  { %v2393_v16 = vadd.f32 %v2392_v33, %v2369_v42 }
0x3b03   :  { %2395 = vst [vmem:[#allocation19 + $0x3] sm:$0x1] %v2393_v16  ;;  %v2396_v17 = vsel %vm854_vm5, %v2393_v16, -inf }
0x3b04   :  { %2397 = vmax.xlane.f32.xlu0 %v2396_v17 }
0x3b08   :  { %v2543_v3 = vpop.f32.mrf.mxu2 }
0x3b77   :  { %v2398_v7 = vpop.xlane.xlu0 %2397 }
0x3b78   :  { %vm2399_vm7 = vcmp.eq.f32.partialorder %v2393_v16, %v2398_v7 }
0x3b79   :  { %v2400_v46 = vsel %vm2399_vm7, %v6358_v6, 128 }
0x3b7a   :  { %v2401_v51 = vsel %vm854_vm5, %v2400_v46, 2147483647 }
0x3b7b   :  { %v2403_v52 = vshra.s32 %v2401_v51, 16  ;;  %v2402_v37 = vand.u32 65535, %v2401_v51 }
0x3b7d   :  { %v2405_v53 = vcvt.s32.f32 %v2403_v52  ;;  %v2404_v5 = vcvt.s32.f32 %v2402_v37 }
0x3b7f   :  { %2406 = vmin.xlane.f32.xlu2 %v2405_v53 }
0x3bf2   :  { %v2407_v19 = vpop.xlane.xlu2 %2406 }
0x3bf3   :  { %vm2408_vm8 = vcmp.eq.f32.partialorder %v2405_v53, %v2407_v19  ;;  %v2413_v1 = vcvt.f32.s32 %v2407_v19 }
0x3bf4   :  { %v2409_v20 = vsel %vm2408_vm8, %v2404_v5, inf }
0x3bf5   :  { %2410 = vmin.xlane.f32.xlu1 %v2409_v20  ;;  %v2414_v21 = vshll.u32 %v2413_v1, 16 }
0x3c68   :  { %v2411_v8 = vpop.xlane.xlu1 %2410 }
0x3c69   :  { %v2412_v12 = vcvt.f32.s32 %v2411_v8 }
0x3c6b   :  { %v2415_v26 = vadd.s32 %v2414_v21, %v2412_v12 }
0x3c6d   :  { %vm2416_vm9 = vcmp.eq.s32.totalorder %v6358_v6, %v2415_v26 }
0x3c6e   :  { %5430 = vmatmul.msk.f32.vlgmr.msra.gmra.mxu0 %vm2416_vm9, %v6208_v18 }
0x3ceb   :  { %v2476_v48 = vpop.f32.mrf.mxu0 }
0x3cec   :  { %v2477_v50 = vadd.f32 %v2476_v48, %v2456_v27 }
0x3cee   :  { %v2480_v29 = vadd.f32 %v2479_v49, %v2477_v50 }
0x3cf0   :  { %5735 = vtanh.f32 %v2480_v29  ;;  %v5431_v9 = vmul.f32 -1.442695, %v2480_v29  ;;  %v6985_v29 = vld [vmem:[#allocation18 + $0x18] sm:$0xff] }
0x3cf1   :  { %2632 = vmatpush.msra.mxu2 %v6985_v29 }
0x3cf2   :  { %5737 = vpow2.f32 %v5431_v9  ;;  %v6990_v9 = vld [vmem:[#allocation18 + $0x8] sm:$0xff] }
0x3cf6   :  { %v5736_v31 = vpop.eup %5735 }
0x3cf7   :  { %2503 = vrot.lane.b32.xlu0 %v5736_v31, %s6206_s25  ;;  %v6987_v31 = vld [vmem:[#allocation18 + $0x10] sm:$0xff] }
0x3cf8   :  { %v5738_v22 = vpop.eup %5737  ;;  %2633 = vmatpush.msra.mxu2 %v6987_v31 }
0x3cf9   :  { %v2484_v23 = vadd.f32 1.0, %v5738_v22  ;;  %v6993_v22 = vld [vmem:[#allocation18] sm:$0xff] }
0x3cfa   :  { %2634 = vmatpush.msra.mxu2 %v6990_v9 }
0x3cfb   :  { %5739 = vrcp.f32 %v2484_v23  ;;  %v2496_v56 = vand.u32 2147483648, %v2484_v23  ;;  %vm2490_vm11 = vweird.f32 %v2484_v23  ;;  %v2494_v57 = vand.u32 2147483647, %v2484_v23 }
0x3cfc   :  { %2635 = vmatpush.msra.mxu2 %v6993_v22 }
0x3cfd   :  { %v2497_v59 = vor.u32 1.1754944e-38, %v2496_v56  ;;  %vm2495_vm14 = vcmp.eq.f32.partialorder %v2494_v57, 8.507059e+37 }
0x3cfe   :  { %2783 = vmatpush.msrb.mxu2 %v6916_v14 }
0x3d00   :  { %2784 = vmatpush.msrb.mxu2 %v6918_v39 }
0x3d01   :  { %v5740_v24 = vpop.eup %5739 }
0x3d02   :  { %v2486_v25 = vmul.f32 %v5740_v24, %v2484_v23  ;;  %vm2491_vm10 = vweird.f32 %v5740_v24  ;;  %2785 = vmatpush.msrb.mxu2 %v6921_v40 }
0x3d03   :  { %vm2492_vm13 = vmor %vm2490_vm11, %vm2491_vm10 }
0x3d04   :  { %v2487_v43 = vsub.f32 1.0, %v2486_v25  ;;  %2786 = vmatpush.msrb.mxu2 %v6924_v55  ;;  %v2614_v25 = vld [vmem:[%s7618_s15] sm:$0x1] }
0x3d06   :  { %v2488_v44 = vmul.f32 %v5740_v24, %v2487_v43 }
0x3d08   :  { %v2489_v47 = vadd.f32 %v5740_v24, %v2488_v44 }
0x3d0a   :  { %v2493_v58 = vsel %vm2492_vm13, %v5740_v24, %v2489_v47 }
0x3d0b   :  { %v2498_v60 = vsel %vm2495_vm14, %v2497_v59, %v2493_v58 }
0x3d0c   :  { %v2501_v62 = vmul.f32 %v2498_v60, %v6886_v45 }
0x3d69   :  { %v2504_v30 = vpop.permute.xlu0 %2503 }
0x3d6a   :  { %v2506_v61 = vmul.f32 %v2504_v30, %v2498_v60 }
0x3d6c   :  { %2508 = vrot.lane.b32.xlu2 %v2506_v61, %s6206_s25  ;;  %v2678_v61 = vld [vmem:[#allocation12 + $0x70] sm:$0xff] }
0x3dc6   :  { %v2509_v63 = vpop.permute.xlu2 %2508 }
0x3dc7   :  { %v6944_v0 = vadd.f32 %v2509_v63, %v2501_v62  ;;  %v2677_v62 = vld [vmem:[#allocation12 + $0x68] sm:$0xff]  ;;  %v2676_v63 = vld [vmem:[#allocation12 + $0x60] sm:$0xff] }
0x3dc9   :  { %5741 = vtanh.f32 %v6944_v0 }
0x3dcf   :  { %v5742_v10 = vpop.eup %5741 }
0x3dd0   :  { %2514 = vrot.lane.b32.xlu1 %v5742_v10, %s6206_s25  ;;  %v2675_v10 = vld [vmem:[#allocation12 + $0x58] sm:$0xff] }
0x3e42   :  { %v2515_v45 = vpop.permute.xlu1 %2514 }
0x3e43   :  { %v2517_v38 = vmul.f32 %v2515_v45, %v2498_v60  ;;  %v2679_v60 = vld [vmem:[#allocation12 + $0x78] sm:$0xff]  ;;  %v2674_v45 = vld [vmem:[#allocation12 + $0x50] sm:$0xff] }
0x3e44   :  { %2704 = vmatpush.msra.mxu1 %v2679_v60  ;;  %2949 = vmatpush.msrb.mxu0 %v2679_v60 }
0x3e45   :  { %2547 = vrot.lane.b32.xlu0 %v2517_v38, %s6207_s3  ;;  %v2673_v38 = vld [vmem:[#allocation12 + $0x48] sm:$0xff] }
0x3e46   :  { %2705 = vmatpush.msra.mxu1 %v2678_v61  ;;  %2950 = vmatpush.msrb.mxu0 %v2678_v61 }
0x3e48   :  { %2706 = vmatpush.msra.mxu1 %v2677_v62  ;;  %2951 = vmatpush.msrb.mxu0 %v2677_v62 }
0x3e4a   :  { %2707 = vmatpush.msra.mxu1 %v2676_v63  ;;  %2952 = vmatpush.msrb.mxu0 %v2676_v63 }
0x3e4c   :  { %2708 = vmatpush.msra.mxu1 %v2675_v10  ;;  %2953 = vmatpush.msrb.mxu0 %v2675_v10 }
0x3e4e   :  { %2709 = vmatpush.msra.mxu1 %v2674_v45  ;;  %2954 = vmatpush.msrb.mxu0 %v2674_v45 }
0x3e50   :  { %2710 = vmatpush.msra.mxu1 %v2673_v38  ;;  %2955 = vmatpush.msrb.mxu0 %v2673_v38 }
0x3eb7   :  { %v2548_v2 = vpop.permute.xlu0 %2547 }
0x3eb8   :  { %5433 = vmatmul.msk.f32.vlgmr.msrb.gmra.mxu3 %vm303_vm12, %v2548_v2 }
0x3eb9   :  { %2808 = vmatpush.msrb.mxu3 %v6948_v11 }
0x3ebb   :  { %2809 = vmatpush.msrb.mxu3 %v6950_v13 }
0x3ebd   :  { %2810 = vmatpush.msrb.mxu3 %v6953_v35 }
0x3ebf   :  { %2811 = vmatpush.msrb.mxu3 %v6956_v36 }
0x3ec0   :  { %5437 = vmatmul.msk.f32.vlgmr.msra.gmra.mxu3 %vm303_vm12, %v2548_v2  ;;  %v2672_v2 = vld [vmem:[#allocation12 + $0x40] sm:$0xff] }
0x3ec1   :  { %2941 = vmatpush.msra.mxu3 %v6891_v32  ;;  %2711 = vmatpush.msra.mxu1 %v2672_v2 }
0x3ec2   :  { %2956 = vmatpush.msrb.mxu0 %v2672_v2 }
0x3ec3   :  { %2942 = vmatpush.msra.mxu3 %v6893_v34 }
0x3ec5   :  { %2943 = vmatpush.msra.mxu3 %v6896_v15 }
0x3ec7   :  { %2944 = vmatpush.msra.mxu3 %v6899_v54 }
0x3f3b   :  { %v2568_v4 = vpop.f32.mrf.mxu3 }
0x3f3c   :  { %v2569_v42 = vadd.f32 %v2568_v4, %v2543_v3  ;;  %v2671_v3 = vld [vmem:[#allocation12 + $0x38] sm:$0xff]  ;;  %v2670_v4 = vld [vmem:[#allocation12 + $0x30] sm:$0xff] }
0x3f3d   :  { %2712 = vmatpush.msra.mxu1 %v2671_v3  ;;  %2957 = vmatpush.msrb.mxu0 %v2671_v3 }
0x3f3e   :  { %v2572_v33 = vadd.f32 %v2571_v41, %v2569_v42  ;;  %v2669_v41 = vld [vmem:[#allocation12 + $0x28] sm:$0xff]  ;;  %v2668_v42 = vld [vmem:[#allocation12 + $0x20] sm:$0xff] }
0x3f3f   :  { %2713 = vmatpush.msra.mxu1 %v2670_v4  ;;  %2958 = vmatpush.msrb.mxu0 %v2670_v4 }
0x3f40   :  { %5743 = vtanh.f32 %v2572_v33  ;;  %v5434_v17 = vmul.f32 -1.442695, %v2572_v33  ;;  %v2667_v33 = vld [vmem:[#allocation12 + $0x18] sm:$0xff] }
0x3f41   :  { %2714 = vmatpush.msra.mxu1 %v2669_v41  ;;  %2959 = vmatpush.msrb.mxu0 %v2669_v41 }
0x3f42   :  { %5745 = vpow2.f32 %v5434_v17 }
0x3f43   :  { %2715 = vmatpush.msra.mxu1 %v2668_v42  ;;  %2960 = vmatpush.msrb.mxu0 %v2668_v42 }
0x3f45   :  { %2716 = vmatpush.msra.mxu1 %v2667_v33  ;;  %2961 = vmatpush.msrb.mxu0 %v2667_v33 }
0x3f46   :  { %v5744_v16 = vpop.eup %5743 }
0x3f47   :  { %2595 = vrot.lane.b32.xlu2 %v5744_v16, %s6206_s25 }
0x3f48   :  { %v5746_v7 = vpop.eup %5745 }
0x3f49   :  { %v2576_v46 = vadd.f32 1.0, %v5746_v7 }
0x3f4b   :  { %5747 = vrcp.f32 %v2576_v46  ;;  %v2588_v5 = vand.u32 2147483648, %v2576_v46  ;;  %vm2582_vm0 = vweird.f32 %v2576_v46  ;;  %v2586_v20 = vand.u32 2147483647, %v2576_v46 }
0x3f4d   :  { %v2589_v8 = vor.u32 1.1754944e-38, %v2588_v5  ;;  %vm2587_vm2 = vcmp.eq.f32.partialorder %v2586_v20, 8.507059e+37 }
0x3f51   :  { %v5748_v51 = vpop.eup %5747 }
0x3f52   :  { %v2578_v52 = vmul.f32 %v5748_v51, %v2576_v46  ;;  %vm2583_vm15 = vweird.f32 %v5748_v51 }
0x3f53   :  { %vm2584_vm1 = vmor %vm2582_vm0, %vm2583_vm15 }
0x3f54   :  { %v2579_v53 = vsub.f32 1.0, %v2578_v52  ;;  %v2665_v52 = vld [vmem:[#allocation12 + $0x8] sm:$0xff] }
0x3f56   :  { %v2580_v37 = vmul.f32 %v5748_v51, %v2579_v53  ;;  %v2664_v53 = vld [vmem:[#allocation12] sm:$0xff] }
0x3f58   :  { %v2581_v19 = vadd.f32 %v5748_v51, %v2580_v37 }
0x3f5a   :  { %v2585_v1 = vsel %vm2584_vm1, %v5748_v51, %v2581_v19  ;;  %v2666_v51 = vld [vmem:[#allocation12 + $0x10] sm:$0xff] }
0x3f5b   :  { %v2590_v12 = vsel %vm2587_vm2, %v2589_v8, %v2585_v1  ;;  %2717 = vmatpush.msra.mxu1 %v2666_v51  ;;  %2962 = vmatpush.msrb.mxu0 %v2666_v51  ;;  %v2701_v8 = vpop.f32.mrf.mxu3 }
0x3f5c   :  { %v2593_v27 = vmul.f32 %v2590_v12, %v6911_v28 }
0x3f5d   :  { %2718 = vmatpush.msra.mxu1 %v2665_v52  ;;  %2963 = vmatpush.msrb.mxu0 %v2665_v52 }
0x3f5f   :  { %2719 = vmatpush.msra.mxu1 %v2664_v53  ;;  %2964 = vmatpush.msrb.mxu0 %v2664_v53 }
0x3f61   :  { %3194 = vmatpush.msrb.mxu1 %v2679_v60  ;;  %3439 = vmatpush.msra.mxu0 %v2679_v60 }
0x3f63   :  { %3195 = vmatpush.msrb.mxu1 %v2678_v61  ;;  %3440 = vmatpush.msra.mxu0 %v2678_v61 }
0x3f65   :  { %3196 = vmatpush.msrb.mxu1 %v2677_v62  ;;  %3441 = vmatpush.msra.mxu0 %v2677_v62 }
0x3f67   :  { %3197 = vmatpush.msrb.mxu1 %v2676_v63  ;;  %3442 = vmatpush.msra.mxu0 %v2676_v63 }
0x3f69   :  { %3198 = vmatpush.msrb.mxu1 %v2675_v10  ;;  %3443 = vmatpush.msra.mxu0 %v2675_v10 }
0x3f6b   :  { %3199 = vmatpush.msrb.mxu1 %v2674_v45  ;;  %3444 = vmatpush.msra.mxu0 %v2674_v45 }
0x3f6d   :  { %3200 = vmatpush.msrb.mxu1 %v2673_v38  ;;  %3445 = vmatpush.msra.mxu0 %v2673_v38 }
0x3f6f   :  { %3201 = vmatpush.msrb.mxu1 %v2672_v2  ;;  %3446 = vmatpush.msra.mxu0 %v2672_v2 }
0x3f71   :  { %3202 = vmatpush.msrb.mxu1 %v2671_v3  ;;  %3447 = vmatpush.msra.mxu0 %v2671_v3 }
0x3f73   :  { %3203 = vmatpush.msrb.mxu1 %v2670_v4  ;;  %3448 = vmatpush.msra.mxu0 %v2670_v4 }
0x3f75   :  { %3204 = vmatpush.msrb.mxu1 %v2669_v41  ;;  %3449 = vmatpush.msra.mxu0 %v2669_v41  ;;  %v2816_v41 = vld [vmem:[%s7616_s13] sm:$0x1] }
0x3f77   :  { %3205 = vmatpush.msrb.mxu1 %v2668_v42  ;;  %3450 = vmatpush.msra.mxu0 %v2668_v42 }
0x3f79   :  { %3206 = vmatpush.msrb.mxu1 %v2667_v33  ;;  %3451 = vmatpush.msra.mxu0 %v2667_v33 }
0x3f7b   :  { %3207 = vmatpush.msrb.mxu1 %v2666_v51  ;;  %3452 = vmatpush.msra.mxu0 %v2666_v51 }
0x3f7d   :  { %3208 = vmatpush.msrb.mxu1 %v2665_v52  ;;  %3453 = vmatpush.msra.mxu0 %v2665_v52 }
0x3f7f   :  { %3209 = vmatpush.msrb.mxu1 %v2664_v53  ;;  %3454 = vmatpush.msra.mxu0 %v2664_v53 }
0x3fa1   :  { %v2596_v21 = vpop.permute.xlu2 %2595 }
0x3fa2   :  { %v2598_v26 = vmul.f32 %v2596_v21, %v2590_v12 }
0x3fa4   :  { %2600 = vrot.lane.b32.xlu0 %v2598_v26, %s6206_s25 }
0x4016   :  { %v2601_v48 = vpop.permute.xlu0 %2600 }
0x4017   :  { %v6981_v49 = vadd.f32 %v2601_v48, %v2593_v27 }
0x4019   :  { %5749 = vtanh.f32 %v6981_v49 }
0x401f   :  { %v5750_v50 = vpop.eup %5749 }
0x4020   :  { %2606 = vrot.lane.b32.xlu1 %v5750_v50, %s6206_s25 }
0x4092   :  { %v2607_v28 = vpop.permute.xlu1 %2606 }
0x4093   :  { %v2609_v23 = vmul.f32 %v2607_v28, %v2590_v12  ;;  %v2724_v12 = vld [vmem:[%s7613_s10] sm:$0x1] }
0x4095   :  { %2616 = vrot.lane.b32.xlu2 %v2609_v23, %s6207_s3 }
0x40ef   :  { %v2617_v24 = vpop.permute.xlu2 %2616 }
0x40f0   :  { %5435 = vmatmul.msk.f32.vlgmr.msra.gmra.mxu2 %vm303_vm12, %v2617_v24 }
0x40f1   :  { %2877 = vmatpush.msra.mxu2 %v6985_v29 }
0x40f3   :  { %2878 = vmatpush.msra.mxu2 %v6987_v31 }
0x40f5   :  { %2879 = vmatpush.msra.mxu2 %v6990_v9 }
0x40f7   :  { %2880 = vmatpush.msra.mxu2 %v6993_v22 }
0x40f8   :  { %5440 = vmatmul.msk.f32.vlgmr.msrb.gmra.mxu2 %vm303_vm12, %v2617_v24 }
0x40f9   :  { %3028 = vmatpush.msrb.mxu2 %v6916_v14 }
0x40fb   :  { %3029 = vmatpush.msrb.mxu2 %v6918_v39 }
0x40fd   :  { %3030 = vmatpush.msrb.mxu2 %v6921_v40 }
0x40ff   :  { %3031 = vmatpush.msrb.mxu2 %v6924_v55 }
0x4173   :  { %v2637_v43 = vpop.f32.mrf.mxu2 }
0x4174   :  { %v2638_v44 = vadd.f32 %v2637_v43, %v2614_v25 }
0x4176   :  { %2640 = vst [vmem:[#allocation19 + $0x4] sm:$0x1] %v2638_v44  ;;  %v2641_v47 = vsel %vm854_vm5, %v2638_v44, -inf }
0x4177   :  { %2642 = vmax.xlane.f32.xlu0 %v2641_v47 }
0x41ea   :  { %v2643_v56 = vpop.xlane.xlu0 %2642 }
0x41eb   :  { %vm2644_vm3 = vcmp.eq.f32.partialorder %v2638_v44, %v2643_v56 }
0x41ec   :  { %v2645_v57 = vsel %vm2644_vm3, %v6358_v6, 128 }
0x41ed   :  { %v2646_v58 = vsel %vm854_vm5, %v2645_v57, 2147483647 }
0x41ee   :  { %v2648_v59 = vshra.s32 %v2646_v58, 16  ;;  %v2647_v16 = vand.u32 65535, %v2646_v58 }
0x41f0   :  { %v2650_v30 = vcvt.s32.f32 %v2648_v59  ;;  %v2649_v7 = vcvt.s32.f32 %v2647_v16 }
0x41f2   :  { %2651 = vmin.xlane.f32.xlu1 %v2650_v30 }
0x4265   :  { %v2652_v17 = vpop.xlane.xlu1 %2651 }
0x4266   :  { %vm2653_vm4 = vcmp.eq.f32.partialorder %v2650_v30, %v2652_v17  ;;  %v2658_v37 = vcvt.f32.s32 %v2652_v17 }
0x4267   :  { %v2654_v46 = vsel %vm2653_vm4, %v2649_v7, inf }
0x4268   :  { %2655 = vmin.xlane.f32.xlu2 %v2654_v46  ;;  %v2659_v5 = vshll.u32 %v2658_v37, 16 }
0x42db   :  { %v2656_v19 = vpop.xlane.xlu2 %2655 }
0x42dc   :  { %v2657_v20 = vcvt.f32.s32 %v2656_v19 }
0x42de   :  { %v2660_v1 = vadd.s32 %v2659_v5, %v2657_v20 }
0x42e0   :  { %vm2661_vm6 = vcmp.eq.s32.totalorder %v6358_v6, %v2660_v1 }
0x42e1   :  { %5438 = vmatmul.msk.f32.vlgmr.msra.gmra.mxu1 %vm2661_vm6, %v6208_v18 }
0x435e   :  { %v2721_v21 = vpop.f32.mrf.mxu1 }
0x435f   :  { %v2722_v26 = vadd.f32 %v2721_v21, %v2701_v8 }
0x4361   :  { %v2725_v27 = vadd.f32 %v2724_v12, %v2722_v26 }
0x4363   :  { %5751 = vtanh.f32 %v2725_v27  ;;  %v5439_v50 = vmul.f32 -1.442695, %v2725_v27 }
0x4365   :  { %5753 = vpow2.f32 %v5439_v50 }
0x4369   :  { %v5752_v48 = vpop.eup %5751 }
0x436a   :  { %2748 = vrot.lane.b32.xlu0 %v5752_v48, %s6206_s25 }
0x436b   :  { %v5754_v28 = vpop.eup %5753 }
0x436c   :  { %v2729_v23 = vadd.f32 1.0, %v5754_v28 }
0x436e   :  { %5755 = vrcp.f32 %v2729_v23  ;;  %v2741_v56 = vand.u32 2147483648, %v2729_v23  ;;  %vm2735_vm8 = vweird.f32 %v2729_v23  ;;  %v2739_v57 = vand.u32 2147483647, %v2729_v23 }
0x4370   :  { %v2742_v59 = vor.u32 1.1754944e-38, %v2741_v56  ;;  %vm2740_vm10 = vcmp.eq.f32.partialorder %v2739_v57, 8.507059e+37 }
0x4374   :  { %v5756_v24 = vpop.eup %5755 }
0x4375   :  { %v2731_v25 = vmul.f32 %v5756_v24, %v2729_v23  ;;  %vm2736_vm7 = vweird.f32 %v5756_v24 }
0x4376   :  { %vm2737_vm9 = vmor %vm2735_vm8, %vm2736_vm7 }
0x4377   :  { %v2732_v43 = vsub.f32 1.0, %v2731_v25 }
0x4379   :  { %v2733_v44 = vmul.f32 %v5756_v24, %v2732_v43 }
0x437b   :  { %v2734_v47 = vadd.f32 %v5756_v24, %v2733_v44 }
0x437d   :  { %v2738_v58 = vsel %vm2737_vm9, %v5756_v24, %v2734_v47 }
0x437e   :  { %v2743_v60 = vsel %vm2740_vm10, %v2742_v59, %v2738_v58 }
0x437f   :  { %v2746_v62 = vmul.f32 %v2743_v60, %v6944_v0  ;;  %v2788_v0 = vpop.f32.mrf.mxu2 }
0x43dc   :  { %v2749_v30 = vpop.permute.xlu0 %2748 }
0x43dd   :  { %v2751_v61 = vmul.f32 %v2749_v30, %v2743_v60 }
0x43df   :  { %2753 = vrot.lane.b32.xlu2 %v2751_v61, %s6206_s25 }
0x4439   :  { %v2754_v63 = vpop.permute.xlu2 %2753 }
0x443a   :  { %v7026_v10 = vadd.f32 %v2754_v63, %v2746_v62  ;;  %v2969_v63 = vld [vmem:[%s7613_s10] sm:$0x1] }
0x443c   :  { %5757 = vtanh.f32 %v7026_v10 }
0x4442   :  { %v5758_v45 = vpop.eup %5757 }
0x4443   :  { %2759 = vrot.lane.b32.xlu1 %v5758_v45, %s6206_s25 }
0x44b5   :  { %v2760_v38 = vpop.permute.xlu1 %2759 }
0x44b6   :  { %v2762_v2 = vmul.f32 %v2760_v38, %v2743_v60 }
0x44b8   :  { %2792 = vrot.lane.b32.xlu0 %v2762_v2, %s6207_s3 }
0x452a   :  { %v2793_v3 = vpop.permute.xlu0 %2792 }
0x452b   :  { %5441 = vmatmul.msk.f32.vlgmr.msrb.gmra.mxu3 %vm303_vm12, %v2793_v3 }
0x452c   :  { %3053 = vmatpush.msrb.mxu3 %v6948_v11 }
0x452e   :  { %3054 = vmatpush.msrb.mxu3 %v6950_v13 }
0x4530   :  { %3055 = vmatpush.msrb.mxu3 %v6953_v35 }
0x4532   :  { %3056 = vmatpush.msrb.mxu3 %v6956_v36 }
0x4533   :  { %5445 = vmatmul.msk.f32.vlgmr.msra.gmra.mxu3 %vm303_vm12, %v2793_v3 }
0x4534   :  { %3186 = vmatpush.msra.mxu3 %v6891_v32 }
0x4536   :  { %3187 = vmatpush.msra.mxu3 %v6893_v34 }
0x4538   :  { %3188 = vmatpush.msra.mxu3 %v6896_v15 }
0x453a   :  { %3189 = vmatpush.msra.mxu3 %v6899_v54 }
0x45ae   :  { %v2813_v4 = vpop.f32.mrf.mxu3 }
0x45af   :  { %v2814_v42 = vadd.f32 %v2813_v4, %v2788_v0 }
0x45b1   :  { %v2817_v33 = vadd.f32 %v2816_v41, %v2814_v42 }
0x45b3   :  { %5759 = vtanh.f32 %v2817_v33  ;;  %v5442_v17 = vmul.f32 -1.442695, %v2817_v33 }
0x45b5   :  { %5761 = vpow2.f32 %v5442_v17 }
0x45b6   :  { %v2946_v61 = vpop.f32.mrf.mxu3 }
0x45b9   :  { %v5760_v16 = vpop.eup %5759 }
0x45ba   :  { %2840 = vrot.lane.b32.xlu2 %v5760_v16, %s6206_s25 }
0x45bb   :  { %v5762_v32 = vpop.eup %5761 }
0x45bc   :  { %v2821_v34 = vadd.f32 1.0, %v5762_v32 }
0x45be   :  { %5763 = vrcp.f32 %v2821_v34  ;;  %v2833_v52 = vand.u32 2147483648, %v2821_v34  ;;  %vm2827_vm13 = vweird.f32 %v2821_v34  ;;  %v2831_v53 = vand.u32 2147483647, %v2821_v34 }
0x45c0   :  { %v2834_v19 = vor.u32 1.1754944e-38, %v2833_v52  ;;  %vm2832_vm15 = vcmp.eq.f32.partialorder %v2831_v53, 8.507059e+37 }
0x45c4   :  { %v5764_v15 = vpop.eup %5763 }
0x45c5   :  { %v2823_v7 = vmul.f32 %v5764_v15, %v2821_v34  ;;  %vm2828_vm11 = vweird.f32 %v5764_v15 }
0x45c6   :  { %vm2829_vm14 = vmor %vm2827_vm13, %vm2828_vm11 }
0x45c7   :  { %v2824_v54 = vsub.f32 1.0, %v2823_v7 }
0x45c9   :  { %v2825_v46 = vmul.f32 %v5764_v15, %v2824_v54 }
0x45cb   :  { %v2826_v51 = vadd.f32 %v5764_v15, %v2825_v46 }
0x45cd   :  { %v2830_v37 = vsel %vm2829_vm14, %v5764_v15, %v2826_v51 }
0x45ce   :  { %v2835_v20 = vsel %vm2832_vm15, %v2834_v19, %v2830_v37 }
0x45cf   :  { %v2838_v8 = vmul.f32 %v2835_v20, %v6981_v49  ;;  %v2859_v49 = vld [vmem:[%s7618_s15] sm:$0x1] }
0x4614   :  { %v2841_v5 = vpop.permute.xlu2 %2840 }
0x4615   :  { %v2843_v1 = vmul.f32 %v2841_v5, %v2835_v20 }
0x4617   :  { %2845 = vrot.lane.b32.xlu0 %v2843_v1, %s6206_s25 }
0x4689   :  { %v2846_v21 = vpop.permute.xlu0 %2845 }
0x468a   :  { %v7047_v12 = vadd.f32 %v2846_v21, %v2838_v8  ;;  %v3061_v21 = vld [vmem:[%s7616_s13] sm:$0x1] }
0x468c   :  { %5765 = vtanh.f32 %v7047_v12 }
0x4692   :  { %v5766_v26 = vpop.eup %5765 }
0x4693   :  { %2851 = vrot.lane.b32.xlu1 %v5766_v26, %s6206_s25 }
0x4705   :  { %v2852_v27 = vpop.permute.xlu1 %2851 }
0x4706   :  { %v2854_v48 = vmul.f32 %v2852_v27, %v2835_v20 }
0x4708   :  { %2861 = vrot.lane.b32.xlu2 %v2854_v48, %s6207_s3 }
0x4762   :  { %v2862_v50 = vpop.permute.xlu2 %2861 }
0x4763   :  { %5443 = vmatmul.msk.f32.vlgmr.msra.gmra.mxu2 %vm303_vm12, %v2862_v50 }
0x4764   :  { %3122 = vmatpush.msra.mxu2 %v6985_v29 }
0x4766   :  { %3123 = vmatpush.msra.mxu2 %v6987_v31 }
0x4768   :  { %3124 = vmatpush.msra.mxu2 %v6990_v9 }
0x476a   :  { %3125 = vmatpush.msra.mxu2 %v6993_v22 }
0x476b   :  { %5448 = vmatmul.msk.f32.vlgmr.msrb.gmra.mxu2 %vm303_vm12, %v2862_v50 }
0x476c   :  { %3273 = vmatpush.msrb.mxu2 %v6916_v14 }
0x476e   :  { %3274 = vmatpush.msrb.mxu2 %v6918_v39 }
0x4770   :  { %3275 = vmatpush.msrb.mxu2 %v6921_v40 }
0x4772   :  { %3276 = vmatpush.msrb.mxu2 %v6924_v55 }
0x47e6   :  { %v2882_v28 = vpop.f32.mrf.mxu2 }
0x47e7   :  { %v2883_v23 = vadd.f32 %v2882_v28, %v2859_v49 }
0x47e9   :  { %2885 = vst [vmem:[#allocation19 + $0x5] sm:$0x1] %v2883_v23  ;;  %v2886_v24 = vsel %vm854_vm5, %v2883_v23, -inf }
0x47ea   :  { %2887 = vmax.xlane.f32.xlu0 %v2886_v24 }
0x485d   :  { %v2888_v25 = vpop.xlane.xlu0 %2887 }
0x485e   :  { %vm2889_vm0 = vcmp.eq.f32.partialorder %v2883_v23, %v2888_v25 }
0x485f   :  { %v2890_v14 = vsel %vm2889_vm0, %v6358_v6, 128 }
0x4860   :  { %v2891_v39 = vsel %vm854_vm5, %v2890_v14, 2147483647 }
0x4861   :  { %v2893_v43 = vshra.s32 %v2891_v39, 16  ;;  %v2892_v55 = vand.u32 65535, %v2891_v39 }
0x4863   :  { %v2895_v40 = vcvt.s32.f32 %v2893_v43  ;;  %v2894_v47 = vcvt.s32.f32 %v2892_v55 }
0x4865   :  { %2896 = vmin.xlane.f32.xlu1 %v2895_v40 }
0x48d8   :  { %v2897_v44 = vpop.xlane.xlu1 %2896 }
0x48d9   :  { %vm2898_vm1 = vcmp.eq.f32.partialorder %v2895_v40, %v2897_v44  ;;  %v2903_v57 = vcvt.f32.s32 %v2897_v44 }
0x48da   :  { %v2899_v56 = vsel %vm2898_vm1, %v2894_v47, inf }
0x48db   :  { %2900 = vmin.xlane.f32.xlu2 %v2899_v56  ;;  %v2904_v59 = vshll.u32 %v2903_v57, 16 }
0x494e   :  { %v2901_v58 = vpop.xlane.xlu2 %2900 }
0x494f   :  { %v2902_v30 = vcvt.f32.s32 %v2901_v58 }
0x4951   :  { %v2905_v60 = vadd.s32 %v2904_v59, %v2902_v30 }
0x4953   :  { %vm2906_vm2 = vcmp.eq.s32.totalorder %v6358_v6, %v2905_v60 }
0x4954   :  { %5446 = vmatmul.msk.f32.vlgmr.msrb.gmra.mxu0 %vm2906_vm2, %v6208_v18 }
0x49d1   :  { %v2966_v62 = vpop.f32.mrf.mxu0 }
0x49d2   :  { %v2967_v45 = vadd.f32 %v2966_v62, %v2946_v61 }
0x49d4   :  { %v2970_v38 = vadd.f32 %v2969_v63, %v2967_v45 }
0x49d6   :  { %5767 = vtanh.f32 %v2970_v38  ;;  %v5447_v3 = vmul.f32 -1.442695, %v2970_v38 }
0x49d8   :  { %5769 = vpow2.f32 %v5447_v3 }
0x49dc   :  { %v5768_v2 = vpop.eup %5767 }
0x49dd   :  { %2993 = vrot.lane.b32.xlu0 %v5768_v2, %s6206_s25 }
0x49de   :  { %v5770_v0 = vpop.eup %5769 }
0x49df   :  { %v2974_v4 = vadd.f32 1.0, %v5770_v0 }
0x49e1   :  { %5771 = vrcp.f32 %v2974_v4  ;;  %v2986_v32 = vand.u32 2147483648, %v2974_v4  ;;  %vm2980_vm4 = vweird.f32 %v2974_v4  ;;  %v2984_v34 = vand.u32 2147483647, %v2974_v4 }
0x49e3   :  { %v2987_v7 = vor.u32 1.1754944e-38, %v2986_v32  ;;  %vm2985_vm7 = vcmp.eq.f32.partialorder %v2984_v34, 8.507059e+37  ;;  %v3214_v32 = vld [vmem:[%s7613_s10] sm:$0x1] }
0x49e7   :  { %v5772_v41 = vpop.eup %5771 }
0x49e8   :  { %v2976_v42 = vmul.f32 %v5772_v41, %v2974_v4  ;;  %vm2981_vm3 = vweird.f32 %v5772_v41 }
0x49e9   :  { %vm2982_vm6 = vmor %vm2980_vm4, %vm2981_vm3 }
0x49ea   :  { %v2977_v33 = vsub.f32 1.0, %v2976_v42 }
0x49ec   :  { %v2978_v16 = vmul.f32 %v5772_v41, %v2977_v33 }
0x49ee   :  { %v2979_v17 = vadd.f32 %v5772_v41, %v2978_v16 }
0x49f0   :  { %v2983_v15 = vsel %vm2982_vm6, %v5772_v41, %v2979_v17 }
0x49f1   :  { %v2988_v46 = vsel %vm2985_vm7, %v2987_v7, %v2983_v15 }
0x49f2   :  { %v2991_v52 = vmul.f32 %v2988_v46, %v7026_v10  ;;  %v3033_v10 = vpop.f32.mrf.mxu2 }
0x4a4f   :  { %v2994_v54 = vpop.permute.xlu0 %2993 }
0x4a50   :  { %v2996_v51 = vmul.f32 %v2994_v54, %v2988_v46 }
0x4a52   :  { %2998 = vrot.lane.b32.xlu1 %v2996_v51, %s6206_s25 }
0x4ac4   :  { %v2999_v53 = vpop.permute.xlu1 %2998 }
0x4ac5   :  { %v7076_v37 = vadd.f32 %v2999_v53, %v2991_v52 }
0x4ac7   :  { %5773 = vtanh.f32 %v7076_v37 }
0x4acd   :  { %v5774_v19 = vpop.eup %5773 }
0x4ace   :  { %3004 = vrot.lane.b32.xlu2 %v5774_v19, %s6206_s25 }
0x4b28   :  { %v3005_v5 = vpop.permute.xlu2 %3004 }
0x4b29   :  { %v3007_v20 = vmul.f32 %v3005_v5, %v2988_v46 }
0x4b2b   :  { %3037 = vrot.lane.b32.xlu0 %v3007_v20, %s6207_s3 }
0x4b9d   :  { %v3038_v1 = vpop.permute.xlu0 %3037 }
0x4b9e   :  { %5449 = vmatmul.msk.f32.vlgmr.msrb.gmra.mxu3 %vm303_vm12, %v3038_v1 }
0x4b9f   :  { %3298 = vmatpush.msrb.mxu3 %v6948_v11 }
0x4ba1   :  { %3299 = vmatpush.msrb.mxu3 %v6950_v13 }
0x4ba3   :  { %3300 = vmatpush.msrb.mxu3 %v6953_v35 }
0x4ba5   :  { %3301 = vmatpush.msrb.mxu3 %v6956_v36 }
0x4ba6   :  { %5453 = vmatmul.msk.f32.vlgmr.msra.gmra.mxu3 %vm303_vm12, %v3038_v1 }
0x4c21   :  { %v3058_v8 = vpop.f32.mrf.mxu3 }
0x4c22   :  { %v3059_v26 = vadd.f32 %v3058_v8, %v3033_v10 }
0x4c24   :  { %v3062_v27 = vadd.f32 %v3061_v21, %v3059_v26 }
0x4c26   :  { %5775 = vtanh.f32 %v3062_v27  ;;  %v5450_v11 = vmul.f32 -1.442695, %v3062_v27 }
0x4c28   :  { %5777 = vpow2.f32 %v5450_v11 }
0x4c29   :  { %v3191_v16 = vpop.f32.mrf.mxu3 }
0x4c2c   :  { %v5776_v48 = vpop.eup %5775 }
0x4c2d   :  { %3085 = vrot.lane.b32.xlu1 %v5776_v48, %s6206_s25 }
0x4c2e   :  { %v5778_v13 = vpop.eup %5777 }
0x4c2f   :  { %v3066_v35 = vadd.f32 1.0, %v5778_v13 }
0x4c31   :  { %5779 = vrcp.f32 %v3066_v35  ;;  %v3078_v24 = vand.u32 2147483648, %v3066_v35  ;;  %vm3072_vm9 = vweird.f32 %v3066_v35  ;;  %v3076_v25 = vand.u32 2147483647, %v3066_v35 }
0x4c33   :  { %v3079_v39 = vor.u32 1.1754944e-38, %v3078_v24  ;;  %vm3077_vm11 = vcmp.eq.f32.partialorder %v3076_v25, 8.507059e+37  ;;  %v7128_v24 = vld [vmem:[#allocation13 + $0x8] sm:$0xff] }
0x4c37   :  { %v5780_v36 = vpop.eup %5779 }
0x4c38   :  { %v3068_v50 = vmul.f32 %v5780_v36, %v3066_v35  ;;  %vm3073_vm8 = vweird.f32 %v5780_v36 }
0x4c39   :  { %vm3074_vm10 = vmor %vm3072_vm9, %vm3073_vm8 }
0x4c3a   :  { %v3069_v49 = vsub.f32 1.0, %v3068_v50 }
0x4c3c   :  { %v3070_v28 = vmul.f32 %v5780_v36, %v3069_v49 }
0x4c3e   :  { %v3071_v23 = vadd.f32 %v5780_v36, %v3070_v28  ;;  %v7123_v28 = vld [vmem:[#allocation13 + $0x18] sm:$0xff] }
0x4c3f   :  { %3431 = vmatpush.msra.mxu3 %v7123_v28 }
0x4c40   :  { %v3075_v14 = vsel %vm3074_vm10, %v5780_v36, %v3071_v23  ;;  %v7125_v23 = vld [vmem:[#allocation13 + $0x10] sm:$0xff] }
0x4c41   :  { %v3080_v40 = vsel %vm3077_vm11, %v3079_v39, %v3075_v14  ;;  %3432 = vmatpush.msra.mxu3 %v7125_v23 }
0x4c42   :  { %v3083_v44 = vmul.f32 %v3080_v40, %v7047_v12  ;;  %v3104_v12 = vld [vmem:[%s7618_s15] sm:$0x1] }
0x4c43   :  { %3433 = vmatpush.msra.mxu3 %v7128_v24 }
0x4c9f   :  { %v3086_v43 = vpop.permute.xlu1 %3085 }
0x4ca0   :  { %v3088_v55 = vmul.f32 %v3086_v43, %v3080_v40  ;;  %v3306_v43 = vld [vmem:[%s7616_s13] sm:$0x1] }
0x4ca2   :  { %3090 = vrot.lane.b32.xlu0 %v3088_v55, %s6206_s25 }
0x4d14   :  { %v3091_v47 = vpop.permute.xlu0 %3090 }
0x4d15   :  { %v7093_v56 = vadd.f32 %v3091_v47, %v3083_v44 }
0x4d17   :  { %5781 = vtanh.f32 %v7093_v56 }
0x4d1d   :  { %v5782_v57 = vpop.eup %5781 }
0x4d1e   :  { %3096 = vrot.lane.b32.xlu2 %v5782_v57, %s6206_s25 }
0x4d78   :  { %v3097_v58 = vpop.permute.xlu2 %3096 }
0x4d79   :  { %v3099_v59 = vmul.f32 %v3097_v58, %v3080_v40 }
0x4d7b   :  { %3106 = vrot.lane.b32.xlu1 %v3099_v59, %s6207_s3 }
0x4ded   :  { %v3107_v30 = vpop.permute.xlu1 %3106 }
0x4dee   :  { %5451 = vmatmul.msk.f32.vlgmr.msra.gmra.mxu2 %vm303_vm12, %v3107_v30 }
0x4def   :  { %3367 = vmatpush.msra.mxu2 %v6985_v29 }
0x4df1   :  { %3368 = vmatpush.msra.mxu2 %v6987_v31 }
0x4df3   :  { %3369 = vmatpush.msra.mxu2 %v6990_v9 }
0x4df5   :  { %3370 = vmatpush.msra.mxu2 %v6993_v22 }
0x4df6   :  { %5456 = vmatmul.msk.f32.vlgmr.msrb.gmra.mxu2 %vm303_vm12, %v3107_v30 }
0x4e71   :  { %v3127_v60 = vpop.f32.mrf.mxu2 }
0x4e72   :  { %v3128_v61 = vadd.f32 %v3127_v60, %v3104_v12 }
0x4e74   :  { %3130 = vst [vmem:[#allocation19 + $0x6] sm:$0x1] %v3128_v61  ;;  %v3131_v62 = vsel %vm854_vm5, %v3128_v61, -inf }
0x4e75   :  { %3132 = vmax.xlane.f32.xlu0 %v3131_v62 }
0x4e79   :  { %v3278_v14 = vpop.f32.mrf.mxu2 }
0x4ee8   :  { %v3133_v63 = vpop.xlane.xlu0 %3132 }
0x4ee9   :  { %vm3134_vm13 = vcmp.eq.f32.partialorder %v3128_v61, %v3133_v63 }
0x4eea   :  { %v3135_v29 = vsel %vm3134_vm13, %v6358_v6, 128 }
0x4eeb   :  { %v3136_v31 = vsel %vm854_vm5, %v3135_v29, 2147483647 }
0x4eec   :  { %v3138_v9 = vshra.s32 %v3136_v31, 16  ;;  %v3137_v45 = vand.u32 65535, %v3136_v31 }
0x4eee   :  { %v3140_v22 = vcvt.s32.f32 %v3138_v9  ;;  %v3139_v2 = vcvt.s32.f32 %v3137_v45 }
0x4ef0   :  { %3141 = vmin.xlane.f32.xlu2 %v3140_v22 }
0x4f63   :  { %v3142_v38 = vpop.xlane.xlu2 %3141 }
0x4f64   :  { %vm3143_vm14 = vcmp.eq.f32.partialorder %v3140_v22, %v3142_v38  ;;  %v3148_v0 = vcvt.f32.s32 %v3142_v38 }
0x4f65   :  { %v3144_v3 = vsel %vm3143_vm14, %v3139_v2, inf }
0x4f66   :  { %3145 = vmin.xlane.f32.xlu1 %v3144_v3  ;;  %v3149_v41 = vshll.u32 %v3148_v0, 16 }
0x4fd9   :  { %v3146_v4 = vpop.xlane.xlu1 %3145 }
0x4fda   :  { %v3147_v42 = vcvt.f32.s32 %v3146_v4 }
0x4fdc   :  { %v3150_v33 = vadd.s32 %v3149_v41, %v3147_v42  ;;  %v7148_v42 = vld [vmem:[#allocation16 + $0x18] sm:$0xff] }
0x4fdd   :  { %3518 = vmatpush.msrb.mxu2 %v7148_v42 }
0x4fde   :  { %vm3151_vm15 = vcmp.eq.s32.totalorder %v6358_v6, %v3150_v33  ;;  %v7150_v33 = vld [vmem:[#allocation16 + $0x10] sm:$0xff] }
0x4fdf   :  { %5454 = vmatmul.msk.f32.vlgmr.msrb.gmra.mxu1 %vm3151_vm15, %v6208_v18  ;;  %3519 = vmatpush.msrb.mxu2 %v7150_v33 }
0x505c   :  { %v3211_v17 = vpop.f32.mrf.mxu1 }
0x505d   :  { %v3212_v34 = vadd.f32 %v3211_v17, %v3191_v16  ;;  %v7153_v16 = vld [vmem:[#allocation16 + $0x8] sm:$0xff] }
0x505e   :  { %3520 = vmatpush.msrb.mxu2 %v7153_v16 }
0x505f   :  { %v3215_v15 = vadd.f32 %v3214_v32, %v3212_v34  ;;  %v3349_v32 = vld [vmem:[%s7618_s15] sm:$0x1] }
0x5061   :  { %5783 = vtanh.f32 %v3215_v15  ;;  %v5455_v54 = vmul.f32 -1.442695, %v3215_v15 }
0x5063   :  { %5785 = vpow2.f32 %v5455_v54 }
0x5067   :  { %v5784_v7 = vpop.eup %5783 }
0x5068   :  { %3238 = vrot.lane.b32.xlu0 %v5784_v7, %s6206_s25 }
0x5069   :  { %v5786_v46 = vpop.eup %5785 }
0x506a   :  { %v3219_v51 = vadd.f32 1.0, %v5786_v46 }
0x506c   :  { %5787 = vrcp.f32 %v3219_v51  ;;  %v3231_v1 = vand.u32 2147483648, %v3219_v51  ;;  %vm3225_vm1 = vweird.f32 %v3219_v51  ;;  %v3229_v10 = vand.u32 2147483647, %v3219_v51 }
0x506e   :  { %v3232_v21 = vor.u32 1.1754944e-38, %v3231_v1  ;;  %vm3230_vm3 = vcmp.eq.f32.partialorder %v3229_v10, 8.507059e+37 }
0x5072   :  { %v5788_v52 = vpop.eup %5787 }
0x5073   :  { %v3221_v53 = vmul.f32 %v5788_v52, %v3219_v51  ;;  %vm3226_vm0 = vweird.f32 %v5788_v52 }
0x5074   :  { %vm3227_vm2 = vmor %vm3225_vm1, %vm3226_vm0 }
0x5075   :  { %v3222_v19 = vsub.f32 1.0, %v3221_v53 }
0x5077   :  { %v3223_v5 = vmul.f32 %v5788_v52, %v3222_v19 }
0x5079   :  { %v3224_v20 = vadd.f32 %v5788_v52, %v3223_v5 }
0x507b   :  { %v3228_v8 = vsel %vm3227_vm2, %v5788_v52, %v3224_v20 }
0x507c   :  { %v3233_v27 = vsel %vm3230_vm3, %v3232_v21, %v3228_v8 }
0x507d   :  { %v3236_v11 = vmul.f32 %v3233_v27, %v7076_v37  ;;  %v7131_v37 = vld [vmem:[#allocation13] sm:$0xff] }
0x507e   :  { %3434 = vmatpush.msra.mxu3 %v7131_v37 }
0x50da   :  { %v3239_v26 = vpop.permute.xlu0 %3238 }
0x50db   :  { %v3241_v48 = vmul.f32 %v3239_v26, %v3233_v27 }
0x50dd   :  { %3243 = vrot.lane.b32.xlu2 %v3241_v48, %s6206_s25 }
0x5137   :  { %v3244_v13 = vpop.permute.xlu2 %3243 }
0x5138   :  { %v7118_v35 = vadd.f32 %v3244_v13, %v3236_v11  ;;  %v3459_v13 = vld [vmem:[%s7613_s10] sm:$0x1] }
0x513a   :  { %5789 = vtanh.f32 %v7118_v35 }
0x5140   :  { %v5790_v36 = vpop.eup %5789 }
0x5141   :  { %3249 = vrot.lane.b32.xlu1 %v5790_v36, %s6206_s25 }
0x51b3   :  { %v3250_v50 = vpop.permute.xlu1 %3249 }
0x51b4   :  { %v3252_v49 = vmul.f32 %v3250_v50, %v3233_v27 }
0x51b6   :  { %3282 = vrot.lane.b32.xlu0 %v3252_v49, %s6207_s3 }
0x5228   :  { %v3283_v25 = vpop.permute.xlu0 %3282 }
0x5229   :  { %5457 = vmatmul.msk.f32.vlgmr.msrb.gmra.mxu3 %vm303_vm12, %v3283_v25 }
0x5231   :  { %5461 = vmatmul.msk.f32.vlgmr.msra.gmra.mxu3 %vm303_vm12, %v3283_v25 }
0x52ac   :  { %v3303_v39 = vpop.f32.mrf.mxu3 }
0x52ad   :  { %v3304_v40 = vadd.f32 %v3303_v39, %v3278_v14 }
0x52af   :  { %v3307_v55 = vadd.f32 %v3306_v43, %v3304_v40 }
0x52b1   :  { %5791 = vtanh.f32 %v3307_v55  ;;  %v5458_v47 = vmul.f32 -1.442695, %v3307_v55 }
0x52b3   :  { %5793 = vpow2.f32 %v5458_v47 }
0x52b4   :  { %v3436_v48 = vpop.f32.mrf.mxu3 }
0x52b7   :  { %v5792_v44 = vpop.eup %5791 }
0x52b8   :  { %3330 = vrot.lane.b32.xlu2 %v5792_v44, %s6206_s25 }
0x52b9   :  { %v5794_v57 = vpop.eup %5793 }
0x52ba   :  { %v3311_v58 = vadd.f32 1.0, %v5794_v57 }
0x52bc   :  { %5795 = vrcp.f32 %v3311_v58  ;;  %v3323_v62 = vand.u32 2147483648, %v3311_v58  ;;  %vm3317_vm6 = vweird.f32 %v3311_v58  ;;  %v3321_v63 = vand.u32 2147483647, %v3311_v58 }
0x52be   :  { %v3324_v31 = vor.u32 1.1754944e-38, %v3323_v62  ;;  %vm3322_vm8 = vcmp.eq.f32.partialorder %v3321_v63, 8.507059e+37 }
0x52c2   :  { %v5796_v59 = vpop.eup %5795 }
0x52c3   :  { %v3313_v30 = vmul.f32 %v5796_v59, %v3311_v58  ;;  %vm3318_vm4 = vweird.f32 %v5796_v59 }
0x52c4   :  { %vm3319_vm7 = vmor %vm3317_vm6, %vm3318_vm4 }
0x52c5   :  { %v3314_v12 = vsub.f32 1.0, %v3313_v30 }
0x52c7   :  { %v3315_v60 = vmul.f32 %v5796_v59, %v3314_v12 }
0x52c9   :  { %v3316_v61 = vadd.f32 %v5796_v59, %v3315_v60 }
0x52cb   :  { %v3320_v29 = vsel %vm3319_vm7, %v5796_v59, %v3316_v61 }
0x52cc   :  { %v3325_v22 = vsel %vm3322_vm8, %v3324_v31, %v3320_v29 }
0x52cd   :  { %v3328_v38 = vmul.f32 %v3325_v22, %v7093_v56  ;;  %v7156_v56 = vld [vmem:[#allocation16] sm:$0xff] }
0x52ce   :  { %3521 = vmatpush.msrb.mxu2 %v7156_v56 }
0x5312   :  { %v3331_v9 = vpop.permute.xlu2 %3330 }
0x5313   :  { %v3333_v45 = vmul.f32 %v3331_v9, %v3325_v22  ;;  %v7180_v9 = vld [vmem:[#allocation15 + $0x18] sm:$0xff] }
0x5314   :  { %3543 = vmatpush.msrb.mxu3 %v7180_v9 }
0x5315   :  { %3335 = vrot.lane.b32.xlu0 %v3333_v45, %s6206_s25  ;;  %v7185_v45 = vld [vmem:[#allocation15 + $0x8] sm:$0xff] }
0x5387   :  { %v3336_v2 = vpop.permute.xlu0 %3335 }
0x5388   :  { %v7143_v3 = vadd.f32 %v3336_v2, %v3328_v38  ;;  %v7188_v38 = vld [vmem:[#allocation15] sm:$0xff] }
0x538a   :  { %5797 = vtanh.f32 %v7143_v3 }
0x5390   :  { %v5798_v0 = vpop.eup %5797 }
0x5391   :  { %3341 = vrot.lane.b32.xlu1 %v5798_v0, %s6206_s25 }
0x5403   :  { %v3342_v4 = vpop.permute.xlu1 %3341 }
0x5404   :  { %v3344_v41 = vmul.f32 %v3342_v4, %v3325_v22  ;;  %v7182_v22 = vld [vmem:[#allocation15 + $0x10] sm:$0xff] }
0x5405   :  { %3544 = vmatpush.msrb.mxu3 %v7182_v22 }
0x5406   :  { %3351 = vrot.lane.b32.xlu2 %v3344_v41, %s6207_s3 }
0x5407   :  { %3545 = vmatpush.msrb.mxu3 %v7185_v45 }
0x5409   :  { %3546 = vmatpush.msrb.mxu3 %v7188_v38 }
0x540b   :  { %3676 = vmatpush.msra.mxu3 %v7123_v28 }
0x540d   :  { %3677 = vmatpush.msra.mxu3 %v7125_v23 }
0x540f   :  { %3678 = vmatpush.msra.mxu3 %v7128_v24 }
0x5411   :  { %3679 = vmatpush.msra.mxu3 %v7131_v37 }
0x5460   :  { %v3352_v17 = vpop.permute.xlu2 %3351 }
0x5461   :  { %5459 = vmatmul.msk.f32.vlgmr.msra.gmra.mxu2 %vm303_vm12, %v3352_v17 }
0x5469   :  { %5464 = vmatmul.msk.f32.vlgmr.msrb.gmra.mxu2 %vm303_vm12, %v3352_v17  ;;  %v3551_v17 = vld [vmem:[%s7616_s13] sm:$0x1] }
0x54e4   :  { %v3372_v34 = vpop.f32.mrf.mxu2 }
0x54e5   :  { %v3373_v15 = vadd.f32 %v3372_v34, %v3349_v32 }
0x54e7   :  { %3375 = vst [vmem:[#allocation19 + $0x7] sm:$0x1] %v3373_v15  ;;  %v3376_v7 = vsel %vm854_vm5, %v3373_v15, -inf }
0x54e8   :  { %3377 = vmax.xlane.f32.xlu0 %v3376_v7 }
0x54ec   :  { %v3523_v4 = vpop.f32.mrf.mxu2 }
0x555b   :  { %v3378_v54 = vpop.xlane.xlu0 %3377 }
0x555c   :  { %vm3379_vm9 = vcmp.eq.f32.partialorder %v3373_v15, %v3378_v54 }
0x555d   :  { %v3380_v46 = vsel %vm3379_vm9, %v6358_v6, 128 }
0x555e   :  { %v3381_v51 = vsel %vm854_vm5, %v3380_v46, 2147483647 }
0x555f   :  { %v3383_v52 = vshra.s32 %v3381_v51, 16  ;;  %v3382_v19 = vand.u32 65535, %v3381_v51 }
0x5561   :  { %v3385_v53 = vcvt.s32.f32 %v3383_v52  ;;  %v3384_v20 = vcvt.s32.f32 %v3382_v19 }
0x5563   :  { %3386 = vmin.xlane.f32.xlu1 %v3385_v53 }
0x55d6   :  { %v3387_v5 = vpop.xlane.xlu1 %3386 }
0x55d7   :  { %vm3388_vm10 = vcmp.eq.f32.partialorder %v3385_v53, %v3387_v5  ;;  %v3393_v10 = vcvt.f32.s32 %v3387_v5 }
0x55d8   :  { %v3389_v1 = vsel %vm3388_vm10, %v3384_v20, inf }
0x55d9   :  { %3390 = vmin.xlane.f32.xlu2 %v3389_v1  ;;  %v3394_v21 = vshll.u32 %v3393_v10, 16 }
0x564c   :  { %v3391_v8 = vpop.xlane.xlu2 %3390 }
0x564d   :  { %v3392_v26 = vcvt.f32.s32 %v3391_v8 }
0x564f   :  { %v3395_v27 = vadd.s32 %v3394_v21, %v3392_v26 }
0x5651   :  { %vm3396_vm11 = vcmp.eq.s32.totalorder %v6358_v6, %v3395_v27 }
0x5652   :  { %5462 = vmatmul.msk.f32.vlgmr.msra.gmra.mxu0 %vm3396_vm11, %v6208_v18 }
0x56cf   :  { %v3456_v11 = vpop.f32.mrf.mxu0 }
0x56d0   :  { %v3457_v36 = vadd.f32 %v3456_v11, %v3436_v48 }
0x56d2   :  { %v3460_v50 = vadd.f32 %v3459_v13, %v3457_v36 }
0x56d4   :  { %5799 = vtanh.f32 %v3460_v50  ;;  %v5463_v25 = vmul.f32 -1.442695, %v3460_v50  ;;  %v7217_v50 = vld [vmem:[#allocation18 + $0x18] sm:$0xff] }
0x56d5   :  { %3612 = vmatpush.msra.mxu2 %v7217_v50 }
0x56d6   :  { %5801 = vpow2.f32 %v5463_v25  ;;  %v7222_v25 = vld [vmem:[#allocation18 + $0x8] sm:$0xff] }
0x56da   :  { %v5800_v49 = vpop.eup %5799 }
0x56db   :  { %3483 = vrot.lane.b32.xlu0 %v5800_v49, %s6206_s25  ;;  %v7219_v49 = vld [vmem:[#allocation18 + $0x10] sm:$0xff] }
0x56dc   :  { %v5802_v14 = vpop.eup %5801  ;;  %3613 = vmatpush.msra.mxu2 %v7219_v49 }
0x56dd   :  { %v3464_v39 = vadd.f32 1.0, %v5802_v14  ;;  %v7225_v14 = vld [vmem:[#allocation18] sm:$0xff] }
0x56de   :  { %3614 = vmatpush.msra.mxu2 %v7222_v25 }
0x56df   :  { %5803 = vrcp.f32 %v3464_v39  ;;  %v3476_v57 = vand.u32 2147483648, %v3464_v39  ;;  %vm3470_vm14 = vweird.f32 %v3464_v39  ;;  %v3474_v58 = vand.u32 2147483647, %v3464_v39 }
0x56e0   :  { %3615 = vmatpush.msra.mxu2 %v7225_v14 }
0x56e1   :  { %v3477_v30 = vor.u32 1.1754944e-38, %v3476_v57  ;;  %vm3475_vm0 = vcmp.eq.f32.partialorder %v3474_v58, 8.507059e+37 }
0x56e2   :  { %3763 = vmatpush.msrb.mxu2 %v7148_v42 }
0x56e4   :  { %3764 = vmatpush.msrb.mxu2 %v7150_v33 }
0x56e5   :  { %v5804_v43 = vpop.eup %5803 }
0x56e6   :  { %v3466_v40 = vmul.f32 %v5804_v43, %v3464_v39  ;;  %vm3471_vm13 = vweird.f32 %v5804_v43  ;;  %3765 = vmatpush.msrb.mxu2 %v7153_v16 }
0x56e7   :  { %vm3472_vm15 = vmor %vm3470_vm14, %vm3471_vm13 }
0x56e8   :  { %v3467_v55 = vsub.f32 1.0, %v3466_v40  ;;  %3766 = vmatpush.msrb.mxu2 %v7156_v56  ;;  %v3594_v40 = vld [vmem:[%s7618_s15] sm:$0x1] }
0x56ea   :  { %v3468_v44 = vmul.f32 %v5804_v43, %v3467_v55 }
0x56ec   :  { %v3469_v47 = vadd.f32 %v5804_v43, %v3468_v44 }
0x56ee   :  { %v3473_v59 = vsel %vm3472_vm15, %v5804_v43, %v3469_v47 }
0x56ef   :  { %v3478_v60 = vsel %vm3475_vm0, %v3477_v30, %v3473_v59 }
0x56f0   :  { %v3481_v62 = vmul.f32 %v3478_v60, %v7118_v35 }
0x574d   :  { %v3484_v12 = vpop.permute.xlu0 %3483 }
0x574e   :  { %v3486_v61 = vmul.f32 %v3484_v12, %v3478_v60 }
0x5750   :  { %3488 = vrot.lane.b32.xlu1 %v3486_v61, %s6206_s25  ;;  %v3658_v61 = vld [vmem:[#allocation12 + $0x70] sm:$0xff] }
0x57c2   :  { %v3489_v63 = vpop.permute.xlu1 %3488 }
0x57c3   :  { %v7176_v29 = vadd.f32 %v3489_v63, %v3481_v62  ;;  %v3657_v62 = vld [vmem:[#allocation12 + $0x68] sm:$0xff]  ;;  %v3656_v63 = vld [vmem:[#allocation12 + $0x60] sm:$0xff] }
0x57c5   :  { %5805 = vtanh.f32 %v7176_v29 }
0x57cb   :  { %v5806_v31 = vpop.eup %5805 }
0x57cc   :  { %3494 = vrot.lane.b32.xlu2 %v5806_v31, %s6206_s25  ;;  %v3655_v31 = vld [vmem:[#allocation12 + $0x58] sm:$0xff] }
0x5826   :  { %v3495_v35 = vpop.permute.xlu2 %3494 }
0x5827   :  { %v3497_v2 = vmul.f32 %v3495_v35, %v3478_v60  ;;  %v3659_v60 = vld [vmem:[#allocation12 + $0x78] sm:$0xff]  ;;  %v3654_v35 = vld [vmem:[#allocation12 + $0x50] sm:$0xff] }
0x5828   :  { %3684 = vmatpush.msra.mxu1 %v3659_v60  ;;  %3929 = vmatpush.msrb.mxu0 %v3659_v60 }
0x5829   :  { %3527 = vrot.lane.b32.xlu0 %v3497_v2, %s6207_s3  ;;  %v3653_v2 = vld [vmem:[#allocation12 + $0x48] sm:$0xff] }
0x582a   :  { %3685 = vmatpush.msra.mxu1 %v3658_v61  ;;  %3930 = vmatpush.msrb.mxu0 %v3658_v61 }
0x582c   :  { %3686 = vmatpush.msra.mxu1 %v3657_v62  ;;  %3931 = vmatpush.msrb.mxu0 %v3657_v62 }
0x582e   :  { %3687 = vmatpush.msra.mxu1 %v3656_v63  ;;  %3932 = vmatpush.msrb.mxu0 %v3656_v63 }
0x5830   :  { %3688 = vmatpush.msra.mxu1 %v3655_v31  ;;  %3933 = vmatpush.msrb.mxu0 %v3655_v31 }
0x5832   :  { %3689 = vmatpush.msra.mxu1 %v3654_v35  ;;  %3934 = vmatpush.msrb.mxu0 %v3654_v35 }
0x5834   :  { %3690 = vmatpush.msra.mxu1 %v3653_v2  ;;  %3935 = vmatpush.msrb.mxu0 %v3653_v2 }
0x589b   :  { %v3528_v0 = vpop.permute.xlu0 %3527 }
0x589c   :  { %5465 = vmatmul.msk.f32.vlgmr.msrb.gmra.mxu3 %vm303_vm12, %v3528_v0 }
0x589d   :  { %3788 = vmatpush.msrb.mxu3 %v7180_v9 }
0x589f   :  { %3789 = vmatpush.msrb.mxu3 %v7182_v22 }
0x58a1   :  { %3790 = vmatpush.msrb.mxu3 %v7185_v45 }
0x58a3   :  { %3791 = vmatpush.msrb.mxu3 %v7188_v38 }
0x58a4   :  { %5469 = vmatmul.msk.f32.vlgmr.msra.gmra.mxu3 %vm303_vm12, %v3528_v0  ;;  %v3652_v0 = vld [vmem:[#allocation12 + $0x40] sm:$0xff] }
0x58a5   :  { %3921 = vmatpush.msra.mxu3 %v7123_v28  ;;  %3691 = vmatpush.msra.mxu1 %v3652_v0 }
0x58a6   :  { %3936 = vmatpush.msrb.mxu0 %v3652_v0 }
0x58a7   :  { %3922 = vmatpush.msra.mxu3 %v7125_v23 }
0x58a9   :  { %3923 = vmatpush.msra.mxu3 %v7128_v24 }
0x58ab   :  { %3924 = vmatpush.msra.mxu3 %v7131_v37 }
0x591f   :  { %v3548_v41 = vpop.f32.mrf.mxu3 }
0x5920   :  { %v3549_v32 = vadd.f32 %v3548_v41, %v3523_v4  ;;  %v3651_v4 = vld [vmem:[#allocation12 + $0x38] sm:$0xff]  ;;  %v3650_v41 = vld [vmem:[#allocation12 + $0x30] sm:$0xff] }
0x5921   :  { %3692 = vmatpush.msra.mxu1 %v3651_v4  ;;  %3937 = vmatpush.msrb.mxu0 %v3651_v4 }
0x5922   :  { %v3552_v34 = vadd.f32 %v3551_v17, %v3549_v32  ;;  %v3649_v17 = vld [vmem:[#allocation12 + $0x28] sm:$0xff]  ;;  %v3648_v32 = vld [vmem:[#allocation12 + $0x20] sm:$0xff] }
0x5923   :  { %3693 = vmatpush.msra.mxu1 %v3650_v41  ;;  %3938 = vmatpush.msrb.mxu0 %v3650_v41 }
0x5924   :  { %5807 = vtanh.f32 %v3552_v34  ;;  %v5466_v7 = vmul.f32 -1.442695, %v3552_v34  ;;  %v3647_v34 = vld [vmem:[#allocation12 + $0x18] sm:$0xff] }
0x5925   :  { %3694 = vmatpush.msra.mxu1 %v3649_v17  ;;  %3939 = vmatpush.msrb.mxu0 %v3649_v17 }
0x5926   :  { %5809 = vpow2.f32 %v5466_v7 }
0x5927   :  { %3695 = vmatpush.msra.mxu1 %v3648_v32  ;;  %3940 = vmatpush.msrb.mxu0 %v3648_v32 }
0x5929   :  { %3696 = vmatpush.msra.mxu1 %v3647_v34  ;;  %3941 = vmatpush.msrb.mxu0 %v3647_v34 }
0x592a   :  { %v5808_v15 = vpop.eup %5807 }
0x592b   :  { %3575 = vrot.lane.b32.xlu0 %v5808_v15, %s6206_s25 }
0x592c   :  { %v5810_v54 = vpop.eup %5809 }
0x592d   :  { %v3556_v46 = vadd.f32 1.0, %v5810_v54 }
0x592f   :  { %5811 = vrcp.f32 %v3556_v46  ;;  %v3568_v20 = vand.u32 2147483648, %v3556_v46  ;;  %vm3562_vm2 = vweird.f32 %v3556_v46  ;;  %v3566_v1 = vand.u32 2147483647, %v3556_v46 }
0x5931   :  { %v3569_v8 = vor.u32 1.1754944e-38, %v3568_v20  ;;  %vm3567_vm4 = vcmp.eq.f32.partialorder %v3566_v1, 8.507059e+37 }
0x5935   :  { %v5812_v51 = vpop.eup %5811 }
0x5936   :  { %v3558_v52 = vmul.f32 %v5812_v51, %v3556_v46  ;;  %vm3563_vm1 = vweird.f32 %v5812_v51 }
0x5937   :  { %vm3564_vm3 = vmor %vm3562_vm2, %vm3563_vm1 }
0x5938   :  { %v3559_v53 = vsub.f32 1.0, %v3558_v52  ;;  %v3645_v52 = vld [vmem:[#allocation12 + $0x8] sm:$0xff] }
0x593a   :  { %v3560_v19 = vmul.f32 %v5812_v51, %v3559_v53  ;;  %v3644_v53 = vld [vmem:[#allocation12] sm:$0xff] }
0x593c   :  { %v3561_v5 = vadd.f32 %v5812_v51, %v3560_v19 }
0x593e   :  { %v3565_v10 = vsel %vm3564_vm3, %v5812_v51, %v3561_v5  ;;  %v3646_v51 = vld [vmem:[#allocation12 + $0x10] sm:$0xff] }
0x593f   :  { %v3570_v26 = vsel %vm3567_vm4, %v3569_v8, %v3565_v10  ;;  %3697 = vmatpush.msra.mxu1 %v3646_v51  ;;  %3942 = vmatpush.msrb.mxu0 %v3646_v51  ;;  %v3681_v8 = vpop.f32.mrf.mxu3 }
0x5940   :  { %v3573_v48 = vmul.f32 %v3570_v26, %v7143_v3 }
0x5941   :  { %3698 = vmatpush.msra.mxu1 %v3645_v52  ;;  %3943 = vmatpush.msrb.mxu0 %v3645_v52 }
0x5943   :  { %3699 = vmatpush.msra.mxu1 %v3644_v53  ;;  %3944 = vmatpush.msrb.mxu0 %v3644_v53 }
0x5945   :  { %4174 = vmatpush.msrb.mxu1 %v3659_v60  ;;  %4419 = vmatpush.msra.mxu0 %v3659_v60 }
0x5947   :  { %4175 = vmatpush.msrb.mxu1 %v3658_v61  ;;  %4420 = vmatpush.msra.mxu0 %v3658_v61 }
0x5949   :  { %4176 = vmatpush.msrb.mxu1 %v3657_v62  ;;  %4421 = vmatpush.msra.mxu0 %v3657_v62 }
0x594b   :  { %4177 = vmatpush.msrb.mxu1 %v3656_v63  ;;  %4422 = vmatpush.msra.mxu0 %v3656_v63 }
0x594d   :  { %4178 = vmatpush.msrb.mxu1 %v3655_v31  ;;  %4423 = vmatpush.msra.mxu0 %v3655_v31 }
0x594f   :  { %4179 = vmatpush.msrb.mxu1 %v3654_v35  ;;  %4424 = vmatpush.msra.mxu0 %v3654_v35 }
0x5951   :  { %4180 = vmatpush.msrb.mxu1 %v3653_v2  ;;  %4425 = vmatpush.msra.mxu0 %v3653_v2 }
0x5953   :  { %4181 = vmatpush.msrb.mxu1 %v3652_v0  ;;  %4426 = vmatpush.msra.mxu0 %v3652_v0 }
0x5955   :  { %4182 = vmatpush.msrb.mxu1 %v3651_v4  ;;  %4427 = vmatpush.msra.mxu0 %v3651_v4 }
0x5957   :  { %4183 = vmatpush.msrb.mxu1 %v3650_v41  ;;  %4428 = vmatpush.msra.mxu0 %v3650_v41 }
0x5959   :  { %4184 = vmatpush.msrb.mxu1 %v3649_v17  ;;  %4429 = vmatpush.msra.mxu0 %v3649_v17  ;;  %v3796_v17 = vld [vmem:[%s7616_s13] sm:$0x1] }
0x595b   :  { %4185 = vmatpush.msrb.mxu1 %v3648_v32  ;;  %4430 = vmatpush.msra.mxu0 %v3648_v32 }
0x595d   :  { %4186 = vmatpush.msrb.mxu1 %v3647_v34  ;;  %4431 = vmatpush.msra.mxu0 %v3647_v34 }
0x595f   :  { %4187 = vmatpush.msrb.mxu1 %v3646_v51  ;;  %4432 = vmatpush.msra.mxu0 %v3646_v51 }
0x5961   :  { %4188 = vmatpush.msrb.mxu1 %v3645_v52  ;;  %4433 = vmatpush.msra.mxu0 %v3645_v52 }
0x5963   :  { %4189 = vmatpush.msrb.mxu1 %v3644_v53  ;;  %4434 = vmatpush.msra.mxu0 %v3644_v53 }
0x599d   :  { %v3576_v21 = vpop.permute.xlu0 %3575 }
0x599e   :  { %v3578_v27 = vmul.f32 %v3576_v21, %v3570_v26 }
0x59a0   :  { %3580 = vrot.lane.b32.xlu1 %v3578_v27, %s6206_s25 }
0x5a12   :  { %v3581_v11 = vpop.permute.xlu1 %3580 }
0x5a13   :  { %v7213_v13 = vadd.f32 %v3581_v11, %v3573_v48 }
0x5a15   :  { %5813 = vtanh.f32 %v7213_v13 }
0x5a1b   :  { %v5814_v36 = vpop.eup %5813 }
0x5a1c   :  { %3586 = vrot.lane.b32.xlu2 %v5814_v36, %s6206_s25 }
0x5a76   :  { %v3587_v3 = vpop.permute.xlu2 %3586 }
0x5a77   :  { %v3589_v39 = vmul.f32 %v3587_v3, %v3570_v26  ;;  %v3704_v26 = vld [vmem:[%s7613_s10] sm:$0x1] }
0x5a79   :  { %3596 = vrot.lane.b32.xlu0 %v3589_v39, %s6207_s3 }
0x5aeb   :  { %v3597_v43 = vpop.permute.xlu0 %3596 }
0x5aec   :  { %5467 = vmatmul.msk.f32.vlgmr.msra.gmra.mxu2 %vm303_vm12, %v3597_v43 }
0x5aed   :  { %3857 = vmatpush.msra.mxu2 %v7217_v50 }
0x5aef   :  { %3858 = vmatpush.msra.mxu2 %v7219_v49 }
0x5af1   :  { %3859 = vmatpush.msra.mxu2 %v7222_v25 }
0x5af3   :  { %3860 = vmatpush.msra.mxu2 %v7225_v14 }
0x5af4   :  { %5472 = vmatmul.msk.f32.vlgmr.msrb.gmra.mxu2 %vm303_vm12, %v3597_v43 }
0x5af5   :  { %4008 = vmatpush.msrb.mxu2 %v7148_v42 }
0x5af7   :  { %4009 = vmatpush.msrb.mxu2 %v7150_v33 }
0x5af9   :  { %4010 = vmatpush.msrb.mxu2 %v7153_v16 }
0x5afb   :  { %4011 = vmatpush.msrb.mxu2 %v7156_v56 }
0x5b6f   :  { %v3617_v55 = vpop.f32.mrf.mxu2 }
0x5b70   :  { %v3618_v44 = vadd.f32 %v3617_v55, %v3594_v40 }
0x5b72   :  { %3620 = vst [vmem:[#allocation19 + $0x8] sm:$0x1] %v3618_v44  ;;  %v3621_v47 = vsel %vm854_vm5, %v3618_v44, -inf }
0x5b73   :  { %3622 = vmax.xlane.f32.xlu1 %v3621_v47 }
0x5be6   :  { %v3623_v57 = vpop.xlane.xlu1 %3622 }
0x5be7   :  { %vm3624_vm6 = vcmp.eq.f32.partialorder %v3618_v44, %v3623_v57 }
0x5be8   :  { %v3625_v58 = vsel %vm3624_vm6, %v6358_v6, 128 }
0x5be9   :  { %v3626_v59 = vsel %vm854_vm5, %v3625_v58, 2147483647 }
0x5bea   :  { %v3628_v30 = vshra.s32 %v3626_v59, 16  ;;  %v3627_v15 = vand.u32 65535, %v3626_v59 }
0x5bec   :  { %v3630_v12 = vcvt.s32.f32 %v3628_v30  ;;  %v3629_v54 = vcvt.s32.f32 %v3627_v15 }
0x5bee   :  { %3631 = vmin.xlane.f32.xlu2 %v3630_v12 }
0x5c61   :  { %v3632_v7 = vpop.xlane.xlu2 %3631 }
0x5c62   :  { %vm3633_vm7 = vcmp.eq.f32.partialorder %v3630_v12, %v3632_v7  ;;  %v3638_v19 = vcvt.f32.s32 %v3632_v7 }
0x5c63   :  { %v3634_v46 = vsel %vm3633_vm7, %v3629_v54, inf }
0x5c64   :  { %3635 = vmin.xlane.f32.xlu0 %v3634_v46  ;;  %v3639_v20 = vshll.u32 %v3638_v19, 16 }
0x5cd7   :  { %v3636_v5 = vpop.xlane.xlu0 %3635 }
0x5cd8   :  { %v3637_v1 = vcvt.f32.s32 %v3636_v5 }
0x5cda   :  { %v3640_v10 = vadd.s32 %v3639_v20, %v3637_v1 }
0x5cdc   :  { %vm3641_vm8 = vcmp.eq.s32.totalorder %v6358_v6, %v3640_v10 }
0x5cdd   :  { %5470 = vmatmul.msk.f32.vlgmr.msra.gmra.mxu1 %vm3641_vm8, %v6208_v18 }
0x5d5a   :  { %v3701_v21 = vpop.f32.mrf.mxu1 }
0x5d5b   :  { %v3702_v27 = vadd.f32 %v3701_v21, %v3681_v8 }
0x5d5d   :  { %v3705_v48 = vadd.f32 %v3704_v26, %v3702_v27 }
0x5d5f   :  { %5815 = vtanh.f32 %v3705_v48  ;;  %v5471_v36 = vmul.f32 -1.442695, %v3705_v48 }
0x5d61   :  { %5817 = vpow2.f32 %v5471_v36 }
0x5d65   :  { %v5816_v11 = vpop.eup %5815 }
0x5d66   :  { %3728 = vrot.lane.b32.xlu2 %v5816_v11, %s6206_s25 }
0x5d67   :  { %v5818_v3 = vpop.eup %5817 }
0x5d68   :  { %v3709_v39 = vadd.f32 1.0, %v5818_v3 }
0x5d6a   :  { %5819 = vrcp.f32 %v3709_v39  ;;  %v3721_v57 = vand.u32 2147483648, %v3709_v39  ;;  %vm3715_vm10 = vweird.f32 %v3709_v39  ;;  %v3719_v58 = vand.u32 2147483647, %v3709_v39 }
0x5d6c   :  { %v3722_v30 = vor.u32 1.1754944e-38, %v3721_v57  ;;  %vm3720_vm13 = vcmp.eq.f32.partialorder %v3719_v58, 8.507059e+37 }
0x5d70   :  { %v5820_v43 = vpop.eup %5819 }
0x5d71   :  { %v3711_v40 = vmul.f32 %v5820_v43, %v3709_v39  ;;  %vm3716_vm9 = vweird.f32 %v5820_v43 }
0x5d72   :  { %vm3717_vm11 = vmor %vm3715_vm10, %vm3716_vm9 }
0x5d73   :  { %v3712_v55 = vsub.f32 1.0, %v3711_v40 }
0x5d75   :  { %v3713_v44 = vmul.f32 %v5820_v43, %v3712_v55 }
0x5d77   :  { %v3714_v47 = vadd.f32 %v5820_v43, %v3713_v44 }
0x5d79   :  { %v3718_v59 = vsel %vm3717_vm11, %v5820_v43, %v3714_v47 }
0x5d7a   :  { %v3723_v60 = vsel %vm3720_vm13, %v3722_v30, %v3718_v59 }
0x5d7b   :  { %v3726_v62 = vmul.f32 %v3723_v60, %v7176_v29  ;;  %v3768_v29 = vpop.f32.mrf.mxu2 }
0x5dc0   :  { %v3729_v12 = vpop.permute.xlu2 %3728 }
0x5dc1   :  { %v3731_v61 = vmul.f32 %v3729_v12, %v3723_v60 }
0x5dc3   :  { %3733 = vrot.lane.b32.xlu1 %v3731_v61, %s6206_s25 }
0x5e35   :  { %v3734_v63 = vpop.permute.xlu1 %3733 }
0x5e36   :  { %v7258_v31 = vadd.f32 %v3734_v63, %v3726_v62  ;;  %v3949_v63 = vld [vmem:[%s7613_s10] sm:$0x1] }
0x5e38   :  { %5821 = vtanh.f32 %v7258_v31 }
0x5e3e   :  { %v5822_v35 = vpop.eup %5821 }
0x5e3f   :  { %3739 = vrot.lane.b32.xlu0 %v5822_v35, %s6206_s25 }
0x5eb1   :  { %v3740_v2 = vpop.permute.xlu0 %3739 }
0x5eb2   :  { %v3742_v0 = vmul.f32 %v3740_v2, %v3723_v60 }
0x5eb4   :  { %3772 = vrot.lane.b32.xlu2 %v3742_v0, %s6207_s3 }
0x5f0e   :  { %v3773_v4 = vpop.permute.xlu2 %3772 }
0x5f0f   :  { %5473 = vmatmul.msk.f32.vlgmr.msrb.gmra.mxu3 %vm303_vm12, %v3773_v4 }
0x5f10   :  { %4033 = vmatpush.msrb.mxu3 %v7180_v9 }
0x5f12   :  { %4034 = vmatpush.msrb.mxu3 %v7182_v22 }
0x5f14   :  { %4035 = vmatpush.msrb.mxu3 %v7185_v45 }
0x5f16   :  { %4036 = vmatpush.msrb.mxu3 %v7188_v38 }
0x5f17   :  { %5477 = vmatmul.msk.f32.vlgmr.msra.gmra.mxu3 %vm303_vm12, %v3773_v4 }
0x5f18   :  { %4166 = vmatpush.msra.mxu3 %v7123_v28 }
0x5f1a   :  { %4167 = vmatpush.msra.mxu3 %v7125_v23 }
0x5f1c   :  { %4168 = vmatpush.msra.mxu3 %v7128_v24 }
0x5f1e   :  { %4169 = vmatpush.msra.mxu3 %v7131_v37 }
0x5f92   :  { %v3793_v41 = vpop.f32.mrf.mxu3 }
0x5f93   :  { %v3794_v32 = vadd.f32 %v3793_v41, %v3768_v29 }
0x5f95   :  { %v3797_v34 = vadd.f32 %v3796_v17, %v3794_v32 }
0x5f97   :  { %5823 = vtanh.f32 %v3797_v34  ;;  %v5474_v7 = vmul.f32 -1.442695, %v3797_v34 }
0x5f99   :  { %5825 = vpow2.f32 %v5474_v7 }
0x5f9a   :  { %v3926_v61 = vpop.f32.mrf.mxu3 }
0x5f9d   :  { %v5824_v15 = vpop.eup %5823 }
0x5f9e   :  { %3820 = vrot.lane.b32.xlu1 %v5824_v15, %s6206_s25 }
0x5f9f   :  { %v5826_v28 = vpop.eup %5825 }
0x5fa0   :  { %v3801_v23 = vadd.f32 1.0, %v5826_v28 }
0x5fa2   :  { %5827 = vrcp.f32 %v3801_v23  ;;  %v3813_v52 = vand.u32 2147483648, %v3801_v23  ;;  %vm3807_vm15 = vweird.f32 %v3801_v23  ;;  %v3811_v53 = vand.u32 2147483647, %v3801_v23 }
0x5fa4   :  { %v3814_v5 = vor.u32 1.1754944e-38, %v3813_v52  ;;  %vm3812_vm1 = vcmp.eq.f32.partialorder %v3811_v53, 8.507059e+37 }
0x5fa8   :  { %v5828_v24 = vpop.eup %5827 }
0x5fa9   :  { %v3803_v54 = vmul.f32 %v5828_v24, %v3801_v23  ;;  %vm3808_vm14 = vweird.f32 %v5828_v24 }
0x5faa   :  { %vm3809_vm0 = vmor %vm3807_vm15, %vm3808_vm14 }
0x5fab   :  { %v3804_v37 = vsub.f32 1.0, %v3803_v54 }
0x5fad   :  { %v3805_v46 = vmul.f32 %v5828_v24, %v3804_v37 }
0x5faf   :  { %v3806_v51 = vadd.f32 %v5828_v24, %v3805_v46 }
0x5fb1   :  { %v3810_v19 = vsel %vm3809_vm0, %v5828_v24, %v3806_v51 }
0x5fb2   :  { %v3815_v1 = vsel %vm3812_vm1, %v3814_v5, %v3810_v19 }
0x5fb3   :  { %v3818_v8 = vmul.f32 %v3815_v1, %v7213_v13  ;;  %v3839_v13 = vld [vmem:[%s7618_s15] sm:$0x1] }
0x6010   :  { %v3821_v20 = vpop.permute.xlu1 %3820 }
0x6011   :  { %v3823_v10 = vmul.f32 %v3821_v20, %v3815_v1 }
0x6013   :  { %3825 = vrot.lane.b32.xlu0 %v3823_v10, %s6206_s25 }
0x6085   :  { %v3826_v21 = vpop.permute.xlu0 %3825 }
0x6086   :  { %v7279_v26 = vadd.f32 %v3826_v21, %v3818_v8  ;;  %v4041_v21 = vld [vmem:[%s7616_s13] sm:$0x1] }
0x6088   :  { %5829 = vtanh.f32 %v7279_v26 }
0x608e   :  { %v5830_v27 = vpop.eup %5829 }
0x608f   :  { %3831 = vrot.lane.b32.xlu2 %v5830_v27, %s6206_s25 }
0x60e9   :  { %v3832_v48 = vpop.permute.xlu2 %3831 }
0x60ea   :  { %v3834_v11 = vmul.f32 %v3832_v48, %v3815_v1 }
0x60ec   :  { %3841 = vrot.lane.b32.xlu1 %v3834_v11, %s6207_s3 }
0x615e   :  { %v3842_v36 = vpop.permute.xlu1 %3841 }
0x615f   :  { %5475 = vmatmul.msk.f32.vlgmr.msra.gmra.mxu2 %vm303_vm12, %v3842_v36 }
0x6160   :  { %4102 = vmatpush.msra.mxu2 %v7217_v50 }
0x6162   :  { %4103 = vmatpush.msra.mxu2 %v7219_v49 }
0x6164   :  { %4104 = vmatpush.msra.mxu2 %v7222_v25 }
0x6166   :  { %4105 = vmatpush.msra.mxu2 %v7225_v14 }
0x6167   :  { %5480 = vmatmul.msk.f32.vlgmr.msrb.gmra.mxu2 %vm303_vm12, %v3842_v36 }
0x6168   :  { %4253 = vmatpush.msrb.mxu2 %v7148_v42 }
0x616a   :  { %4254 = vmatpush.msrb.mxu2 %v7150_v33 }
0x616c   :  { %4255 = vmatpush.msrb.mxu2 %v7153_v16 }
0x616e   :  { %4256 = vmatpush.msrb.mxu2 %v7156_v56 }
0x61e2   :  { %v3862_v3 = vpop.f32.mrf.mxu2 }
0x61e3   :  { %v3863_v39 = vadd.f32 %v3862_v3, %v3839_v13 }
0x61e5   :  { %3865 = vst [vmem:[#allocation19 + $0x9] sm:$0x1] %v3863_v39  ;;  %v3866_v43 = vsel %vm854_vm5, %v3863_v39, -inf }
0x61e6   :  { %3867 = vmax.xlane.f32.xlu0 %v3866_v43 }
0x6259   :  { %v3868_v40 = vpop.xlane.xlu0 %3867 }
0x625a   :  { %vm3869_vm2 = vcmp.eq.f32.partialorder %v3863_v39, %v3868_v40 }
0x625b   :  { %v3870_v42 = vsel %vm3869_vm2, %v6358_v6, 128 }
0x625c   :  { %v3871_v33 = vsel %vm854_vm5, %v3870_v42, 2147483647 }
0x625d   :  { %v3873_v55 = vshra.s32 %v3871_v33, 16  ;;  %v3872_v56 = vand.u32 65535, %v3871_v33 }
0x625f   :  { %v3875_v16 = vcvt.s32.f32 %v3873_v55  ;;  %v3874_v47 = vcvt.s32.f32 %v3872_v56 }
0x6261   :  { %3876 = vmin.xlane.f32.xlu2 %v3875_v16 }
0x62d4   :  { %v3877_v44 = vpop.xlane.xlu2 %3876 }
0x62d5   :  { %vm3878_vm3 = vcmp.eq.f32.partialorder %v3875_v16, %v3877_v44  ;;  %v3883_v58 = vcvt.f32.s32 %v3877_v44 }
0x62d6   :  { %v3879_v57 = vsel %vm3878_vm3, %v3874_v47, inf }
0x62d7   :  { %3880 = vmin.xlane.f32.xlu1 %v3879_v57  ;;  %v3884_v30 = vshll.u32 %v3883_v58, 16 }
0x634a   :  { %v3881_v59 = vpop.xlane.xlu1 %3880 }
0x634b   :  { %v3882_v12 = vcvt.f32.s32 %v3881_v59 }
0x634d   :  { %v3885_v60 = vadd.s32 %v3884_v30, %v3882_v12 }
0x634f   :  { %vm3886_vm4 = vcmp.eq.s32.totalorder %v6358_v6, %v3885_v60 }
0x6350   :  { %5478 = vmatmul.msk.f32.vlgmr.msrb.gmra.mxu0 %vm3886_vm4, %v6208_v18 }
0x63cd   :  { %v3946_v62 = vpop.f32.mrf.mxu0 }
0x63ce   :  { %v3947_v35 = vadd.f32 %v3946_v62, %v3926_v61 }
0x63d0   :  { %v3950_v2 = vadd.f32 %v3949_v63, %v3947_v35 }
0x63d2   :  { %5831 = vtanh.f32 %v3950_v2  ;;  %v5479_v4 = vmul.f32 -1.442695, %v3950_v2 }
0x63d4   :  { %5833 = vpow2.f32 %v5479_v4 }
0x63d8   :  { %v5832_v0 = vpop.eup %5831 }
0x63d9   :  { %3973 = vrot.lane.b32.xlu0 %v5832_v0, %s6206_s25 }
0x63da   :  { %v5834_v29 = vpop.eup %5833 }
0x63db   :  { %v3954_v41 = vadd.f32 1.0, %v5834_v29 }
0x63dd   :  { %5835 = vrcp.f32 %v3954_v41  ;;  %v3966_v28 = vand.u32 2147483648, %v3954_v41  ;;  %vm3960_vm7 = vweird.f32 %v3954_v41  ;;  %v3964_v23 = vand.u32 2147483647, %v3954_v41 }
0x63df   :  { %v3967_v54 = vor.u32 1.1754944e-38, %v3966_v28  ;;  %vm3965_vm9 = vcmp.eq.f32.partialorder %v3964_v23, 8.507059e+37  ;;  %v4194_v28 = vld [vmem:[%s7613_s10] sm:$0x1] }
0x63e3   :  { %v5836_v17 = vpop.eup %5835 }
0x63e4   :  { %v3956_v32 = vmul.f32 %v5836_v17, %v3954_v41  ;;  %vm3961_vm6 = vweird.f32 %v5836_v17 }
0x63e5   :  { %vm3962_vm8 = vmor %vm3960_vm7, %vm3961_vm6 }
0x63e6   :  { %v3957_v34 = vsub.f32 1.0, %v3956_v32 }
0x63e8   :  { %v3958_v15 = vmul.f32 %v5836_v17, %v3957_v34 }
0x63ea   :  { %v3959_v7 = vadd.f32 %v5836_v17, %v3958_v15 }
0x63ec   :  { %v3963_v24 = vsel %vm3962_vm8, %v5836_v17, %v3959_v7 }
0x63ed   :  { %v3968_v46 = vsel %vm3965_vm9, %v3967_v54, %v3963_v24 }
0x63ee   :  { %v3971_v52 = vmul.f32 %v3968_v46, %v7258_v31  ;;  %v4013_v31 = vpop.f32.mrf.mxu2 }
0x644b   :  { %v3974_v37 = vpop.permute.xlu0 %3973 }
0x644c   :  { %v3976_v51 = vmul.f32 %v3974_v37, %v3968_v46 }
0x644e   :  { %3978 = vrot.lane.b32.xlu2 %v3976_v51, %s6206_s25 }
0x64a8   :  { %v3979_v53 = vpop.permute.xlu2 %3978 }
0x64a9   :  { %v7308_v19 = vadd.f32 %v3979_v53, %v3971_v52 }
0x64ab   :  { %5837 = vtanh.f32 %v7308_v19 }
0x64b1   :  { %v5838_v5 = vpop.eup %5837 }
0x64b2   :  { %3984 = vrot.lane.b32.xlu1 %v5838_v5, %s6206_s25 }
0x6524   :  { %v3985_v20 = vpop.permute.xlu1 %3984 }
0x6525   :  { %v3987_v1 = vmul.f32 %v3985_v20, %v3968_v46 }
0x6527   :  { %4017 = vrot.lane.b32.xlu0 %v3987_v1, %s6207_s3 }
0x6599   :  { %v4018_v10 = vpop.permute.xlu0 %4017 }
0x659a   :  { %5481 = vmatmul.msk.f32.vlgmr.msrb.gmra.mxu3 %vm303_vm12, %v4018_v10 }
0x659b   :  { %4278 = vmatpush.msrb.mxu3 %v7180_v9 }
0x659d   :  { %4279 = vmatpush.msrb.mxu3 %v7182_v22 }
0x659f   :  { %4280 = vmatpush.msrb.mxu3 %v7185_v45 }
0x65a1   :  { %4281 = vmatpush.msrb.mxu3 %v7188_v38 }
0x65a2   :  { %5485 = vmatmul.msk.f32.vlgmr.msra.gmra.mxu3 %vm303_vm12, %v4018_v10 }
0x661d   :  { %v4038_v8 = vpop.f32.mrf.mxu3 }
0x661e   :  { %v4039_v27 = vadd.f32 %v4038_v8, %v4013_v31 }
0x6620   :  { %v4042_v48 = vadd.f32 %v4041_v21, %v4039_v27 }
0x6622   :  { %5839 = vtanh.f32 %v4042_v48  ;;  %v5482_v9 = vmul.f32 -1.442695, %v4042_v48 }
0x6624   :  { %5841 = vpow2.f32 %v5482_v9 }
0x6625   :  { %v4171_v15 = vpop.f32.mrf.mxu3 }
0x6628   :  { %v5840_v11 = vpop.eup %5839 }
0x6629   :  { %4065 = vrot.lane.b32.xlu2 %v5840_v11, %s6206_s25 }
0x662a   :  { %v5842_v22 = vpop.eup %5841 }
0x662b   :  { %v4046_v45 = vadd.f32 1.0, %v5842_v22 }
0x662d   :  { %5843 = vrcp.f32 %v4046_v45  ;;  %v4058_v43 = vand.u32 2147483648, %v4046_v45  ;;  %vm4052_vm11 = vweird.f32 %v4046_v45  ;;  %v4056_v40 = vand.u32 2147483647, %v4046_v45 }
0x662f   :  { %v4059_v33 = vor.u32 1.1754944e-38, %v4058_v43  ;;  %vm4057_vm14 = vcmp.eq.f32.partialorder %v4056_v40, 8.507059e+37  ;;  %v7360_v43 = vld [vmem:[#allocation13 + $0x8] sm:$0xff] }
0x6633   :  { %v5844_v38 = vpop.eup %5843 }
0x6634   :  { %v4048_v36 = vmul.f32 %v5844_v38, %v4046_v45  ;;  %vm4053_vm10 = vweird.f32 %v5844_v38 }
0x6635   :  { %vm4054_vm13 = vmor %vm4052_vm11, %vm4053_vm10 }
0x6636   :  { %v4049_v13 = vsub.f32 1.0, %v4048_v36 }
0x6638   :  { %v4050_v3 = vmul.f32 %v5844_v38, %v4049_v13 }
0x663a   :  { %v4051_v39 = vadd.f32 %v5844_v38, %v4050_v3  ;;  %v7355_v3 = vld [vmem:[#allocation13 + $0x18] sm:$0xff] }
0x663b   :  { %4411 = vmatpush.msra.mxu3 %v7355_v3 }
0x663c   :  { %v4055_v42 = vsel %vm4054_vm13, %v5844_v38, %v4051_v39  ;;  %v7357_v39 = vld [vmem:[#allocation13 + $0x10] sm:$0xff] }
0x663d   :  { %v4060_v16 = vsel %vm4057_vm14, %v4059_v33, %v4055_v42  ;;  %4412 = vmatpush.msra.mxu3 %v7357_v39 }
0x663e   :  { %v4063_v44 = vmul.f32 %v4060_v16, %v7279_v26  ;;  %v4084_v26 = vld [vmem:[%s7618_s15] sm:$0x1] }
0x663f   :  { %4413 = vmatpush.msra.mxu3 %v7360_v43 }
0x6683   :  { %v4066_v55 = vpop.permute.xlu2 %4065 }
0x6684   :  { %v4068_v56 = vmul.f32 %v4066_v55, %v4060_v16  ;;  %v4286_v55 = vld [vmem:[%s7616_s13] sm:$0x1] }
0x6686   :  { %4070 = vrot.lane.b32.xlu0 %v4068_v56, %s6206_s25 }
0x66f8   :  { %v4071_v47 = vpop.permute.xlu0 %4070 }
0x66f9   :  { %v7325_v57 = vadd.f32 %v4071_v47, %v4063_v44 }
0x66fb   :  { %5845 = vtanh.f32 %v7325_v57 }
0x6701   :  { %v5846_v58 = vpop.eup %5845 }
0x6702   :  { %4076 = vrot.lane.b32.xlu1 %v5846_v58, %s6206_s25 }
0x6774   :  { %v4077_v59 = vpop.permute.xlu1 %4076 }
0x6775   :  { %v4079_v30 = vmul.f32 %v4077_v59, %v4060_v16 }
0x6777   :  { %4086 = vrot.lane.b32.xlu2 %v4079_v30, %s6207_s3 }
0x67d1   :  { %v4087_v12 = vpop.permute.xlu2 %4086 }
0x67d2   :  { %5483 = vmatmul.msk.f32.vlgmr.msra.gmra.mxu2 %vm303_vm12, %v4087_v12 }
0x67d3   :  { %4347 = vmatpush.msra.mxu2 %v7217_v50 }
0x67d5   :  { %4348 = vmatpush.msra.mxu2 %v7219_v49 }
0x67d7   :  { %4349 = vmatpush.msra.mxu2 %v7222_v25 }
0x67d9   :  { %4350 = vmatpush.msra.mxu2 %v7225_v14 }
0x67da   :  { %5488 = vmatmul.msk.f32.vlgmr.msrb.gmra.mxu2 %vm303_vm12, %v4087_v12 }
0x6855   :  { %v4107_v60 = vpop.f32.mrf.mxu2 }
0x6856   :  { %v4108_v61 = vadd.f32 %v4107_v60, %v4084_v26 }
0x6858   :  { %4110 = vst [vmem:[#allocation19 + $0xa] sm:$0x1] %v4108_v61  ;;  %v4111_v62 = vsel %vm854_vm5, %v4108_v61, -inf }
0x6859   :  { %4112 = vmax.xlane.f32.xlu0 %v4111_v62 }
0x685d   :  { %v4258_v42 = vpop.f32.mrf.mxu2 }
0x68cc   :  { %v4113_v63 = vpop.xlane.xlu0 %4112 }
0x68cd   :  { %vm4114_vm15 = vcmp.eq.f32.partialorder %v4108_v61, %v4113_v63 }
0x68ce   :  { %v4115_v50 = vsel %vm4114_vm15, %v6358_v6, 128 }
0x68cf   :  { %v4116_v49 = vsel %vm854_vm5, %v4115_v50, 2147483647 }
0x68d0   :  { %v4118_v25 = vshra.s32 %v4116_v49, 16  ;;  %v4117_v35 = vand.u32 65535, %v4116_v49 }
0x68d2   :  { %v4120_v14 = vcvt.s32.f32 %v4118_v25  ;;  %v4119_v0 = vcvt.s32.f32 %v4117_v35 }
0x68d4   :  { %4121 = vmin.xlane.f32.xlu1 %v4120_v14 }
0x6947   :  { %v4122_v2 = vpop.xlane.xlu1 %4121 }
0x6948   :  { %vm4123_vm0 = vcmp.eq.f32.partialorder %v4120_v14, %v4122_v2  ;;  %v4128_v29 = vcvt.f32.s32 %v4122_v2 }
0x6949   :  { %v4124_v4 = vsel %vm4123_vm0, %v4119_v0, inf }
0x694a   :  { %4125 = vmin.xlane.f32.xlu2 %v4124_v4  ;;  %v4129_v17 = vshll.u32 %v4128_v29, 16 }
0x69bd   :  { %v4126_v41 = vpop.xlane.xlu2 %4125 }
0x69be   :  { %v4127_v32 = vcvt.f32.s32 %v4126_v41 }
0x69c0   :  { %v4130_v34 = vadd.s32 %v4129_v17, %v4127_v32  ;;  %v7380_v32 = vld [vmem:[#allocation16 + $0x18] sm:$0xff] }
0x69c1   :  { %4498 = vmatpush.msrb.mxu2 %v7380_v32 }
0x69c2   :  { %vm4131_vm1 = vcmp.eq.s32.totalorder %v6358_v6, %v4130_v34  ;;  %v7382_v34 = vld [vmem:[#allocation16 + $0x10] sm:$0xff] }
0x69c3   :  { %5486 = vmatmul.msk.f32.vlgmr.msrb.gmra.mxu1 %vm4131_vm1, %v6208_v18  ;;  %4499 = vmatpush.msrb.mxu2 %v7382_v34 }
0x6a40   :  { %v4191_v7 = vpop.f32.mrf.mxu1 }
0x6a41   :  { %v4192_v23 = vadd.f32 %v4191_v7, %v4171_v15  ;;  %v7385_v15 = vld [vmem:[#allocation16 + $0x8] sm:$0xff] }
0x6a42   :  { %4500 = vmatpush.msrb.mxu2 %v7385_v15 }
0x6a43   :  { %v4195_v24 = vadd.f32 %v4194_v28, %v4192_v23  ;;  %v4329_v28 = vld [vmem:[%s7618_s15] sm:$0x1] }
0x6a45   :  { %5847 = vtanh.f32 %v4195_v24  ;;  %v5487_v37 = vmul.f32 -1.442695, %v4195_v24 }
0x6a47   :  { %5849 = vpow2.f32 %v5487_v37 }
0x6a4b   :  { %v5848_v54 = vpop.eup %5847 }
0x6a4c   :  { %4218 = vrot.lane.b32.xlu0 %v5848_v54, %s6206_s25 }
0x6a4d   :  { %v5850_v46 = vpop.eup %5849 }
0x6a4e   :  { %v4199_v51 = vadd.f32 1.0, %v5850_v46 }
0x6a50   :  { %5851 = vrcp.f32 %v4199_v51  ;;  %v4211_v10 = vand.u32 2147483648, %v4199_v51  ;;  %vm4205_vm3 = vweird.f32 %v4199_v51  ;;  %v4209_v31 = vand.u32 2147483647, %v4199_v51 }
0x6a52   :  { %v4212_v21 = vor.u32 1.1754944e-38, %v4211_v10  ;;  %vm4210_vm6 = vcmp.eq.f32.partialorder %v4209_v31, 8.507059e+37 }
0x6a56   :  { %v5852_v52 = vpop.eup %5851 }
0x6a57   :  { %v4201_v53 = vmul.f32 %v5852_v52, %v4199_v51  ;;  %vm4206_vm2 = vweird.f32 %v5852_v52 }
0x6a58   :  { %vm4207_vm4 = vmor %vm4205_vm3, %vm4206_vm2 }
0x6a59   :  { %v4202_v5 = vsub.f32 1.0, %v4201_v53 }
0x6a5b   :  { %v4203_v20 = vmul.f32 %v5852_v52, %v4202_v5 }
0x6a5d   :  { %v4204_v1 = vadd.f32 %v5852_v52, %v4203_v20 }
0x6a5f   :  { %v4208_v8 = vsel %vm4207_vm4, %v5852_v52, %v4204_v1 }
0x6a60   :  { %v4213_v48 = vsel %vm4210_vm6, %v4212_v21, %v4208_v8 }
0x6a61   :  { %v4216_v9 = vmul.f32 %v4213_v48, %v7308_v19  ;;  %v7363_v19 = vld [vmem:[#allocation13] sm:$0xff] }
0x6a62   :  { %4414 = vmatpush.msra.mxu3 %v7363_v19 }
0x6abe   :  { %v4219_v27 = vpop.permute.xlu0 %4218 }
0x6abf   :  { %v4221_v11 = vmul.f32 %v4219_v27, %v4213_v48 }
0x6ac1   :  { %4223 = vrot.lane.b32.xlu1 %v4221_v11, %s6206_s25 }
0x6b33   :  { %v4224_v22 = vpop.permute.xlu1 %4223 }
0x6b34   :  { %v7350_v45 = vadd.f32 %v4224_v22, %v4216_v9  ;;  %v4439_v22 = vld [vmem:[%s7613_s10] sm:$0x1] }
0x6b36   :  { %5853 = vtanh.f32 %v7350_v45 }
0x6b3c   :  { %v5854_v38 = vpop.eup %5853 }
0x6b3d   :  { %4229 = vrot.lane.b32.xlu2 %v5854_v38, %s6206_s25 }
0x6b97   :  { %v4230_v36 = vpop.permute.xlu2 %4229 }
0x6b98   :  { %v4232_v13 = vmul.f32 %v4230_v36, %v4213_v48 }
0x6b9a   :  { %4262 = vrot.lane.b32.xlu0 %v4232_v13, %s6207_s3 }
0x6c0c   :  { %v4263_v40 = vpop.permute.xlu0 %4262 }
0x6c0d   :  { %5489 = vmatmul.msk.f32.vlgmr.msrb.gmra.mxu3 %vm303_vm12, %v4263_v40 }
0x6c15   :  { %5493 = vmatmul.msk.f32.vlgmr.msra.gmra.mxu3 %vm303_vm12, %v4263_v40 }
0x6c90   :  { %v4283_v33 = vpop.f32.mrf.mxu3 }
0x6c91   :  { %v4284_v16 = vadd.f32 %v4283_v33, %v4258_v42 }
0x6c93   :  { %v4287_v56 = vadd.f32 %v4286_v55, %v4284_v16 }
0x6c95   :  { %5855 = vtanh.f32 %v4287_v56  ;;  %v5490_v47 = vmul.f32 -1.442695, %v4287_v56 }
0x6c97   :  { %5857 = vpow2.f32 %v5490_v47 }
0x6c98   :  { %v4416_v11 = vpop.f32.mrf.mxu3 }
0x6c9b   :  { %v5856_v44 = vpop.eup %5855 }
0x6c9c   :  { %4310 = vrot.lane.b32.xlu1 %v5856_v44, %s6206_s25 }
0x6c9d   :  { %v5858_v58 = vpop.eup %5857 }
0x6c9e   :  { %v4291_v59 = vadd.f32 1.0, %v5858_v58 }
0x6ca0   :  { %5859 = vrcp.f32 %v4291_v59  ;;  %v4303_v62 = vand.u32 2147483648, %v4291_v59  ;;  %vm4297_vm8 = vweird.f32 %v4291_v59  ;;  %v4301_v63 = vand.u32 2147483647, %v4291_v59 }
0x6ca2   :  { %v4304_v49 = vor.u32 1.1754944e-38, %v4303_v62  ;;  %vm4302_vm10 = vcmp.eq.f32.partialorder %v4301_v63, 8.507059e+37 }
0x6ca6   :  { %v5860_v30 = vpop.eup %5859 }
0x6ca7   :  { %v4293_v12 = vmul.f32 %v5860_v30, %v4291_v59  ;;  %vm4298_vm7 = vweird.f32 %v5860_v30 }
0x6ca8   :  { %vm4299_vm9 = vmor %vm4297_vm8, %vm4298_vm7 }
0x6ca9   :  { %v4294_v26 = vsub.f32 1.0, %v4293_v12 }
0x6cab   :  { %v4295_v60 = vmul.f32 %v5860_v30, %v4294_v26 }
0x6cad   :  { %v4296_v61 = vadd.f32 %v5860_v30, %v4295_v60 }
0x6caf   :  { %v4300_v50 = vsel %vm4299_vm9, %v5860_v30, %v4296_v61 }
0x6cb0   :  { %v4305_v14 = vsel %vm4302_vm10, %v4304_v49, %v4300_v50 }
0x6cb1   :  { %v4308_v2 = vmul.f32 %v4305_v14, %v7325_v57  ;;  %v7388_v57 = vld [vmem:[#allocation16] sm:$0xff] }
0x6cb2   :  { %4501 = vmatpush.msrb.mxu2 %v7388_v57 }
0x6d0e   :  { %v4311_v25 = vpop.permute.xlu1 %4310 }
0x6d0f   :  { %v4313_v35 = vmul.f32 %v4311_v25, %v4305_v14  ;;  %v7412_v25 = vld [vmem:[#allocation15 + $0x18] sm:$0xff] }
0x6d10   :  { %4523 = vmatpush.msrb.mxu3 %v7412_v25 }
0x6d11   :  { %4315 = vrot.lane.b32.xlu0 %v4313_v35, %s6206_s25  ;;  %v7417_v35 = vld [vmem:[#allocation15 + $0x8] sm:$0xff] }
0x6d83   :  { %v4316_v0 = vpop.permute.xlu0 %4315 }
0x6d84   :  { %v7375_v4 = vadd.f32 %v4316_v0, %v4308_v2  ;;  %v7420_v2 = vld [vmem:[#allocation15] sm:$0xff] }
0x6d86   :  { %5861 = vtanh.f32 %v7375_v4 }
0x6d8c   :  { %v5862_v29 = vpop.eup %5861 }
0x6d8d   :  { %4321 = vrot.lane.b32.xlu2 %v5862_v29, %s6206_s25 }
0x6de7   :  { %v4322_v41 = vpop.permute.xlu2 %4321 }
0x6de8   :  { %v4324_v17 = vmul.f32 %v4322_v41, %v4305_v14  ;;  %v7414_v14 = vld [vmem:[#allocation15 + $0x10] sm:$0xff] }
0x6de9   :  { %4524 = vmatpush.msrb.mxu3 %v7414_v14 }
0x6dea   :  { %4331 = vrot.lane.b32.xlu1 %v4324_v17, %s6207_s3 }
0x6deb   :  { %4525 = vmatpush.msrb.mxu3 %v7417_v35 }
0x6ded   :  { %4526 = vmatpush.msrb.mxu3 %v7420_v2 }
0x6def   :  { %4656 = vmatpush.msra.mxu3 %v7355_v3 }
0x6df1   :  { %4657 = vmatpush.msra.mxu3 %v7357_v39 }
0x6df3   :  { %4658 = vmatpush.msra.mxu3 %v7360_v43 }
0x6df5   :  { %4659 = vmatpush.msra.mxu3 %v7363_v19 }
0x6e5c   :  { %v4332_v7 = vpop.permute.xlu1 %4331 }
0x6e5d   :  { %5491 = vmatmul.msk.f32.vlgmr.msra.gmra.mxu2 %vm303_vm12, %v4332_v7 }
0x6e65   :  { %5496 = vmatmul.msk.f32.vlgmr.msrb.gmra.mxu2 %vm303_vm12, %v4332_v7  ;;  %v4531_v7 = vld [vmem:[%s7616_s13] sm:$0x1] }
0x6ee0   :  { %v4352_v23 = vpop.f32.mrf.mxu2 }
0x6ee1   :  { %v4353_v24 = vadd.f32 %v4352_v23, %v4329_v28 }
0x6ee3   :  { %4355 = vst [vmem:[#allocation19 + $0xb] sm:$0x1] %v4353_v24  ;;  %v4356_v54 = vsel %vm854_vm5, %v4353_v24, -inf }
0x6ee4   :  { %4357 = vmax.xlane.f32.xlu0 %v4356_v54 }
0x6ee8   :  { %v4503_v41 = vpop.f32.mrf.mxu2 }
0x6f57   :  { %v4358_v37 = vpop.xlane.xlu0 %4357 }
0x6f58   :  { %vm4359_vm11 = vcmp.eq.f32.partialorder %v4353_v24, %v4358_v37 }
0x6f59   :  { %v4360_v46 = vsel %vm4359_vm11, %v6358_v6, 128 }
0x6f5a   :  { %v4361_v51 = vsel %vm854_vm5, %v4360_v46, 2147483647 }
0x6f5b   :  { %v4363_v52 = vshra.s32 %v4361_v51, 16  ;;  %v4362_v5 = vand.u32 65535, %v4361_v51 }
0x6f5d   :  { %v4365_v53 = vcvt.s32.f32 %v4363_v52  ;;  %v4364_v1 = vcvt.s32.f32 %v4362_v5 }
0x6f5f   :  { %4366 = vmin.xlane.f32.xlu2 %v4365_v53 }
0x6fd2   :  { %v4367_v20 = vpop.xlane.xlu2 %4366 }
0x6fd3   :  { %vm4368_vm13 = vcmp.eq.f32.partialorder %v4365_v53, %v4367_v20  ;;  %v4373_v31 = vcvt.f32.s32 %v4367_v20 }
0x6fd4   :  { %v4369_v10 = vsel %vm4368_vm13, %v4364_v1, inf }
0x6fd5   :  { %4370 = vmin.xlane.f32.xlu1 %v4369_v10  ;;  %v4374_v21 = vshll.u32 %v4373_v31, 16 }
0x7048   :  { %v4371_v8 = vpop.xlane.xlu1 %4370 }
0x7049   :  { %v4372_v27 = vcvt.f32.s32 %v4371_v8 }
0x704b   :  { %v4375_v48 = vadd.s32 %v4374_v21, %v4372_v27 }
0x704d   :  { %vm4376_vm14 = vcmp.eq.s32.totalorder %v6358_v6, %v4375_v48 }
0x704e   :  { %5494 = vmatmul.msk.f32.vlgmr.msra.gmra.mxu0 %vm4376_vm14, %v6208_v18 }
0x70cb   :  { %v4436_v9 = vpop.f32.mrf.mxu0 }
0x70cc   :  { %v4437_v38 = vadd.f32 %v4436_v9, %v4416_v11 }
0x70ce   :  { %v4440_v36 = vadd.f32 %v4439_v22, %v4437_v38 }
0x70d0   :  { %5863 = vtanh.f32 %v4440_v36  ;;  %v5495_v40 = vmul.f32 -1.442695, %v4440_v36  ;;  %v7449_v36 = vld [vmem:[#allocation18 + $0x18] sm:$0xff] }
0x70d1   :  { %4592 = vmatpush.msra.mxu2 %v7449_v36 }
0x70d2   :  { %5865 = vpow2.f32 %v5495_v40  ;;  %v7454_v40 = vld [vmem:[#allocation18 + $0x8] sm:$0xff] }
0x70d6   :  { %v5864_v13 = vpop.eup %5863 }
0x70d7   :  { %4463 = vrot.lane.b32.xlu0 %v5864_v13, %s6206_s25  ;;  %v7451_v13 = vld [vmem:[#allocation18 + $0x10] sm:$0xff] }
0x70d8   :  { %v5866_v42 = vpop.eup %5865  ;;  %4593 = vmatpush.msra.mxu2 %v7451_v13 }
0x70d9   :  { %v4444_v33 = vadd.f32 1.0, %v5866_v42  ;;  %v7457_v42 = vld [vmem:[#allocation18] sm:$0xff] }
0x70da   :  { %4594 = vmatpush.msra.mxu2 %v7454_v40 }
0x70db   :  { %5867 = vrcp.f32 %v4444_v33  ;;  %v4456_v58 = vand.u32 2147483648, %v4444_v33  ;;  %vm4450_vm0 = vweird.f32 %v4444_v33  ;;  %v4454_v59 = vand.u32 2147483647, %v4444_v33 }
0x70dc   :  { %4595 = vmatpush.msra.mxu2 %v7457_v42 }
0x70dd   :  { %v4457_v12 = vor.u32 1.1754944e-38, %v4456_v58  ;;  %vm4455_vm2 = vcmp.eq.f32.partialorder %v4454_v59, 8.507059e+37 }
0x70de   :  { %4743 = vmatpush.msrb.mxu2 %v7380_v32 }
0x70e0   :  { %4744 = vmatpush.msrb.mxu2 %v7382_v34 }
0x70e1   :  { %v5868_v55 = vpop.eup %5867 }
0x70e2   :  { %v4446_v16 = vmul.f32 %v5868_v55, %v4444_v33  ;;  %vm4451_vm15 = vweird.f32 %v5868_v55  ;;  %4745 = vmatpush.msrb.mxu2 %v7385_v15 }
0x70e3   :  { %vm4452_vm1 = vmor %vm4450_vm0, %vm4451_vm15 }
0x70e4   :  { %v4447_v56 = vsub.f32 1.0, %v4446_v16  ;;  %4746 = vmatpush.msrb.mxu2 %v7388_v57  ;;  %v4574_v16 = vld [vmem:[%s7618_s15] sm:$0x1] }
0x70e6   :  { %v4448_v44 = vmul.f32 %v5868_v55, %v4447_v56 }
0x70e8   :  { %v4449_v47 = vadd.f32 %v5868_v55, %v4448_v44 }
0x70ea   :  { %v4453_v30 = vsel %vm4452_vm1, %v5868_v55, %v4449_v47 }
0x70eb   :  { %v4458_v60 = vsel %vm4455_vm2, %v4457_v12, %v4453_v30 }
0x70ec   :  { %v4461_v62 = vmul.f32 %v4458_v60, %v7350_v45 }
0x7149   :  { %v4464_v26 = vpop.permute.xlu0 %4463 }
0x714a   :  { %v4466_v61 = vmul.f32 %v4464_v26, %v4458_v60 }
0x714c   :  { %4468 = vrot.lane.b32.xlu2 %v4466_v61, %s6206_s25  ;;  %v4638_v61 = vld [vmem:[#allocation12 + $0x70] sm:$0xff] }
0x71a6   :  { %v4469_v63 = vpop.permute.xlu2 %4468 }
0x71a7   :  { %v7408_v50 = vadd.f32 %v4469_v63, %v4461_v62  ;;  %v4637_v62 = vld [vmem:[#allocation12 + $0x68] sm:$0xff]  ;;  %v4636_v63 = vld [vmem:[#allocation12 + $0x60] sm:$0xff] }
0x71a9   :  { %5869 = vtanh.f32 %v7408_v50 }
0x71af   :  { %v5870_v49 = vpop.eup %5869 }
0x71b0   :  { %4474 = vrot.lane.b32.xlu1 %v5870_v49, %s6206_s25  ;;  %v4635_v49 = vld [vmem:[#allocation12 + $0x58] sm:$0xff] }
0x7222   :  { %v4475_v45 = vpop.permute.xlu1 %4474 }
0x7223   :  { %v4477_v0 = vmul.f32 %v4475_v45, %v4458_v60  ;;  %v4639_v60 = vld [vmem:[#allocation12 + $0x78] sm:$0xff]  ;;  %v4634_v45 = vld [vmem:[#allocation12 + $0x50] sm:$0xff] }
0x7224   :  { %4664 = vmatpush.msra.mxu1 %v4639_v60  ;;  %4909 = vmatpush.msrb.mxu0 %v4639_v60 }
0x7225   :  { %4507 = vrot.lane.b32.xlu0 %v4477_v0, %s6207_s3  ;;  %v4633_v0 = vld [vmem:[#allocation12 + $0x48] sm:$0xff] }
0x7226   :  { %4665 = vmatpush.msra.mxu1 %v4638_v61  ;;  %4910 = vmatpush.msrb.mxu0 %v4638_v61 }
0x7228   :  { %4666 = vmatpush.msra.mxu1 %v4637_v62  ;;  %4911 = vmatpush.msrb.mxu0 %v4637_v62 }
0x722a   :  { %4667 = vmatpush.msra.mxu1 %v4636_v63  ;;  %4912 = vmatpush.msrb.mxu0 %v4636_v63 }
0x722c   :  { %4668 = vmatpush.msra.mxu1 %v4635_v49  ;;  %4913 = vmatpush.msrb.mxu0 %v4635_v49 }
0x722e   :  { %4669 = vmatpush.msra.mxu1 %v4634_v45  ;;  %4914 = vmatpush.msrb.mxu0 %v4634_v45 }
0x7230   :  { %4670 = vmatpush.msra.mxu1 %v4633_v0  ;;  %4915 = vmatpush.msrb.mxu0 %v4633_v0 }
0x7297   :  { %v4508_v29 = vpop.permute.xlu0 %4507 }
0x7298   :  { %5497 = vmatmul.msk.f32.vlgmr.msrb.gmra.mxu3 %vm303_vm12, %v4508_v29 }
0x7299   :  { %4768 = vmatpush.msrb.mxu3 %v7412_v25 }
0x729b   :  { %4769 = vmatpush.msrb.mxu3 %v7414_v14 }
0x729d   :  { %4770 = vmatpush.msrb.mxu3 %v7417_v35 }
0x729f   :  { %4771 = vmatpush.msrb.mxu3 %v7420_v2 }
0x72a0   :  { %5501 = vmatmul.msk.f32.vlgmr.msra.gmra.mxu3 %vm303_vm12, %v4508_v29  ;;  %v4632_v29 = vld [vmem:[#allocation12 + $0x40] sm:$0xff] }
0x72a1   :  { %4901 = vmatpush.msra.mxu3 %v7355_v3  ;;  %4671 = vmatpush.msra.mxu1 %v4632_v29 }
0x72a2   :  { %4916 = vmatpush.msrb.mxu0 %v4632_v29 }
0x72a3   :  { %4902 = vmatpush.msra.mxu3 %v7357_v39 }
0x72a5   :  { %4903 = vmatpush.msra.mxu3 %v7360_v43 }
0x72a7   :  { %4904 = vmatpush.msra.mxu3 %v7363_v19 }
0x731b   :  { %v4528_v17 = vpop.f32.mrf.mxu3 }
0x731c   :  { %v4529_v28 = vadd.f32 %v4528_v17, %v4503_v41  ;;  %v4631_v41 = vld [vmem:[#allocation12 + $0x38] sm:$0xff]  ;;  %v4630_v17 = vld [vmem:[#allocation12 + $0x30] sm:$0xff] }
0x731d   :  { %4672 = vmatpush.msra.mxu1 %v4631_v41  ;;  %4917 = vmatpush.msrb.mxu0 %v4631_v41 }
0x731e   :  { %v4532_v23 = vadd.f32 %v4531_v7, %v4529_v28  ;;  %v4629_v7 = vld [vmem:[#allocation12 + $0x28] sm:$0xff]  ;;  %v4628_v28 = vld [vmem:[#allocation12 + $0x20] sm:$0xff] }
0x731f   :  { %4673 = vmatpush.msra.mxu1 %v4630_v17  ;;  %4918 = vmatpush.msrb.mxu0 %v4630_v17 }
0x7320   :  { %5871 = vtanh.f32 %v4532_v23  ;;  %v5498_v54 = vmul.f32 -1.442695, %v4532_v23  ;;  %v4627_v23 = vld [vmem:[#allocation12 + $0x18] sm:$0xff] }
0x7321   :  { %4674 = vmatpush.msra.mxu1 %v4629_v7  ;;  %4919 = vmatpush.msrb.mxu0 %v4629_v7 }
0x7322   :  { %5873 = vpow2.f32 %v5498_v54 }
0x7323   :  { %4675 = vmatpush.msra.mxu1 %v4628_v28  ;;  %4920 = vmatpush.msrb.mxu0 %v4628_v28 }
0x7325   :  { %4676 = vmatpush.msra.mxu1 %v4627_v23  ;;  %4921 = vmatpush.msrb.mxu0 %v4627_v23 }
0x7326   :  { %v5872_v24 = vpop.eup %5871 }
0x7327   :  { %4555 = vrot.lane.b32.xlu2 %v5872_v24, %s6206_s25 }
0x7328   :  { %v5874_v37 = vpop.eup %5873 }
0x7329   :  { %v4536_v46 = vadd.f32 1.0, %v5874_v37 }
0x732b   :  { %5875 = vrcp.f32 %v4536_v46  ;;  %v4548_v1 = vand.u32 2147483648, %v4536_v46  ;;  %vm4542_vm4 = vweird.f32 %v4536_v46  ;;  %v4546_v10 = vand.u32 2147483647, %v4536_v46 }
0x732d   :  { %v4549_v8 = vor.u32 1.1754944e-38, %v4548_v1  ;;  %vm4547_vm7 = vcmp.eq.f32.partialorder %v4546_v10, 8.507059e+37 }
0x7331   :  { %v5876_v51 = vpop.eup %5875 }
0x7332   :  { %v4538_v52 = vmul.f32 %v5876_v51, %v4536_v46  ;;  %vm4543_vm3 = vweird.f32 %v5876_v51 }
0x7333   :  { %vm4544_vm6 = vmor %vm4542_vm4, %vm4543_vm3 }
0x7334   :  { %v4539_v53 = vsub.f32 1.0, %v4538_v52  ;;  %v4625_v52 = vld [vmem:[#allocation12 + $0x8] sm:$0xff] }
0x7336   :  { %v4540_v5 = vmul.f32 %v5876_v51, %v4539_v53  ;;  %v4624_v53 = vld [vmem:[#allocation12] sm:$0xff] }
0x7338   :  { %v4541_v20 = vadd.f32 %v5876_v51, %v4540_v5 }
0x733a   :  { %v4545_v31 = vsel %vm4544_vm6, %v5876_v51, %v4541_v20  ;;  %v4626_v51 = vld [vmem:[#allocation12 + $0x10] sm:$0xff] }
0x733b   :  { %v4550_v27 = vsel %vm4547_vm7, %v4549_v8, %v4545_v31  ;;  %4677 = vmatpush.msra.mxu1 %v4626_v51  ;;  %4922 = vmatpush.msrb.mxu0 %v4626_v51  ;;  %v4661_v8 = vpop.f32.mrf.mxu3 }
0x733c   :  { %v4553_v11 = vmul.f32 %v4550_v27, %v7375_v4 }
0x733d   :  { %4678 = vmatpush.msra.mxu1 %v4625_v52  ;;  %4923 = vmatpush.msrb.mxu0 %v4625_v52 }
0x733f   :  { %4679 = vmatpush.msra.mxu1 %v4624_v53  ;;  %4924 = vmatpush.msrb.mxu0 %v4624_v53 }
0x7341   :  { %5154 = vmatpush.msrb.mxu1 %v4639_v60 }
0x7343   :  { %5155 = vmatpush.msrb.mxu1 %v4638_v61 }
0x7345   :  { %5156 = vmatpush.msrb.mxu1 %v4637_v62 }
0x7347   :  { %5157 = vmatpush.msrb.mxu1 %v4636_v63 }
0x7349   :  { %5158 = vmatpush.msrb.mxu1 %v4635_v49 }
0x734b   :  { %5159 = vmatpush.msrb.mxu1 %v4634_v45 }
0x734d   :  { %5160 = vmatpush.msrb.mxu1 %v4633_v0 }
0x734f   :  { %5161 = vmatpush.msrb.mxu1 %v4632_v29 }
0x7351   :  { %5162 = vmatpush.msrb.mxu1 %v4631_v41 }
0x7353   :  { %5163 = vmatpush.msrb.mxu1 %v4630_v17 }
0x7355   :  { %5164 = vmatpush.msrb.mxu1 %v4629_v7  ;;  %v4776_v7 = vld [vmem:[%s7616_s13] sm:$0x1] }
0x7357   :  { %5165 = vmatpush.msrb.mxu1 %v4628_v28 }
0x7359   :  { %5166 = vmatpush.msrb.mxu1 %v4627_v23 }
0x735b   :  { %5167 = vmatpush.msrb.mxu1 %v4626_v51 }
0x735d   :  { %5168 = vmatpush.msrb.mxu1 %v4625_v52 }
0x735f   :  { %5169 = vmatpush.msrb.mxu1 %v4624_v53 }
0x7381   :  { %v4556_v21 = vpop.permute.xlu2 %4555 }
0x7382   :  { %v4558_v48 = vmul.f32 %v4556_v21, %v4550_v27 }
0x7384   :  { %4560 = vrot.lane.b32.xlu0 %v4558_v48, %s6206_s25 }
0x73f6   :  { %v4561_v9 = vpop.permute.xlu0 %4560 }
0x73f7   :  { %v7445_v22 = vadd.f32 %v4561_v9, %v4553_v11 }
0x73f9   :  { %5877 = vtanh.f32 %v7445_v22 }
0x73ff   :  { %v5878_v38 = vpop.eup %5877 }
0x7400   :  { %4566 = vrot.lane.b32.xlu1 %v5878_v38, %s6206_s25 }
0x7472   :  { %v4567_v4 = vpop.permute.xlu1 %4566 }
0x7473   :  { %v4569_v33 = vmul.f32 %v4567_v4, %v4550_v27  ;;  %v4684_v27 = vld [vmem:[%s7613_s10] sm:$0x1] }
0x7475   :  { %4576 = vrot.lane.b32.xlu2 %v4569_v33, %s6207_s3 }
0x74cf   :  { %v4577_v55 = vpop.permute.xlu2 %4576 }
0x74d0   :  { %5499 = vmatmul.msk.f32.vlgmr.msra.gmra.mxu2 %vm303_vm12, %v4577_v55 }
0x74d1   :  { %4837 = vmatpush.msra.mxu2 %v7449_v36 }
0x74d3   :  { %4838 = vmatpush.msra.mxu2 %v7451_v13 }
0x74d5   :  { %4839 = vmatpush.msra.mxu2 %v7454_v40 }
0x74d7   :  { %4840 = vmatpush.msra.mxu2 %v7457_v42 }
0x74d8   :  { %5504 = vmatmul.msk.f32.vlgmr.msrb.gmra.mxu2 %vm303_vm12, %v4577_v55 }
0x74d9   :  { %4988 = vmatpush.msrb.mxu2 %v7380_v32 }
0x74db   :  { %4989 = vmatpush.msrb.mxu2 %v7382_v34 }
0x74dd   :  { %4990 = vmatpush.msrb.mxu2 %v7385_v15 }
0x74df   :  { %4991 = vmatpush.msrb.mxu2 %v7388_v57 }
0x7553   :  { %v4597_v56 = vpop.f32.mrf.mxu2 }
0x7554   :  { %v4598_v44 = vadd.f32 %v4597_v56, %v4574_v16 }
0x7556   :  { %4600 = vst [vmem:[#allocation19 + $0xc] sm:$0x1] %v4598_v44  ;;  %v4601_v47 = vsel %vm854_vm5, %v4598_v44, -inf }
0x7557   :  { %4602 = vmax.xlane.f32.xlu0 %v4601_v47 }
0x75ca   :  { %v4603_v58 = vpop.xlane.xlu0 %4602 }
0x75cb   :  { %vm4604_vm8 = vcmp.eq.f32.partialorder %v4598_v44, %v4603_v58 }
0x75cc   :  { %v4605_v59 = vsel %vm4604_vm8, %v6358_v6, 128 }
0x75cd   :  { %v4606_v30 = vsel %vm854_vm5, %v4605_v59, 2147483647 }
0x75ce   :  { %v4608_v12 = vshra.s32 %v4606_v30, 16  ;;  %v4607_v24 = vand.u32 65535, %v4606_v30 }
0x75d0   :  { %v4610_v26 = vcvt.s32.f32 %v4608_v12  ;;  %v4609_v37 = vcvt.s32.f32 %v4607_v24 }
0x75d2   :  { %4611 = vmin.xlane.f32.xlu1 %v4610_v26 }
0x7645   :  { %v4612_v54 = vpop.xlane.xlu1 %4611 }
0x7646   :  { %vm4613_vm9 = vcmp.eq.f32.partialorder %v4610_v26, %v4612_v54  ;;  %v4618_v5 = vcvt.f32.s32 %v4612_v54 }
0x7647   :  { %v4614_v46 = vsel %vm4613_vm9, %v4609_v37, inf }
0x7648   :  { %4615 = vmin.xlane.f32.xlu2 %v4614_v46  ;;  %v4619_v1 = vshll.u32 %v4618_v5, 16 }
0x76bb   :  { %v4616_v20 = vpop.xlane.xlu2 %4615 }
0x76bc   :  { %v4617_v10 = vcvt.f32.s32 %v4616_v20 }
0x76be   :  { %v4620_v31 = vadd.s32 %v4619_v1, %v4617_v10 }
0x76c0   :  { %vm4621_vm10 = vcmp.eq.s32.totalorder %v6358_v6, %v4620_v31 }
0x76c1   :  { %5502 = vmatmul.msk.f32.vlgmr.msra.gmra.mxu1 %vm4621_vm10, %v6208_v18 }
0x773e   :  { %v4681_v21 = vpop.f32.mrf.mxu1 }
0x773f   :  { %v4682_v48 = vadd.f32 %v4681_v21, %v4661_v8 }
0x7741   :  { %v4685_v11 = vadd.f32 %v4684_v27, %v4682_v48 }
0x7743   :  { %5879 = vtanh.f32 %v4685_v11  ;;  %v5503_v38 = vmul.f32 -1.442695, %v4685_v11 }
0x7745   :  { %5881 = vpow2.f32 %v5503_v38 }
0x7749   :  { %v5880_v9 = vpop.eup %5879 }
0x774a   :  { %4708 = vrot.lane.b32.xlu0 %v5880_v9, %s6206_s25 }
0x774b   :  { %v5882_v4 = vpop.eup %5881 }
0x774c   :  { %v4689_v33 = vadd.f32 1.0, %v5882_v4 }
0x774e   :  { %5883 = vrcp.f32 %v4689_v33  ;;  %v4701_v58 = vand.u32 2147483648, %v4689_v33  ;;  %vm4695_vm13 = vweird.f32 %v4689_v33  ;;  %v4699_v59 = vand.u32 2147483647, %v4689_v33 }
0x7750   :  { %v4702_v12 = vor.u32 1.1754944e-38, %v4701_v58  ;;  %vm4700_vm15 = vcmp.eq.f32.partialorder %v4699_v59, 8.507059e+37 }
0x7754   :  { %v5884_v55 = vpop.eup %5883 }
0x7755   :  { %v4691_v16 = vmul.f32 %v5884_v55, %v4689_v33  ;;  %vm4696_vm11 = vweird.f32 %v5884_v55 }
0x7756   :  { %vm4697_vm14 = vmor %vm4695_vm13, %vm4696_vm11 }
0x7757   :  { %v4692_v56 = vsub.f32 1.0, %v4691_v16 }
0x7759   :  { %v4693_v44 = vmul.f32 %v5884_v55, %v4692_v56 }
0x775b   :  { %v4694_v47 = vadd.f32 %v5884_v55, %v4693_v44 }
0x775d   :  { %v4698_v30 = vsel %vm4697_vm14, %v5884_v55, %v4694_v47 }
0x775e   :  { %v4703_v60 = vsel %vm4700_vm15, %v4702_v12, %v4698_v30 }
0x775f   :  { %v4706_v62 = vmul.f32 %v4703_v60, %v7408_v50  ;;  %v4748_v50 = vpop.f32.mrf.mxu2 }
0x77bc   :  { %v4709_v26 = vpop.permute.xlu0 %4708 }
0x77bd   :  { %v4711_v61 = vmul.f32 %v4709_v26, %v4703_v60 }
0x77bf   :  { %4713 = vrot.lane.b32.xlu2 %v4711_v61, %s6206_s25 }
0x7819   :  { %v4714_v63 = vpop.permute.xlu2 %4713 }
0x781a   :  { %v7490_v49 = vadd.f32 %v4714_v63, %v4706_v62  ;;  %v4929_v63 = vld [vmem:[%s7613_s10] sm:$0x1] }
0x781c   :  { %5885 = vtanh.f32 %v7490_v49 }
0x7822   :  { %v5886_v45 = vpop.eup %5885 }
0x7823   :  { %4719 = vrot.lane.b32.xlu1 %v5886_v45, %s6206_s25 }
0x7895   :  { %v4720_v0 = vpop.permute.xlu1 %4719 }
0x7896   :  { %v4722_v29 = vmul.f32 %v4720_v0, %v4703_v60 }
0x7898   :  { %4752 = vrot.lane.b32.xlu0 %v4722_v29, %s6207_s3 }
0x790a   :  { %v4753_v41 = vpop.permute.xlu0 %4752 }
0x790b   :  { %5505 = vmatmul.msk.f32.vlgmr.msrb.gmra.mxu3 %vm303_vm12, %v4753_v41 }
0x790c   :  { %5013 = vmatpush.msrb.mxu3 %v7412_v25 }
0x790e   :  { %5014 = vmatpush.msrb.mxu3 %v7414_v14 }
0x7910   :  { %5015 = vmatpush.msrb.mxu3 %v7417_v35 }
0x7912   :  { %5016 = vmatpush.msrb.mxu3 %v7420_v2 }
0x7913   :  { %5509 = vmatmul.msk.f32.vlgmr.msra.gmra.mxu3 %vm303_vm12, %v4753_v41 }
0x7914   :  { %5146 = vmatpush.msra.mxu3 %v7355_v3 }
0x7916   :  { %5147 = vmatpush.msra.mxu3 %v7357_v39 }
0x7918   :  { %5148 = vmatpush.msra.mxu3 %v7360_v43 }
0x791a   :  { %5149 = vmatpush.msra.mxu3 %v7363_v19 }
0x798e   :  { %v4773_v17 = vpop.f32.mrf.mxu3 }
0x798f   :  { %v4774_v28 = vadd.f32 %v4773_v17, %v4748_v50 }
0x7991   :  { %v4777_v23 = vadd.f32 %v4776_v7, %v4774_v28 }
0x7993   :  { %5887 = vtanh.f32 %v4777_v23  ;;  %v5506_v54 = vmul.f32 -1.442695, %v4777_v23 }
0x7995   :  { %5889 = vpow2.f32 %v5506_v54 }
0x7996   :  { %v4906_v61 = vpop.f32.mrf.mxu3 }
0x7999   :  { %v5888_v24 = vpop.eup %5887 }
0x799a   :  { %4800 = vrot.lane.b32.xlu2 %v5888_v24, %s6206_s25 }
0x799b   :  { %v5890_v3 = vpop.eup %5889 }
0x799c   :  { %v4781_v39 = vadd.f32 1.0, %v5890_v3 }
0x799e   :  { %5891 = vrcp.f32 %v4781_v39  ;;  %v4793_v52 = vand.u32 2147483648, %v4781_v39  ;;  %vm4787_vm1 = vweird.f32 %v4781_v39  ;;  %v4791_v53 = vand.u32 2147483647, %v4781_v39 }
0x79a0   :  { %v4794_v20 = vor.u32 1.1754944e-38, %v4793_v52  ;;  %vm4792_vm3 = vcmp.eq.f32.partialorder %v4791_v53, 8.507059e+37 }
0x79a4   :  { %v5892_v43 = vpop.eup %5891 }
0x79a5   :  { %v4783_v37 = vmul.f32 %v5892_v43, %v4781_v39  ;;  %vm4788_vm0 = vweird.f32 %v5892_v43 }
0x79a6   :  { %vm4789_vm2 = vmor %vm4787_vm1, %vm4788_vm0 }
0x79a7   :  { %v4784_v19 = vsub.f32 1.0, %v4783_v37 }
0x79a9   :  { %v4785_v46 = vmul.f32 %v5892_v43, %v4784_v19 }
0x79ab   :  { %v4786_v51 = vadd.f32 %v5892_v43, %v4785_v46 }
0x79ad   :  { %v4790_v5 = vsel %vm4789_vm2, %v5892_v43, %v4786_v51 }
0x79ae   :  { %v4795_v10 = vsel %vm4792_vm3, %v4794_v20, %v4790_v5 }
0x79af   :  { %v4798_v8 = vmul.f32 %v4795_v10, %v7445_v22  ;;  %v4819_v22 = vld [vmem:[%s7618_s15] sm:$0x1] }
0x79f4   :  { %v4801_v1 = vpop.permute.xlu2 %4800 }
0x79f5   :  { %v4803_v31 = vmul.f32 %v4801_v1, %v4795_v10 }
0x79f7   :  { %4805 = vrot.lane.b32.xlu0 %v4803_v31, %s6206_s25 }
0x7a69   :  { %v4806_v21 = vpop.permute.xlu0 %4805 }
0x7a6a   :  { %v7511_v27 = vadd.f32 %v4806_v21, %v4798_v8  ;;  %v5021_v21 = vld [vmem:[%s7616_s13] sm:$0x1] }
0x7a6c   :  { %5893 = vtanh.f32 %v7511_v27 }
0x7a72   :  { %v5894_v48 = vpop.eup %5893 }
0x7a73   :  { %4811 = vrot.lane.b32.xlu1 %v5894_v48, %s6206_s25 }
0x7ae5   :  { %v4812_v11 = vpop.permute.xlu1 %4811 }
0x7ae6   :  { %v4814_v9 = vmul.f32 %v4812_v11, %v4795_v10 }
0x7ae8   :  { %4821 = vrot.lane.b32.xlu2 %v4814_v9, %s6207_s3 }
0x7b42   :  { %v4822_v38 = vpop.permute.xlu2 %4821 }
0x7b43   :  { %5507 = vmatmul.msk.f32.vlgmr.msra.gmra.mxu2 %vm303_vm12, %v4822_v38 }
0x7b44   :  { %5082 = vmatpush.msra.mxu2 %v7449_v36 }
0x7b46   :  { %5083 = vmatpush.msra.mxu2 %v7451_v13 }
0x7b48   :  { %5084 = vmatpush.msra.mxu2 %v7454_v40 }
0x7b4a   :  { %5085 = vmatpush.msra.mxu2 %v7457_v42 }
0x7b4b   :  { %5512 = vmatmul.msk.f32.vlgmr.msrb.gmra.mxu2 %vm303_vm12, %v4822_v38 }
0x7b4c   :  { %5233 = vmatpush.msrb.mxu2 %v7380_v32 }
0x7b4e   :  { %5234 = vmatpush.msrb.mxu2 %v7382_v34 }
0x7b50   :  { %5235 = vmatpush.msrb.mxu2 %v7385_v15 }
0x7b52   :  { %5236 = vmatpush.msrb.mxu2 %v7388_v57 }
0x7bc6   :  { %v4842_v4 = vpop.f32.mrf.mxu2 }
0x7bc7   :  { %v4843_v33 = vadd.f32 %v4842_v4, %v4819_v22 }
0x7bc9   :  { %4845 = vst [vmem:[#allocation19 + $0xd] sm:$0x1] %v4843_v33  ;;  %v4846_v55 = vsel %vm854_vm5, %v4843_v33, -inf }
0x7bca   :  { %4847 = vmax.xlane.f32.xlu0 %v4846_v55 }
0x7c3d   :  { %v4848_v16 = vpop.xlane.xlu0 %4847 }
0x7c3e   :  { %vm4849_vm4 = vcmp.eq.f32.partialorder %v4843_v33, %v4848_v16 }
0x7c3f   :  { %v4850_v32 = vsel %vm4849_vm4, %v6358_v6, 128 }
0x7c40   :  { %v4851_v34 = vsel %vm854_vm5, %v4850_v32, 2147483647 }
0x7c41   :  { %v4853_v56 = vshra.s32 %v4851_v34, 16  ;;  %v4852_v57 = vand.u32 65535, %v4851_v34 }
0x7c43   :  { %v4855_v15 = vcvt.s32.f32 %v4853_v56  ;;  %v4854_v47 = vcvt.s32.f32 %v4852_v57 }
0x7c45   :  { %4856 = vmin.xlane.f32.xlu1 %v4855_v15 }
0x7cb8   :  { %v4857_v44 = vpop.xlane.xlu1 %4856 }
0x7cb9   :  { %vm4858_vm6 = vcmp.eq.f32.partialorder %v4855_v15, %v4857_v44  ;;  %v4863_v59 = vcvt.f32.s32 %v4857_v44 }
0x7cba   :  { %v4859_v58 = vsel %vm4858_vm6, %v4854_v47, inf }
0x7cbb   :  { %4860 = vmin.xlane.f32.xlu2 %v4859_v58  ;;  %v4864_v12 = vshll.u32 %v4863_v59, 16 }
0x7d2e   :  { %v4861_v30 = vpop.xlane.xlu2 %4860 }
0x7d2f   :  { %v4862_v26 = vcvt.f32.s32 %v4861_v30 }
0x7d31   :  { %v4865_v60 = vadd.s32 %v4864_v12, %v4862_v26 }
0x7d33   :  { %vm4866_vm7 = vcmp.eq.s32.totalorder %v6358_v6, %v4865_v60 }
0x7d34   :  { %5510 = vmatmul.msk.f32.vlgmr.msrb.gmra.mxu0 %vm4866_vm7, %v6208_v18 }
0x7db1   :  { %v4926_v62 = vpop.f32.mrf.mxu0 }
0x7db2   :  { %v4927_v45 = vadd.f32 %v4926_v62, %v4906_v61 }
0x7db4   :  { %v4930_v0 = vadd.f32 %v4929_v63, %v4927_v45 }
0x7db6   :  { %5895 = vtanh.f32 %v4930_v0  ;;  %v5511_v41 = vmul.f32 -1.442695, %v4930_v0 }
0x7db8   :  { %5897 = vpow2.f32 %v5511_v41 }
0x7dbc   :  { %v5896_v29 = vpop.eup %5895 }
0x7dbd   :  { %4953 = vrot.lane.b32.xlu0 %v5896_v29, %s6206_s25 }
0x7dbe   :  { %v5898_v50 = vpop.eup %5897 }
0x7dbf   :  { %v4934_v17 = vadd.f32 1.0, %v5898_v50 }
0x7dc1   :  { %5899 = vrcp.f32 %v4934_v17  ;;  %v4946_v3 = vand.u32 2147483648, %v4934_v17  ;;  %vm4940_vm9 = vweird.f32 %v4934_v17  ;;  %v4944_v39 = vand.u32 2147483647, %v4934_v17 }
0x7dc3   :  { %v4947_v37 = vor.u32 1.1754944e-38, %v4946_v3  ;;  %vm4945_vm11 = vcmp.eq.f32.partialorder %v4944_v39, 8.507059e+37  ;;  %v5174_v3 = vld [vmem:[%s7613_s10] sm:$0x1] }
0x7dc7   :  { %v5900_v7 = vpop.eup %5899 }
0x7dc8   :  { %v4936_v28 = vmul.f32 %v5900_v7, %v4934_v17  ;;  %vm4941_vm8 = vweird.f32 %v5900_v7 }
0x7dc9   :  { %vm4942_vm10 = vmor %vm4940_vm9, %vm4941_vm8 }
0x7dca   :  { %v4937_v23 = vsub.f32 1.0, %v4936_v28 }
0x7dcc   :  { %v4938_v24 = vmul.f32 %v5900_v7, %v4937_v23 }
0x7dce   :  { %v4939_v54 = vadd.f32 %v5900_v7, %v4938_v24 }
0x7dd0   :  { %v4943_v43 = vsel %vm4942_vm10, %v5900_v7, %v4939_v54 }
0x7dd1   :  { %v4948_v46 = vsel %vm4945_vm11, %v4947_v37, %v4943_v43 }
0x7dd2   :  { %v4951_v52 = vmul.f32 %v4948_v46, %v7490_v49  ;;  %v4993_v49 = vpop.f32.mrf.mxu2 }
0x7e2f   :  { %v4954_v19 = vpop.permute.xlu0 %4953 }
0x7e30   :  { %v4956_v51 = vmul.f32 %v4954_v19, %v4948_v46 }
0x7e32   :  { %4958 = vrot.lane.b32.xlu1 %v4956_v51, %s6206_s25 }
0x7ea4   :  { %v4959_v53 = vpop.permute.xlu1 %4958 }
0x7ea5   :  { %v7540_v5 = vadd.f32 %v4959_v53, %v4951_v52 }
0x7ea7   :  { %5901 = vtanh.f32 %v7540_v5 }
0x7ead   :  { %v5902_v20 = vpop.eup %5901 }
0x7eae   :  { %4964 = vrot.lane.b32.xlu2 %v5902_v20, %s6206_s25 }
0x7f08   :  { %v4965_v1 = vpop.permute.xlu2 %4964 }
0x7f09   :  { %v4967_v10 = vmul.f32 %v4965_v1, %v4948_v46 }
0x7f0b   :  { %4997 = vrot.lane.b32.xlu0 %v4967_v10, %s6207_s3 }
0x7f7d   :  { %v4998_v31 = vpop.permute.xlu0 %4997 }
0x7f7e   :  { %5513 = vmatmul.msk.f32.vlgmr.msrb.gmra.mxu3 %vm303_vm12, %v4998_v31 }
0x7f7f   :  { %5258 = vmatpush.msrb.mxu3 %v7412_v25 }
0x7f81   :  { %5259 = vmatpush.msrb.mxu3 %v7414_v14 }
0x7f83   :  { %5260 = vmatpush.msrb.mxu3 %v7417_v35 }
0x7f85   :  { %5261 = vmatpush.msrb.mxu3 %v7420_v2 }
0x7f86   :  { %5517 = vmatmul.msk.f32.vlgmr.msra.gmra.mxu3 %vm303_vm12, %v4998_v31 }
0x8001   :  { %v5018_v8 = vpop.f32.mrf.mxu3 }
0x8002   :  { %v5019_v48 = vadd.f32 %v5018_v8, %v4993_v49 }
0x8004   :  { %v5022_v11 = vadd.f32 %v5021_v21, %v5019_v48 }
0x8006   :  { %5903 = vtanh.f32 %v5022_v11  ;;  %v5514_v25 = vmul.f32 -1.442695, %v5022_v11 }
0x8008   :  { %5905 = vpow2.f32 %v5514_v25 }
0x8009   :  { %v5151_v24 = vpop.f32.mrf.mxu3 }
0x800c   :  { %v5904_v9 = vpop.eup %5903 }
0x800d   :  { %5045 = vrot.lane.b32.xlu1 %v5904_v9, %s6206_s25 }
0x800e   :  { %v5906_v14 = vpop.eup %5905 }
0x800f   :  { %v5026_v35 = vadd.f32 1.0, %v5906_v14 }
0x8011   :  { %5907 = vrcp.f32 %v5026_v35  ;;  %v5038_v55 = vand.u32 2147483648, %v5026_v35  ;;  %vm5032_vm14 = vweird.f32 %v5026_v35  ;;  %v5036_v16 = vand.u32 2147483647, %v5026_v35 }
0x8013   :  { %v5039_v34 = vor.u32 1.1754944e-38, %v5038_v55  ;;  %vm5037_vm0 = vcmp.eq.f32.partialorder %v5036_v16, 8.507059e+37 }
0x8017   :  { %v5908_v2 = vpop.eup %5907 }
0x8018   :  { %v5028_v38 = vmul.f32 %v5908_v2, %v5026_v35  ;;  %vm5033_vm13 = vweird.f32 %v5908_v2 }
0x8019   :  { %vm5034_vm15 = vmor %vm5032_vm14, %vm5033_vm13 }
0x801a   :  { %v5029_v22 = vsub.f32 1.0, %v5028_v38 }
0x801c   :  { %v5030_v4 = vmul.f32 %v5908_v2, %v5029_v22 }
0x801e   :  { %v5031_v33 = vadd.f32 %v5908_v2, %v5030_v4 }
0x8020   :  { %v5035_v32 = vsel %vm5034_vm15, %v5908_v2, %v5031_v33  ;;  %v5266_v33 = vld [vmem:[%s7616_s13] sm:$0x1] }
0x8021   :  { %v5040_v15 = vsel %vm5037_vm0, %v5039_v34, %v5035_v32 }
0x8022   :  { %v5043_v44 = vmul.f32 %v5040_v15, %v7511_v27  ;;  %v5064_v27 = vld [vmem:[%s7618_s15] sm:$0x1] }
0x807f   :  { %v5046_v56 = vpop.permute.xlu1 %5045 }
0x8080   :  { %v5048_v57 = vmul.f32 %v5046_v56, %v5040_v15 }
0x8082   :  { %5050 = vrot.lane.b32.xlu0 %v5048_v57, %s6206_s25 }
0x80f4   :  { %v5051_v47 = vpop.permute.xlu0 %5050 }
0x80f5   :  { %v7557_v58 = vadd.f32 %v5051_v47, %v5043_v44 }
0x80f7   :  { %5909 = vtanh.f32 %v7557_v58 }
0x80fd   :  { %v5910_v59 = vpop.eup %5909 }
0x80fe   :  { %5056 = vrot.lane.b32.xlu2 %v5910_v59, %s6206_s25 }
0x8158   :  { %v5057_v30 = vpop.permute.xlu2 %5056 }
0x8159   :  { %v5059_v12 = vmul.f32 %v5057_v30, %v5040_v15 }
0x815b   :  { %5066 = vrot.lane.b32.xlu1 %v5059_v12, %s6207_s3 }
0x81cd   :  { %v5067_v26 = vpop.permute.xlu1 %5066 }
0x81ce   :  { %5515 = vmatmul.msk.f32.vlgmr.msra.gmra.mxu2 %vm303_vm12, %v5067_v26 }
0x81cf   :  { %5327 = vmatpush.msra.mxu2 %v7449_v36 }
0x81d1   :  { %5328 = vmatpush.msra.mxu2 %v7451_v13 }
0x81d3   :  { %5329 = vmatpush.msra.mxu2 %v7454_v40 }
0x81d5   :  { %5330 = vmatpush.msra.mxu2 %v7457_v42 }
0x81d6   :  { %5520 = vmatmul.msk.f32.vlgmr.msrb.gmra.mxu2 %vm303_vm12, %v5067_v26 }
0x8251   :  { %v5087_v60 = vpop.f32.mrf.mxu2 }
0x8252   :  { %v5088_v61 = vadd.f32 %v5087_v60, %v5064_v27 }
0x8254   :  { %5090 = vst [vmem:[#allocation19 + $0xe] sm:$0x1] %v5088_v61  ;;  %v5091_v62 = vsel %vm854_vm5, %v5088_v61, -inf }
0x8255   :  { %5092 = vmax.xlane.f32.xlu0 %v5091_v62 }
0x8259   :  { %v5238_v22 = vpop.f32.mrf.mxu2 }
0x82c8   :  { %v5093_v63 = vpop.xlane.xlu0 %5092 }
0x82c9   :  { %vm5094_vm1 = vcmp.eq.f32.partialorder %v5088_v61, %v5093_v63 }
0x82ca   :  { %v5095_v36 = vsel %vm5094_vm1, %v6358_v6, 128 }
0x82cb   :  { %v5096_v13 = vsel %vm854_vm5, %v5095_v36, 2147483647 }
0x82cc   :  { %v5098_v40 = vshra.s32 %v5096_v13, 16  ;;  %v5097_v45 = vand.u32 65535, %v5096_v13 }
0x82ce   :  { %v5100_v42 = vcvt.s32.f32 %v5098_v40  ;;  %v5099_v29 = vcvt.s32.f32 %v5097_v45 }
0x82d0   :  { %5101 = vmin.xlane.f32.xlu2 %v5100_v42 }
0x8343   :  { %v5102_v0 = vpop.xlane.xlu2 %5101 }
0x8344   :  { %vm5103_vm2 = vcmp.eq.f32.partialorder %v5100_v42, %v5102_v0  ;;  %v5108_v50 = vcvt.f32.s32 %v5102_v0 }
0x8345   :  { %v5104_v41 = vsel %vm5103_vm2, %v5099_v29, inf  ;;  %v5309_v29 = vld [vmem:[%s7618_s15] sm:$0x1] }
0x8346   :  { %5105 = vmin.xlane.f32.xlu1 %v5104_v41  ;;  %v5109_v7 = vshll.u32 %v5108_v50, 16 }
0x83b9   :  { %v5106_v17 = vpop.xlane.xlu1 %5105 }
0x83ba   :  { %v5107_v28 = vcvt.f32.s32 %v5106_v17 }
0x83bc   :  { %v5110_v23 = vadd.s32 %v5109_v7, %v5107_v28 }
0x83be   :  { %vm5111_vm3 = vcmp.eq.s32.totalorder %v6358_v6, %v5110_v23 }
0x83bf   :  { %5518 = vmatmul.msk.f32.vlgmr.msrb.gmra.mxu1 %vm5111_vm3, %v6208_v18 }
0x843c   :  { %v5171_v54 = vpop.f32.mrf.mxu1 }
0x843d   :  { %v5172_v39 = vadd.f32 %v5171_v54, %v5151_v24 }
0x843f   :  { %v5175_v43 = vadd.f32 %v5174_v3, %v5172_v39 }
0x8441   :  { %5911 = vtanh.f32 %v5175_v43  ;;  %v5519_v19 = vmul.f32 -1.442695, %v5175_v43 }
0x8443   :  { %5913 = vpow2.f32 %v5519_v19 }
0x8447   :  { %v5912_v37 = vpop.eup %5911 }
0x8448   :  { %5198 = vrot.lane.b32.xlu0 %v5912_v37, %s6206_s25 }
0x8449   :  { %v5914_v46 = vpop.eup %5913 }
0x844a   :  { %v5179_v51 = vadd.f32 1.0, %v5914_v46 }
0x844c   :  { %5915 = vrcp.f32 %v5179_v51  ;;  %v5191_v1 = vand.u32 2147483648, %v5179_v51  ;;  %vm5185_vm4 = vweird.f32 %v5179_v51  ;;  %v5189_v10 = vand.u32 2147483647, %v5179_v51 }
0x844e   :  { %v5192_v49 = vor.u32 1.1754944e-38, %v5191_v1  ;;  %vm5190_vm7 = vcmp.eq.f32.partialorder %v5189_v10, 8.507059e+37 }
0x8452   :  { %v5916_v6 = vpop.eup %5915 }
0x8453   :  { %v5181_v52 = vmul.f32 %v5916_v6, %v5179_v51  ;;  %vm5186_vm5 = vweird.f32 %v5916_v6 }
0x8454   :  { %vm5187_vm6 = vmor %vm5185_vm4, %vm5186_vm5 }
0x8455   :  { %v5182_v18 = vsub.f32 1.0, %v5181_v52 }
0x8457   :  { %v5183_v53 = vmul.f32 %v5916_v6, %v5182_v18 }
0x8459   :  { %v5184_v20 = vadd.f32 %v5916_v6, %v5183_v53 }
0x845b   :  { %v5188_v31 = vsel %vm5187_vm6, %v5916_v6, %v5184_v20 }
0x845c   :  { %v5193_v21 = vsel %vm5190_vm7, %v5192_v49, %v5188_v31 }
0x845d   :  { %v5196_v11 = vmul.f32 %v5193_v21, %v7540_v5 }
0x84ba   :  { %v5199_v8 = vpop.permute.xlu0 %5198 }
0x84bb   :  { %v5201_v48 = vmul.f32 %v5199_v8, %v5193_v21 }
0x84bd   :  { %5203 = vrot.lane.b32.xlu2 %v5201_v48, %s6206_s25 }
0x8517   :  { %v5204_v9 = vpop.permute.xlu2 %5203 }
0x8518   :  { %v5206_v25 = vadd.f32 %v5204_v9, %v5196_v11 }
0x851a   :  { %5917 = vtanh.f32 %v5206_v25 }
0x8520   :  { %v5918_v14 = vpop.eup %5917 }
0x8521   :  { %5209 = vrot.lane.b32.xlu1 %v5918_v14, %s6206_s25 }
0x8593   :  { %v5210_v35 = vpop.permute.xlu1 %5209 }
0x8594   :  { %v5212_v2 = vmul.f32 %v5210_v35, %v5193_v21 }
0x8596   :  { %5242 = vrot.lane.b32.xlu0 %v5212_v2, %s6207_s3 }
0x8608   :  { %v5243_v38 = vpop.permute.xlu0 %5242 }
0x8609   :  { %5521 = vmatmul.msk.f32.vlgmr.msrb.gmra.mxu3 %vm303_vm12, %v5243_v38 }
0x868c   :  { %v5263_v4 = vpop.f32.mrf.mxu3 }
0x868d   :  { %v5264_v5 = vadd.f32 %v5263_v4, %v5238_v22 }
0x868f   :  { %v5267_v55 = vadd.f32 %v5266_v33, %v5264_v5 }
0x8691   :  { %5919 = vtanh.f32 %v5267_v55  ;;  %v5522_v32 = vmul.f32 -1.442695, %v5267_v55 }
0x8693   :  { %5921 = vpow2.f32 %v5522_v32 }
0x8697   :  { %v5920_v16 = vpop.eup %5919 }
0x8698   :  { %5290 = vrot.lane.b32.xlu2 %v5920_v16, %s6206_s25 }
0x8699   :  { %v5922_v34 = vpop.eup %5921 }
0x869a   :  { %v5271_v56 = vadd.f32 1.0, %v5922_v34 }
0x869c   :  { %5923 = vrcp.f32 %v5271_v56  ;;  %v5283_v30 = vand.u32 2147483648, %v5271_v56  ;;  %vm5277_vm9 = vweird.f32 %v5271_v56  ;;  %v5281_v12 = vand.u32 2147483647, %v5271_v56 }
0x869e   :  { %v5284_v27 = vor.u32 1.1754944e-38, %v5283_v30  ;;  %vm5282_vm11 = vcmp.eq.f32.partialorder %v5281_v12, 8.507059e+37 }
0x86a2   :  { %v5924_v15 = vpop.eup %5923 }
0x86a3   :  { %v5273_v57 = vmul.f32 %v5924_v15, %v5271_v56  ;;  %vm5278_vm8 = vweird.f32 %v5924_v15 }
0x86a4   :  { %vm5279_vm10 = vmor %vm5277_vm9, %vm5278_vm8 }
0x86a5   :  { %v5274_v44 = vsub.f32 1.0, %v5273_v57 }
0x86a7   :  { %v5275_v47 = vmul.f32 %v5924_v15, %v5274_v44 }
0x86a9   :  { %v5276_v59 = vadd.f32 %v5924_v15, %v5275_v47 }
0x86ab   :  { %v5280_v26 = vsel %vm5279_vm10, %v5924_v15, %v5276_v59 }
0x86ac   :  { %v5285_v61 = vsel %vm5282_vm11, %v5284_v27, %v5280_v26 }
0x86ad   :  { %v5288_v63 = vmul.f32 %v5285_v61, %v7557_v58 }
0x86f2   :  { %v5291_v60 = vpop.permute.xlu2 %5290 }
0x86f3   :  { %v5293_v62 = vmul.f32 %v5291_v60, %v5285_v61 }
0x86f5   :  { %5295 = vrot.lane.b32.xlu0 %v5293_v62, %s6206_s25 }
0x8767   :  { %v5296_v36 = vpop.permute.xlu0 %5295 }
0x8768   :  { %v5298_v13 = vadd.f32 %v5296_v36, %v5288_v63 }
0x876a   :  { %5925 = vtanh.f32 %v5298_v13 }
0x8770   :  { %v5926_v40 = vpop.eup %5925 }
0x8771   :  { %5301 = vrot.lane.b32.xlu1 %v5926_v40, %s6206_s25 }
0x87e3   :  { %v5302_v42 = vpop.permute.xlu1 %5301 }
0x87e4   :  { %v5304_v45 = vmul.f32 %v5302_v42, %v5285_v61 }
0x87e6   :  { %5311 = vrot.lane.b32.xlu2 %v5304_v45, %s6207_s3 }
0x8840   :  { %v5312_v0 = vpop.permute.xlu2 %5311 }
0x8841   :  { %5523 = vmatmul.msk.f32.vlgmr.msra.gmra.mxu2 %vm303_vm12, %v5312_v0 }
0x88c4   :  { %v5332_v58 = vpop.f32.mrf.mxu2 }
0x88c5   :  { %v5333_v41 = vadd.f32 %v5332_v58, %v5309_v29 }
0x88c7   :  { %5335 = vst [vmem:[#allocation19 + $0xf] sm:$0x1] %v5333_v41 }
0x88c8   :  { %5348 = dma.vmem_to_hbm [thread:$0]  %s5341_s12, 256, %s5343_s18, [#allocation4], %s6194_s29, %s6194_s29, %s6195_s30  }
0x88c9   :  { %6191 = dma.done.wait [#allocation4], 256  }
0x88ca   :  { %6192 = vsyncadd [#allocation4], 4294967040 }
0x88cb   :  { %5353 = vsyncpa [#allocation3], 1 }
0x88cc   :  { %5354 = vsyncpa [#allocation8], 1 }
0x88cd   :  { %5355 = vsyncpa [#allocation11], 1 }
0x88ce   :  { %5356 = vsyncpa [#allocation14], 1 }
0x88cf   :  { %5357 = vsyncpa [#allocation17], 1 }
0x88d0   :  { %5358 = vsyncpa [#allocation4], 1 }
0x88d1   :  { %5359 = vsyncpa [#allocation5], 1 }

</bundles_post_ra>
